<compile_context>
chip_gen: v6e
topology: v6e:2x2x1
jax: 0.10.0
libtpu: 0.0.40
codegen_flags: <defaults>
</compile_context>

<pallas_src>
import functools

import jax
import jax.numpy as jnp
from jax.experimental import pallas as pl
from jax.experimental.pallas import tpu as pltpu


# Padded sizes (lane axis multiples of 128).
_K1P, _N1P = 1408, 4096   # 1328 -> 1408, 4000 -> 4096
_N2P = 512                # 400  -> 512
_N3P = 128                # 20   -> 128
_N4P = 128                # 2    -> 128


def _round_up(n, m):
    return ((n + m - 1) // m) * m


def _pad2d(a, rows, cols):
    r, c = a.shape
    return jnp.pad(a, ((0, rows - r), (0, cols - c)))


# ------------------------------------------------------------------------
# Fused kernel: the whole 4-layer MLP in one pallas_call.
# Grid axis j streams w1 N-blocks and the matching w2 K-blocks.
# ------------------------------------------------------------------------
def _fused_mlp_kernel(x_ref, w1_ref, b1_ref, w2_ref, b2_ref,
                      w3_ref, b3_ref, w4_ref, b4_ref,
                      o_ref, h2_acc):
    j = pl.program_id(0)

    @pl.when(j == 0)
    def _():
        h2_acc[...] = jnp.zeros_like(h2_acc)

    # Layer 1 partial: relu(x @ w1_j + b1_j)  (bf16 x bf16 -> f32 accum).
    h1 = jnp.maximum(
        jnp.dot(x_ref[...], w1_ref[...], preferred_element_type=jnp.float32)
        + b1_ref[...], 0.0)

    # Layer 2 partial accumulation over the streamed K-chunk of w2.
    h2_acc[...] += jnp.dot(h1.astype(jnp.bfloat16), w2_ref[...],
                           preferred_element_type=jnp.float32)

    @pl.when(j == pl.num_programs(0) - 1)
    def _():
        # Finalize layer 2, then the tiny layers 3 and 4.
        h2 = jnp.maximum(h2_acc[...] + b2_ref[...], 0.0)
        h3 = jnp.maximum(
            jnp.dot(h2.astype(jnp.bfloat16), w3_ref[...],
                    preferred_element_type=jnp.float32) + b3_ref[...], 0.0)
        # TODO(synk): Dropout(p=0.2) is identity at inference; training-mode
        # PRNG mask + 1/(1-p) scaling is not implemented.
        o = jnp.maximum(
            jnp.dot(h3.astype(jnp.bfloat16), w4_ref[...],
                    preferred_element_type=jnp.float32) + b4_ref[...], 0.0)
        o_ref[...] = o.astype(o_ref.dtype)


def fused_mlp(xp, prep, *, tn):
    Mp = xp.shape[0]
    assert _N1P % tn == 0 and Mp % 16 == 0
    grid = (_N1P // tn,)

    return pl.pallas_call(
        _fused_mlp_kernel,
        out_shape=jax.ShapeDtypeStruct((Mp, _N4P), jnp.float32),
        grid_spec=pltpu.PrefetchScalarGridSpec(
            num_scalar_prefetch=0,
            grid=grid,
            in_specs=[
                pl.BlockSpec((Mp, _K1P), lambda j: (0, 0)),    # x resident
                pl.BlockSpec((_K1P, tn), lambda j: (0, j)),    # stream w1
                pl.BlockSpec((1, tn), lambda j: (0, j)),       # b1 chunk
                pl.BlockSpec((tn, _N2P), lambda j: (j, 0)),    # stream w2 K-chunk
                pl.BlockSpec((1, _N2P), lambda j: (0, 0)),     # b2
                pl.BlockSpec((_N2P, _N3P), lambda j: (0, 0)),  # w3 resident
                pl.BlockSpec((1, _N3P), lambda j: (0, 0)),     # b3
                pl.BlockSpec((_N3P, _N4P), lambda j: (0, 0)),  # w4 resident
                pl.BlockSpec((1, _N4P), lambda j: (0, 0)),     # b4
            ],
            out_specs=pl.BlockSpec((Mp, _N4P), lambda j: (0, 0)),
            scratch_shapes=[pltpu.VMEM((Mp, _N2P), jnp.float32)],
        ),
        compiler_params=pltpu.CompilerParams(
            dimension_semantics=("arbitrary",),   # h2 reduction across j
            vmem_limit_bytes=32 * 1024 * 1024,    # headroom for v5e (16 MiB default)
        ),
    )(xp, prep["w1"], prep["b1"], prep["w2"], prep["b2"],
      prep["w3"], prep["b3"], prep["w4"], prep["b4"])


# ------------------------------------------------------------------------
# Parameters
# ------------------------------------------------------------------------
_DIMS = [(1328, 4000), (4000, 400), (400, 20), (20, 2)]


def init_params(key):
    """Deterministic f32 parameters matching nn.Linear, stored as (in, out)."""
    params = {}
    for idx, (fan_in, fan_out) in enumerate(_DIMS, start=1):
        key, kw, kb = jax.random.split(key, 3)
        bound = 1.0 / jnp.sqrt(fan_in)
        params[f"w{idx}"] = jax.random.uniform(
            kw, (fan_in, fan_out), jnp.float32, -bound, bound)
        params[f"b{idx}"] = jax.random.uniform(
            kb, (fan_out,), jnp.float32, -bound, bound)
    return params


def prepare_params(params):
    """One-time padding + bf16 cast of all weights (outside jit); f32 biases."""
    return dict(
        w1=_pad2d(params["w1"], _K1P, _N1P).astype(jnp.bfloat16),
        b1=_pad2d(params["b1"].reshape(1, -1), 1, _N1P),
        w2=_pad2d(params["w2"], _N1P, _N2P).astype(jnp.bfloat16),
        b2=_pad2d(params["b2"].reshape(1, -1), 1, _N2P),
        w3=_pad2d(params["w3"], _N2P, _N3P).astype(jnp.bfloat16),
        b3=_pad2d(params["b3"].reshape(1, -1), 1, _N3P),
        w4=_pad2d(params["w4"], _N3P, _N4P).astype(jnp.bfloat16),
        b4=_pad2d(params["b4"].reshape(1, -1), 1, _N4P),
    )


# ------------------------------------------------------------------------
# Forward
# ------------------------------------------------------------------------
@functools.partial(jax.jit, static_argnames=("tn1",))
def ds_predict_nn_forward(x, prep, *, tn1=2048):
    B, K = x.shape
    assert K == 1328
    # Pad M to a multiple of 16: bf16 packs 16 rows per vreg tile.
    Mp = _round_up(B, 16)
    xp = jnp.pad(x, ((0, Mp - B), (0, _K1P - K))).astype(jnp.bfloat16)

    out = fused_mlp(xp, prep, tn=tn1)   # (Mp, 128) f32
    return out[:B, :2]


if __name__ == "__main__":
    key = jax.random.PRNGKey(0)
    key, kx = jax.random.split(key)
    batch = 8
    x = jax.random.normal(kx, (batch, 1328), dtype=jnp.float32)

    params = init_params(key)
    prep = prepare_params(params)

    out = ds_predict_nn_forward(x, prep)
    out = jax.block_until_ready(out)

    # Pure-JAX f32 reference of the module math (dropout is identity in eval).
    ref = x
    for i in range(1, 5):
        ref = jnp.maximum(ref @ params[f"w{i}"] + params[f"b{i}"], 0.0)

    assert out.shape == (batch, 2)
    # Tolerance loosened vs. the pure-f32 reference because weights and the
    # streamed activations are bf16 (accumulation stays f32).
    assert jnp.allclose(out, ref, atol=1e-2, rtol=1e-2), (
        "max abs diff = %f" % float(jnp.max(jnp.abs(out - ref))))

    print("KERNEL_OK")
</pallas_src>

<mosaic_0001>
module attributes {stable_mosaic.version = 11 : i64} {
  func.func @_fused_mlp_kernel(%arg0: i32, %arg1: memref<16x1408xbf16, #tpu.memory_space<vmem>>, %arg2: memref<1408x2048xbf16, #tpu.memory_space<vmem>>, %arg3: memref<1x2048xf32, #tpu.memory_space<vmem>>, %arg4: memref<2048x512xbf16, #tpu.memory_space<vmem>>, %arg5: memref<1x512xf32, #tpu.memory_space<vmem>>, %arg6: memref<512x128xbf16, #tpu.memory_space<vmem>>, %arg7: memref<1x128xf32, #tpu.memory_space<vmem>>, %arg8: memref<128x128xbf16, #tpu.memory_space<vmem>>, %arg9: memref<1x128xf32, #tpu.memory_space<vmem>>, %arg10: memref<16x128xf32, #tpu.memory_space<vmem>>, %arg11: memref<16x512xf32, #tpu.memory_space<vmem>>) attributes {dimension_semantics = [#tpu.dimension_semantics<arbitrary>], iteration_bounds = array<i64: 2>, scalar_prefetch = 0 : i64, scratch_operands = 1 : i64, tpu.core_type = #tpu.core_type<tc>, window_params = [{pipeline_mode = #tpu.pipeline_mode<synchronous>, transform_indices = @transform_0, window_bounds = array<i64: 16, 1408>}, {transform_indices = @transform_1, window_bounds = array<i64: 1408, 2048>}, {transform_indices = @transform_2, window_bounds = array<i64: 1, 2048>}, {transform_indices = @transform_3, window_bounds = array<i64: 2048, 512>}, {pipeline_mode = #tpu.pipeline_mode<synchronous>, transform_indices = @transform_4, window_bounds = array<i64: 1, 512>}, {pipeline_mode = #tpu.pipeline_mode<synchronous>, transform_indices = @transform_5, window_bounds = array<i64: 512, 128>}, {pipeline_mode = #tpu.pipeline_mode<synchronous>, transform_indices = @transform_6, window_bounds = array<i64: 1, 128>}, {pipeline_mode = #tpu.pipeline_mode<synchronous>, transform_indices = @transform_7, window_bounds = array<i64: 128, 128>}, {pipeline_mode = #tpu.pipeline_mode<synchronous>, transform_indices = @transform_8, window_bounds = array<i64: 1, 128>}, {pipeline_mode = #tpu.pipeline_mode<synchronous>, transform_indices = @transform_9, window_bounds = array<i64: 16, 128>}]} {
    %c0_i32 = arith.constant 0 : i32
    %0 = arith.cmpi eq, %arg0, %c0_i32 : i32
    %1 = arith.extui %0 : i1 to i32
    %c0_i32_0 = arith.constant 0 : i32
    %2 = arith.cmpi ne, %1, %c0_i32_0 : i32
    scf.if %2 {
      %cst_15 = arith.constant 0.000000e+00 : f32
      %20 = vector.broadcast %cst_15 : f32 to vector<16x512xf32>
      %c0_16 = arith.constant 0 : index
      %c0_17 = arith.constant 0 : index
      %21 = vector.load %arg11[%c0_16, %c0_17] : memref<16x512xf32, #tpu.memory_space<vmem>>, vector<16x512xf32>
      tpu.vector_store %arg11[%c0_16, %c0_17], %20 {strides = array<i32>} : memref<16x512xf32, #tpu.memory_space<vmem>>, vector<16x512xf32>,
    } else {
    }
    %c0 = arith.constant 0 : index
    %c0_1 = arith.constant 0 : index
    %3 = vector.load %arg1[%c0, %c0_1] : memref<16x1408xbf16, #tpu.memory_space<vmem>>, vector<16x1408xbf16>
    %c0_2 = arith.constant 0 : index
    %c0_3 = arith.constant 0 : index
    %4 = vector.load %arg2[%c0_2, %c0_3] : memref<1408x2048xbf16, #tpu.memory_space<vmem>>, vector<1408x2048xbf16>
    %cst = arith.constant dense<0.000000e+00> : vector<16x2048xf32>
    %5 = tpu.matmul %3, %4, %cst {dimension_numbers = #tpu.dot_dimension_numbers<[1], [0], [0], [1], [0, 0, 1, 1], [], []>} : vector<16x1408xbf16>, vector<1408x2048xbf16>, vector<16x2048xf32> -> vector<16x2048xf32>
    %c0_4 = arith.constant 0 : index
    %c0_5 = arith.constant 0 : index
    %6 = vector.load %arg3[%c0_4, %c0_5] : memref<1x2048xf32, #tpu.memory_space<vmem>>, vector<1x2048xf32>
    %7 = vector.broadcast %6 : vector<1x2048xf32> to vector<16x2048xf32>
    %8 = arith.addf %5, %7 : vector<16x2048xf32>
    %cst_6 = arith.constant 0.000000e+00 : f32
    %9 = vector.broadcast %cst_6 : f32 to vector<16x2048xf32>
    %10 = arith.maximumf %8, %9 : vector<16x2048xf32>
    %c0_7 = arith.constant 0 : index
    %c0_8 = arith.constant 0 : index
    %11 = vector.load %arg11[%c0_7, %c0_8] : memref<16x512xf32, #tpu.memory_space<vmem>>, vector<16x512xf32>
    %12 = arith.truncf %10 : vector<16x2048xf32> to vector<16x2048xbf16>
    %c0_9 = arith.constant 0 : index
    %c0_10 = arith.constant 0 : index
    %13 = vector.load %arg4[%c0_9, %c0_10] : memref<2048x512xbf16, #tpu.memory_space<vmem>>, vector<2048x512xbf16>
    %cst_11 = arith.constant dense<0.000000e+00> : vector<16x512xf32>
    %14 = tpu.matmul %12, %13, %cst_11 {dimension_numbers = #tpu.dot_dimension_numbers<[1], [0], [0], [1], [0, 0, 1, 1], [], []>} : vector<16x2048xbf16>, vector<2048x512xbf16>, vector<16x512xf32> -> vector<16x512xf32>
    %15 = arith.addf %11, %14 : vector<16x512xf32>
    %c0_12 = arith.constant 0 : index
    %c0_13 = arith.constant 0 : index
    %16 = vector.load %arg11[%c0_12, %c0_13] : memref<16x512xf32, #tpu.memory_space<vmem>>, vector<16x512xf32>
    tpu.vector_store %arg11[%c0_12, %c0_13], %15 {strides = array<i32>} : memref<16x512xf32, #tpu.memory_space<vmem>>, vector<16x512xf32>,
    %c1_i32 = arith.constant 1 : i32
    %17 = arith.cmpi eq, %arg0, %c1_i32 : i32
    %18 = arith.extui %17 : i1 to i32
    %c0_i32_14 = arith.constant 0 : i32
    %19 = arith.cmpi ne, %18, %c0_i32_14 : i32
    scf.if %19 {
      %c0_15 = arith.constant 0 : index
      %c0_16 = arith.constant 0 : index
      %20 = vector.load %arg11[%c0_15, %c0_16] : memref<16x512xf32, #tpu.memory_space<vmem>>, vector<16x512xf32>
      %c0_17 = arith.constant 0 : index
      %c0_18 = arith.constant 0 : index
      %21 = vector.load %arg5[%c0_17, %c0_18] : memref<1x512xf32, #tpu.memory_space<vmem>>, vector<1x512xf32>
      %22 = vector.broadcast %21 : vector<1x512xf32> to vector<16x512xf32>
      %23 = arith.addf %20, %22 : vector<16x512xf32>
      %cst_19 = arith.constant 0.000000e+00 : f32
      %24 = vector.broadcast %cst_19 : f32 to vector<16x512xf32>
      %25 = arith.maximumf %23, %24 : vector<16x512xf32>
      %26 = arith.truncf %25 : vector<16x512xf32> to vector<16x512xbf16>
      %c0_20 = arith.constant 0 : index
      %c0_21 = arith.constant 0 : index
      %27 = vector.load %arg6[%c0_20, %c0_21] : memref<512x128xbf16, #tpu.memory_space<vmem>>, vector<512x128xbf16>
      %cst_22 = arith.constant dense<0.000000e+00> : vector<16x128xf32>
      %28 = tpu.matmul %26, %27, %cst_22 {dimension_numbers = #tpu.dot_dimension_numbers<[1], [0], [0], [1], [0, 0, 1, 1], [], []>} : vector<16x512xbf16>, vector<512x128xbf16>, vector<16x128xf32> -> vector<16x128xf32>
      %c0_23 = arith.constant 0 : index
      %c0_24 = arith.constant 0 : index
      %29 = vector.load %arg7[%c0_23, %c0_24] : memref<1x128xf32, #tpu.memory_space<vmem>>, vector<1x128xf32>
      %30 = vector.broadcast %29 : vector<1x128xf32> to vector<16x128xf32>
      %31 = arith.addf %28, %30 : vector<16x128xf32>
      %cst_25 = arith.constant 0.000000e+00 : f32
      %32 = vector.broadcast %cst_25 : f32 to vector<16x128xf32>
      %33 = arith.maximumf %31, %32 : vector<16x128xf32>
      %34 = arith.truncf %33 : vector<16x128xf32> to vector<16x128xbf16>
      %c0_26 = arith.constant 0 : index
      %c0_27 = arith.constant 0 : index
      %35 = vector.load %arg8[%c0_26, %c0_27] : memref<128x128xbf16, #tpu.memory_space<vmem>>, vector<128x128xbf16>
      %cst_28 = arith.constant dense<0.000000e+00> : vector<16x128xf32>
      %36 = tpu.matmul %34, %35, %cst_28 {dimension_numbers = #tpu.dot_dimension_numbers<[1], [0], [0], [1], [0, 0, 1, 1], [], []>} : vector<16x128xbf16>, vector<128x128xbf16>, vector<16x128xf32> -> vector<16x128xf32>
      %c0_29 = arith.constant 0 : index
      %c0_30 = arith.constant 0 : index
      %37 = vector.load %arg9[%c0_29, %c0_30] : memref<1x128xf32, #tpu.memory_space<vmem>>, vector<1x128xf32>
      %38 = vector.broadcast %37 : vector<1x128xf32> to vector<16x128xf32>
      %39 = arith.addf %36, %38 : vector<16x128xf32>
      %cst_31 = arith.constant 0.000000e+00 : f32
      %40 = vector.broadcast %cst_31 : f32 to vector<16x128xf32>
      %41 = arith.maximumf %39, %40 : vector<16x128xf32>
      %c0_32 = arith.constant 0 : index
      %c0_33 = arith.constant 0 : index
      %42 = vector.load %arg10[%c0_32, %c0_33] : memref<16x128xf32, #tpu.memory_space<vmem>>, vector<16x128xf32>
      tpu.vector_store %arg10[%c0_32, %c0_33], %41 {strides = array<i32>} : memref<16x128xf32, #tpu.memory_space<vmem>>, vector<16x128xf32>,
    } else {
    }
    return
  }
  func.func @transform_0(%arg0: i32) -> (i32, i32) {
    %c0_i32 = arith.constant 0 : i32
    %c0_i32_0 = arith.constant 0 : i32
    %c0_i32_1 = arith.constant 0 : i32
    return %c0_i32, %c0_i32_0 : i32, i32
  }
  func.func @transform_1(%arg0: i32) -> (i32, i32) {
    %c0_i32 = arith.constant 0 : i32
    %c0_i32_0 = arith.constant 0 : i32
    return %c0_i32, %arg0 : i32, i32
  }
  func.func @transform_2(%arg0: i32) -> (i32, i32) {
    %c0_i32 = arith.constant 0 : i32
    %c0_i32_0 = arith.constant 0 : i32
    return %c0_i32, %arg0 : i32, i32
  }
  func.func @transform_3(%arg0: i32) -> (i32, i32) {
    %c0_i32 = arith.constant 0 : i32
    %c0_i32_0 = arith.constant 0 : i32
    return %arg0, %c0_i32 : i32, i32
  }
  func.func @transform_4(%arg0: i32) -> (i32, i32) {
    %c0_i32 = arith.constant 0 : i32
    %c0_i32_0 = arith.constant 0 : i32
    %c0_i32_1 = arith.constant 0 : i32
    return %c0_i32, %c0_i32_0 : i32, i32
  }
  func.func @transform_5(%arg0: i32) -> (i32, i32) {
    %c0_i32 = arith.constant 0 : i32
    %c0_i32_0 = arith.constant 0 : i32
    %c0_i32_1 = arith.constant 0 : i32
    return %c0_i32, %c0_i32_0 : i32, i32
  }
  func.func @transform_6(%arg0: i32) -> (i32, i32) {
    %c0_i32 = arith.constant 0 : i32
    %c0_i32_0 = arith.constant 0 : i32
    %c0_i32_1 = arith.constant 0 : i32
    return %c0_i32, %c0_i32_0 : i32, i32
  }
  func.func @transform_7(%arg0: i32) -> (i32, i32) {
    %c0_i32 = arith.constant 0 : i32
    %c0_i32_0 = arith.constant 0 : i32
    %c0_i32_1 = arith.constant 0 : i32
    return %c0_i32, %c0_i32_0 : i32, i32
  }
  func.func @transform_8(%arg0: i32) -> (i32, i32) {
    %c0_i32 = arith.constant 0 : i32
    %c0_i32_0 = arith.constant 0 : i32
    %c0_i32_1 = arith.constant 0 : i32
    return %c0_i32, %c0_i32_0 : i32, i32
  }
  func.func @transform_9(%arg0: i32) -> (i32, i32) {
    %c0_i32 = arith.constant 0 : i32
    %c0_i32_0 = arith.constant 0 : i32
    %c0_i32_1 = arith.constant 0 : i32
    return %c0_i32, %c0_i32_0 : i32, i32
  }
}

</mosaic_0001>

<bundles_post_ra>
// kernel: ds_predict_nn_forward.1
= control target key start
LH: loop header
LB: loop body
LE: loop exit
PB: predicated region body
PF: predicated region fallthrough
CT: control target
= control target key end

     0   :  { %s22070_s0 = inlined_call_operand.vmem [shape: bf16[16,1408], index: 0, kind: input, shape index: {}]   ;;  %s22071_s1 = inlined_call_operand.hbm [shape: bf16[1408,4096], index: 1, kind: input, shape index: {}]   ;;  %s22072_s2 = inlined_call_operand.hbm [shape: f32[1,4096], index: 2, kind: input, shape index: {}]   ;;  %s22073_s3 = inlined_call_operand.hbm [shape: bf16[4096,512], index: 3, kind: input, shape index: {}]   ;;  %s22074_s4 = inlined_call_operand.hbm [shape: f32[1,512], index: 4, kind: input, shape index: {}]   ;;  %s22075_s5 = inlined_call_operand.hbm [shape: bf16[512,128], index: 5, kind: input, shape index: {}]   ;;  %s22076_s6 = inlined_call_operand.hbm [shape: f32[1,128], index: 6, kind: input, shape index: {}]   ;;  %s22077_s7 = inlined_call_operand.hbm [shape: bf16[128,128], index: 7, kind: input, shape index: {}]   ;;  %s22078_s8 = inlined_call_operand.hbm [shape: f32[1,128], index: 8, kind: input, shape index: {}]   ;;  %s22079_s9 = inlined_call_operand.vmem [shape: f32[16,128], index: 9, kind: output, shape index: {}]  }
   0x1   :  { %22102 = sst [smem:[#allocation76_spill]] %s22074_s4 }
   0x2   :  { %22103 = sst [smem:[#allocation77_spill]] %s22076_s6 }
   0x3   :  { %14 = vsyncpa [#allocation4], 0 }
   0x4   :  { %16 = vsyncpa [#allocation4 + $0x1], 0 }
   0x5   :  { %17 = vsyncpa [#allocation6], 0 }
   0x6   :  { %19 = vsyncpa [#allocation6 + $0x1], 0 }
   0x7   :  { %20 = vsyncpa [#allocation9], 0 }
   0x8   :  { %21 = vsyncpa [#allocation12], 0 }
   0x9   :  { %22 = vsyncpa [#allocation15], 0  ;;  %s19074_s30 = smov 0   ;;  %s19076_s10 = smov 0  }
   0xa   :  { %s19078_s11 = smov 0   ;;  %s19080_s12 = smov 0  }
   0xb LB: > { %22104 = sst [smem:[#allocation21_spill]] %s19000_s11  ;;  %s19006_s13 = smov [#allocation8]   ;;  %s19004_s12 = sphi %s19080_s12, %s22235_s12   ;;  %s19000_s11 = sphi %s19078_s11, %s22240_s11   ;;  %s18996_s10 = sphi %s19076_s10, %s22239_s10   ;;  %s18992_s30 = sphi %s19074_s30, %s22238_s30  }
   0xc   : > { %s274_s14 = sshll.u32 %s19006_s13, 4  ;;  %s19095_s15 = sadd.s32 4294967295, %s19004_s12   ;;  %s275_s14 = int_to_ptr.vmem [resolvable:$true] %s274_s14 }
   0xd   : > { %p15642_p0 = scmp.ge.s32.totalorder %s19004_s12, 1  ;;  %p22080_p1 = scmp.eq.s32.totalorder %s19095_s15, 0 }
   0xe   : > { %p258_p2 = scmp.lt.s32.totalorder %s19004_s12, 3  ;;  %s19007_s17 = smov [#allocation11]  }
   0xf   : > { %s298_s18 = sshll.u32 %s19007_s17, 4  ;;  %s18751_s21 = scalar_lea.vmem %s275_s14, 64  ;;  %s299_s18 = int_to_ptr.vmem [resolvable:$true] %s298_s18 }
  0x10   : > { %p19101_p4 = pnand %p15642_p0, %p258_p2  ;;  %p18752_p8 = scmp.ne.s32.totalorder %s275_s14, %s18751_s21 }
  0x11   : > { %p18759_p11 = scmp.lt.s32.totalorder %s275_s14, %s275_s14  ;;  %p18760_p12 = scmp.lt.s32.totalorder %s18751_s21, %s18751_s21 }
  0x12   : > { %s22105_s16 = scalar_select %p19101_p4, 1, 0 }
  0x13   : > { %p17748_p5 = pneg %p19101_p4  ;;  %p18761_p13 = por %p18760_p12, %p18759_p11 }
  0x15   : > { %p19109_p6 = pnand %p17748_p5, %p22080_p1 }
  0x17   : > { %s22106_s19 = scalar_select %p19109_p6, 1, 0 }
  0x18   : > { %p19115_p7 = pneg %p19109_p6 }
  0x1a   : > { %s22107_s20 = scalar_select %p19115_p7, 1, 0 }
  0x1b   : > { %p18754_p9 = pnand %p18752_p8, %p19115_p7 }
  0x1d   : > { %p18755_p10 = pneg %p18754_p9 }
  0x1f   : > { %p18762_p0 = pnand %p18761_p13, %p18755_p10 }
  0x21   : > { %18765 = shalt.err (!%p18762_p0)
}
  0x22   : > { %s22108_s4 = sld [smem:[#allocation76_spill]]  ;;  %s18777_s24 = scalar_lea.vmem %s299_s18, 16 }
  0x23   : > { %p18778_p2 = scmp.ne.s32.totalorder %s299_s18, %s18777_s24  ;;  %s18784_s25 = scalar_lea.vmem %s299_s18, 32 }
  0x24   : > { %p18785_p8 = scmp.lt.s32.totalorder %s299_s18, %s299_s18  ;;  %p18786_p9 = scmp.lt.s32.totalorder %s18784_s25, %s18777_s24 }
  0x25   : > { %p18780_p5 = pnand %p18778_p2, %p19115_p7 }
  0x26   : > { %p18787_p1 = por %p18786_p9, %p18785_p8 }
  0x27   : > { %p18781_p3 = pneg %p18780_p5 }
  0x28   : > { %17751 = dma.hbm_to_vmem [thread:$0]  (!%p19109_p6), %s22108_s4, 64, %s275_s14, [#allocation9]  }
  0x29   : > { %p18788_p4 = pnand %p18787_p1, %p18781_p3 }
  0x2b   : > { %18791 = shalt.err (!%p18788_p4)
}
  0x2c   : > { %s22109_s6 = sld [smem:[#allocation77_spill]]  ;;  %s19134_s28 = sadd.s32 1, %s19004_s12  }
  0x2d   : > { %22110 = sst [smem:[#allocation22_spill]] %s19134_s28  ;;  %s56_s29 = sadd.s32 1, %s19000_s11 }
  0x2e   : > { %s53_s13 = ssub.s32 %s19004_s12, %s19134_s28  ;;  %p63_p1 = scmp.ne.s32.totalorder %s19000_s11, %s18996_s10 }
  0x2f   : > { %p54_p3 = scmp.eq.s32.totalorder %s53_s13, 0  ;;  %p64_p4 = scmp.eq.s32.totalorder %s19004_s12, 0 }
  0x30   : > { %p69_p10 = scmp.ne.s32.totalorder %s18996_s10, %s18992_s30  ;;  %p17779_p11 = scmp.lt.s32.totalorder %s19004_s12, 2 }
  0x31   : > { %s19146_s14 = scalar_select %p54_p3, %s19000_s11, %s56_s29  }
  0x32   : > { %17757 = dma.hbm_to_vmem [thread:$0]  (!%p19109_p6), %s22109_s6, 16, %s299_s18, [#allocation12]  }
  0x33   : > { %22111 = sst [smem:[#allocation23_spill]] %s19146_s14  ;;  %p65_p12 = por %p64_p4, %p63_p1 }
  0x34   : > { %p22112_p13 = scmp.eq.s32.totalorder %s19095_s15, 0  ;;  %s19155_s18 = sand.u32 1, %s19000_s11  }
  0x35   : > { %s354_s21 = sand.u32 1, %s19004_s12   ;;  %p19159_p2 = pnand %p17779_p11, %p65_p12 }
  0x36   : > { %p19150_p0 = por %p22112_p13, %p69_p10  ;;  %s15651_s30 = sshll.u32 %s19155_s18, 4 }
  0x37   : > { %s17644_s24 = sshll.u32 %s19004_s12, 8  ;;  %s358_s25 = scalar_lea.vmem [#allocation5], %s15651_s30 }
  0x38   : > { %s22113_s17 = scalar_select %p19150_p0, 1, 0 }
  0x39   : > { %s366_s26 = sshll.u32 %s358_s25, 4  ;;  %s364_s13 = scalar_lea.hbm %s22072_s2, %s17644_s24  ;;  %s367_s26 = int_to_ptr.vmem [resolvable:$true] %s366_s26 }
  0x3a   : > { %s19168_s4 = scalar_lea.sflag [#allocation6], %s354_s21  ;;  %s18792_s6 = scalar_lea.hbm %s364_s13, 256 }
  0x3b   : > { %p18793_p5 = scmp.ne.s32.totalorder %s364_s13, %s18792_s6  ;;  %p19172_p8 = pneg %p19159_p2 }
  0x3c   : > { %s18797_s14 = scalar_lea.hbm %s22072_s2, 512  ;;  %p18798_p3 = scmp.lt.s32.totalorder %s364_s13, %s22072_s2 }
  0x3d   : > { %p18795_p9 = pnand %p19172_p8, %p18793_p5  ;;  %p18799_p4 = scmp.lt.s32.totalorder %s18797_s14, %s18792_s6 }
  0x3f   : > { %p18796_p1 = pneg %p18795_p9  ;;  %p18800_p10 = por %p18799_p4, %p18798_p3 }
  0x41   : > { %p18801_p11 = pnand %p18800_p10, %p18796_p1 }
  0x43   : > { %18804 = shalt.err (!%p18801_p11)
}
  0x44   : > { %s18805_s21 = scalar_lea.vmem %s367_s26, 256  ;;  %s19008_s29 = smov [#allocation5]  }
  0x45   : > { %p18806_p12 = scmp.ne.s32.totalorder %s367_s26, %s18805_s21  ;;  %s18810_s11 = sshll.u32 %s19008_s29, 4  ;;  %s18811_s11 = int_to_ptr.vmem [resolvable:$false] %s18810_s11 }
  0x46   : > { %s18812_s28 = scalar_lea.vmem %s18811_s11, 512  ;;  %p18813_p5 = scmp.lt.s32.totalorder %s367_s26, %s18811_s11 }
  0x47   : > { %p18808_p13 = pnand %p18806_p12, %p19172_p8  ;;  %p18814_p9 = scmp.lt.s32.totalorder %s18812_s28, %s18805_s21 }
  0x49   : > { %p18809_p0 = pneg %p18808_p13  ;;  %p18815_p6 = por %p18814_p9, %p18813_p5 }
  0x4b   : > { %p18816_p7 = pnand %p18815_p6, %p18809_p0 }
  0x4d   : > { %18819 = shalt.err (!%p18816_p7)
}
  0x4e   : > { %17770 = dma.hbm_to_vmem [thread:$0]  (!%p19159_p2), %s364_s13, 256, %s367_s26, %s19168_s4  }
  0x4f   : > { %s15654_s6 = sshll.u32 %s19155_s18, 12  ;;  %s19009_s14 = smov [#allocation10]  }
  0x50   : > { %s284_s30 = sshll.u32 %s19009_s14, 4  ;;  %p22116_p3 = scmp.ne.s32.totalorder %s22107_s20, 0  ;;  %s285_s30 = int_to_ptr.vmem [resolvable:$true] %s284_s30 }
  0x51   : > { %s18831_s25 = scalar_lea.vmem %s285_s30, 4096  ;;  %p18839_p11 = scmp.lt.s32.totalorder %s285_s30, %s285_s30 }
  0x52   : > { %p18832_p1 = scmp.ne.s32.totalorder %s285_s30, %s18831_s25  ;;  %p18840_p12 = scmp.lt.s32.totalorder %s18831_s25, %s18831_s25 }
  0x54   : > { %p18834_p4 = pnand %p18832_p1, %p22116_p3  ;;  %p18841_p13 = por %p18840_p12, %p18839_p11 }
  0x56   : > { %p18835_p10 = pneg %p18834_p4 }
  0x58   : > { %p18842_p6 = pnand %p18841_p13, %p18835_p10 }
  0x5a   : > { %18845 = shalt.err (!%p18842_p6)
}
  0x5b   : > { %s19010_s11 = smov 64   ;;  %s19011_s28 = smov 4  }
  0x5c   : > { %p22117_p7 = scmp.ne.s32.totalorder %s22106_s19, 0  ;;  %s19012_s27 = smov [#allocation13]  }
  0x5d   : > { %s308_s24 = sshll.u32 %s19012_s27, 4  ;;  %s19013_s21 = smov [#allocation14]   ;;  %s309_s24 = int_to_ptr.vmem [resolvable:$true] %s308_s24 }
  0x5e   : > { %17754 = dma.hbm_to_vmem [thread:$0]  (!%p22117_p7), %s22075_s5, 4096, %s285_s30, [#allocation9], %s19010_s11, %s19010_s11, %s19011_s28  }
  0x5f   : > { %s322_s29 = sshll.u32 %s19013_s21, 4  ;;  %s18857_s14 = scalar_lea.vmem %s309_s24, 1024  ;;  %s323_s29 = int_to_ptr.vmem [resolvable:$true] %s322_s29 }
  0x60   : > { %p18858_p0 = scmp.ne.s32.totalorder %s309_s24, %s18857_s14  ;;  %p18865_p1 = scmp.lt.s32.totalorder %s309_s24, %s309_s24 }
  0x61   : > { %p18866_p4 = scmp.lt.s32.totalorder %s18857_s14, %s18857_s14 }
  0x62   : > { %p18860_p5 = pnand %p18858_p0, %p22116_p3 }
  0x63   : > { %p18867_p10 = por %p18866_p4, %p18865_p1 }
  0x64   : > { %p18861_p9 = pneg %p18860_p5 }
  0x66   : > { %p18868_p11 = pnand %p18867_p10, %p18861_p9 }
  0x68   : > { %18871 = shalt.err (!%p18868_p11)
}
  0x69   : > { %17760 = dma.hbm_to_vmem [thread:$0]  (!%p22117_p7), %s22077_s7, 1024, %s309_s24, [#allocation12], %s19010_s11, %s19010_s11, %s19011_s28  }
  0x6a   : > { %s18883_s26 = scalar_lea.vmem %s323_s29, 16  ;;  %s18890_s13 = scalar_lea.vmem %s323_s29, 32 }
  0x6b   : > { %p18884_p12 = scmp.ne.s32.totalorder %s323_s29, %s18883_s26  ;;  %p18891_p0 = scmp.lt.s32.totalorder %s323_s29, %s323_s29 }
  0x6c   : > { %p18892_p5 = scmp.lt.s32.totalorder %s18890_s13, %s18883_s26 }
  0x6d   : > { %p18886_p13 = pnand %p18884_p12, %p22116_p3 }
  0x6e   : > { %p18893_p1 = por %p18892_p5, %p18891_p0 }
  0x6f   : > { %p18887_p6 = pneg %p18886_p13 }
  0x71   : > { %p18894_p9 = pnand %p18893_p1, %p18887_p6 }
  0x73   : > { %18897 = shalt.err (!%p18894_p9)
}
  0x74   : > { %17763 = dma.hbm_to_vmem [thread:$0]  (!%p22117_p7), %s22078_s8, 16, %s323_s29, [#allocation15]  }
  0x75   : > { %s17643_s28 = sshll.u32 %s19004_s12, 10  ;;  %s22118_s20 = smul.u32 11264, %s19155_s18 }
  0x76   : > { %s19221_s26 = scalar_lea.hbm %s22071_s1, %s17643_s28  ;;  %s334_s19 = scalar_lea.sflag [#allocation4], %s19155_s18 }
  0x77   : > { %s337_s24 = scalar_lea.vmem [#allocation3], %s22118_s20  ;;  %s18898_s13 = scalar_lea.hbm %s19221_s26, 180224 }
  0x78   : > { %s344_s14 = sshll.u32 %s337_s24, 4  ;;  %p18899_p3 = scmp.ne.s32.totalorder %s19221_s26, %s18898_s13  ;;  %s19223_s14 = int_to_ptr.vmem [resolvable:$true] %s344_s14 }
  0x79   : > { %s18903_s21 = scalar_lea.hbm %s22071_s1, 360448  ;;  %p18904_p10 = scmp.lt.s32.totalorder %s19221_s26, %s22071_s1 }
  0x7a   : > { %p18901_p4 = pnand %p18899_p3, %p19172_p8  ;;  %p18905_p11 = scmp.lt.s32.totalorder %s18903_s21, %s18898_s13 }
  0x7c   : > { %p18902_p7 = pneg %p18901_p4  ;;  %p18906_p12 = por %p18905_p11, %p18904_p10 }
  0x7e   : > { %p18907_p13 = pnand %p18906_p12, %p18902_p7 }
  0x80   : > { %18910 = shalt.err (!%p18907_p13)
}
  0x81   : > { %s18911_s28 = scalar_lea.vmem %s19223_s14, 180224  ;;  %s19014_s30 = smov [#allocation3]  }
  0x82   : > { %p18912_p6 = scmp.ne.s32.totalorder %s19223_s14, %s18911_s28  ;;  %s18916_s25 = sshll.u32 %s19014_s30, 4  ;;  %s18917_s25 = int_to_ptr.vmem [resolvable:$false] %s18916_s25 }
  0x83   : > { %s18918_s29 = scalar_lea.vmem %s18917_s25, 360448  ;;  %p18919_p1 = scmp.lt.s32.totalorder %s19223_s14, %s18917_s25 }
  0x84   : > { %p18914_p0 = pnand %p18912_p6, %p19172_p8  ;;  %p18920_p9 = scmp.lt.s32.totalorder %s18918_s29, %s18911_s28 }
  0x86   : > { %p18915_p5 = pneg %p18914_p0  ;;  %p18921_p3 = por %p18920_p9, %p18919_p1 }
  0x88   : > { %p18922_p4 = pnand %p18921_p3, %p18915_p5 }
  0x8a   : > { %18925 = shalt.err (!%p18922_p4)
}
  0x8b   : > { %s19015_s13 = smov 2048   ;;  %s19016_s27 = smov 1024  }
  0x8c   : > { %17767 = dma.hbm_to_vmem [thread:$0]  (!%p19159_p2), %s19221_s26, 180224, %s19223_s14, %s334_s19, %s19015_s13, %s19016_s27, %s19010_s11  }
  0x8d   : > { %s17646_s21 = sshll.u32 %s19004_s12, 16  ;;  %s377_s30 = scalar_lea.vmem [#allocation7], %s15654_s6 }
  0x8e   : > { %s19253_s28 = scalar_lea.hbm %s22073_s3, %s17646_s21  ;;  %s385_s25 = sshll.u32 %s377_s30, 4  ;;  %s19257_s25 = int_to_ptr.vmem [resolvable:$true] %s385_s25 }
  0x8f   : > { %s18926_s29 = scalar_lea.hbm %s19253_s28, 65536  ;;  %s18931_s14 = scalar_lea.hbm %s22073_s3, 131072 }
  0x90   : > { %p18927_p7 = scmp.ne.s32.totalorder %s19253_s28, %s18926_s29  ;;  %p18932_p12 = scmp.lt.s32.totalorder %s19253_s28, %s22073_s3 }
  0x91   : > { %p18933_p13 = scmp.lt.s32.totalorder %s18931_s14, %s18926_s29 }
  0x92   : > { %p18929_p10 = pnand %p18927_p7, %p19172_p8 }
  0x93   : > { %p18934_p6 = por %p18933_p13, %p18932_p12 }
  0x94   : > { %p18930_p11 = pneg %p18929_p10 }
  0x96   : > { %p18935_p0 = pnand %p18934_p6, %p18930_p11 }
  0x98   : > { %18938 = shalt.err (!%p18935_p0)
}
  0x99   : > { %s18939_s18 = scalar_lea.vmem %s19257_s25, 65536  ;;  %s19017_s6 = smov [#allocation7]  }
  0x9a   : > { %p18940_p5 = scmp.ne.s32.totalorder %s19257_s25, %s18939_s18  ;;  %s18944_s13 = sshll.u32 %s19017_s6, 4  ;;  %s18945_s13 = int_to_ptr.vmem [resolvable:$false] %s18944_s13 }
  0x9b   : > { %s18946_s27 = scalar_lea.vmem %s18945_s13, 131072  ;;  %p18947_p3 = scmp.lt.s32.totalorder %s19257_s25, %s18945_s13 }
  0x9c   : > { %p18942_p1 = pnand %p18940_p5, %p19172_p8  ;;  %p18948_p4 = scmp.lt.s32.totalorder %s18946_s27, %s18939_s18 }
  0x9e   : > { %p18943_p9 = pneg %p18942_p1  ;;  %p18949_p7 = por %p18948_p4, %p18947_p3 }
  0xa0   : > { %p18950_p10 = pnand %p18949_p7, %p18943_p9 }
  0xa2   : > { %18953 = shalt.err (!%p18950_p10)
}
  0xa3   : > { %s19018_s21 = smov 256   ;;  %s19019_s20 = smov 16  }
  0xa4   : > { %17773 = dma.hbm_to_vmem [thread:$0]  (!%p19159_p2), %s19253_s28, 65536, %s19257_s25, %s19168_s4, %s19018_s21, %s19018_s21, %s19019_s20  }
  0xa5   : > { %p22119_p8 = scmp.ne.s32.totalorder %s22105_s16, 0 }
  0xa7   : > { %397 = sbr.rel (%p22119_p8) target bundleno = 2781 (0xadd), region = 56 }
  0xac   : > { %s399_s22 = sand.u32 1, %s18996_s10   ;;  %p22120_p11 = scmp.ne.s32.totalorder %s22113_s17, 0 }
  0xad   : > { %s17721_s24 = smul.u32 11264, %s399_s22  ;;  %s400_s30 = scalar_lea.sflag [#allocation4], %s399_s22 }
  0xaf   : > { %s19283_s29 = scalar_lea.vmem [#allocation3], %s17721_s24 }
  0xb0   : > { %18971 = dma.done.wait (%p22120_p11), %s400_s30, 180224  }
  0xb1   : > { %18973 = vsyncadd (%p22120_p11), %s400_s30, 4294787072  ;;  %s408_s11 = sand.u32 1, %s19095_s15   ;;  %s15659_s23 = sshll.u32 %s399_s22, 4 }
  0xb2   : > { %s409_s4 = scalar_lea.sflag [#allocation6], %s408_s11  ;;  %s19290_s28 = scalar_lea.vmem [#allocation5], %s15659_s23 }
  0xb3   : > { %18975 = dma.done.wait (%p22120_p11), %s409_s4, 65792  }
  0xb4   : > { %18977 = vsyncadd (%p22120_p11), %s409_s4, 4294901504  ;;  %s15660_s16 = sshll.u32 %s399_s22, 12  ;;  %p22121_p2 = scmp.eq.s32.totalorder %s19095_s15, 0 }
  0xb5   : > { %s19296_s25 = scalar_lea.vmem [#allocation7], %s15660_s16 }
  0xb6   : > { %18979 = dma.done.wait (%p22121_p2), [#allocation9], 4160   ;;  %p22122_p12 = pmov %p22121_p2 }
  0xb7   : > { %p22123_p13 = pmov %p22121_p2 }
  0xb8   : > { %18981 = vsyncadd (%p22122_p12), [#allocation9], 4294963136 }
  0xb9   : > { %18983 = dma.done.wait (%p22123_p13), [#allocation12], 1040   ;;  %p22124_p6 = pmov %p22121_p2 }
  0xba   : > { %p22125_p0 = pmov %p22121_p2 }
  0xbb   : > { %18985 = vsyncadd (%p22124_p6), [#allocation12], 4294966256 }
  0xbc   : > { %18987 = dma.done.wait (%p22125_p0), [#allocation15], 16   ;;  %p22126_p5 = pmov %p22125_p0 }
  0xbd   : > { %p22127_p1 = scmp.ne.s32.totalorder %s19095_s15, 0 }
  0xbe   : > { %18989 = vsyncadd (%p22126_p5), [#allocation15], 4294967280 }
  0xbf   : > { %488 = sbr.rel (%p22127_p1) target bundleno = 201 (0xc9), region = 92 }
  0xc4   : > { %v19020_v0 = vmov 0.0  }
  0xc5   : > { %489 = vst [vmem:[#allocation2 + $0x30] sm:$0xff] %v19020_v0  ;;  %490 = vst [vmem:[#allocation2] sm:$0xff] %v19020_v0 }
  0xc6   : > { %491 = vst [vmem:[#allocation2 + $0x18] sm:$0xff] %v19020_v0  ;;  %492 = vst [vmem:[#allocation2 + $0x10] sm:$0xff] %v19020_v0 }
  0xc7   : > { %493 = vst [vmem:[#allocation2 + $0x8] sm:$0xff] %v19020_v0  ;;  %494 = vst [vmem:[#allocation2 + $0x20] sm:$0xff] %v19020_v0 }
  0xc8   : > { %495 = vst [vmem:[#allocation2 + $0x28] sm:$0xff] %v19020_v0  ;;  %496 = vst [vmem:[#allocation2 + $0x38] sm:$0xff] %v19020_v0 }
  0xc9 PF: > { %v621_v1 = vld [vmem:[%s19283_s29 + $0x380] sm:$0xff]  ;;  %v17834_v60 = vld [vmem:[%s22070_s0 + $0xc] ss:$44 sps:$4 sm:$0xff]   ;;  %p17598_p9 = scmp.ne.s32.totalorder %s19095_s15, 1 }
  0xca   : > { %v629_v2 = vld [vmem:[%s19283_s29 + $0x3c0] sm:$0xff]  ;;  %9172 = vmatprep.mubr.bf16.mxu1 %v17834_v60 }
  0xcb   : > { %v877_v3 = vld [vmem:[%s19283_s29 + $0xb80] sm:$0xff]  ;;  %v15791_v4 = vcombine.high %v621_v1, %v629_v2  ;;  %v15790_v6 = vcombine.low %v621_v1, %v629_v2 }
  0xcc   : > { %v885_v5 = vld [vmem:[%s19283_s29 + $0xbc0] sm:$0xff] }
  0xcd   : > { %v605_v7 = vld [vmem:[%s19283_s29 + $0x300] sm:$0xff]  ;;  %v16047_v9 = vcombine.high %v877_v3, %v885_v5  ;;  %v16046_v10 = vcombine.low %v877_v3, %v885_v5  ;;  %9097 = vmatprep.subr.bf16.mxu0 %v15791_v4 }
  0xce   : > { %v613_v8 = vld [vmem:[%s19283_s29 + $0x340] sm:$0xff]  ;;  %9098 = vmatpush1.bf16.msra.mxu0 %v15790_v6 }
  0xcf   : > { %v15775_v11 = vcombine.high %v605_v7, %v613_v8  ;;  %v861_v12 = vld [vmem:[%s19283_s29 + $0xb00] sm:$0xff]  ;;  %9140 = vmatprep.subr.bf16.mxu1 %v16047_v9  ;;  %v15774_v19 = vcombine.low %v605_v7, %v613_v8 }
  0xd0   : > { %v869_v13 = vld [vmem:[%s19283_s29 + $0xb40] sm:$0xff]  ;;  %9141 = vmatpush1.bf16.msra.mxu1 %v16046_v10 }
  0xd1   : > { %v589_v14 = vld [vmem:[%s19283_s29 + $0x280] sm:$0xff]  ;;  %v16031_v15 = vcombine.high %v861_v12, %v869_v13  ;;  %9099 = vmatprep.subr.bf16.mxu0 %v15775_v11  ;;  %v16030_v20 = vcombine.low %v861_v12, %v869_v13 }
  0xd2   : > { %v597_v16 = vld [vmem:[%s19283_s29 + $0x2c0] sm:$0xff]  ;;  %9100 = vmatpush1.bf16.msra.mxu0 %v15774_v19 }
  0xd3   : > { %v845_v17 = vld [vmem:[%s19283_s29 + $0xa80] sm:$0xff]  ;;  %v15759_v21 = vcombine.high %v589_v14, %v597_v16  ;;  %9142 = vmatprep.subr.bf16.mxu1 %v16031_v15  ;;  %v15758_v27 = vcombine.low %v589_v14, %v597_v16 }
  0xd4   : > { %v853_v18 = vld [vmem:[%s19283_s29 + $0xac0] sm:$0xff]  ;;  %9143 = vmatpush1.bf16.msra.mxu1 %v16030_v20 }
  0xd5   : > { %v16015_v22 = vcombine.high %v845_v17, %v853_v18  ;;  %v573_v23 = vld [vmem:[%s19283_s29 + $0x200] sm:$0xff]  ;;  %9101 = vmatprep.subr.bf16.mxu0 %v15759_v21  ;;  %v16014_v28 = vcombine.low %v845_v17, %v853_v18 }
  0xd6   : > { %v581_v24 = vld [vmem:[%s19283_s29 + $0x240] sm:$0xff]  ;;  %9102 = vmatpush1.bf16.msra.mxu0 %v15758_v27 }
  0xd7   : > { %v829_v25 = vld [vmem:[%s19283_s29 + $0xa00] sm:$0xff]  ;;  %v15743_v29 = vcombine.high %v573_v23, %v581_v24  ;;  %9144 = vmatprep.subr.bf16.mxu1 %v16015_v22  ;;  %v15742_v35 = vcombine.low %v573_v23, %v581_v24 }
  0xd8   : > { %v837_v26 = vld [vmem:[%s19283_s29 + $0xa40] sm:$0xff]  ;;  %9145 = vmatpush1.bf16.msra.mxu1 %v16014_v28 }
  0xd9   : > { %v15999_v30 = vcombine.high %v829_v25, %v837_v26  ;;  %v557_v31 = vld [vmem:[%s19283_s29 + $0x180] sm:$0xff]  ;;  %9103 = vmatprep.subr.bf16.mxu0 %v15743_v29  ;;  %v15998_v36 = vcombine.low %v829_v25, %v837_v26 }
  0xda   : > { %v565_v32 = vld [vmem:[%s19283_s29 + $0x1c0] sm:$0xff]  ;;  %9104 = vmatpush1.bf16.msra.mxu0 %v15742_v35 }
  0xdb   : > { %v813_v33 = vld [vmem:[%s19283_s29 + $0x980] sm:$0xff]  ;;  %v15727_v37 = vcombine.high %v557_v31, %v565_v32  ;;  %9146 = vmatprep.subr.bf16.mxu1 %v15999_v30  ;;  %v15726_v43 = vcombine.low %v557_v31, %v565_v32 }
  0xdc   : > { %v821_v34 = vld [vmem:[%s19283_s29 + $0x9c0] sm:$0xff]  ;;  %9147 = vmatpush1.bf16.msra.mxu1 %v15998_v36 }
  0xdd   : > { %v15983_v38 = vcombine.high %v813_v33, %v821_v34  ;;  %v541_v39 = vld [vmem:[%s19283_s29 + $0x100] sm:$0xff]  ;;  %9105 = vmatprep.subr.bf16.mxu0 %v15727_v37  ;;  %v15982_v44 = vcombine.low %v813_v33, %v821_v34 }
  0xde   : > { %v549_v40 = vld [vmem:[%s19283_s29 + $0x140] sm:$0xff]  ;;  %9106 = vmatpush1.bf16.msra.mxu0 %v15726_v43 }
  0xdf   : > { %v797_v41 = vld [vmem:[%s19283_s29 + $0x900] sm:$0xff]  ;;  %v15711_v45 = vcombine.high %v541_v39, %v549_v40  ;;  %9148 = vmatprep.subr.bf16.mxu1 %v15983_v38  ;;  %v15710_v51 = vcombine.low %v541_v39, %v549_v40 }
  0xe0   : > { %v805_v42 = vld [vmem:[%s19283_s29 + $0x940] sm:$0xff]  ;;  %9149 = vmatpush1.bf16.msra.mxu1 %v15982_v44 }
  0xe1   : > { %v15967_v46 = vcombine.high %v797_v41, %v805_v42  ;;  %v525_v47 = vld [vmem:[%s19283_s29 + $0x80] sm:$0xff]  ;;  %9107 = vmatprep.subr.bf16.mxu0 %v15711_v45  ;;  %v15966_v53 = vcombine.low %v797_v41, %v805_v42 }
  0xe2   : > { %v533_v48 = vld [vmem:[%s19283_s29 + $0xc0] sm:$0xff]  ;;  %9108 = vmatpush1.bf16.msra.mxu0 %v15710_v51 }
  0xe3   : > { %v781_v49 = vld [vmem:[%s19283_s29 + $0x880] sm:$0xff]  ;;  %v15695_v54 = vcombine.high %v525_v47, %v533_v48  ;;  %9150 = vmatprep.subr.bf16.mxu1 %v15967_v46  ;;  %v15694_v61 = vcombine.low %v525_v47, %v533_v48 }
  0xe4   : > { %v789_v50 = vld [vmem:[%s19283_s29 + $0x8c0] sm:$0xff]  ;;  %9151 = vmatpush1.bf16.msra.mxu1 %v15966_v53 }
  0xe5   : > { %v509_v52 = vld [vmem:[%s19283_s29] sm:$0xff]  ;;  %v15951_v56 = vcombine.high %v781_v49, %v789_v50  ;;  %9109 = vmatprep.subr.bf16.mxu0 %v15695_v54  ;;  %v15950_v62 = vcombine.low %v781_v49, %v789_v50 }
  0xe6   : > { %v517_v55 = vld [vmem:[%s19283_s29 + $0x40] sm:$0xff]  ;;  %9110 = vmatpush1.bf16.msra.mxu0 %v15694_v61 }
  0xe7   : > { %v17832_v57 = vld [vmem:[%s22070_s0 + $0x4] ss:$44 sps:$4 sm:$0xff]   ;;  %v15679_v63 = vcombine.high %v509_v52, %v517_v55  ;;  %9152 = vmatprep.subr.bf16.mxu1 %v15951_v56  ;;  %v15678_v5 = vcombine.low %v509_v52, %v517_v55 }
  0xe8   : > { %v765_v58 = vld [vmem:[%s19283_s29 + $0x800] sm:$0xff]  ;;  %9129 = vmatprep.mubr.bf16.mxu0 %v17832_v57  ;;  %9153 = vmatpush1.bf16.msra.mxu1 %v15950_v62 }
  0xe9   : > { %v773_v59 = vld [vmem:[%s19283_s29 + $0x840] sm:$0xff]  ;;  %9111 = vmatprep.subr.bf16.mxu0 %v15679_v63 }
  0xea   : > { %v15935_v0 = vcombine.high %v765_v58, %v773_v59  ;;  %v749_v1 = vld [vmem:[%s19283_s29 + $0x780] sm:$0xff]  ;;  %v15934_v6 = vcombine.low %v765_v58, %v773_v59  ;;  %9112 = vmatpush1.bf16.msra.mxu0 %v15678_v5 }
  0xeb   : > { %v757_v2 = vld [vmem:[%s19283_s29 + $0x7c0] sm:$0xff] }
  0xec   : > { %v1005_v3 = vld [vmem:[%s19283_s29 + $0xf80] sm:$0xff]  ;;  %v15919_v7 = vcombine.high %v749_v1, %v757_v2  ;;  %9154 = vmatprep.subr.bf16.mxu1 %v15935_v0  ;;  %v15918_v13 = vcombine.low %v749_v1, %v757_v2 }
  0xed   : > { %v1013_v4 = vld [vmem:[%s19283_s29 + $0xfc0] sm:$0xff]  ;;  %9155 = vmatpush1.bf16.msra.mxu1 %v15934_v6 }
  0xee   : > { %v16175_v8 = vcombine.high %v1005_v3, %v1013_v4  ;;  %v733_v9 = vld [vmem:[%s19283_s29 + $0x700] sm:$0xff]  ;;  %9113 = vmatprep.subr.bf16.mxu0 %v15919_v7  ;;  %v16174_v14 = vcombine.low %v1005_v3, %v1013_v4 }
  0xef   : > { %v741_v10 = vld [vmem:[%s19283_s29 + $0x740] sm:$0xff]  ;;  %9114 = vmatpush2.bf16.msra.mxu0 %v15918_v13 }
  0xf0   : > { %v989_v11 = vld [vmem:[%s19283_s29 + $0xf00] sm:$0xff]  ;;  %v15903_v15 = vcombine.high %v733_v9, %v741_v10  ;;  %9156 = vmatprep.subr.bf16.mxu1 %v16175_v8  ;;  %v15902_v21 = vcombine.low %v733_v9, %v741_v10 }
  0xf1   : > { %v997_v12 = vld [vmem:[%s19283_s29 + $0xf40] sm:$0xff]  ;;  %9157 = vmatpush2.bf16.msra.mxu1 %v16174_v14  ;;  %v17837_v14 = vld [vmem:[%s22070_s0 + $0x8] ss:$44 sps:$4 sm:$0xff]  }
  0xf2   : > { %v16159_v16 = vcombine.high %v989_v11, %v997_v12  ;;  %v717_v17 = vld [vmem:[%s19283_s29 + $0x680] sm:$0xff]  ;;  %9115 = vmatprep.subr.bf16.mxu0 %v15903_v15  ;;  %v16158_v22 = vcombine.low %v989_v11, %v997_v12 }
  0xf3   : > { %v725_v18 = vld [vmem:[%s19283_s29 + $0x6c0] sm:$0xff]  ;;  %9116 = vmatpush2.bf16.msra.mxu0 %v15902_v21 }
  0xf4   : > { %v973_v19 = vld [vmem:[%s19283_s29 + $0xe80] sm:$0xff]  ;;  %v15887_v23 = vcombine.high %v717_v17, %v725_v18  ;;  %9158 = vmatprep.subr.bf16.mxu1 %v16159_v16  ;;  %v15886_v29 = vcombine.low %v717_v17, %v725_v18 }
  0xf5   : > { %v981_v20 = vld [vmem:[%s19283_s29 + $0xec0] sm:$0xff]  ;;  %9159 = vmatpush2.bf16.msra.mxu1 %v16158_v22 }
  0xf6   : > { %v16143_v24 = vcombine.high %v973_v19, %v981_v20  ;;  %v701_v25 = vld [vmem:[%s19283_s29 + $0x600] sm:$0xff]  ;;  %9117 = vmatprep.subr.bf16.mxu0 %v15887_v23  ;;  %v16142_v30 = vcombine.low %v973_v19, %v981_v20 }
  0xf7   : > { %v709_v26 = vld [vmem:[%s19283_s29 + $0x640] sm:$0xff]  ;;  %9118 = vmatpush2.bf16.msra.mxu0 %v15886_v29 }
  0xf8   : > { %v957_v27 = vld [vmem:[%s19283_s29 + $0xe00] sm:$0xff]  ;;  %v15871_v31 = vcombine.high %v701_v25, %v709_v26  ;;  %9160 = vmatprep.subr.bf16.mxu1 %v16143_v24  ;;  %v15870_v37 = vcombine.low %v701_v25, %v709_v26  ;;  %v17840_v24 = vld [vmem:[%s22070_s0 + $0x1c] ss:$44 sps:$4 sm:$0xff]  }
  0xf9   : > { %v965_v28 = vld [vmem:[%s19283_s29 + $0xe40] sm:$0xff]  ;;  %9161 = vmatpush2.bf16.msra.mxu1 %v16142_v30 }
  0xfa   : > { %v16127_v32 = vcombine.high %v957_v27, %v965_v28  ;;  %v685_v33 = vld [vmem:[%s19283_s29 + $0x580] sm:$0xff]  ;;  %9119 = vmatprep.subr.bf16.mxu0 %v15871_v31  ;;  %v16126_v38 = vcombine.low %v957_v27, %v965_v28 }
  0xfb   : > { %v693_v34 = vld [vmem:[%s19283_s29 + $0x5c0] sm:$0xff]  ;;  %9120 = vmatpush2.bf16.msra.mxu0 %v15870_v37 }
  0xfc   : > { %v941_v35 = vld [vmem:[%s19283_s29 + $0xd80] sm:$0xff]  ;;  %v15855_v39 = vcombine.high %v685_v33, %v693_v34  ;;  %9162 = vmatprep.subr.bf16.mxu1 %v16127_v32  ;;  %v15854_v45 = vcombine.low %v685_v33, %v693_v34 }
  0xfd   : > { %v949_v36 = vld [vmem:[%s19283_s29 + $0xdc0] sm:$0xff]  ;;  %9163 = vmatpush2.bf16.msra.mxu1 %v16126_v38 }
  0xfe   : > { %v669_v40 = vld [vmem:[%s19283_s29 + $0x500] sm:$0xff]  ;;  %v16111_v41 = vcombine.high %v941_v35, %v949_v36  ;;  %9121 = vmatprep.subr.bf16.mxu0 %v15855_v39  ;;  %v16110_v46 = vcombine.low %v941_v35, %v949_v36 }
  0xff   : > { %v677_v42 = vld [vmem:[%s19283_s29 + $0x540] sm:$0xff]  ;;  %9122 = vmatpush2.bf16.msra.mxu0 %v15854_v45 }
 0x100   : > { %v925_v43 = vld [vmem:[%s19283_s29 + $0xd00] sm:$0xff]  ;;  %v15839_v47 = vcombine.high %v669_v40, %v677_v42  ;;  %9164 = vmatprep.subr.bf16.mxu1 %v16111_v41  ;;  %v15838_v53 = vcombine.low %v669_v40, %v677_v42 }
 0x101   : > { %v933_v44 = vld [vmem:[%s19283_s29 + $0xd40] sm:$0xff]  ;;  %9165 = vmatpush2.bf16.msra.mxu1 %v16110_v46 }
 0x102   : > { %v16095_v48 = vcombine.high %v925_v43, %v933_v44  ;;  %v653_v49 = vld [vmem:[%s19283_s29 + $0x480] sm:$0xff]  ;;  %9123 = vmatprep.subr.bf16.mxu0 %v15839_v47  ;;  %v16094_v54 = vcombine.low %v925_v43, %v933_v44 }
 0x103   : > { %v661_v50 = vld [vmem:[%s19283_s29 + $0x4c0] sm:$0xff]  ;;  %9124 = vmatpush2.bf16.msra.mxu0 %v15838_v53 }
 0x104   : > { %v909_v51 = vld [vmem:[%s19283_s29 + $0xc80] sm:$0xff]  ;;  %v15823_v55 = vcombine.high %v653_v49, %v661_v50  ;;  %9166 = vmatprep.subr.bf16.mxu1 %v16095_v48  ;;  %v15822_v61 = vcombine.low %v653_v49, %v661_v50 }
 0x105   : > { %v917_v52 = vld [vmem:[%s19283_s29 + $0xcc0] sm:$0xff]  ;;  %9167 = vmatpush2.bf16.msra.mxu1 %v16094_v54 }
 0x106   : > { %v16079_v56 = vcombine.high %v909_v51, %v917_v52  ;;  %v637_v57 = vld [vmem:[%s19283_s29 + $0x400] sm:$0xff]  ;;  %9125 = vmatprep.subr.bf16.mxu0 %v15823_v55  ;;  %v16078_v62 = vcombine.low %v909_v51, %v917_v52 }
 0x107   : > { %v645_v58 = vld [vmem:[%s19283_s29 + $0x440] sm:$0xff]  ;;  %9126 = vmatpush2.bf16.msra.mxu0 %v15822_v61 }
 0x108   : > { %v893_v59 = vld [vmem:[%s19283_s29 + $0xc00] sm:$0xff]  ;;  %v15807_v63 = vcombine.high %v637_v57, %v645_v58  ;;  %9168 = vmatprep.subr.bf16.mxu1 %v16079_v56  ;;  %v15806_v5 = vcombine.low %v637_v57, %v645_v58 }
 0x109   : > { %v901_v60 = vld [vmem:[%s19283_s29 + $0xc40] sm:$0xff]  ;;  %9169 = vmatpush2.bf16.msra.mxu1 %v16078_v62 }
 0x10a   : > { %v16063_v0 = vcombine.high %v893_v59, %v901_v60  ;;  %v1133_v1 = vld [vmem:[%s19283_s29 + $0x1380] sm:$0xff]  ;;  %9127 = vmatprep.subr.bf16.mxu0 %v15807_v63  ;;  %v16062_v6 = vcombine.low %v893_v59, %v901_v60 }
 0x10b   : > { %v1141_v2 = vld [vmem:[%s19283_s29 + $0x13c0] sm:$0xff]  ;;  %9128 = vmatpush2.bf16.msra.mxu0 %v15806_v5 }
 0x10c   : > { %v1389_v3 = vld [vmem:[%s19283_s29 + $0x1b80] sm:$0xff]  ;;  %v16303_v7 = vcombine.high %v1133_v1, %v1141_v2  ;;  %9170 = vmatprep.subr.bf16.mxu1 %v16063_v0  ;;  %v16302_v15 = vcombine.low %v1133_v1, %v1141_v2 }
 0x10d   : > { %v1397_v4 = vld [vmem:[%s19283_s29 + $0x1bc0] sm:$0xff]  ;;  %9171 = vmatpush2.bf16.msra.mxu1 %v16062_v6 }
 0x10e   : > { %v16559_v8 = vcombine.high %v1389_v3, %v1397_v4  ;;  %v1117_v9 = vld [vmem:[%s19283_s29 + $0x1300] sm:$0xff]  ;;  %9183 = vmatprep.subr.bf16.mxu0 %v16303_v7  ;;  %v16558_v16 = vcombine.low %v1389_v3, %v1397_v4 }
 0x10f   : > { %v1125_v10 = vld [vmem:[%s19283_s29 + $0x1340] sm:$0xff] }
 0x110   : > { %v17836_v11 = vld [vmem:[%s22070_s0] ss:$44 sps:$4 sm:$0xff]   ;;  %v16287_v17 = vcombine.high %v1117_v9, %v1125_v10  ;;  %9226 = vmatprep.subr.bf16.mxu1 %v16559_v8  ;;  %9173 = vmatmul.mubr.bf16.vlgmr.msra.gmra.mxu1 %v17837_v14  ;;  %v16286_v25 = vcombine.low %v1117_v9, %v1125_v10 }
 0x111   : > { %v1373_v12 = vld [vmem:[%s19283_s29 + $0x1b00] sm:$0xff]  ;;  %9130 = vmatmul.mubr.bf16.vlgmr.msra.gmra.mxu0 %v17836_v11  ;;  %9227 = vmatpush1.bf16.msra.mxu1 %v16558_v16 }
 0x112   : > { %v1381_v13 = vld [vmem:[%s19283_s29 + $0x1b40] sm:$0xff]  ;;  %9184 = vmatpush1.bf16.msra.mxu0 %v16302_v15  ;;  %9258 = vmatprep.mubr.bf16.mxu1 %v17840_v24 }
 0x113   : > { %v16543_v18 = vcombine.high %v1373_v12, %v1381_v13  ;;  %v1101_v19 = vld [vmem:[%s19283_s29 + $0x1280] sm:$0xff]  ;;  %9185 = vmatprep.subr.bf16.mxu0 %v16287_v17  ;;  %v16542_v26 = vcombine.low %v1373_v12, %v1381_v13 }
 0x114   : > { %v1109_v20 = vld [vmem:[%s19283_s29 + $0x12c0] sm:$0xff] }
 0x115   : > { %v17838_v21 = vld [vmem:[%s22070_s0 + $0x14] ss:$44 sps:$4 sm:$0xff]   ;;  %v16271_v27 = vcombine.high %v1101_v19, %v1109_v20  ;;  %9228 = vmatprep.subr.bf16.mxu1 %v16543_v18  ;;  %v16270_v33 = vcombine.low %v1101_v19, %v1109_v20 }
 0x116   : > { %v1357_v22 = vld [vmem:[%s19283_s29 + $0x1a80] sm:$0xff]  ;;  %9215 = vmatprep.mubr.bf16.mxu0 %v17838_v21  ;;  %9186 = vmatpush1.bf16.msra.mxu0 %v16286_v25 }
 0x117   : > { %v1365_v23 = vld [vmem:[%s19283_s29 + $0x1ac0] sm:$0xff]  ;;  %9229 = vmatpush1.bf16.msra.mxu1 %v16542_v26  ;;  %9187 = vmatprep.subr.bf16.mxu0 %v16271_v27 }
 0x118   : > { %v1085_v28 = vld [vmem:[%s19283_s29 + $0x1200] sm:$0xff]  ;;  %v16527_v29 = vcombine.high %v1357_v22, %v1365_v23  ;;  %v16526_v34 = vcombine.low %v1357_v22, %v1365_v23 }
 0x119   : > { %v1093_v30 = vld [vmem:[%s19283_s29 + $0x1240] sm:$0xff] }
 0x11a   : > { %v1341_v31 = vld [vmem:[%s19283_s29 + $0x1a00] sm:$0xff]  ;;  %v16255_v35 = vcombine.high %v1085_v28, %v1093_v30  ;;  %9230 = vmatprep.subr.bf16.mxu1 %v16527_v29  ;;  %9188 = vmatpush1.bf16.msra.mxu0 %v16270_v33  ;;  %v16254_v41 = vcombine.low %v1085_v28, %v1093_v30 }
 0x11b   : > { %v1349_v32 = vld [vmem:[%s19283_s29 + $0x1a40] sm:$0xff]  ;;  %9231 = vmatpush1.bf16.msra.mxu1 %v16526_v34 }
 0x11c   : > { %v16511_v36 = vcombine.high %v1341_v31, %v1349_v32  ;;  %v1069_v37 = vld [vmem:[%s19283_s29 + $0x1180] sm:$0xff]  ;;  %9189 = vmatprep.subr.bf16.mxu0 %v16255_v35  ;;  %v16510_v42 = vcombine.low %v1341_v31, %v1349_v32 }
 0x11d   : > { %v1077_v38 = vld [vmem:[%s19283_s29 + $0x11c0] sm:$0xff] }
 0x11e   : > { %v1325_v39 = vld [vmem:[%s19283_s29 + $0x1980] sm:$0xff]  ;;  %v16239_v43 = vcombine.high %v1069_v37, %v1077_v38  ;;  %9232 = vmatprep.subr.bf16.mxu1 %v16511_v36  ;;  %9190 = vmatpush1.bf16.msra.mxu0 %v16254_v41  ;;  %v16238_v49 = vcombine.low %v1069_v37, %v1077_v38 }
 0x11f   : > { %v1333_v40 = vld [vmem:[%s19283_s29 + $0x19c0] sm:$0xff]  ;;  %9233 = vmatpush1.bf16.msra.mxu1 %v16510_v42 }
 0x120   : > { %v1053_v44 = vld [vmem:[%s19283_s29 + $0x1100] sm:$0xff]  ;;  %v16495_v47 = vcombine.high %v1325_v39, %v1333_v40  ;;  %9191 = vmatprep.subr.bf16.mxu0 %v16239_v43  ;;  %v16494_v50 = vcombine.low %v1325_v39, %v1333_v40 }
 0x121   : > { %v1061_v45 = vld [vmem:[%s19283_s29 + $0x1140] sm:$0xff] }
 0x122   : > { %v1309_v46 = vld [vmem:[%s19283_s29 + $0x1900] sm:$0xff]  ;;  %v16223_v51 = vcombine.high %v1053_v44, %v1061_v45  ;;  %9234 = vmatprep.subr.bf16.mxu1 %v16495_v47  ;;  %9192 = vmatpush1.bf16.msra.mxu0 %v16238_v49  ;;  %v16222_v57 = vcombine.low %v1053_v44, %v1061_v45 }
 0x123   : > { %v1317_v48 = vld [vmem:[%s19283_s29 + $0x1940] sm:$0xff]  ;;  %9235 = vmatpush1.bf16.msra.mxu1 %v16494_v50 }
 0x124   : > { %v1037_v52 = vld [vmem:[%s19283_s29 + $0x1080] sm:$0xff]  ;;  %v16479_v55 = vcombine.high %v1309_v46, %v1317_v48  ;;  %9193 = vmatprep.subr.bf16.mxu0 %v16223_v51  ;;  %v16478_v58 = vcombine.low %v1309_v46, %v1317_v48 }
 0x125   : > { %v1045_v53 = vld [vmem:[%s19283_s29 + $0x10c0] sm:$0xff] }
 0x126   : > { %v1293_v54 = vld [vmem:[%s19283_s29 + $0x1880] sm:$0xff]  ;;  %v16207_v59 = vcombine.high %v1037_v52, %v1045_v53  ;;  %9236 = vmatprep.subr.bf16.mxu1 %v16479_v55  ;;  %9194 = vmatpush1.bf16.msra.mxu0 %v16222_v57  ;;  %v16206_v1 = vcombine.low %v1037_v52, %v1045_v53 }
 0x127   : > { %v1301_v56 = vld [vmem:[%s19283_s29 + $0x18c0] sm:$0xff]  ;;  %9237 = vmatpush1.bf16.msra.mxu1 %v16478_v58 }
 0x128   : > { %v1021_v60 = vld [vmem:[%s19283_s29 + $0x1000] sm:$0xff]  ;;  %v16463_v63 = vcombine.high %v1293_v54, %v1301_v56  ;;  %9195 = vmatprep.subr.bf16.mxu0 %v16207_v59  ;;  %v16462_v2 = vcombine.low %v1293_v54, %v1301_v56 }
 0x129   : > { %v1029_v61 = vld [vmem:[%s19283_s29 + $0x1040] sm:$0xff] }
 0x12a   : > { %v1277_v62 = vld [vmem:[%s19283_s29 + $0x1800] sm:$0xff]  ;;  %v16191_v3 = vcombine.high %v1021_v60, %v1029_v61  ;;  %9238 = vmatprep.subr.bf16.mxu1 %v16463_v63  ;;  %9196 = vmatpush1.bf16.msra.mxu0 %v16206_v1  ;;  %v16190_v9 = vcombine.low %v1021_v60, %v1029_v61 }
 0x12b   : > { %v1285_v0 = vld [vmem:[%s19283_s29 + $0x1840] sm:$0xff]  ;;  %9239 = vmatpush1.bf16.msra.mxu1 %v16462_v2 }
 0x12c   : > { %v1261_v4 = vld [vmem:[%s19283_s29 + $0x1780] sm:$0xff]  ;;  %v16447_v7 = vcombine.high %v1277_v62, %v1285_v0  ;;  %9197 = vmatprep.subr.bf16.mxu0 %v16191_v3  ;;  %v16446_v10 = vcombine.low %v1277_v62, %v1285_v0 }
 0x12d   : > { %v1269_v5 = vld [vmem:[%s19283_s29 + $0x17c0] sm:$0xff] }
 0x12e   : > { %v1517_v6 = vld [vmem:[%s19283_s29 + $0x1f80] sm:$0xff]  ;;  %v16431_v11 = vcombine.high %v1261_v4, %v1269_v5  ;;  %9240 = vmatprep.subr.bf16.mxu1 %v16447_v7  ;;  %9198 = vmatpush1.bf16.msra.mxu0 %v16190_v9  ;;  %v16430_v17 = vcombine.low %v1261_v4, %v1269_v5 }
 0x12f   : > { %v1525_v8 = vld [vmem:[%s19283_s29 + $0x1fc0] sm:$0xff]  ;;  %9241 = vmatpush1.bf16.msra.mxu1 %v16446_v10 }
 0x130   : > { %v1245_v12 = vld [vmem:[%s19283_s29 + $0x1700] sm:$0xff]  ;;  %v16687_v15 = vcombine.high %v1517_v6, %v1525_v8  ;;  %9199 = vmatprep.subr.bf16.mxu0 %v16431_v11  ;;  %v16686_v18 = vcombine.low %v1517_v6, %v1525_v8  ;;  %v17842_v11 = vld [vmem:[%s22070_s0 + $0x10] ss:$44 sps:$4 sm:$0xff]  }
 0x131   : > { %v1253_v13 = vld [vmem:[%s19283_s29 + $0x1740] sm:$0xff] }
 0x132   : > { %v1501_v14 = vld [vmem:[%s19283_s29 + $0x1f00] sm:$0xff]  ;;  %v16415_v19 = vcombine.high %v1245_v12, %v1253_v13  ;;  %9242 = vmatprep.subr.bf16.mxu1 %v16687_v15  ;;  %9200 = vmatpush2.bf16.msra.mxu0 %v16430_v17  ;;  %v16414_v25 = vcombine.low %v1245_v12, %v1253_v13 }
 0x133   : > { %v1509_v16 = vld [vmem:[%s19283_s29 + $0x1f40] sm:$0xff]  ;;  %9243 = vmatpush2.bf16.msra.mxu1 %v16686_v18 }
 0x134   : > { %v1229_v20 = vld [vmem:[%s19283_s29 + $0x1680] sm:$0xff]  ;;  %v16671_v23 = vcombine.high %v1501_v14, %v1509_v16  ;;  %9201 = vmatprep.subr.bf16.mxu0 %v16415_v19  ;;  %v16670_v26 = vcombine.low %v1501_v14, %v1509_v16 }
 0x135   : > { %v1237_v21 = vld [vmem:[%s19283_s29 + $0x16c0] sm:$0xff] }
 0x136   : > { %v1485_v22 = vld [vmem:[%s19283_s29 + $0x1e80] sm:$0xff]  ;;  %v16399_v27 = vcombine.high %v1229_v20, %v1237_v21  ;;  %9244 = vmatprep.subr.bf16.mxu1 %v16671_v23  ;;  %9202 = vmatpush2.bf16.msra.mxu0 %v16414_v25  ;;  %v16398_v33 = vcombine.low %v1229_v20, %v1237_v21 }
 0x137   : > { %v1493_v24 = vld [vmem:[%s19283_s29 + $0x1ec0] sm:$0xff]  ;;  %9245 = vmatpush2.bf16.msra.mxu1 %v16670_v26 }
 0x138   : > { %v1213_v28 = vld [vmem:[%s19283_s29 + $0x1600] sm:$0xff]  ;;  %v16655_v31 = vcombine.high %v1485_v22, %v1493_v24  ;;  %9203 = vmatprep.subr.bf16.mxu0 %v16399_v27  ;;  %v16654_v34 = vcombine.low %v1485_v22, %v1493_v24 }
 0x139   : > { %v1221_v29 = vld [vmem:[%s19283_s29 + $0x1640] sm:$0xff] }
 0x13a   : > { %v1469_v30 = vld [vmem:[%s19283_s29 + $0x1e00] sm:$0xff]  ;;  %v16383_v35 = vcombine.high %v1213_v28, %v1221_v29  ;;  %9246 = vmatprep.subr.bf16.mxu1 %v16655_v31  ;;  %9204 = vmatpush2.bf16.msra.mxu0 %v16398_v33  ;;  %v16382_v41 = vcombine.low %v1213_v28, %v1221_v29 }
 0x13b   : > { %v1477_v32 = vld [vmem:[%s19283_s29 + $0x1e40] sm:$0xff]  ;;  %9247 = vmatpush2.bf16.msra.mxu1 %v16654_v34 }
 0x13c   : > { %v1197_v36 = vld [vmem:[%s19283_s29 + $0x1580] sm:$0xff]  ;;  %v16639_v39 = vcombine.high %v1469_v30, %v1477_v32  ;;  %9205 = vmatprep.subr.bf16.mxu0 %v16383_v35  ;;  %v16638_v42 = vcombine.low %v1469_v30, %v1477_v32 }
 0x13d   : > { %v1205_v37 = vld [vmem:[%s19283_s29 + $0x15c0] sm:$0xff] }
 0x13e   : > { %v1453_v38 = vld [vmem:[%s19283_s29 + $0x1d80] sm:$0xff]  ;;  %v16367_v43 = vcombine.high %v1197_v36, %v1205_v37  ;;  %9248 = vmatprep.subr.bf16.mxu1 %v16639_v39  ;;  %9206 = vmatpush2.bf16.msra.mxu0 %v16382_v41  ;;  %v16366_v49 = vcombine.low %v1197_v36, %v1205_v37  ;;  %v22091_v36 = vmov 0  }
 0x13f   : > { %v1461_v40 = vld [vmem:[%s19283_s29 + $0x1dc0] sm:$0xff]  ;;  %9249 = vmatpush2.bf16.msra.mxu1 %v16638_v42 }
 0x140   : > { %v1181_v44 = vld [vmem:[%s19283_s29 + $0x1500] sm:$0xff]  ;;  %v16623_v47 = vcombine.high %v1453_v38, %v1461_v40  ;;  %9207 = vmatprep.subr.bf16.mxu0 %v16367_v43  ;;  %v16622_v50 = vcombine.low %v1453_v38, %v1461_v40 }
 0x141   : > { %v1189_v45 = vld [vmem:[%s19283_s29 + $0x1540] sm:$0xff] }
 0x142   : > { %v1437_v46 = vld [vmem:[%s19283_s29 + $0x1d00] sm:$0xff]  ;;  %v16351_v51 = vcombine.high %v1181_v44, %v1189_v45  ;;  %9250 = vmatprep.subr.bf16.mxu1 %v16623_v47  ;;  %9208 = vmatpush2.bf16.msra.mxu0 %v16366_v49  ;;  %v16350_v57 = vcombine.low %v1181_v44, %v1189_v45 }
 0x143   : > { %v1445_v48 = vld [vmem:[%s19283_s29 + $0x1d40] sm:$0xff]  ;;  %9251 = vmatpush2.bf16.msra.mxu1 %v16622_v50 }
 0x144   : > { %v1165_v52 = vld [vmem:[%s19283_s29 + $0x1480] sm:$0xff]  ;;  %v16607_v55 = vcombine.high %v1437_v46, %v1445_v48  ;;  %9209 = vmatprep.subr.bf16.mxu0 %v16351_v51  ;;  %v16606_v58 = vcombine.low %v1437_v46, %v1445_v48 }
 0x145   : > { %v1173_v53 = vld [vmem:[%s19283_s29 + $0x14c0] sm:$0xff] }
 0x146   : > { %v1421_v54 = vld [vmem:[%s19283_s29 + $0x1c80] sm:$0xff]  ;;  %v16335_v59 = vcombine.high %v1165_v52, %v1173_v53  ;;  %9252 = vmatprep.subr.bf16.mxu1 %v16607_v55  ;;  %9210 = vmatpush2.bf16.msra.mxu0 %v16350_v57  ;;  %v16334_v1 = vcombine.low %v1165_v52, %v1173_v53 }
 0x147   : > { %v1429_v56 = vld [vmem:[%s19283_s29 + $0x1cc0] sm:$0xff]  ;;  %9253 = vmatpush2.bf16.msra.mxu1 %v16606_v58 }
 0x148   : > { %v1149_v60 = vld [vmem:[%s19283_s29 + $0x1400] sm:$0xff]  ;;  %v16591_v63 = vcombine.high %v1421_v54, %v1429_v56  ;;  %9211 = vmatprep.subr.bf16.mxu0 %v16335_v59  ;;  %v16590_v2 = vcombine.low %v1421_v54, %v1429_v56 }
 0x149   : > { %v1157_v61 = vld [vmem:[%s19283_s29 + $0x1440] sm:$0xff] }
 0x14a   : > { %v1405_v62 = vld [vmem:[%s19283_s29 + $0x1c00] sm:$0xff]  ;;  %v16319_v3 = vcombine.high %v1149_v60, %v1157_v61  ;;  %9254 = vmatprep.subr.bf16.mxu1 %v16591_v63  ;;  %9212 = vmatpush2.bf16.msra.mxu0 %v16334_v1  ;;  %v16318_v9 = vcombine.low %v1149_v60, %v1157_v61 }
 0x14b   : > { %v1413_v0 = vld [vmem:[%s19283_s29 + $0x1c40] sm:$0xff]  ;;  %9255 = vmatpush2.bf16.msra.mxu1 %v16590_v2 }
 0x14c   : > { %v1645_v4 = vld [vmem:[%s19283_s29 + $0x2380] sm:$0xff]  ;;  %v16575_v7 = vcombine.high %v1405_v62, %v1413_v0  ;;  %9213 = vmatprep.subr.bf16.mxu0 %v16319_v3  ;;  %v16574_v10 = vcombine.low %v1405_v62, %v1413_v0 }
 0x14d   : > { %v1653_v5 = vld [vmem:[%s19283_s29 + $0x23c0] sm:$0xff] }
 0x14e   : > { %v1901_v6 = vld [vmem:[%s19283_s29 + $0x2b80] sm:$0xff]  ;;  %v16815_v12 = vcombine.high %v1645_v4, %v1653_v5  ;;  %9256 = vmatprep.subr.bf16.mxu1 %v16575_v7  ;;  %9214 = vmatpush2.bf16.msra.mxu0 %v16318_v9  ;;  %v16814_v19 = vcombine.low %v1645_v4, %v1653_v5 }
 0x14f   : > { %v1909_v8 = vld [vmem:[%s19283_s29 + $0x2bc0] sm:$0xff]  ;;  %9257 = vmatpush2.bf16.msra.mxu1 %v16574_v10  ;;  %v622_v10 = vld [vmem:[%s19283_s29 + $0x388] sm:$0xff] }
 0x150   : > { %v1629_v13 = vld [vmem:[%s19283_s29 + $0x2300] sm:$0xff]  ;;  %v17071_v17 = vcombine.high %v1901_v6, %v1909_v8  ;;  %9269 = vmatprep.subr.bf16.mxu0 %v16815_v12  ;;  %v17070_v20 = vcombine.low %v1901_v6, %v1909_v8  ;;  %v630_v12 = vld [vmem:[%s19283_s29 + $0x3c8] sm:$0xff] }
 0x151   : > { %v1637_v14 = vld [vmem:[%s19283_s29 + $0x2340] sm:$0xff]  ;;  %9216 = vmatmul.mubr.bf16.vlgmr.msra.gmra.mxu0 %v17842_v11 }
 0x152   : > { %v1885_v15 = vld [vmem:[%s19283_s29 + $0x2b00] sm:$0xff]  ;;  %v16799_v21 = vcombine.high %v1629_v13, %v1637_v14  ;;  %9312 = vmatprep.subr.bf16.mxu1 %v17071_v17  ;;  %9270 = vmatpush1.bf16.msra.mxu0 %v16814_v19  ;;  %v16798_v28 = vcombine.low %v1629_v13, %v1637_v14  ;;  %v17844_v19 = vld [vmem:[%s22070_s0 + $0x28] ss:$44 sps:$4 sm:$0xff]  }
 0x153   : > { %v17843_v16 = vld [vmem:[%s22070_s0 + $0x18] ss:$44 sps:$4 sm:$0xff]  }
 0x154   : > { %v1893_v18 = vld [vmem:[%s19283_s29 + $0x2b40] sm:$0xff]  ;;  %9259 = vmatmul.mubr.bf16.vlgmr.msra.gmra.mxu1 %v17843_v16  ;;  %9271 = vmatprep.subr.bf16.mxu0 %v16799_v21  ;;  %v614_v21 = vld [vmem:[%s19283_s29 + $0x348] sm:$0xff] }
 0x155   : > { %v1613_v22 = vld [vmem:[%s19283_s29 + $0x2280] sm:$0xff]  ;;  %v17055_v25 = vcombine.high %v1885_v15, %v1893_v18  ;;  %9313 = vmatpush1.bf16.msra.mxu1 %v17070_v20  ;;  %v17054_v29 = vcombine.low %v1885_v15, %v1893_v18  ;;  %9344 = vmatprep.mubr.bf16.mxu1 %v22091_v36  ;;  %v606_v18 = vld [vmem:[%s19283_s29 + $0x308] sm:$0xff]  ;;  %v15793_v20 = vcombine.high %v622_v10, %v630_v12 }
 0x156   : > { %v1621_v23 = vld [vmem:[%s19283_s29 + $0x22c0] sm:$0xff]  ;;  %9272 = vmatpush1.bf16.msra.mxu0 %v16798_v28  ;;  %v15777_v28 = vcombine.high %v606_v18, %v614_v21 }
 0x157   : > { %v1869_v24 = vld [vmem:[%s19283_s29 + $0x2a80] sm:$0xff]  ;;  %v16783_v30 = vcombine.high %v1613_v22, %v1621_v23  ;;  %9314 = vmatprep.subr.bf16.mxu1 %v17055_v25  ;;  %v16782_v37 = vcombine.low %v1613_v22, %v1621_v23  ;;  %v15792_v23 = vcombine.low %v622_v10, %v630_v12  ;;  %v758_v12 = vld [vmem:[%s19283_s29 + $0x7c8] sm:$0xff] }
 0x158   : > { %v1877_v26 = vld [vmem:[%s19283_s29 + $0x2ac0] sm:$0xff] }
 0x159   : > { %v17845_v27 = vld [vmem:[%s22070_s0 + $0x24] ss:$44 sps:$4 sm:$0xff]   ;;  %v17039_v34 = vcombine.high %v1869_v24, %v1877_v26  ;;  %9315 = vmatpush1.bf16.msra.mxu1 %v17054_v29  ;;  %9273 = vmatprep.subr.bf16.mxu0 %v16783_v30  ;;  %v17038_v38 = vcombine.low %v1869_v24, %v1877_v26  ;;  %v598_v29 = vld [vmem:[%s19283_s29 + $0x2c8] sm:$0xff] }
 0x15a   : > { %v1597_v31 = vld [vmem:[%s19283_s29 + $0x2200] sm:$0xff]  ;;  %9301 = vmatprep.mubr.bf16.mxu0 %v17845_v27  ;;  %9274 = vmatpush1.bf16.msra.mxu0 %v16782_v37  ;;  %v590_v27 = vld [vmem:[%s19283_s29 + $0x288] sm:$0xff] }
 0x15b   : > { %v1605_v32 = vld [vmem:[%s19283_s29 + $0x2240] sm:$0xff]  ;;  %9316 = vmatprep.subr.bf16.mxu1 %v17039_v34  ;;  %v15761_v37 = vcombine.high %v590_v27, %v598_v29 }
 0x15c   : > { %v1853_v33 = vld [vmem:[%s19283_s29 + $0x2a00] sm:$0xff]  ;;  %v16767_v39 = vcombine.high %v1597_v31, %v1605_v32  ;;  %v16766_v45 = vcombine.low %v1597_v31, %v1605_v32  ;;  %v15776_v31 = vcombine.low %v606_v18, %v614_v21  ;;  %v742_v21 = vld [vmem:[%s19283_s29 + $0x748] sm:$0xff] }
 0x15d   : > { %v1861_v35 = vld [vmem:[%s19283_s29 + $0x2a40] sm:$0xff]  ;;  %9317 = vmatpush1.bf16.msra.mxu1 %v17038_v38  ;;  %v582_v38 = vld [vmem:[%s19283_s29 + $0x248] sm:$0xff] }
 0x15e   : > { %v1581_v40 = vld [vmem:[%s19283_s29 + $0x2180] sm:$0xff]  ;;  %v17023_v43 = vcombine.high %v1853_v33, %v1861_v35  ;;  %9275 = vmatprep.subr.bf16.mxu0 %v16767_v39  ;;  %v17022_v46 = vcombine.low %v1853_v33, %v1861_v35  ;;  %v574_v35 = vld [vmem:[%s19283_s29 + $0x208] sm:$0xff] }
 0x15f   : > { %v1589_v41 = vld [vmem:[%s19283_s29 + $0x21c0] sm:$0xff]  ;;  %9276 = vmatpush1.bf16.msra.mxu0 %v16766_v45  ;;  %v558_v45 = vld [vmem:[%s19283_s29 + $0x188] sm:$0xff] }
 0x160   : > { %v1837_v42 = vld [vmem:[%s19283_s29 + $0x2980] sm:$0xff]  ;;  %v16751_v47 = vcombine.high %v1581_v40, %v1589_v41  ;;  %9318 = vmatprep.subr.bf16.mxu1 %v17023_v43  ;;  %v16750_v53 = vcombine.low %v1581_v40, %v1589_v41  ;;  %v15760_v41 = vcombine.low %v590_v27, %v598_v29  ;;  %v726_v29 = vld [vmem:[%s19283_s29 + $0x6c8] sm:$0xff] }
 0x161   : > { %v1845_v44 = vld [vmem:[%s19283_s29 + $0x29c0] sm:$0xff]  ;;  %9319 = vmatpush1.bf16.msra.mxu1 %v17022_v46  ;;  %v15745_v46 = vcombine.high %v574_v35, %v582_v38 }
 0x162   : > { %v1565_v48 = vld [vmem:[%s19283_s29 + $0x2100] sm:$0xff]  ;;  %v17007_v51 = vcombine.high %v1837_v42, %v1845_v44  ;;  %9277 = vmatprep.subr.bf16.mxu0 %v16751_v47  ;;  %v17006_v54 = vcombine.low %v1837_v42, %v1845_v44  ;;  %v566_v47 = vld [vmem:[%s19283_s29 + $0x1c8] sm:$0xff] }
 0x163   : > { %v1573_v49 = vld [vmem:[%s19283_s29 + $0x2140] sm:$0xff]  ;;  %9278 = vmatpush1.bf16.msra.mxu0 %v16750_v53  ;;  %v542_v53 = vld [vmem:[%s19283_s29 + $0x108] sm:$0xff] }
 0x164   : > { %v1821_v50 = vld [vmem:[%s19283_s29 + $0x2900] sm:$0xff]  ;;  %v16735_v55 = vcombine.high %v1565_v48, %v1573_v49  ;;  %9320 = vmatprep.subr.bf16.mxu1 %v17007_v51  ;;  %v16734_v61 = vcombine.low %v1565_v48, %v1573_v49  ;;  %v15744_v49 = vcombine.low %v574_v35, %v582_v38  ;;  %v702_v38 = vld [vmem:[%s19283_s29 + $0x608] sm:$0xff] }
 0x165   : > { %v1829_v52 = vld [vmem:[%s19283_s29 + $0x2940] sm:$0xff]  ;;  %9321 = vmatpush1.bf16.msra.mxu1 %v17006_v54  ;;  %v15729_v54 = vcombine.high %v558_v45, %v566_v47 }
 0x166   : > { %v1549_v56 = vld [vmem:[%s19283_s29 + $0x2080] sm:$0xff]  ;;  %v16991_v59 = vcombine.high %v1821_v50, %v1829_v52  ;;  %9279 = vmatprep.subr.bf16.mxu0 %v16735_v55  ;;  %v16990_v62 = vcombine.low %v1821_v50, %v1829_v52  ;;  %v550_v55 = vld [vmem:[%s19283_s29 + $0x148] sm:$0xff] }
 0x167   : > { %v1557_v57 = vld [vmem:[%s19283_s29 + $0x20c0] sm:$0xff]  ;;  %9280 = vmatpush1.bf16.msra.mxu0 %v16734_v61  ;;  %v526_v61 = vld [vmem:[%s19283_s29 + $0x88] sm:$0xff] }
 0x168   : > { %v1805_v58 = vld [vmem:[%s19283_s29 + $0x2880] sm:$0xff]  ;;  %v16719_v63 = vcombine.high %v1549_v56, %v1557_v57  ;;  %9322 = vmatprep.subr.bf16.mxu1 %v16991_v59  ;;  %v16718_v5 = vcombine.low %v1549_v56, %v1557_v57  ;;  %v15728_v57 = vcombine.low %v558_v45, %v566_v47  ;;  %v694_v47 = vld [vmem:[%s19283_s29 + $0x5c8] sm:$0xff] }
 0x169   : > { %v1813_v60 = vld [vmem:[%s19283_s29 + $0x28c0] sm:$0xff]  ;;  %9323 = vmatpush1.bf16.msra.mxu1 %v16990_v62  ;;  %v15713_v62 = vcombine.high %v542_v53, %v550_v55 }
 0x16a   : > { %v1533_v0 = vld [vmem:[%s19283_s29 + $0x2000] sm:$0xff]  ;;  %v16975_v3 = vcombine.high %v1805_v58, %v1813_v60  ;;  %9281 = vmatprep.subr.bf16.mxu0 %v16719_v63  ;;  %v16974_v6 = vcombine.low %v1805_v58, %v1813_v60  ;;  %v534_v63 = vld [vmem:[%s19283_s29 + $0xc8] sm:$0xff] }
 0x16b   : > { %v1541_v1 = vld [vmem:[%s19283_s29 + $0x2040] sm:$0xff]  ;;  %9282 = vmatpush1.bf16.msra.mxu0 %v16718_v5  ;;  %v510_v5 = vld [vmem:[%s19283_s29 + $0x8] sm:$0xff] }
 0x16c   : > { %v1789_v2 = vld [vmem:[%s19283_s29 + $0x2800] sm:$0xff]  ;;  %v16703_v7 = vcombine.high %v1533_v0, %v1541_v1  ;;  %9324 = vmatprep.subr.bf16.mxu1 %v16975_v3  ;;  %v16702_v13 = vcombine.low %v1533_v0, %v1541_v1  ;;  %v15712_v1 = vcombine.low %v542_v53, %v550_v55  ;;  %v678_v55 = vld [vmem:[%s19283_s29 + $0x548] sm:$0xff] }
 0x16d   : > { %v1797_v4 = vld [vmem:[%s19283_s29 + $0x2840] sm:$0xff]  ;;  %9325 = vmatpush1.bf16.msra.mxu1 %v16974_v6  ;;  %v15697_v6 = vcombine.high %v526_v61, %v534_v63 }
 0x16e   : > { %v1773_v8 = vld [vmem:[%s19283_s29 + $0x2780] sm:$0xff]  ;;  %v16959_v11 = vcombine.high %v1789_v2, %v1797_v4  ;;  %9283 = vmatprep.subr.bf16.mxu0 %v16703_v7  ;;  %v16958_v14 = vcombine.low %v1789_v2, %v1797_v4  ;;  %v518_v7 = vld [vmem:[%s19283_s29 + $0x48] sm:$0xff] }
 0x16f   : > { %v1781_v9 = vld [vmem:[%s19283_s29 + $0x27c0] sm:$0xff]  ;;  %9284 = vmatpush1.bf16.msra.mxu0 %v16702_v13  ;;  %v878_v13 = vld [vmem:[%s19283_s29 + $0xb88] sm:$0xff] }
 0x170   : > { %v16943_v15 = vcombine.high %v1773_v8, %v1781_v9  ;;  %v1757_v16 = vld [vmem:[%s19283_s29 + $0x2700] sm:$0xff]  ;;  %9326 = vmatprep.subr.bf16.mxu1 %v16959_v11  ;;  %v16942_v22 = vcombine.low %v1773_v8, %v1781_v9  ;;  %v15696_v9 = vcombine.low %v526_v61, %v534_v63  ;;  %v750_v11 = vld [vmem:[%s19283_s29 + $0x788] sm:$0xff] }
 0x171   : > { %v1765_v17 = vld [vmem:[%s19283_s29 + $0x2740] sm:$0xff]  ;;  %9327 = vmatpush1.bf16.msra.mxu1 %v16958_v14  ;;  %v15681_v14 = vcombine.high %v510_v5, %v518_v7  ;;  %v662_v63 = vld [vmem:[%s19283_s29 + $0x4c8] sm:$0xff] }
 0x172   : > { %9285 = vmatprep.subr.bf16.mxu0 %v16943_v15  ;;  %v16927_v24 = vcombine.high %v1757_v16, %v1765_v17  ;;  %v1741_v25 = vld [vmem:[%s19283_s29 + $0x2680] sm:$0xff]  ;;  %9355 = vmatprep.subr.bf16.mxu1 %v15793_v20  ;;  %v16926_v30 = vcombine.low %v1757_v16, %v1765_v17  ;;  %v886_v15 = vld [vmem:[%s19283_s29 + $0xbc8] sm:$0xff]  ;;  %v15680_v17 = vcombine.low %v510_v5, %v518_v7 }
 0x173   : > { %v1749_v26 = vld [vmem:[%s19283_s29 + $0x26c0] sm:$0xff]  ;;  %9286 = vmatpush2.bf16.msra.mxu0 %v16942_v22  ;;  %v734_v20 = vld [vmem:[%s19283_s29 + $0x708] sm:$0xff] }
 0x174   : > { %9345 = vmatmul.mubr.bf16.vlgmr.msra.gmra.mxu1 %v17844_v19  ;;  %9287 = vmatprep.subr.bf16.mxu0 %v16927_v24  ;;  %v16911_v32 = vcombine.high %v1741_v25, %v1749_v26  ;;  %v1725_v33 = vld [vmem:[%s19283_s29 + $0x2600] sm:$0xff]  ;;  %v16910_v40 = vcombine.low %v1741_v25, %v1749_v26  ;;  %v16049_v19 = vcombine.high %v878_v13, %v886_v15  ;;  %v862_v22 = vld [vmem:[%s19283_s29 + $0xb08] sm:$0xff] }
 0x175   : > { %9356 = vmatpush1.bf16.msra.mxu1 %v15792_v23  ;;  %v1733_v34 = vld [vmem:[%s19283_s29 + $0x2640] sm:$0xff]  ;;  %v15921_v23 = vcombine.high %v750_v11, %v758_v12  ;;  %v870_v24 = vld [vmem:[%s19283_s29 + $0xb48] sm:$0xff]  ;;  %v16048_v25 = vcombine.low %v878_v13, %v886_v15  ;;  %v15920_v26 = vcombine.low %v750_v11, %v758_v12  ;;  %v15904_v35 = vcombine.low %v734_v20, %v742_v21 }
 0x176   : > { %9357 = vmatprep.subr.bf16.mxu1 %v15777_v28  ;;  %v18616_v39 = vld [vmem:[%s22070_s0 + $0x4] ss:$44 sps:$4 sm:$0xff]   ;;  %v16895_v42 = vcombine.high %v1725_v33, %v1733_v34  ;;  %v16894_v48 = vcombine.low %v1725_v33, %v1733_v34  ;;  %v17847_v18 = vld [vmem:[%s22070_s0 + $0x20] ss:$44 sps:$4 sm:$0xff]   ;;  %v16033_v27 = vcombine.high %v862_v22, %v870_v24  ;;  %v16032_v33 = vcombine.low %v862_v22, %v870_v24 }
 0x177   : > { %9387 = vmatprep.mubr.bf16.mxu1 %v18616_v39  ;;  %9288 = vmatpush2.bf16.msra.mxu0 %v16926_v30  ;;  %v1709_v43 = vld [vmem:[%s19283_s29 + $0x2580] sm:$0xff]  ;;  %v718_v28 = vld [vmem:[%s19283_s29 + $0x688] sm:$0xff] }
 0x178   : > { %9289 = vmatprep.subr.bf16.mxu0 %v16911_v32  ;;  %v1717_v44 = vld [vmem:[%s19283_s29 + $0x25c0] sm:$0xff]  ;;  %v846_v30 = vld [vmem:[%s19283_s29 + $0xa88] sm:$0xff] }
 0x179   : > { %9358 = vmatpush1.bf16.msra.mxu1 %v15776_v31  ;;  %v16879_v50 = vcombine.high %v1709_v43, %v1717_v44  ;;  %v1693_v51 = vld [vmem:[%s19283_s29 + $0x2500] sm:$0xff]  ;;  %v16878_v56 = vcombine.low %v1709_v43, %v1717_v44  ;;  %v15905_v31 = vcombine.high %v734_v20, %v742_v21  ;;  %v854_v32 = vld [vmem:[%s19283_s29 + $0xac8] sm:$0xff]  ;;  %v15888_v44 = vcombine.low %v718_v28, %v726_v29 }
 0x17a   : > { %9359 = vmatprep.subr.bf16.mxu1 %v15761_v37  ;;  %v1701_v52 = vld [vmem:[%s19283_s29 + $0x2540] sm:$0xff]  ;;  %v18617_v34 = vld [vmem:[%s22070_s0 + $0xc] ss:$44 sps:$4 sm:$0xff]   ;;  %v16017_v37 = vcombine.high %v846_v30, %v854_v32  ;;  %v16016_v43 = vcombine.low %v846_v30, %v854_v32 }
 0x17b   : > { %9290 = vmatpush2.bf16.msra.mxu0 %v16910_v40  ;;  %v16863_v58 = vcombine.high %v1693_v51, %v1701_v52  ;;  %v1677_v59 = vld [vmem:[%s19283_s29 + $0x2480] sm:$0xff]  ;;  %v16862_v0 = vcombine.low %v1693_v51, %v1701_v52  ;;  %v710_v39 = vld [vmem:[%s19283_s29 + $0x648] sm:$0xff] }
 0x17c   : > { %9291 = vmatprep.subr.bf16.mxu0 %v16895_v42  ;;  %v1685_v60 = vld [vmem:[%s19283_s29 + $0x24c0] sm:$0xff]  ;;  %v830_v40 = vld [vmem:[%s19283_s29 + $0xa08] sm:$0xff]  ;;  %v15872_v52 = vcombine.low %v702_v38, %v710_v39 }
 0x17d   : > { %9360 = vmatpush1.bf16.msra.mxu1 %v15760_v41  ;;  %v16847_v2 = vcombine.high %v1677_v59, %v1685_v60  ;;  %v1661_v3 = vld [vmem:[%s19283_s29 + $0x2400] sm:$0xff]  ;;  %v16846_v8 = vcombine.low %v1677_v59, %v1685_v60  ;;  %v15889_v41 = vcombine.high %v718_v28, %v726_v29  ;;  %v838_v42 = vld [vmem:[%s19283_s29 + $0xa48] sm:$0xff] }
 0x17e   : > { %9361 = vmatprep.subr.bf16.mxu1 %v15745_v46  ;;  %v1669_v4 = vld [vmem:[%s19283_s29 + $0x2440] sm:$0xff]  ;;  %v16001_v45 = vcombine.high %v830_v40, %v838_v42  ;;  %v686_v46 = vld [vmem:[%s19283_s29 + $0x588] sm:$0xff]  ;;  %v16000_v51 = vcombine.low %v830_v40, %v838_v42 }
 0x17f   : > { %9292 = vmatpush2.bf16.msra.mxu0 %v16894_v48  ;;  %v16831_v10 = vcombine.high %v1661_v3, %v1669_v4  ;;  %v16830_v16 = vcombine.low %v1661_v3, %v1669_v4  ;;  %v814_v48 = vld [vmem:[%s19283_s29 + $0x988] sm:$0xff]  ;;  %v15856_v60 = vcombine.low %v686_v46, %v694_v47 }
 0x180   : > { %9293 = vmatprep.subr.bf16.mxu0 %v16879_v50  ;;  %v822_v50 = vld [vmem:[%s19283_s29 + $0x9c8] sm:$0xff] }
 0x181   : > { %9362 = vmatpush1.bf16.msra.mxu1 %v15744_v49  ;;  %v15873_v49 = vcombine.high %v702_v38, %v710_v39  ;;  %v15985_v53 = vcombine.high %v814_v48, %v822_v50  ;;  %v15984_v59 = vcombine.low %v814_v48, %v822_v50  ;;  %v646_v7 = vld [vmem:[%s19283_s29 + $0x448] sm:$0xff] }
 0x182   : > { %9363 = vmatprep.subr.bf16.mxu1 %v15729_v54  ;;  %v670_v54 = vld [vmem:[%s19283_s29 + $0x508] sm:$0xff] }
 0x183   : > { %9294 = vmatpush2.bf16.msra.mxu0 %v16878_v56  ;;  %v798_v56 = vld [vmem:[%s19283_s29 + $0x908] sm:$0xff]  ;;  %v15840_v4 = vcombine.low %v670_v54, %v678_v55 }
 0x184   : > { %9295 = vmatprep.subr.bf16.mxu0 %v16863_v58  ;;  %v806_v58 = vld [vmem:[%s19283_s29 + $0x948] sm:$0xff] }
 0x185   : > { %9364 = vmatpush1.bf16.msra.mxu1 %v15728_v57  ;;  %v15857_v57 = vcombine.high %v686_v46, %v694_v47  ;;  %v15969_v61 = vcombine.high %v798_v56, %v806_v58  ;;  %v15968_v3 = vcombine.low %v798_v56, %v806_v58  ;;  %v1014_v15 = vld [vmem:[%s19283_s29 + $0xfc8] sm:$0xff] }
 0x186   : > { %9365 = vmatprep.subr.bf16.mxu1 %v15713_v62  ;;  %v654_v62 = vld [vmem:[%s19283_s29 + $0x488] sm:$0xff] }
 0x187   : > { %9296 = vmatpush2.bf16.msra.mxu0 %v16862_v0  ;;  %v782_v0 = vld [vmem:[%s19283_s29 + $0x888] sm:$0xff]  ;;  %v15824_v12 = vcombine.low %v654_v62, %v662_v63 }
 0x188   : > { %9297 = vmatprep.subr.bf16.mxu0 %v16847_v2  ;;  %v790_v2 = vld [vmem:[%s19283_s29 + $0x8c8] sm:$0xff] }
 0x189   : > { %9366 = vmatpush1.bf16.msra.mxu1 %v15712_v1  ;;  %v15841_v1 = vcombine.high %v670_v54, %v678_v55  ;;  %v15953_v5 = vcombine.high %v782_v0, %v790_v2  ;;  %v15952_v11 = vcombine.low %v782_v0, %v790_v2  ;;  %v990_v22 = vld [vmem:[%s19283_s29 + $0xf08] sm:$0xff] }
 0x18a   : > { %9367 = vmatprep.subr.bf16.mxu1 %v15697_v6  ;;  %v638_v6 = vld [vmem:[%s19283_s29 + $0x408] sm:$0xff] }
 0x18b   : > { %9298 = vmatpush2.bf16.msra.mxu0 %v16846_v8  ;;  %v766_v8 = vld [vmem:[%s19283_s29 + $0x808] sm:$0xff]  ;;  %v15808_v20 = vcombine.low %v638_v6, %v646_v7 }
 0x18c   : > { %9299 = vmatprep.subr.bf16.mxu0 %v16831_v10  ;;  %v774_v10 = vld [vmem:[%s19283_s29 + $0x848] sm:$0xff] }
 0x18d   : > { %9368 = vmatpush1.bf16.msra.mxu1 %v15696_v9  ;;  %v15825_v9 = vcombine.high %v654_v62, %v662_v63  ;;  %v15937_v13 = vcombine.high %v766_v8, %v774_v10  ;;  %v1118_v24 = vld [vmem:[%s19283_s29 + $0x1308] sm:$0xff] }
 0x18e   : > { %9369 = vmatprep.subr.bf16.mxu1 %v15681_v14  ;;  %v1006_v14 = vld [vmem:[%s19283_s29 + $0xf88] sm:$0xff] }
 0x18f   : > { %9300 = vmatpush2.bf16.msra.mxu0 %v16830_v16  ;;  %v1134_v16 = vld [vmem:[%s19283_s29 + $0x1388] sm:$0xff]  ;;  %v16177_v21 = vcombine.high %v1006_v14, %v1014_v15 }
 0x190   : > { %9398 = vmatprep.subr.bf16.mxu0 %v16049_v19  ;;  %v15936_v19 = vcombine.low %v766_v8, %v774_v10  ;;  %v974_v30 = vld [vmem:[%s19283_s29 + $0xe88] sm:$0xff] }
 0x191   : > { %9370 = vmatpush1.bf16.msra.mxu1 %v15680_v17  ;;  %v15809_v17 = vcombine.high %v638_v6, %v646_v7  ;;  %v1102_v32 = vld [vmem:[%s19283_s29 + $0x1288] sm:$0xff]  ;;  %v1921_v7 = vlaneseq }
 0x192   : > { %9371 = vmatprep.subr.bf16.mxu1 %v15921_v23  ;;  %9302 = vmatmul.mubr.bf16.vlgmr.msra.gmra.mxu0 %v17847_v18  ;;  %v1142_v18 = vld [vmem:[%s19283_s29 + $0x13c8] sm:$0xff] }
 0x193   : > { %9399 = vmatpush1.bf16.msra.mxu0 %v16048_v25  ;;  %9430 = vmatprep.mubr.bf16.mxu0 %v18617_v34  ;;  %v998_v23 = vld [vmem:[%s19283_s29 + $0xf48] sm:$0xff]  ;;  %v16305_v25 = vcombine.high %v1134_v16, %v1142_v18  ;;  %v16304_v28 = vcombine.low %v1134_v16, %v1142_v18  ;;  %v19614_v16 = vshrl.u32 %v1921_v7, 7 }
 0x194   : > { %9400 = vmatprep.subr.bf16.mxu0 %v16033_v27  ;;  %v16176_v27 = vcombine.low %v1006_v14, %v1014_v15  ;;  %v16161_v29 = vcombine.high %v990_v22, %v998_v23  ;;  %v1110_v34 = vld [vmem:[%s19283_s29 + $0x12c8] sm:$0xff] }
 0x195   : > { %9372 = vmatpush2.bf16.msra.mxu1 %v15920_v26  ;;  %v1126_v26 = vld [vmem:[%s19283_s29 + $0x1348] sm:$0xff]  ;;  %v16272_v47 = vcombine.low %v1102_v32, %v1110_v34 }
 0x196   : > { %9373 = vmatprep.subr.bf16.mxu1 %v15905_v31  ;;  %v982_v31 = vld [vmem:[%s19283_s29 + $0xec8] sm:$0xff]  ;;  %v16288_v38 = vcombine.low %v1118_v24, %v1126_v26 }
 0x197   : > { %9401 = vmatpush1.bf16.msra.mxu0 %v16032_v33  ;;  %v16289_v33 = vcombine.high %v1118_v24, %v1126_v26  ;;  %v16145_v39 = vcombine.high %v974_v30, %v982_v31  ;;  %v958_v40 = vld [vmem:[%s19283_s29 + $0xe08] sm:$0xff]  ;;  %v16144_v46 = vcombine.low %v974_v30, %v982_v31  ;;  %v1917_v24 = vld [vmem:[%s19290_s28] sm:$0xff]  ;;  %v19622_v26 = vsub.s32 0, %v19614_v16 }
 0x198   : > { %9402 = vmatprep.subr.bf16.mxu0 %v16017_v37  ;;  %v16160_v37 = vcombine.low %v990_v22, %v998_v23  ;;  %v1086_v42 = vld [vmem:[%s19283_s29 + $0x1208] sm:$0xff] }
 0x199   : > { %9374 = vmatpush2.bf16.msra.mxu1 %v15904_v35  ;;  %v18618_v35 = vld [vmem:[%s22070_s0] ss:$44 sps:$4 sm:$0xff]   ;;  %22128 = vst [vmem:[#allocation24_spill] sm:$0xff] %v19622_v26 }
 0x19a   : > { %9375 = vmatprep.subr.bf16.mxu1 %v15889_v41  ;;  %v966_v41 = vld [vmem:[%s19283_s29 + $0xe48] sm:$0xff] }
 0x19b   : > { %9403 = vmatpush1.bf16.msra.mxu0 %v16016_v43  ;;  %v16273_v43 = vcombine.high %v1102_v32, %v1110_v34  ;;  %v16129_v48 = vcombine.high %v958_v40, %v966_v41  ;;  %v950_v50 = vld [vmem:[%s19283_s29 + $0xdc8] sm:$0xff]  ;;  %v16128_v54 = vcombine.low %v958_v40, %v966_v41  ;;  %v1924_v34 = vrot.slane %v1917_v24, %v19622_v26 }
 0x19c   : > { %9404 = vmatprep.subr.bf16.mxu0 %v16001_v45  ;;  %v18619_v45 = vld [vmem:[%s22070_s0 + $0x14] ss:$44 sps:$4 sm:$0xff]   ;;  %v934_v58 = vld [vmem:[%s19283_s29 + $0xd48] sm:$0xff] }
 0x19d   : > { %9376 = vmatpush2.bf16.msra.mxu1 %v15888_v44  ;;  %v1094_v44 = vld [vmem:[%s19283_s29 + $0x1248] sm:$0xff] }
 0x19e   : > { %9377 = vmatprep.subr.bf16.mxu1 %v15873_v49  ;;  %v942_v49 = vld [vmem:[%s19283_s29 + $0xd88] sm:$0xff]  ;;  %v16256_v55 = vcombine.low %v1086_v42, %v1094_v44 }
 0x19f   : > { %9405 = vmatpush1.bf16.msra.mxu0 %v16000_v51  ;;  %v1070_v51 = vld [vmem:[%s19283_s29 + $0x1188] sm:$0xff]  ;;  %v16113_v56 = vcombine.high %v942_v49, %v950_v50  ;;  %v16112_v62 = vcombine.low %v942_v49, %v950_v50 }
 0x1a0   : > { %9406 = vmatprep.subr.bf16.mxu0 %v15985_v53  ;;  %v1078_v53 = vld [vmem:[%s19283_s29 + $0x11c8] sm:$0xff] }
 0x1a1   : > { %9378 = vmatpush2.bf16.msra.mxu1 %v15872_v52  ;;  %v16257_v52 = vcombine.high %v1086_v42, %v1094_v44  ;;  %v16240_v63 = vcombine.low %v1070_v51, %v1078_v53  ;;  %v918_v2 = vld [vmem:[%s19283_s29 + $0xcc8] sm:$0xff] }
 0x1a2   : > { %9379 = vmatprep.subr.bf16.mxu1 %v15857_v57  ;;  %v926_v57 = vld [vmem:[%s19283_s29 + $0xd08] sm:$0xff] }
 0x1a3   : > { %9407 = vmatpush1.bf16.msra.mxu0 %v15984_v59  ;;  %v1054_v59 = vld [vmem:[%s19283_s29 + $0x1108] sm:$0xff]  ;;  %v16097_v0 = vcombine.high %v926_v57, %v934_v58  ;;  %v16096_v6 = vcombine.low %v926_v57, %v934_v58 }
 0x1a4   : > { %9408 = vmatprep.subr.bf16.mxu0 %v15969_v61  ;;  %v1062_v61 = vld [vmem:[%s19283_s29 + $0x1148] sm:$0xff] }
 0x1a5   : > { %9380 = vmatpush2.bf16.msra.mxu1 %v15856_v60  ;;  %v16241_v60 = vcombine.high %v1070_v51, %v1078_v53  ;;  %v16224_v8 = vcombine.low %v1054_v59, %v1062_v61  ;;  %v894_v10 = vld [vmem:[%s19283_s29 + $0xc08] sm:$0xff] }
 0x1a6   : > { %9381 = vmatprep.subr.bf16.mxu1 %v15841_v1  ;;  %v910_v1 = vld [vmem:[%s19283_s29 + $0xc88] sm:$0xff] }
 0x1a7   : > { %9409 = vmatpush1.bf16.msra.mxu0 %v15968_v3  ;;  %v1038_v3 = vld [vmem:[%s19283_s29 + $0x1088] sm:$0xff]  ;;  %v16080_v15 = vcombine.low %v910_v1, %v918_v2 }
 0x1a8   : > { %9410 = vmatprep.subr.bf16.mxu0 %v15953_v5  ;;  %v1046_v5 = vld [vmem:[%s19283_s29 + $0x10c8] sm:$0xff] }
 0x1a9   : > { %9382 = vmatpush2.bf16.msra.mxu1 %v15840_v4  ;;  %v16225_v4 = vcombine.high %v1054_v59, %v1062_v61  ;;  %v1030_v14 = vld [vmem:[%s19283_s29 + $0x1048] sm:$0xff] }
 0x1aa   : > { %9383 = vmatprep.subr.bf16.mxu1 %v15825_v9  ;;  %v16081_v9 = vcombine.high %v910_v1, %v918_v2  ;;  %v1398_v23 = vld [vmem:[%s19283_s29 + $0x1bc8] sm:$0xff] }
 0x1ab   : > { %9411 = vmatpush1.bf16.msra.mxu0 %v15952_v11  ;;  %v902_v11 = vld [vmem:[%s19283_s29 + $0xc48] sm:$0xff] }
 0x1ac   : > { %9412 = vmatprep.subr.bf16.mxu0 %v15937_v13  ;;  %v16209_v13 = vcombine.high %v1038_v3, %v1046_v5  ;;  %v16065_v18 = vcombine.high %v894_v10, %v902_v11  ;;  %v1254_v30 = vld [vmem:[%s19283_s29 + $0x1748] sm:$0xff] }
 0x1ad   : > { %9384 = vmatpush2.bf16.msra.mxu1 %v15824_v12  ;;  %v1022_v12 = vld [vmem:[%s19283_s29 + $0x1008] sm:$0xff] }
 0x1ae   : > { %9385 = vmatprep.subr.bf16.mxu1 %v15809_v17  ;;  %v16208_v17 = vcombine.low %v1038_v3, %v1046_v5  ;;  %v16193_v22 = vcombine.high %v1022_v12, %v1030_v14  ;;  %v1374_v31 = vld [vmem:[%s19283_s29 + $0x1b08] sm:$0xff] }
 0x1af   : > { %9413 = vmatpush1.bf16.msra.mxu0 %v15936_v19  ;;  %v1262_v19 = vld [vmem:[%s19283_s29 + $0x1788] sm:$0xff] }
 0x1b0   : > { %9414 = vmatprep.subr.bf16.mxu0 %v16177_v21  ;;  %v1390_v21 = vld [vmem:[%s19283_s29 + $0x1b88] sm:$0xff] }
 0x1b1   : > { %9386 = vmatpush2.bf16.msra.mxu1 %v15808_v20  ;;  %v1270_v20 = vld [vmem:[%s19283_s29 + $0x17c8] sm:$0xff] }
 0x1b2   : > { %9441 = vmatprep.subr.bf16.mxu1 %v16305_v25  ;;  %v16064_v25 = vcombine.low %v894_v10, %v902_v11  ;;  %v16433_v32 = vcombine.high %v1262_v19, %v1270_v20  ;;  %v1238_v40 = vld [vmem:[%s19283_s29 + $0x16c8] sm:$0xff] }
 0x1b3   : > { %9415 = vmatpush2.bf16.msra.mxu0 %v16176_v27  ;;  %v16192_v27 = vcombine.low %v1022_v12, %v1030_v14  ;;  %v1358_v41 = vld [vmem:[%s19283_s29 + $0x1a88] sm:$0xff] }
 0x1b4   : > { %9388 = vmatmul.mubr.bf16.vlgmr.msra.gmra.mxu1 %v18618_v35  ;;  %9416 = vmatprep.subr.bf16.mxu0 %v16161_v29  ;;  %v1246_v29 = vld [vmem:[%s19283_s29 + $0x1708] sm:$0xff]  ;;  %v16560_v35 = vcombine.low %v1390_v21, %v1398_v23 }
 0x1b5   : > { %9442 = vmatpush1.bf16.msra.mxu1 %v16304_v28  ;;  %9473 = vmatprep.mubr.bf16.mxu1 %v18619_v45  ;;  %v16561_v28 = vcombine.high %v1390_v21, %v1398_v23  ;;  %v16417_v42 = vcombine.high %v1246_v29, %v1254_v30  ;;  %v18620_v45 = vld [vmem:[%s22070_s0 + $0x8] ss:$44 sps:$4 sm:$0xff]   ;;  %v16416_v51 = vcombine.low %v1246_v29, %v1254_v30 }
 0x1b6   : > { %9443 = vmatprep.subr.bf16.mxu1 %v16289_v33  ;;  %v1382_v33 = vld [vmem:[%s19283_s29 + $0x1b48] sm:$0xff] }
 0x1b7   : > { %9417 = vmatpush2.bf16.msra.mxu0 %v16160_v37  ;;  %v16432_v37 = vcombine.low %v1262_v19, %v1270_v20  ;;  %v18621_v49 = vld [vmem:[%s22070_s0 + $0x1c] ss:$44 sps:$4 sm:$0xff]  }
 0x1b8   : > { %9418 = vmatprep.subr.bf16.mxu0 %v16145_v39  ;;  %v1230_v39 = vld [vmem:[%s19283_s29 + $0x1688] sm:$0xff] }
 0x1b9   : > { %9444 = vmatpush1.bf16.msra.mxu1 %v16288_v38  ;;  %v16545_v38 = vcombine.high %v1374_v31, %v1382_v33  ;;  %v1214_v53 = vld [vmem:[%s19283_s29 + $0x1608] sm:$0xff]  ;;  %v16401_v58 = vcombine.high %v1230_v39, %v1238_v40 }
 0x1ba   : > { %9445 = vmatprep.subr.bf16.mxu1 %v16273_v43  ;;  %v1366_v43 = vld [vmem:[%s19283_s29 + $0x1ac8] sm:$0xff] }
 0x1bb   : > { %9419 = vmatpush2.bf16.msra.mxu0 %v16144_v46  ;;  %v1350_v59 = vld [vmem:[%s19283_s29 + $0x1a48] sm:$0xff] }
 0x1bc   : > { %9420 = vmatprep.subr.bf16.mxu0 %v16129_v48  ;;  %v16544_v48 = vcombine.low %v1374_v31, %v1382_v33  ;;  %v1198_v2 = vld [vmem:[%s19283_s29 + $0x1588] sm:$0xff] }
 0x1bd   : > { %9446 = vmatpush1.bf16.msra.mxu1 %v16272_v47  ;;  %v1206_v3 = vld [vmem:[%s19283_s29 + $0x15c8] sm:$0xff] }
 0x1be   : > { %9447 = vmatprep.subr.bf16.mxu1 %v16257_v52  ;;  %v16529_v52 = vcombine.high %v1358_v41, %v1366_v43  ;;  %v1334_v7 = vld [vmem:[%s19283_s29 + $0x19c8] sm:$0xff]  ;;  %v16369_v14 = vcombine.high %v1198_v2, %v1206_v3 }
 0x1bf   : > { %9421 = vmatpush2.bf16.msra.mxu0 %v16128_v54  ;;  %v1222_v54 = vld [vmem:[%s19283_s29 + $0x1648] sm:$0xff] }
 0x1c0   : > { %9422 = vmatprep.subr.bf16.mxu0 %v16113_v56  ;;  %v1182_v11 = vld [vmem:[%s19283_s29 + $0x1508] sm:$0xff] }
 0x1c1   : > { %9448 = vmatpush1.bf16.msra.mxu1 %v16256_v55  ;;  %v1342_v55 = vld [vmem:[%s19283_s29 + $0x1a08] sm:$0xff] }
 0x1c2   : > { %9449 = vmatprep.subr.bf16.mxu1 %v16241_v60  ;;  %v16513_v1 = vcombine.high %v1342_v55, %v1350_v59  ;;  %v1190_v12 = vld [vmem:[%s19283_s29 + $0x1548] sm:$0xff] }
 0x1c3   : > { %9423 = vmatpush2.bf16.msra.mxu0 %v16112_v62  ;;  %v16528_v62 = vcombine.low %v1358_v41, %v1366_v43  ;;  %v1166_v20 = vld [vmem:[%s19283_s29 + $0x1488] sm:$0xff]  ;;  %v16353_v23 = vcombine.high %v1182_v11, %v1190_v12 }
 0x1c4   : > { %9424 = vmatprep.subr.bf16.mxu0 %v16097_v0  ;;  %v16400_v0 = vcombine.low %v1230_v39, %v1238_v40  ;;  %v1174_v21 = vld [vmem:[%s19283_s29 + $0x14c8] sm:$0xff] }
 0x1c5   : > { %9450 = vmatpush1.bf16.msra.mxu1 %v16240_v63  ;;  %v1302_v24 = vld [vmem:[%s19283_s29 + $0x18c8] sm:$0xff] }
 0x1c6   : > { %9451 = vmatprep.subr.bf16.mxu1 %v16225_v4  ;;  %v1326_v4 = vld [vmem:[%s19283_s29 + $0x1988] sm:$0xff] }
 0x1c7   : > { %9425 = vmatpush2.bf16.msra.mxu0 %v16096_v6  ;;  %v16385_v6 = vcombine.high %v1214_v53, %v1222_v54  ;;  %v16497_v10 = vcombine.high %v1326_v4, %v1334_v7  ;;  %v1150_v29 = vld [vmem:[%s19283_s29 + $0x1408] sm:$0xff] }
 0x1c8   : > { %9426 = vmatprep.subr.bf16.mxu0 %v16081_v9  ;;  %v16384_v9 = vcombine.low %v1214_v53, %v1222_v54  ;;  %v1158_v30 = vld [vmem:[%s19283_s29 + $0x1448] sm:$0xff] }
 0x1c9   : > { %9452 = vmatpush1.bf16.msra.mxu1 %v16224_v8  ;;  %v16512_v8 = vcombine.low %v1342_v55, %v1350_v59  ;;  %v1278_v31 = vld [vmem:[%s19283_s29 + $0x1808] sm:$0xff]  ;;  %v16321_v41 = vcombine.high %v1150_v29, %v1158_v30 }
 0x1ca   : > { %9453 = vmatprep.subr.bf16.mxu1 %v16209_v13  ;;  %v1310_v13 = vld [vmem:[%s19283_s29 + $0x1908] sm:$0xff] }
 0x1cb   : > { %9427 = vmatpush2.bf16.msra.mxu0 %v16080_v15  ;;  %v1318_v15 = vld [vmem:[%s19283_s29 + $0x1948] sm:$0xff] }
 0x1cc   : > { %9428 = vmatprep.subr.bf16.mxu0 %v16065_v18  ;;  %v16368_v18 = vcombine.low %v1198_v2, %v1206_v3  ;;  %v16481_v19 = vcombine.high %v1310_v13, %v1318_v15  ;;  %v1286_v33 = vld [vmem:[%s19283_s29 + $0x1848] sm:$0xff] }
 0x1cd   : > { %9454 = vmatpush1.bf16.msra.mxu1 %v16208_v17  ;;  %v16496_v17 = vcombine.low %v1326_v4, %v1334_v7  ;;  %v1526_v39 = vld [vmem:[%s19283_s29 + $0x1fc8] sm:$0xff]  ;;  %v16448_v43 = vcombine.low %v1278_v31, %v1286_v33 }
 0x1ce   : > { %9455 = vmatprep.subr.bf16.mxu1 %v16193_v22  ;;  %v1294_v22 = vld [vmem:[%s19283_s29 + $0x1888] sm:$0xff] }
 0x1cf   : > { %9429 = vmatpush2.bf16.msra.mxu0 %v16064_v25  ;;  %v16480_v25 = vcombine.low %v1310_v13, %v1318_v15  ;;  %v1646_v40 = vld [vmem:[%s19283_s29 + $0x2388] sm:$0xff] }
 0x1d0   : > { %9484 = vmatprep.subr.bf16.mxu0 %v16561_v28  ;;  %v9174_v47 = vpop.f32.mrf.mxu1  ;;  %v16465_v28 = vcombine.high %v1294_v22, %v1302_v24  ;;  %v1486_v55 = vld [vmem:[%s19283_s29 + $0x1e88] sm:$0xff] }
 0x1d1   : > { %9456 = vmatpush1.bf16.msra.mxu1 %v16192_v27  ;;  %v9131_v44 = vpop.f32.mrf.mxu0  ;;  %v16352_v27 = vcombine.low %v1182_v11, %v1190_v12  ;;  %v1614_v59 = vld [vmem:[%s19283_s29 + $0x2288] sm:$0xff] }
 0x1d2   : > { %9457 = vmatprep.subr.bf16.mxu1 %v16433_v32  ;;  %9431 = vmatmul.mubr.bf16.vlgmr.msra.gmra.mxu0 %v18620_v45  ;;  %v9132_v46 = vadd.f32 %v9131_v44, %v1924_v34  ;;  %v19646_v57 = vpop.f32.mrf.mxu1  ;;  %v16337_v32 = vcombine.high %v1166_v20, %v1174_v21  ;;  %v16320_v44 = vcombine.low %v1150_v29, %v1158_v30  ;;  %v1470_v2 = vld [vmem:[%s19283_s29 + $0x1e08] sm:$0xff] }
 0x1d3   : > { %9485 = vmatpush1.bf16.msra.mxu0 %v16560_v35  ;;  %9516 = vmatprep.mubr.bf16.mxu0 %v18621_v49  ;;  %v19639_v50 = vpop.f32.mrf.mxu0  ;;  %v16336_v35 = vcombine.low %v1166_v20, %v1174_v21  ;;  %v1478_v3 = vld [vmem:[%s19283_s29 + $0x1e48] sm:$0xff] }
 0x1d4   : > { %9486 = vmatprep.subr.bf16.mxu0 %v16545_v38  ;;  %v19644_v56 = vadd.f32 %v9174_v47, %v9132_v46  ;;  %v9178_v63 = vpop.f32.mrf.mxu1  ;;  %v1518_v38 = vld [vmem:[%s19283_s29 + $0x1f88] sm:$0xff]  ;;  %v16641_v11 = vcombine.high %v1470_v2, %v1478_v3 }
 0x1d5   : > { %9458 = vmatpush2.bf16.msra.mxu1 %v16432_v37  ;;  %v9135_v60 = vpop.f32.mrf.mxu0  ;;  %v16449_v37 = vcombine.high %v1278_v31, %v1286_v33  ;;  %v16689_v45 = vcombine.high %v1518_v38, %v1526_v39  ;;  %v1502_v46 = vld [vmem:[%s19283_s29 + $0x1f08] sm:$0xff] }
 0x1d6   : > { %9459 = vmatprep.subr.bf16.mxu1 %v16417_v42  ;;  %v9136_v61 = vadd.f32 %v9135_v60, %v1924_v34  ;;  %v16464_v34 = vcombine.low %v1294_v22, %v1302_v24  ;;  %v1654_v42 = vld [vmem:[%s19283_s29 + $0x23c8] sm:$0xff] }
 0x1d7   : > { %9487 = vmatpush1.bf16.msra.mxu0 %v16544_v48  ;;  %v1510_v47 = vld [vmem:[%s19283_s29 + $0x1f48] sm:$0xff]  ;;  %v16817_v49 = vcombine.high %v1646_v40, %v1654_v42  ;;  %v16816_v53 = vcombine.low %v1646_v40, %v1654_v42 }
 0x1d8   : > { %9488 = vmatprep.subr.bf16.mxu0 %v16529_v52  ;;  %v19652_v5 = vadd.f32 %v9178_v63, %v9136_v61  ;;  %v1630_v48 = vld [vmem:[%s19283_s29 + $0x2308] sm:$0xff]  ;;  %v16688_v52 = vcombine.low %v1518_v38, %v1526_v39  ;;  %v16673_v54 = vcombine.high %v1502_v46, %v1510_v47  ;;  %v16672_v63 = vcombine.low %v1502_v46, %v1510_v47 }
 0x1d9   : > { %9460 = vmatpush2.bf16.msra.mxu1 %v16416_v51  ;;  %v1638_v51 = vld [vmem:[%s19283_s29 + $0x2348] sm:$0xff] }
 0x1da   : > { %9461 = vmatprep.subr.bf16.mxu1 %v16401_v58  ;;  %v1494_v58 = vld [vmem:[%s19283_s29 + $0x1ec8] sm:$0xff]  ;;  %v16801_v60 = vcombine.high %v1630_v48, %v1638_v51 }
 0x1db   : > { %9489 = vmatpush1.bf16.msra.mxu0 %v16528_v62  ;;  %v1622_v61 = vld [vmem:[%s19283_s29 + $0x22c8] sm:$0xff]  ;;  %v18622_v62 = vld [vmem:[%s22070_s0 + $0x10] ss:$44 sps:$4 sm:$0xff]  }
 0x1dc   : > { %9490 = vmatprep.subr.bf16.mxu0 %v16513_v1  ;;  %v16657_v1 = vcombine.high %v1486_v55, %v1494_v58  ;;  %v1598_v4 = vld [vmem:[%s19283_s29 + $0x2208] sm:$0xff] }
 0x1dd   : > { %9462 = vmatpush2.bf16.msra.mxu1 %v16400_v0  ;;  %v16800_v0 = vcombine.low %v1630_v48, %v1638_v51  ;;  %v1606_v7 = vld [vmem:[%s19283_s29 + $0x2248] sm:$0xff] }
 0x1de   : > { %9463 = vmatprep.subr.bf16.mxu1 %v16385_v6  ;;  %v16785_v6 = vcombine.high %v1614_v59, %v1622_v61  ;;  %v1454_v12 = vld [vmem:[%s19283_s29 + $0x1d88] sm:$0xff]  ;;  %v16769_v15 = vcombine.high %v1598_v4, %v1606_v7 }
 0x1df   : > { %9491 = vmatpush1.bf16.msra.mxu0 %v16512_v8  ;;  %v18623_v8 = vld [vmem:[%s22070_s0 + $0x24] ss:$44 sps:$4 sm:$0xff]   ;;  %v1462_v13 = vld [vmem:[%s19283_s29 + $0x1dc8] sm:$0xff] }
 0x1e0   : > { %9492 = vmatprep.subr.bf16.mxu0 %v16497_v10  ;;  %v16784_v10 = vcombine.low %v1614_v59, %v1622_v61  ;;  %v16625_v20 = vcombine.high %v1454_v12, %v1462_v13  ;;  %v1438_v21 = vld [vmem:[%s19283_s29 + $0x1d08] sm:$0xff] }
 0x1e1   : > { %9464 = vmatpush2.bf16.msra.mxu1 %v16384_v9  ;;  %v16656_v9 = vcombine.low %v1486_v55, %v1494_v58  ;;  %v1446_v22 = vld [vmem:[%s19283_s29 + $0x1d48] sm:$0xff] }
 0x1e2   : > { %9465 = vmatprep.subr.bf16.mxu1 %v16369_v14  ;;  %v1582_v14 = vld [vmem:[%s19283_s29 + $0x2188] sm:$0xff]  ;;  %v16609_v29 = vcombine.high %v1438_v21, %v1446_v22 }
 0x1e3   : > { %9493 = vmatpush1.bf16.msra.mxu0 %v16496_v17  ;;  %v1590_v17 = vld [vmem:[%s19283_s29 + $0x21c8] sm:$0xff] }
 0x1e4   : > { %9494 = vmatprep.subr.bf16.mxu0 %v16481_v19  ;;  %v16768_v19 = vcombine.low %v1598_v4, %v1606_v7  ;;  %v16753_v24 = vcombine.high %v1582_v14, %v1590_v17  ;;  %v1422_v30 = vld [vmem:[%s19283_s29 + $0x1c88] sm:$0xff]  ;;  %v19718_v7 = vpop.f32.mrf.mxu1 }
 0x1e5   : > { %9466 = vmatpush2.bf16.msra.mxu1 %v16368_v18  ;;  %v16640_v18 = vcombine.low %v1470_v2, %v1478_v3  ;;  %v1430_v31 = vld [vmem:[%s19283_s29 + $0x1cc8] sm:$0xff] }
 0x1e6   : > { %9467 = vmatprep.subr.bf16.mxu1 %v16353_v23  ;;  %v1566_v23 = vld [vmem:[%s19283_s29 + $0x2108] sm:$0xff]  ;;  %v16593_v38 = vcombine.high %v1422_v30, %v1430_v31 }
 0x1e7   : > { %9495 = vmatpush1.bf16.msra.mxu0 %v16480_v25  ;;  %v1574_v25 = vld [vmem:[%s19283_s29 + $0x2148] sm:$0xff] }
 0x1e8   : > { %9496 = vmatprep.subr.bf16.mxu0 %v16465_v28  ;;  %v16752_v28 = vcombine.low %v1582_v14, %v1590_v17  ;;  %v16737_v33 = vcombine.high %v1566_v23, %v1574_v25  ;;  %v1406_v39 = vld [vmem:[%s19283_s29 + $0x1c08] sm:$0xff] }
 0x1e9   : > { %9468 = vmatpush2.bf16.msra.mxu1 %v16352_v27  ;;  %v16624_v27 = vcombine.low %v1454_v12, %v1462_v13  ;;  %v1414_v40 = vld [vmem:[%s19283_s29 + $0x1c48] sm:$0xff] }
 0x1ea   : > { %9469 = vmatprep.subr.bf16.mxu1 %v16337_v32  ;;  %v1550_v32 = vld [vmem:[%s19283_s29 + $0x2088] sm:$0xff]  ;;  %v16577_v46 = vcombine.high %v1406_v39, %v1414_v40 }
 0x1eb   : > { %9497 = vmatpush1.bf16.msra.mxu0 %v16464_v34  ;;  %v1558_v34 = vld [vmem:[%s19283_s29 + $0x20c8] sm:$0xff] }
 0x1ec   : > { %9498 = vmatprep.subr.bf16.mxu0 %v16449_v37  ;;  %v16736_v37 = vcombine.low %v1566_v23, %v1574_v25  ;;  %v16721_v42 = vcombine.high %v1550_v32, %v1558_v34  ;;  %v1774_v47 = vld [vmem:[%s19283_s29 + $0x2788] sm:$0xff] }
 0x1ed   : > { %9470 = vmatpush2.bf16.msra.mxu1 %v16336_v35  ;;  %v16608_v35 = vcombine.low %v1438_v21, %v1446_v22  ;;  %v1782_v48 = vld [vmem:[%s19283_s29 + $0x27c8] sm:$0xff] }
 0x1ee   : > { %9471 = vmatprep.subr.bf16.mxu1 %v16321_v41  ;;  %v1534_v41 = vld [vmem:[%s19283_s29 + $0x2008] sm:$0xff]  ;;  %v16945_v61 = vcombine.high %v1774_v47, %v1782_v48 }
 0x1ef   : > { %9499 = vmatpush1.bf16.msra.mxu0 %v16448_v43  ;;  %v1542_v43 = vld [vmem:[%s19283_s29 + $0x2048] sm:$0xff] }
 0x1f0   : > { %9500 = vmatprep.subr.bf16.mxu0 %v16689_v45  ;;  %v16720_v45 = vcombine.low %v1550_v32, %v1558_v34  ;;  %v16705_v51 = vcombine.high %v1534_v41, %v1542_v43  ;;  %v1758_v58 = vld [vmem:[%s19283_s29 + $0x2708] sm:$0xff] }
 0x1f1   : > { %9472 = vmatpush2.bf16.msra.mxu1 %v16320_v44  ;;  %v16592_v44 = vcombine.low %v1422_v30, %v1430_v31  ;;  %v1766_v59 = vld [vmem:[%s19283_s29 + $0x2748] sm:$0xff] }
 0x1f2   : > { %9527 = vmatprep.subr.bf16.mxu1 %v16817_v49  ;;  %v1902_v49 = vld [vmem:[%s19283_s29 + $0x2b88] sm:$0xff]  ;;  %v16928_v17 = vcombine.low %v1758_v58, %v1766_v59 }
 0x1f3   : > { %9501 = vmatpush2.bf16.msra.mxu0 %v16688_v52  ;;  %v1910_v52 = vld [vmem:[%s19283_s29 + $0x2bc8] sm:$0xff] }
 0x1f4   : > { %9474 = vmatmul.mubr.bf16.vlgmr.msra.gmra.mxu1 %v18622_v62  ;;  %9502 = vmatprep.subr.bf16.mxu0 %v16673_v54  ;;  %v16704_v54 = vcombine.low %v1534_v41, %v1542_v43  ;;  %v17073_v55 = vcombine.high %v1902_v49, %v1910_v52  ;;  %v1894_v62 = vld [vmem:[%s19283_s29 + $0x2b48] sm:$0xff] }
 0x1f5   : > { %9528 = vmatpush1.bf16.msra.mxu1 %v16816_v53  ;;  %9559 = vmatprep.mubr.bf16.mxu1 %v18623_v8  ;;  %v16576_v53 = vcombine.low %v1406_v39, %v1414_v40  ;;  %v1742_v3 = vld [vmem:[%s19283_s29 + $0x2688] sm:$0xff]  ;;  %v16929_v8 = vcombine.high %v1758_v58, %v1766_v59 }
 0x1f6   : > { %9529 = vmatprep.subr.bf16.mxu1 %v16801_v60  ;;  %v1886_v60 = vld [vmem:[%s19283_s29 + $0x2b08] sm:$0xff] }
 0x1f7   : > { %9503 = vmatpush2.bf16.msra.mxu0 %v16672_v63  ;;  %v17072_v63 = vcombine.low %v1902_v49, %v1910_v52  ;;  %v17057_v2 = vcombine.high %v1886_v60, %v1894_v62  ;;  %v1750_v4 = vld [vmem:[%s19283_s29 + $0x26c8] sm:$0xff]  ;;  %v17056_v14 = vcombine.low %v1886_v60, %v1894_v62 }
 0x1f8   : > { %9504 = vmatprep.subr.bf16.mxu0 %v16657_v1  ;;  %v16944_v1 = vcombine.low %v1774_v47, %v1782_v48  ;;  %v1854_v21 = vld [vmem:[%s19283_s29 + $0x2a08] sm:$0xff]  ;;  %v16913_v23 = vcombine.high %v1742_v3, %v1750_v4  ;;  %v16912_v30 = vcombine.low %v1742_v3, %v1750_v4 }
 0x1f9   : > { %9530 = vmatpush1.bf16.msra.mxu1 %v16800_v0  ;;  %v19713_v0 = vpop.f32.mrf.mxu0  ;;  %v1710_v32 = vld [vmem:[%s19283_s29 + $0x2588] sm:$0xff] }
 0x1fa   : > { %9531 = vmatprep.subr.bf16.mxu1 %v16785_v6  ;;  %v1870_v6 = vld [vmem:[%s19283_s29 + $0x2a88] sm:$0xff] }
 0x1fb   : > { %9505 = vmatpush2.bf16.msra.mxu0 %v16656_v9  ;;  %v1878_v9 = vld [vmem:[%s19283_s29 + $0x2ac8] sm:$0xff] }
 0x1fc   : > { %9506 = vmatprep.subr.bf16.mxu0 %v16641_v11  ;;  %v18624_v11 = vld [vmem:[%s22070_s0 + $0x18] ss:$44 sps:$4 sm:$0xff]   ;;  %v1838_v34 = vld [vmem:[%s19283_s29 + $0x2988] sm:$0xff] }
 0x1fd   : > { %9532 = vmatpush1.bf16.msra.mxu1 %v16784_v10  ;;  %v1830_v43 = vld [vmem:[%s19283_s29 + $0x2948] sm:$0xff] }
 0x1fe   : > { %9533 = vmatprep.subr.bf16.mxu1 %v16769_v15  ;;  %v1814_v52 = vld [vmem:[%s19283_s29 + $0x28c8] sm:$0xff] }
 0x1ff   : > { %9507 = vmatpush2.bf16.msra.mxu0 %v16640_v18  ;;  %v17041_v18 = vcombine.high %v1870_v6, %v1878_v9  ;;  %v1798_v62 = vld [vmem:[%s19283_s29 + $0x2848] sm:$0xff] }
 0x200   : > { %9508 = vmatprep.subr.bf16.mxu0 %v16625_v20  ;;  %v1734_v20 = vld [vmem:[%s19283_s29 + $0x2648] sm:$0xff] }
 0x201   : > { %9534 = vmatpush1.bf16.msra.mxu1 %v16768_v19  ;;  %v1726_v19 = vld [vmem:[%s19283_s29 + $0x2608] sm:$0xff] }
 0x202   : > { %9535 = vmatprep.subr.bf16.mxu1 %v16753_v24  ;;  %v1862_v24 = vld [vmem:[%s19283_s29 + $0x2a48] sm:$0xff]  ;;  %v16896_v39 = vcombine.low %v1726_v19, %v1734_v20 }
 0x203   : > { %9509 = vmatpush2.bf16.msra.mxu0 %v16624_v27  ;;  %v17025_v31 = vcombine.high %v1854_v21, %v1862_v24 }
 0x204   : > { %9510 = vmatprep.subr.bf16.mxu0 %v16609_v29 }
 0x205   : > { %9536 = vmatpush1.bf16.msra.mxu1 %v16752_v28  ;;  %v17040_v28 = vcombine.low %v1870_v6, %v1878_v9  ;;  %v631_v9 = vld [vmem:[%s19283_s29 + $0x3d0] sm:$0xff] }
 0x206   : > { %9537 = vmatprep.subr.bf16.mxu1 %v16737_v33  ;;  %v1718_v33 = vld [vmem:[%s19283_s29 + $0x25c8] sm:$0xff] }
 0x207   : > { %9511 = vmatpush2.bf16.msra.mxu0 %v16608_v35  ;;  %v16881_v41 = vcombine.high %v1710_v32, %v1718_v33  ;;  %v16880_v47 = vcombine.low %v1710_v32, %v1718_v33  ;;  %v855_v32 = vld [vmem:[%s19283_s29 + $0xad0] sm:$0xff]  ;;  %v18626_v33 = vld [vmem:[%s22070_s0 + $0x20] ss:$44 sps:$4 sm:$0xff]  }
 0x208   : > { %9512 = vmatprep.subr.bf16.mxu0 %v16593_v38  ;;  %v1846_v38 = vld [vmem:[%s19283_s29 + $0x29c8] sm:$0xff] }
 0x209   : > { %9538 = vmatpush1.bf16.msra.mxu1 %v16736_v37  ;;  %v16897_v37 = vcombine.high %v1726_v19, %v1734_v20  ;;  %v17009_v40 = vcombine.high %v1838_v34, %v1846_v38  ;;  %v615_v19 = vld [vmem:[%s19283_s29 + $0x350] sm:$0xff] }
 0x20a   : > { %9539 = vmatprep.subr.bf16.mxu1 %v16721_v42  ;;  %v1822_v42 = vld [vmem:[%s19283_s29 + $0x2908] sm:$0xff]  ;;  %v863_v20 = vld [vmem:[%s19283_s29 + $0xb10] sm:$0xff] }
 0x20b   : > { %9513 = vmatpush2.bf16.msra.mxu0 %v16592_v44  ;;  %v1694_v44 = vld [vmem:[%s19283_s29 + $0x2508] sm:$0xff]  ;;  %v16993_v48 = vcombine.high %v1822_v42, %v1830_v43 }
 0x20c   : > { %9514 = vmatprep.subr.bf16.mxu0 %v16577_v46  ;;  %v17008_v46 = vcombine.low %v1838_v34, %v1846_v38 }
 0x20d   : > { %9540 = vmatpush1.bf16.msra.mxu1 %v16720_v45  ;;  %v1702_v45 = vld [vmem:[%s19283_s29 + $0x2548] sm:$0xff] }
 0x20e   : > { %9541 = vmatprep.subr.bf16.mxu1 %v16705_v51  ;;  %v16865_v49 = vcombine.high %v1694_v44, %v1702_v45  ;;  %v1806_v51 = vld [vmem:[%s19283_s29 + $0x2888] sm:$0xff]  ;;  %v16864_v58 = vcombine.low %v1694_v44, %v1702_v45 }
 0x20f   : > { %9515 = vmatpush2.bf16.msra.mxu0 %v16576_v53  ;;  %v1678_v53 = vld [vmem:[%s19283_s29 + $0x2488] sm:$0xff]  ;;  %v16977_v59 = vcombine.high %v1806_v51, %v1814_v52 }
 0x210   : > { %9570 = vmatprep.subr.bf16.mxu0 %v17073_v55  ;;  %v16992_v55 = vcombine.low %v1822_v42, %v1830_v43  ;;  %v831_v42 = vld [vmem:[%s19283_s29 + $0xa10] sm:$0xff]  ;;  %v18628_v44 = vld [vmem:[%s22070_s0 + $0xc] ss:$44 sps:$4 sm:$0xff]  }
 0x211   : > { %9542 = vmatpush1.bf16.msra.mxu1 %v16704_v54  ;;  %v9217_v10 = vpop.f32.mrf.mxu0  ;;  %v1686_v54 = vld [vmem:[%s19283_s29 + $0x24c8] sm:$0xff]  ;;  %v839_v43 = vld [vmem:[%s19283_s29 + $0xa50] sm:$0xff] }
 0x212   : > { %9543 = vmatprep.subr.bf16.mxu1 %v16945_v61  ;;  %9517 = vmatmul.mubr.bf16.vlgmr.msra.gmra.mxu0 %v18624_v11  ;;  %v9218_v12 = vadd.f32 %v9217_v10, %v19644_v56  ;;  %v16849_v60 = vcombine.high %v1678_v53, %v1686_v54  ;;  %v1790_v61 = vld [vmem:[%s19283_s29 + $0x2808] sm:$0xff]  ;;  %v16848_v3 = vcombine.low %v1678_v53, %v1686_v54  ;;  %v879_v10 = vld [vmem:[%s19283_s29 + $0xb90] sm:$0xff] }
 0x213   : > { %9571 = vmatpush1.bf16.msra.mxu0 %v17072_v63  ;;  %9602 = vmatprep.mubr.bf16.mxu0 %v22091_v36  ;;  %v19726_v15 = vpop.f32.mrf.mxu0  ;;  %v1662_v63 = vld [vmem:[%s19283_s29 + $0x2408] sm:$0xff]  ;;  %v16961_v4 = vcombine.high %v1790_v61, %v1798_v62  ;;  %v887_v11 = vld [vmem:[%s19283_s29 + $0xbd0] sm:$0xff] }
 0x214   : > { %v9260_v13 = vpop.f32.mrf.mxu1  ;;  %9572 = vmatprep.subr.bf16.mxu0 %v17057_v2  ;;  %v16976_v2 = vcombine.low %v1806_v51, %v1814_v52  ;;  %v567_v51 = vld [vmem:[%s19283_s29 + $0x1d0] sm:$0xff] }
 0x215   : > { %9544 = vmatpush2.bf16.msra.mxu1 %v16944_v1  ;;  %v19731_v22 = vadd.f32 %v9260_v13, %v9218_v12  ;;  %v9221_v25 = vpop.f32.mrf.mxu0  ;;  %v1670_v1 = vld [vmem:[%s19283_s29 + $0x2448] sm:$0xff]  ;;  %v16960_v12 = vcombine.low %v1790_v61, %v1798_v62  ;;  %v815_v52 = vld [vmem:[%s19283_s29 + $0x990] sm:$0xff] }
 0x216   : > { %v19733_v56 = vpop.f32.mrf.mxu1  ;;  %9545 = vmatprep.subr.bf16.mxu1 %v16929_v8  ;;  %v9222_v27 = vadd.f32 %v9221_v25, %v19652_v5  ;;  %v17024_v5 = vcombine.low %v1854_v21, %v1862_v24  ;;  %v16833_v6 = vcombine.high %v1662_v63, %v1670_v1  ;;  %v623_v8 = vld [vmem:[%s19283_s29 + $0x390] sm:$0xff]  ;;  %v16832_v13 = vcombine.low %v1662_v63, %v1670_v1 }
 0x217   : > { %9573 = vmatpush1.bf16.msra.mxu0 %v17056_v14  ;;  %v15795_v14 = vcombine.high %v623_v8, %v631_v9  ;;  %v871_v21 = vld [vmem:[%s19283_s29 + $0xb50] sm:$0xff]  ;;  %v16050_v24 = vcombine.low %v879_v10, %v887_v11 }
 0x218   : > { %v9264_v29 = vpop.f32.mrf.mxu1  ;;  %9574 = vmatprep.subr.bf16.mxu0 %v17041_v18  ;;  %v607_v18 = vld [vmem:[%s19283_s29 + $0x310] sm:$0xff] }
 0x219   : > { %9546 = vmatpush2.bf16.msra.mxu1 %v16928_v17  ;;  %v19740_v35 = vadd.f32 %v9264_v29, %v9222_v27  ;;  %v16051_v17 = vcombine.high %v879_v10, %v887_v11  ;;  %v15779_v25 = vcombine.high %v607_v18, %v615_v19  ;;  %v16035_v27 = vcombine.high %v863_v20, %v871_v21  ;;  %v599_v29 = vld [vmem:[%s19283_s29 + $0x2d0] sm:$0xff] }
 0x21a   : > { %9547 = vmatprep.subr.bf16.mxu1 %v16913_v23  ;;  %v15794_v23 = vcombine.low %v623_v8, %v631_v9  ;;  %v15778_v34 = vcombine.low %v607_v18, %v615_v19  ;;  %v823_v53 = vld [vmem:[%s19283_s29 + $0x9d0] sm:$0xff] }
 0x21b   : > { %9575 = vmatpush1.bf16.msra.mxu0 %v17040_v28  ;;  %v591_v28 = vld [vmem:[%s19283_s29 + $0x290] sm:$0xff] }
 0x21c   : > { %9576 = vmatprep.subr.bf16.mxu0 %v17025_v31  ;;  %v847_v31 = vld [vmem:[%s19283_s29 + $0xa90] sm:$0xff]  ;;  %v15763_v38 = vcombine.high %v591_v28, %v599_v29  ;;  %v15762_v45 = vcombine.low %v591_v28, %v599_v29 }
 0x21d   : > { %9548 = vmatpush2.bf16.msra.mxu1 %v16912_v30  ;;  %v18625_v30 = vld [vmem:[%s22070_s0 + $0x28] ss:$44 sps:$4 sm:$0xff]  }
 0x21e   : > { %9549 = vmatprep.subr.bf16.mxu1 %v16897_v37  ;;  %v16034_v37 = vcombine.low %v863_v20, %v871_v21  ;;  %v551_v61 = vld [vmem:[%s19283_s29 + $0x150] sm:$0xff] }
 0x21f   : > { %9577 = vmatpush1.bf16.msra.mxu0 %v17024_v5  ;;  %v16019_v5 = vcombine.high %v847_v31, %v855_v32  ;;  %v799_v62 = vld [vmem:[%s19283_s29 + $0x910] sm:$0xff] }
 0x220   : > { %9578 = vmatprep.subr.bf16.mxu0 %v17009_v40  ;;  %v583_v40 = vld [vmem:[%s19283_s29 + $0x250] sm:$0xff] }
 0x221   : > { %9550 = vmatpush2.bf16.msra.mxu1 %v16896_v39  ;;  %v575_v39 = vld [vmem:[%s19283_s29 + $0x210] sm:$0xff] }
 0x222   : > { %9551 = vmatprep.subr.bf16.mxu1 %v16881_v41  ;;  %v18627_v41 = vld [vmem:[%s22070_s0 + $0x4] ss:$44 sps:$4 sm:$0xff]   ;;  %v15746_v54 = vcombine.low %v575_v39, %v583_v40 }
 0x223   : > { %9579 = vmatpush1.bf16.msra.mxu0 %v17008_v46  ;;  %v16018_v46 = vcombine.low %v847_v31, %v855_v32  ;;  %v807_v63 = vld [vmem:[%s19283_s29 + $0x950] sm:$0xff] }
 0x224   : > { %9580 = vmatprep.subr.bf16.mxu0 %v16993_v48  ;;  %v16003_v48 = vcombine.high %v831_v42, %v839_v43  ;;  %v535_v8 = vld [vmem:[%s19283_s29 + $0xd0] sm:$0xff] }
 0x225   : > { %9552 = vmatpush2.bf16.msra.mxu1 %v16880_v47  ;;  %v15747_v47 = vcombine.high %v575_v39, %v583_v40  ;;  %v783_v9 = vld [vmem:[%s19283_s29 + $0x890] sm:$0xff] }
 0x226   : > { %9553 = vmatprep.subr.bf16.mxu1 %v16865_v49  ;;  %v559_v49 = vld [vmem:[%s19283_s29 + $0x190] sm:$0xff] }
 0x227   : > { %9581 = vmatpush1.bf16.msra.mxu0 %v16992_v55  ;;  %v16002_v55 = vcombine.low %v831_v42, %v839_v43  ;;  %v15730_v1 = vcombine.low %v559_v49, %v567_v51  ;;  %v791_v10 = vld [vmem:[%s19283_s29 + $0x8d0] sm:$0xff]  ;;  %v19809_v42 = vpop.f32.mrf.mxu0 }
 0x228   : > { %9582 = vmatprep.subr.bf16.mxu0 %v16977_v59  ;;  %v15987_v59 = vcombine.high %v815_v52, %v823_v53  ;;  %v519_v18 = vld [vmem:[%s19283_s29 + $0x50] sm:$0xff] }
 0x229   : > { %9554 = vmatpush2.bf16.msra.mxu1 %v16864_v58  ;;  %v15731_v58 = vcombine.high %v559_v49, %v567_v51  ;;  %v767_v19 = vld [vmem:[%s19283_s29 + $0x810] sm:$0xff] }
 0x22a   : > { %9555 = vmatprep.subr.bf16.mxu1 %v16849_v60  ;;  %v543_v60 = vld [vmem:[%s19283_s29 + $0x110] sm:$0xff] }
 0x22b   : > { %9583 = vmatpush1.bf16.msra.mxu0 %v16976_v2  ;;  %v15986_v2 = vcombine.low %v815_v52, %v823_v53  ;;  %v15714_v11 = vcombine.low %v543_v60, %v551_v61  ;;  %v775_v20 = vld [vmem:[%s19283_s29 + $0x850] sm:$0xff] }
 0x22c   : > { %9584 = vmatprep.subr.bf16.mxu0 %v16961_v4  ;;  %v15971_v4 = vcombine.high %v799_v62, %v807_v63  ;;  %v759_v28 = vld [vmem:[%s19283_s29 + $0x7d0] sm:$0xff]  ;;  %v15938_v32 = vcombine.low %v767_v19, %v775_v20 }
 0x22d   : > { %9556 = vmatpush2.bf16.msra.mxu1 %v16848_v3  ;;  %v15715_v3 = vcombine.high %v543_v60, %v551_v61  ;;  %v1007_v29 = vld [vmem:[%s19283_s29 + $0xf90] sm:$0xff] }
 0x22e   : > { %9557 = vmatprep.subr.bf16.mxu1 %v16833_v6  ;;  %v527_v6 = vld [vmem:[%s19283_s29 + $0x90] sm:$0xff] }
 0x22f   : > { %9585 = vmatpush1.bf16.msra.mxu0 %v16960_v12  ;;  %v15970_v12 = vcombine.low %v799_v62, %v807_v63  ;;  %v15698_v21 = vcombine.low %v527_v6, %v535_v8  ;;  %v991_v39 = vld [vmem:[%s19283_s29 + $0xf10] sm:$0xff] }
 0x230   : > { %9613 = vmatprep.subr.bf16.mxu0 %v15795_v14  ;;  %v15955_v14 = vcombine.high %v783_v9, %v791_v10  ;;  %v999_v40 = vld [vmem:[%s19283_s29 + $0xf50] sm:$0xff] }
 0x231   : > { %9558 = vmatpush2.bf16.msra.mxu1 %v16832_v13  ;;  %v15699_v13 = vcombine.high %v527_v6, %v535_v8  ;;  %v975_v51 = vld [vmem:[%s19283_s29 + $0xe90] sm:$0xff] }
 0x232   : > { %9656 = vmatprep.subr.bf16.mxu1 %v16051_v17  ;;  %9603 = vmatmul.mubr.bf16.vlgmr.msra.gmra.mxu0 %v18625_v30  ;;  %v511_v17 = vld [vmem:[%s19283_s29 + $0x10] sm:$0xff] }
 0x233   : > { %9614 = vmatpush1.bf16.msra.mxu0 %v15794_v23  ;;  %9645 = vmatprep.mubr.bf16.mxu0 %v18627_v41  ;;  %v15954_v23 = vcombine.low %v783_v9, %v791_v10  ;;  %v1015_v30 = vld [vmem:[%s19283_s29 + $0xfd0] sm:$0xff]  ;;  %v15682_v31 = vcombine.low %v511_v17, %v519_v18 }
 0x234   : > { %9560 = vmatmul.mubr.bf16.vlgmr.msra.gmra.mxu1 %v18626_v33  ;;  %9615 = vmatprep.subr.bf16.mxu0 %v15779_v25  ;;  %v15939_v25 = vcombine.high %v767_v19, %v775_v20  ;;  %v983_v52 = vld [vmem:[%s19283_s29 + $0xed0] sm:$0xff] }
 0x235   : > { %9657 = vmatpush1.bf16.msra.mxu1 %v16050_v24  ;;  %9688 = vmatprep.mubr.bf16.mxu1 %v18628_v44  ;;  %v15683_v24 = vcombine.high %v511_v17, %v519_v18  ;;  %v16178_v44 = vcombine.low %v1007_v29, %v1015_v30  ;;  %v16147_v62 = vcombine.high %v975_v51, %v983_v52  ;;  %v703_v63 = vld [vmem:[%s19283_s29 + $0x610] sm:$0xff] }
 0x236   : > { %9658 = vmatprep.subr.bf16.mxu1 %v16035_v27  ;;  %v751_v27 = vld [vmem:[%s19283_s29 + $0x790] sm:$0xff]  ;;  %v16146_v9 = vcombine.low %v975_v51, %v983_v52 }
 0x237   : > { %9616 = vmatpush1.bf16.msra.mxu0 %v15778_v34  ;;  %v15923_v33 = vcombine.high %v751_v27, %v759_v28  ;;  %v16179_v34 = vcombine.high %v1007_v29, %v1015_v30  ;;  %v15922_v41 = vcombine.low %v751_v27, %v759_v28  ;;  %v943_v17 = vld [vmem:[%s19283_s29 + $0xd90] sm:$0xff] }
 0x238   : > { %9617 = vmatprep.subr.bf16.mxu0 %v15763_v38  ;;  %v743_v38 = vld [vmem:[%s19283_s29 + $0x750] sm:$0xff] }
 0x239   : > { %9659 = vmatpush1.bf16.msra.mxu1 %v16034_v37  ;;  %v735_v37 = vld [vmem:[%s19283_s29 + $0x710] sm:$0xff] }
 0x23a   : > { %9660 = vmatprep.subr.bf16.mxu1 %v16019_v5  ;;  %v19805_v5 = vpop.f32.mrf.mxu1  ;;  %v951_v18 = vld [vmem:[%s19283_s29 + $0xdd0] sm:$0xff] }
 0x23b   : > { %9618 = vmatpush1.bf16.msra.mxu0 %v15762_v45  ;;  %v15907_v45 = vcombine.high %v735_v37, %v743_v38  ;;  %v671_v27 = vld [vmem:[%s19283_s29 + $0x510] sm:$0xff] }
 0x23c   : > { %9619 = vmatprep.subr.bf16.mxu0 %v15747_v47  ;;  %v9346_v43 = vpop.f32.mrf.mxu1  ;;  %v719_v47 = vld [vmem:[%s19283_s29 + $0x690] sm:$0xff] }
 0x23d   : > { %9661 = vmatpush1.bf16.msra.mxu1 %v16018_v46  ;;  %v16163_v46 = vcombine.high %v991_v39, %v999_v40  ;;  %v679_v28 = vld [vmem:[%s19283_s29 + $0x550] sm:$0xff] }
 0x23e   : > { %9662 = vmatprep.subr.bf16.mxu1 %v16003_v48  ;;  %v727_v48 = vld [vmem:[%s19283_s29 + $0x6d0] sm:$0xff] }
 0x23f   : > { %9620 = vmatpush1.bf16.msra.mxu0 %v15746_v54  ;;  %v15906_v54 = vcombine.low %v735_v37, %v743_v38  ;;  %v15891_v60 = vcombine.high %v719_v47, %v727_v48  ;;  %v15890_v6 = vcombine.low %v719_v47, %v727_v48  ;;  %v927_v29 = vld [vmem:[%s19283_s29 + $0xd10] sm:$0xff] }
 0x240   : > { %9621 = vmatprep.subr.bf16.mxu0 %v15731_v58  ;;  %v935_v30 = vld [vmem:[%s19283_s29 + $0xd50] sm:$0xff] }
 0x241   : > { %9663 = vmatpush1.bf16.msra.mxu1 %v16002_v55  ;;  %v19816_v55 = vpop.f32.mrf.mxu1  ;;  %v655_v37 = vld [vmem:[%s19283_s29 + $0x490] sm:$0xff] }
 0x242   : > { %9664 = vmatprep.subr.bf16.mxu1 %v15987_v59  ;;  %v16162_v59 = vcombine.low %v991_v39, %v999_v40  ;;  %v663_v38 = vld [vmem:[%s19283_s29 + $0x4d0] sm:$0xff] }
 0x243   : > { %9622 = vmatpush1.bf16.msra.mxu0 %v15730_v1  ;;  %v711_v1 = vld [vmem:[%s19283_s29 + $0x650] sm:$0xff]  ;;  %v9350_v8 = vpop.f32.mrf.mxu1  ;;  %v15826_v51 = vcombine.low %v655_v37, %v663_v38 }
 0x244   : > { %9623 = vmatprep.subr.bf16.mxu0 %v15715_v3  ;;  %v967_v3 = vld [vmem:[%s19283_s29 + $0xe50] sm:$0xff]  ;;  %v15875_v10 = vcombine.high %v703_v63, %v711_v1  ;;  %v15874_v20 = vcombine.low %v703_v63, %v711_v1 }
 0x245   : > { %9665 = vmatpush1.bf16.msra.mxu1 %v15986_v2  ;;  %v911_v39 = vld [vmem:[%s19283_s29 + $0xc90] sm:$0xff] }
 0x246   : > { %9666 = vmatprep.subr.bf16.mxu1 %v15971_v4  ;;  %v919_v40 = vld [vmem:[%s19283_s29 + $0xcd0] sm:$0xff] }
 0x247   : > { %9624 = vmatpush1.bf16.msra.mxu0 %v15714_v11  ;;  %v647_v47 = vld [vmem:[%s19283_s29 + $0x450] sm:$0xff]  ;;  %v16082_v52 = vcombine.low %v911_v39, %v919_v40 }
 0x248   : > { %9625 = vmatprep.subr.bf16.mxu0 %v15699_v13  ;;  %v687_v13 = vld [vmem:[%s19283_s29 + $0x590] sm:$0xff] }
 0x249   : > { %9667 = vmatpush1.bf16.msra.mxu1 %v15970_v12  ;;  %v895_v48 = vld [vmem:[%s19283_s29 + $0xc10] sm:$0xff] }
 0x24a   : > { %9668 = vmatprep.subr.bf16.mxu1 %v15955_v14  ;;  %v695_v14 = vld [vmem:[%s19283_s29 + $0x5d0] sm:$0xff] }
 0x24b   : > { %9626 = vmatpush1.bf16.msra.mxu0 %v15698_v21 }
 0x24c   : > { %9627 = vmatprep.subr.bf16.mxu0 %v15683_v24 }
 0x24d   : > { %9669 = vmatpush1.bf16.msra.mxu1 %v15954_v23  ;;  %v15859_v23 = vcombine.high %v687_v13, %v695_v14 }
 0x24e   : > { %9670 = vmatprep.subr.bf16.mxu1 %v15939_v25  ;;  %v16115_v25 = vcombine.high %v943_v17, %v951_v18 }
 0x24f   : > { %9628 = vmatpush1.bf16.msra.mxu0 %v15682_v31  ;;  %v15858_v31 = vcombine.low %v687_v13, %v695_v14  ;;  %v1103_v13 = vld [vmem:[%s19283_s29 + $0x1290] sm:$0xff] }
 0x250   : > { %9629 = vmatprep.subr.bf16.mxu0 %v15923_v33  ;;  %v15843_v33 = vcombine.high %v671_v27, %v679_v28  ;;  %v1111_v14 = vld [vmem:[%s19283_s29 + $0x12d0] sm:$0xff] }
 0x251   : > { %9671 = vmatpush1.bf16.msra.mxu1 %v15938_v32  ;;  %v16114_v32 = vcombine.low %v943_v17, %v951_v18  ;;  %v18629_v17 = vld [vmem:[%s22070_s0] ss:$44 sps:$4 sm:$0xff]   ;;  %v1359_v18 = vld [vmem:[%s19283_s29 + $0x1a90] sm:$0xff] }
 0x252   : > { %9672 = vmatprep.subr.bf16.mxu1 %v16179_v34  ;;  %v9303_v49 = vpop.f32.mrf.mxu0  ;;  %v16099_v34 = vcombine.high %v927_v29, %v935_v30 }
 0x253   : > { %v9304_v53 = vadd.f32 %v9303_v49, %v19731_v22  ;;  %9630 = vmatpush2.bf16.msra.mxu0 %v15922_v41  ;;  %v959_v22 = vld [vmem:[%s19283_s29 + $0xe10] sm:$0xff]  ;;  %v15842_v41 = vcombine.low %v671_v27, %v679_v28 }
 0x254   : > { %v19818_v58 = vpop.f32.mrf.mxu0  ;;  %9631 = vmatprep.subr.bf16.mxu0 %v15907_v45  ;;  %v16131_v12 = vcombine.high %v959_v22, %v967_v3  ;;  %v16130_v21 = vcombine.low %v959_v22, %v967_v3  ;;  %v16083_v45 = vcombine.high %v911_v39, %v919_v40  ;;  %v903_v49 = vld [vmem:[%s19283_s29 + $0xc50] sm:$0xff] }
 0x255   : > { %9673 = vmatpush2.bf16.msra.mxu1 %v16178_v44  ;;  %v9347_v61 = vadd.f32 %v9346_v43, %v9304_v53  ;;  %v16098_v43 = vcombine.low %v927_v29, %v935_v30  ;;  %v15827_v44 = vcombine.high %v655_v37, %v663_v38  ;;  %v16066_v1 = vcombine.low %v895_v48, %v903_v49  ;;  %v1119_v3 = vld [vmem:[%s19283_s29 + $0x1310] sm:$0xff] }
 0x256   : > { %9674 = vmatprep.subr.bf16.mxu1 %v16163_v46  ;;  %v9307_v2 = vpop.f32.mrf.mxu0  ;;  %v639_v46 = vld [vmem:[%s19283_s29 + $0x410] sm:$0xff] }
 0x257   : > { %v9308_v4 = vadd.f32 %v9307_v2, %v19740_v35  ;;  %9632 = vmatpush2.bf16.msra.mxu0 %v15906_v54  ;;  %v11161_v19 = vmax.f32 %v9347_v61, 0.0  ;;  %v15811_v53 = vcombine.high %v639_v46, %v647_v47  ;;  %v16067_v54 = vcombine.high %v895_v48, %v903_v49  ;;  %v1391_v61 = vld [vmem:[%s19283_s29 + $0x1b90] sm:$0xff] }
 0x258   : > { %9633 = vmatprep.subr.bf16.mxu0 %v15891_v60  ;;  %v1143_v60 = vld [vmem:[%s19283_s29 + $0x13d0] sm:$0xff]  ;;  %v15810_v63 = vcombine.low %v639_v46, %v647_v47 }
 0x259   : > { %9675 = vmatpush2.bf16.msra.mxu1 %v16162_v59  ;;  %v9351_v11 = vadd.f32 %v9350_v8, %v9308_v4  ;;  %v1135_v59 = vld [vmem:[%s19283_s29 + $0x1390] sm:$0xff] }
 0x25a   : > { %9676 = vmatprep.subr.bf16.mxu1 %v16147_v62  ;;  %v1399_v62 = vld [vmem:[%s19283_s29 + $0x1bd0] sm:$0xff]  ;;  %v16307_v2 = vcombine.high %v1135_v59, %v1143_v60 }
 0x25b   : > { %v11177_v35 = vmax.f32 %v9351_v11, 0.0  ;;  %9634 = vmatpush2.bf16.msra.mxu0 %v15890_v6  ;;  %v16563_v22 = vcombine.high %v1391_v61, %v1399_v62  ;;  %v1127_v4 = vld [vmem:[%s19283_s29 + $0x1350] sm:$0xff] }
 0x25c   : > { %9635 = vmatprep.subr.bf16.mxu0 %v15875_v10  ;;  %v1375_v6 = vld [vmem:[%s19283_s29 + $0x1b10] sm:$0xff]  ;;  %v16562_v10 = vcombine.low %v1391_v61, %v1399_v62  ;;  %v16291_v11 = vcombine.high %v1119_v3, %v1127_v4 }
 0x25d   : > { %9677 = vmatpush2.bf16.msra.mxu1 %v16146_v9  ;;  %v19829_v24 = vpack.c.bf16 %v11177_v35, %v11161_v19  ;;  %v1383_v8 = vld [vmem:[%s19283_s29 + $0x1b50] sm:$0xff]  ;;  %v16306_v9 = vcombine.low %v1135_v59, %v1143_v60 }
 0x25e   : > { %9678 = vmatprep.subr.bf16.mxu1 %v16131_v12  ;;  %v16547_v12 = vcombine.high %v1375_v6, %v1383_v8  ;;  %v1367_v19 = vld [vmem:[%s19283_s29 + $0x1ad0] sm:$0xff] }
 0x25f   : > { %22129 = vst [vmem:[#allocation25_spill] sm:$0xff] %v19829_v24  ;;  %9636 = vmatpush2.bf16.msra.mxu0 %v15874_v20  ;;  %v18630_v35 = vld [vmem:[%s22070_s0 + $0x8] ss:$44 sps:$4 sm:$0xff]   ;;  %v16290_v20 = vcombine.low %v1119_v3, %v1127_v4 }
 0x260   : > { %9637 = vmatprep.subr.bf16.mxu0 %v15859_v23  ;;  %v16275_v23 = vcombine.high %v1103_v13, %v1111_v14  ;;  %v1087_v27 = vld [vmem:[%s19283_s29 + $0x1210] sm:$0xff] }
 0x261   : > { %9679 = vmatpush2.bf16.msra.mxu1 %v16130_v21  ;;  %v16546_v21 = vcombine.low %v1375_v6, %v1383_v8  ;;  %v1095_v28 = vld [vmem:[%s19283_s29 + $0x1250] sm:$0xff] }
 0x262   : > { %9680 = vmatprep.subr.bf16.mxu1 %v16115_v25  ;;  %v16531_v25 = vcombine.high %v1359_v18, %v1367_v19  ;;  %v18631_v29 = vld [vmem:[%s22070_s0 + $0x14] ss:$44 sps:$4 sm:$0xff]   ;;  %v16259_v37 = vcombine.high %v1087_v27, %v1095_v28 }
 0x263   : > { %9638 = vmatpush2.bf16.msra.mxu0 %v15858_v31  ;;  %v1343_v30 = vld [vmem:[%s19283_s29 + $0x1a10] sm:$0xff] }
 0x264   : > { %9639 = vmatprep.subr.bf16.mxu0 %v15843_v33  ;;  %v1351_v31 = vld [vmem:[%s19283_s29 + $0x1a50] sm:$0xff]  ;;  %v16274_v33 = vcombine.low %v1103_v13, %v1111_v14 }
 0x265   : > { %9681 = vmatpush2.bf16.msra.mxu1 %v16114_v32  ;;  %v18632_v32 = vld [vmem:[%s22070_s0 + $0x1c] ss:$44 sps:$4 sm:$0xff]   ;;  %v16515_v38 = vcombine.high %v1343_v30, %v1351_v31  ;;  %v1071_v39 = vld [vmem:[%s19283_s29 + $0x1190] sm:$0xff] }
 0x266   : > { %9682 = vmatprep.subr.bf16.mxu1 %v16099_v34  ;;  %v16530_v34 = vcombine.low %v1359_v18, %v1367_v19  ;;  %v1079_v40 = vld [vmem:[%s19283_s29 + $0x11d0] sm:$0xff] }
 0x267   : > { %9640 = vmatpush2.bf16.msra.mxu0 %v15842_v41  ;;  %v1327_v41 = vld [vmem:[%s19283_s29 + $0x1990] sm:$0xff]  ;;  %v16243_v46 = vcombine.high %v1071_v39, %v1079_v40 }
 0x268   : > { %9641 = vmatprep.subr.bf16.mxu0 %v15827_v44  ;;  %v16258_v44 = vcombine.low %v1087_v27, %v1095_v28  ;;  %v1055_v48 = vld [vmem:[%s19283_s29 + $0x1110] sm:$0xff] }
 0x269   : > { %9683 = vmatpush2.bf16.msra.mxu1 %v16098_v43  ;;  %v1335_v43 = vld [vmem:[%s19283_s29 + $0x19d0] sm:$0xff] }
 0x26a   : > { %9684 = vmatprep.subr.bf16.mxu1 %v16083_v45  ;;  %v16514_v45 = vcombine.low %v1343_v30, %v1351_v31  ;;  %v16499_v47 = vcombine.high %v1327_v41, %v1335_v43  ;;  %v1063_v49 = vld [vmem:[%s19283_s29 + $0x1150] sm:$0xff] }
 0x26b   : > { %9642 = vmatpush2.bf16.msra.mxu0 %v15826_v51  ;;  %v1311_v51 = vld [vmem:[%s19283_s29 + $0x1910] sm:$0xff]  ;;  %v16227_v59 = vcombine.high %v1055_v48, %v1063_v49 }
 0x26c   : > { %9643 = vmatprep.subr.bf16.mxu0 %v15811_v53  ;;  %v16242_v53 = vcombine.low %v1071_v39, %v1079_v40  ;;  %v1039_v61 = vld [vmem:[%s19283_s29 + $0x1090] sm:$0xff]  ;;  %v19904_v40 = vpop.f32.mrf.mxu0 }
 0x26d   : > { %9685 = vmatpush2.bf16.msra.mxu1 %v16082_v52  ;;  %v1319_v52 = vld [vmem:[%s19283_s29 + $0x1950] sm:$0xff] }
 0x26e   : > { %9686 = vmatprep.subr.bf16.mxu1 %v16067_v54  ;;  %v16498_v54 = vcombine.low %v1327_v41, %v1335_v43  ;;  %v16483_v60 = vcombine.high %v1311_v51, %v1319_v52  ;;  %v1047_v62 = vld [vmem:[%s19283_s29 + $0x10d0] sm:$0xff] }
 0x26f   : > { %9644 = vmatpush2.bf16.msra.mxu0 %v15810_v63  ;;  %v1295_v63 = vld [vmem:[%s19283_s29 + $0x1890] sm:$0xff]  ;;  %v16211_v3 = vcombine.high %v1039_v61, %v1047_v62 }
 0x270   : > { %9699 = vmatprep.subr.bf16.mxu0 %v16307_v2  ;;  %v16226_v2 = vcombine.low %v1055_v48, %v1063_v49  ;;  %v1023_v6 = vld [vmem:[%s19283_s29 + $0x1010] sm:$0xff] }
 0x271   : > { %9687 = vmatpush2.bf16.msra.mxu1 %v16066_v1  ;;  %v1303_v1 = vld [vmem:[%s19283_s29 + $0x18d0] sm:$0xff] }
 0x272   : > { %9742 = vmatprep.subr.bf16.mxu1 %v16563_v22  ;;  %9646 = vmatmul.mubr.bf16.vlgmr.msra.gmra.mxu0 %v18629_v17  ;;  %v16482_v22 = vcombine.low %v1311_v51, %v1319_v52  ;;  %v16467_v4 = vcombine.high %v1295_v63, %v1303_v1  ;;  %v1031_v8 = vld [vmem:[%s19283_s29 + $0x1050] sm:$0xff]  ;;  %v16466_v13 = vcombine.low %v1295_v63, %v1303_v1  ;;  %v19890_v17 = vsub.s32 2, %v19614_v16 }
 0x273   : > { %9700 = vmatpush1.bf16.msra.mxu0 %v16306_v9  ;;  %9731 = vmatprep.mubr.bf16.mxu0 %v18631_v29  ;;  %v1279_v9 = vld [vmem:[%s19283_s29 + $0x1810] sm:$0xff]  ;;  %v16195_v14 = vcombine.high %v1023_v6, %v1031_v8 }
 0x274   : > { %9689 = vmatmul.mubr.bf16.vlgmr.msra.gmra.mxu1 %v18630_v35  ;;  %9701 = vmatprep.subr.bf16.mxu0 %v16291_v11  ;;  %v16210_v11 = vcombine.low %v1039_v61, %v1047_v62  ;;  %22130 = vst [vmem:[#allocation26_spill] sm:$0xff] %v19890_v17  ;;  %v1263_v19 = vld [vmem:[%s19283_s29 + $0x1790] sm:$0xff] }
 0x275   : > { %9743 = vmatpush1.bf16.msra.mxu1 %v16562_v10  ;;  %9774 = vmatprep.mubr.bf16.mxu1 %v18632_v32  ;;  %v1287_v10 = vld [vmem:[%s19283_s29 + $0x1850] sm:$0xff] }
 0x276   : > { %9744 = vmatprep.subr.bf16.mxu1 %v16547_v12  ;;  %v19887_v12 = vpop.f32.mrf.mxu1  ;;  %v16451_v18 = vcombine.high %v1279_v9, %v1287_v10  ;;  %v1271_v35 = vld [vmem:[%s19283_s29 + $0x17d0] sm:$0xff]  ;;  %v16450_v27 = vcombine.low %v1279_v9, %v1287_v10 }
 0x277   : > { %9702 = vmatpush1.bf16.msra.mxu0 %v16290_v20  ;;  %v16435_v28 = vcombine.high %v1263_v19, %v1271_v35  ;;  %v18633_v29 = vld [vmem:[%s19290_s28] sm:$0xff]  ;;  %v16434_v39 = vcombine.low %v1263_v19, %v1271_v35 }
 0x278   : > { %9703 = vmatprep.subr.bf16.mxu0 %v16275_v23  ;;  %v9389_v20 = vpop.f32.mrf.mxu1  ;;  %v1527_v23 = vld [vmem:[%s19283_s29 + $0x1fd0] sm:$0xff]  ;;  %v1932_v30 = vrot.slane %v18633_v29, %v19890_v17 }
 0x279   : > { %9745 = vmatpush1.bf16.msra.mxu1 %v16546_v21  ;;  %v1519_v21 = vld [vmem:[%s19283_s29 + $0x1f90] sm:$0xff] }
 0x27a   : > { %9746 = vmatprep.subr.bf16.mxu1 %v16531_v25  ;;  %v16194_v25 = vcombine.low %v1023_v6, %v1031_v8  ;;  %v16691_v31 = vcombine.high %v1519_v21, %v1527_v23  ;;  %v1247_v32 = vld [vmem:[%s19283_s29 + $0x1710] sm:$0xff]  ;;  %v16690_v41 = vcombine.low %v1519_v21, %v1527_v23 }
 0x27b   : > { %9704 = vmatpush1.bf16.msra.mxu0 %v16274_v33  ;;  %v1255_v33 = vld [vmem:[%s19283_s29 + $0x1750] sm:$0xff] }
 0x27c   : > { %9705 = vmatprep.subr.bf16.mxu0 %v16259_v37  ;;  %v1503_v37 = vld [vmem:[%s19283_s29 + $0x1f10] sm:$0xff]  ;;  %v16419_v43 = vcombine.high %v1247_v32, %v1255_v33 }
 0x27d   : > { %9747 = vmatpush1.bf16.msra.mxu1 %v16530_v34  ;;  %v19900_v34 = vpop.f32.mrf.mxu1  ;;  %v1487_v51 = vld [vmem:[%s19283_s29 + $0x1e90] sm:$0xff] }
 0x27e   : > { %9748 = vmatprep.subr.bf16.mxu1 %v16515_v38  ;;  %v1511_v38 = vld [vmem:[%s19283_s29 + $0x1f50] sm:$0xff] }
 0x27f   : > { %9706 = vmatpush1.bf16.msra.mxu0 %v16258_v44  ;;  %v9390_v44 = vadd.f32 %v9389_v20, %v1932_v30  ;;  %v9393_v48 = vpop.f32.mrf.mxu1  ;;  %v1495_v52 = vld [vmem:[%s19283_s29 + $0x1ed0] sm:$0xff] }
 0x280   : > { %9707 = vmatprep.subr.bf16.mxu0 %v16243_v46  ;;  %v1231_v46 = vld [vmem:[%s19283_s29 + $0x1690] sm:$0xff]  ;;  %v9394_v62 = vadd.f32 %v9393_v48, %v1932_v30  ;;  %v16659_v63 = vcombine.high %v1487_v51, %v1495_v52  ;;  %v16658_v9 = vcombine.low %v1487_v51, %v1495_v52 }
 0x281   : > { %9749 = vmatpush1.bf16.msra.mxu1 %v16514_v45  ;;  %v16675_v45 = vcombine.high %v1503_v37, %v1511_v38  ;;  %v1215_v1 = vld [vmem:[%s19283_s29 + $0x1610] sm:$0xff] }
 0x282   : > { %9750 = vmatprep.subr.bf16.mxu1 %v16499_v47  ;;  %v1239_v47 = vld [vmem:[%s19283_s29 + $0x16d0] sm:$0xff] }
 0x283   : > { %9708 = vmatpush1.bf16.msra.mxu0 %v16242_v53  ;;  %v16403_v61 = vcombine.high %v1231_v46, %v1239_v47  ;;  %v16402_v8 = vcombine.low %v1231_v46, %v1239_v47  ;;  %v1463_v19 = vld [vmem:[%s19283_s29 + $0x1dd0] sm:$0xff] }
 0x284   : > { %9709 = vmatprep.subr.bf16.mxu0 %v16227_v59  ;;  %v1447_v29 = vld [vmem:[%s19283_s29 + $0x1d50] sm:$0xff] }
 0x285   : > { %9751 = vmatpush1.bf16.msra.mxu1 %v16498_v54  ;;  %v16418_v54 = vcombine.low %v1247_v32, %v1255_v33  ;;  %v1151_v47 = vld [vmem:[%s19283_s29 + $0x1410] sm:$0xff] }
 0x286   : > { %9752 = vmatprep.subr.bf16.mxu1 %v16483_v60  ;;  %v16674_v60 = vcombine.low %v1503_v37, %v1511_v38  ;;  %v1167_v37 = vld [vmem:[%s19283_s29 + $0x1490] sm:$0xff] }
 0x287   : > { %9710 = vmatpush1.bf16.msra.mxu0 %v16226_v2  ;;  %v1223_v2 = vld [vmem:[%s19283_s29 + $0x1650] sm:$0xff] }
 0x288   : > { %9711 = vmatprep.subr.bf16.mxu0 %v16211_v3  ;;  %v1471_v3 = vld [vmem:[%s19283_s29 + $0x1e10] sm:$0xff]  ;;  %v16387_v10 = vcombine.high %v1215_v1, %v1223_v2  ;;  %v16386_v35 = vcombine.low %v1215_v1, %v1223_v2 }
 0x289   : > { %9753 = vmatpush1.bf16.msra.mxu1 %v16482_v22  ;;  %v1175_v38 = vld [vmem:[%s19283_s29 + $0x14d0] sm:$0xff] }
 0x28a   : > { %9754 = vmatprep.subr.bf16.mxu1 %v16467_v4  ;;  %v1479_v4 = vld [vmem:[%s19283_s29 + $0x1e50] sm:$0xff]  ;;  %v16338_v52 = vcombine.low %v1167_v37, %v1175_v38 }
 0x28b   : > { %9712 = vmatpush1.bf16.msra.mxu0 %v16210_v11  ;;  %v16643_v11 = vcombine.high %v1471_v3, %v1479_v4  ;;  %v16642_v20 = vcombine.low %v1471_v3, %v1479_v4  ;;  %v1159_v48 = vld [vmem:[%s19283_s29 + $0x1450] sm:$0xff] }
 0x28c   : > { %9713 = vmatprep.subr.bf16.mxu0 %v16195_v14  ;;  %v1207_v14 = vld [vmem:[%s19283_s29 + $0x15d0] sm:$0xff] }
 0x28d   : > { %9755 = vmatpush1.bf16.msra.mxu1 %v16466_v13  ;;  %v1199_v13 = vld [vmem:[%s19283_s29 + $0x1590] sm:$0xff] }
 0x28e   : > { %9756 = vmatprep.subr.bf16.mxu1 %v16451_v18  ;;  %v1455_v18 = vld [vmem:[%s19283_s29 + $0x1d90] sm:$0xff]  ;;  %v16371_v21 = vcombine.high %v1199_v13, %v1207_v14  ;;  %v16370_v30 = vcombine.low %v1199_v13, %v1207_v14 }
 0x28f   : > { %9714 = vmatpush1.bf16.msra.mxu0 %v16194_v25  ;;  %v16627_v23 = vcombine.high %v1455_v18, %v1463_v19  ;;  %v1183_v25 = vld [vmem:[%s19283_s29 + $0x1510] sm:$0xff] }
 0x290   : > { %9715 = vmatprep.subr.bf16.mxu0 %v16435_v28  ;;  %v1439_v28 = vld [vmem:[%s19283_s29 + $0x1d10] sm:$0xff] }
 0x291   : > { %9757 = vmatpush1.bf16.msra.mxu1 %v16450_v27  ;;  %v1191_v27 = vld [vmem:[%s19283_s29 + $0x1550] sm:$0xff]  ;;  %v16611_v33 = vcombine.high %v1439_v28, %v1447_v29 }
 0x292   : > { %9758 = vmatprep.subr.bf16.mxu1 %v16691_v31  ;;  %v9432_v49 = vpop.f32.mrf.mxu0  ;;  %v16626_v31 = vcombine.low %v1455_v18, %v1463_v19  ;;  %v16355_v32 = vcombine.high %v1183_v25, %v1191_v27  ;;  %v1415_v51 = vld [vmem:[%s19283_s29 + $0x1c50] sm:$0xff] }
 0x293   : > { %v19910_v53 = vadd.f32 %v9432_v49, %v9390_v44  ;;  %9716 = vmatpush2.bf16.msra.mxu0 %v16434_v39  ;;  %v1423_v39 = vld [vmem:[%s19283_s29 + $0x1c90] sm:$0xff]  ;;  %v16610_v44 = vcombine.low %v1439_v28, %v1447_v29 }
 0x294   : > { %v19912_v59 = vpop.f32.mrf.mxu0  ;;  %9717 = vmatprep.subr.bf16.mxu0 %v16419_v43  ;;  %v16354_v43 = vcombine.low %v1183_v25, %v1191_v27  ;;  %v1407_v49 = vld [vmem:[%s19283_s29 + $0x1c10] sm:$0xff] }
 0x295   : > { %9759 = vmatpush2.bf16.msra.mxu1 %v16690_v41  ;;  %v1431_v41 = vld [vmem:[%s19283_s29 + $0x1cd0] sm:$0xff]  ;;  %v16578_v3 = vcombine.low %v1407_v49, %v1415_v51 }
 0x296   : > { %9760 = vmatprep.subr.bf16.mxu1 %v16675_v45  ;;  %v9436_v22 = vpop.f32.mrf.mxu0  ;;  %v16339_v45 = vcombine.high %v1167_v37, %v1175_v38  ;;  %v16595_v46 = vcombine.high %v1423_v39, %v1431_v41  ;;  %v1903_v1 = vld [vmem:[%s19283_s29 + $0x2b90] sm:$0xff] }
 0x297   : > { %v19918_v6 = vadd.f32 %v9436_v22, %v9394_v62  ;;  %9718 = vmatpush2.bf16.msra.mxu0 %v16418_v54  ;;  %v16594_v54 = vcombine.low %v1423_v39, %v1431_v41  ;;  %v1647_v62 = vld [vmem:[%s19283_s29 + $0x2390] sm:$0xff]  ;;  %v16322_v22 = vcombine.low %v1151_v47, %v1159_v48 }
 0x298   : > { %9719 = vmatprep.subr.bf16.mxu0 %v16403_v61  ;;  %v16579_v61 = vcombine.high %v1407_v49, %v1415_v51  ;;  %v1911_v2 = vld [vmem:[%s19283_s29 + $0x2bd0] sm:$0xff] }
 0x299   : > { %9761 = vmatpush2.bf16.msra.mxu1 %v16674_v60  ;;  %v16323_v60 = vcombine.high %v1151_v47, %v1159_v48  ;;  %v1895_v13 = vld [vmem:[%s19283_s29 + $0x2b50] sm:$0xff]  ;;  %v17074_v18 = vcombine.low %v1903_v1, %v1911_v2 }
 0x29a   : > { %9762 = vmatprep.subr.bf16.mxu1 %v16659_v63  ;;  %v1655_v63 = vld [vmem:[%s19283_s29 + $0x23d0] sm:$0xff] }
 0x29b   : > { %9720 = vmatpush2.bf16.msra.mxu0 %v16402_v8  ;;  %v16819_v4 = vcombine.high %v1647_v62, %v1655_v63  ;;  %v17075_v8 = vcombine.high %v1903_v1, %v1911_v2  ;;  %v16818_v14 = vcombine.low %v1647_v62, %v1655_v63  ;;  %v18634_v25 = vld [vmem:[%s22070_s0 + $0x10] ss:$44 sps:$4 sm:$0xff]  }
 0x29c   : > { %9721 = vmatprep.subr.bf16.mxu0 %v16387_v10  ;;  %v1639_v10 = vld [vmem:[%s19283_s29 + $0x2350] sm:$0xff] }
 0x29d   : > { %9763 = vmatpush2.bf16.msra.mxu1 %v16658_v9  ;;  %v1631_v9 = vld [vmem:[%s19283_s29 + $0x2310] sm:$0xff] }
 0x29e   : > { %9764 = vmatprep.subr.bf16.mxu1 %v16643_v11  ;;  %v1887_v11 = vld [vmem:[%s19283_s29 + $0x2b10] sm:$0xff]  ;;  %v16803_v19 = vcombine.high %v1631_v9, %v1639_v10 }
 0x29f   : > { %9722 = vmatpush2.bf16.msra.mxu0 %v16386_v35  ;;  %v19944_v35 = vpop.f32.mrf.mxu1  ;;  %v1871_v27 = vld [vmem:[%s19283_s29 + $0x2a90] sm:$0xff] }
 0x2a0   : > { %9723 = vmatprep.subr.bf16.mxu0 %v16371_v21  ;;  %v1615_v21 = vld [vmem:[%s19283_s29 + $0x2290] sm:$0xff] }
 0x2a1   : > { %9765 = vmatpush2.bf16.msra.mxu1 %v16642_v20  ;;  %v17059_v20 = vcombine.high %v1887_v11, %v1895_v13  ;;  %v1879_v28 = vld [vmem:[%s19283_s29 + $0x2ad0] sm:$0xff] }
 0x2a2   : > { %9766 = vmatprep.subr.bf16.mxu1 %v16627_v23  ;;  %v1623_v23 = vld [vmem:[%s19283_s29 + $0x22d0] sm:$0xff]  ;;  %v17043_v39 = vcombine.high %v1871_v27, %v1879_v28  ;;  %v17042_v49 = vcombine.low %v1871_v27, %v1879_v28 }
 0x2a3   : > { %9724 = vmatpush2.bf16.msra.mxu0 %v16370_v30  ;;  %v18635_v30 = vld [vmem:[%s22070_s0 + $0x18] ss:$44 sps:$4 sm:$0xff]   ;;  %v16787_v37 = vcombine.high %v1615_v21, %v1623_v23  ;;  %v1599_v41 = vld [vmem:[%s19283_s29 + $0x2210] sm:$0xff]  ;;  %v16786_v47 = vcombine.low %v1615_v21, %v1623_v23 }
 0x2a4   : > { %9725 = vmatprep.subr.bf16.mxu0 %v16355_v32  ;;  %v1847_v62 = vld [vmem:[%s19283_s29 + $0x29d0] sm:$0xff] }
 0x2a5   : > { %9767 = vmatpush2.bf16.msra.mxu1 %v16626_v31  ;;  %v16802_v31 = vcombine.low %v1631_v9, %v1639_v10  ;;  %v1535_v28 = vld [vmem:[%s19283_s29 + $0x2010] sm:$0xff] }
 0x2a6   : > { %9768 = vmatprep.subr.bf16.mxu1 %v16611_v33  ;;  %v17058_v33 = vcombine.low %v1887_v11, %v1895_v13 }
 0x2a7   : > { %9726 = vmatpush2.bf16.msra.mxu0 %v16354_v43  ;;  %v1607_v43 = vld [vmem:[%s19283_s29 + $0x2250] sm:$0xff] }
 0x2a8   : > { %9727 = vmatprep.subr.bf16.mxu0 %v16339_v45  ;;  %v1863_v45 = vld [vmem:[%s19283_s29 + $0x2a50] sm:$0xff]  ;;  %v16771_v51 = vcombine.high %v1599_v41, %v1607_v43  ;;  %v16770_v63 = vcombine.low %v1599_v41, %v1607_v43 }
 0x2a9   : > { %9769 = vmatpush2.bf16.msra.mxu1 %v16610_v44  ;;  %v1855_v44 = vld [vmem:[%s19283_s29 + $0x2a10] sm:$0xff] }
 0x2aa   : > { %9770 = vmatprep.subr.bf16.mxu1 %v16595_v46  ;;  %v1775_v43 = vld [vmem:[%s19283_s29 + $0x2790] sm:$0xff] }
 0x2ab   : > { %9728 = vmatpush2.bf16.msra.mxu0 %v16338_v52  ;;  %v17027_v52 = vcombine.high %v1855_v44, %v1863_v45 }
 0x2ac   : > { %9729 = vmatprep.subr.bf16.mxu0 %v16323_v60  ;;  %v1591_v60 = vld [vmem:[%s19283_s29 + $0x21d0] sm:$0xff] }
 0x2ad   : > { %9771 = vmatpush2.bf16.msra.mxu1 %v16594_v54  ;;  %v1583_v54 = vld [vmem:[%s19283_s29 + $0x2190] sm:$0xff] }
 0x2ae   : > { %9772 = vmatprep.subr.bf16.mxu1 %v16579_v61  ;;  %v1839_v61 = vld [vmem:[%s19283_s29 + $0x2990] sm:$0xff]  ;;  %v16755_v1 = vcombine.high %v1583_v54, %v1591_v60  ;;  %v16754_v9 = vcombine.low %v1583_v54, %v1591_v60  ;;  %v608_v60 = vld [vmem:[%s19283_s29 + $0x318] sm:$0xff] }
 0x2af   : > { %9730 = vmatpush2.bf16.msra.mxu0 %v16322_v22  ;;  %v17011_v2 = vcombine.high %v1839_v61, %v1847_v62  ;;  %v1567_v22 = vld [vmem:[%s19283_s29 + $0x2110] sm:$0xff]  ;;  %v17010_v10 = vcombine.low %v1839_v61, %v1847_v62  ;;  %v616_v61 = vld [vmem:[%s19283_s29 + $0x358] sm:$0xff] }
 0x2b0   : > { %9785 = vmatprep.subr.bf16.mxu0 %v16819_v4  ;;  %v1823_v4 = vld [vmem:[%s19283_s29 + $0x2910] sm:$0xff] }
 0x2b1   : > { %9773 = vmatpush2.bf16.msra.mxu1 %v16578_v3  ;;  %v1575_v3 = vld [vmem:[%s19283_s29 + $0x2150] sm:$0xff] }
 0x2b2   : > { %9828 = vmatprep.subr.bf16.mxu1 %v17075_v8  ;;  %9732 = vmatmul.mubr.bf16.vlgmr.msra.gmra.mxu0 %v18634_v25  ;;  %v1831_v8 = vld [vmem:[%s19283_s29 + $0x2950] sm:$0xff]  ;;  %v16739_v11 = vcombine.high %v1567_v22, %v1575_v3  ;;  %v16738_v21 = vcombine.low %v1567_v22, %v1575_v3 }
 0x2b3   : > { %9786 = vmatpush1.bf16.msra.mxu0 %v16818_v14  ;;  %v16995_v13 = vcombine.high %v1823_v4, %v1831_v8  ;;  %v1551_v14 = vld [vmem:[%s19283_s29 + $0x2090] sm:$0xff]  ;;  %v16994_v23 = vcombine.low %v1823_v4, %v1831_v8  ;;  %v592_v8 = vld [vmem:[%s19283_s29 + $0x298] sm:$0xff] }
 0x2b4   : > { %v9475_v29 = vpop.f32.mrf.mxu1  ;;  %9775 = vmatmul.mubr.bf16.vlgmr.msra.gmra.mxu1 %v18635_v30  ;;  %9787 = vmatprep.subr.bf16.mxu0 %v16803_v19  ;;  %v1807_v19 = vld [vmem:[%s19283_s29 + $0x2890] sm:$0xff] }
 0x2b5   : > { %v19957_v32 = vadd.f32 %v9475_v29, %v19910_v53  ;;  %9829 = vmatpush1.bf16.msra.mxu1 %v17074_v18  ;;  %9860 = vmatprep.mubr.bf16.mxu1 %v22091_v36  ;;  %v18636_v53 = vld [vmem:[%s22070_s0 + $0x24] ss:$44 sps:$4 sm:$0xff]  }
 0x2b6   : > { %v19959_v38 = vpop.f32.mrf.mxu1  ;;  %9830 = vmatprep.subr.bf16.mxu1 %v17059_v20  ;;  %9817 = vmatprep.mubr.bf16.mxu0 %v18636_v53  ;;  %v1559_v18 = vld [vmem:[%s19283_s29 + $0x20d0] sm:$0xff]  ;;  %v632_v53 = vld [vmem:[%s19283_s29 + $0x3d8] sm:$0xff] }
 0x2b7   : > { %9788 = vmatpush1.bf16.msra.mxu0 %v16802_v31  ;;  %v1815_v20 = vld [vmem:[%s19283_s29 + $0x28d0] sm:$0xff]  ;;  %v16723_v25 = vcombine.high %v1551_v14, %v1559_v18 }
 0x2b8   : > { %v9479_v46 = vpop.f32.mrf.mxu1  ;;  %9789 = vmatprep.subr.bf16.mxu0 %v16787_v37  ;;  %v16979_v27 = vcombine.high %v1807_v19, %v1815_v20  ;;  %v1543_v29 = vld [vmem:[%s19283_s29 + $0x2050] sm:$0xff]  ;;  %v16978_v37 = vcombine.low %v1807_v19, %v1815_v20 }
 0x2b9   : > { %v19970_v48 = vadd.f32 %v9479_v46, %v19918_v6  ;;  %9831 = vmatpush1.bf16.msra.mxu1 %v17058_v33  ;;  %v17026_v6 = vcombine.low %v1855_v44, %v1863_v45  ;;  %v1791_v30 = vld [vmem:[%s19283_s29 + $0x2810] sm:$0xff]  ;;  %v16722_v33 = vcombine.low %v1551_v14, %v1559_v18  ;;  %v624_v45 = vld [vmem:[%s19283_s29 + $0x398] sm:$0xff]  ;;  %v16706_v46 = vcombine.low %v1535_v28, %v1543_v29 }
 0x2ba   : > { %9832 = vmatprep.subr.bf16.mxu1 %v17043_v39  ;;  %v1799_v31 = vld [vmem:[%s19283_s29 + $0x2850] sm:$0xff]  ;;  %v16707_v39 = vcombine.high %v1535_v28, %v1543_v29  ;;  %v15780_v18 = vcombine.low %v608_v60, %v616_v61  ;;  %v584_v28 = vld [vmem:[%s19283_s29 + $0x258] sm:$0xff] }
 0x2bb   : > { %9790 = vmatpush1.bf16.msra.mxu0 %v16786_v47  ;;  %v16963_v41 = vcombine.high %v1791_v30, %v1799_v31  ;;  %v1783_v44 = vld [vmem:[%s19283_s29 + $0x27d0] sm:$0xff]  ;;  %v16962_v47 = vcombine.low %v1791_v30, %v1799_v31 }
 0x2bc   : > { %9791 = vmatprep.subr.bf16.mxu0 %v16771_v51  ;;  %v15797_v51 = vcombine.high %v624_v45, %v632_v53  ;;  %v1767_v54 = vld [vmem:[%s19283_s29 + $0x2750] sm:$0xff]  ;;  %v16946_v62 = vcombine.low %v1775_v43, %v1783_v44 }
 0x2bd   : > { %9833 = vmatpush1.bf16.msra.mxu1 %v17042_v49  ;;  %v16947_v49 = vcombine.high %v1775_v43, %v1783_v44  ;;  %v1743_v22 = vld [vmem:[%s19283_s29 + $0x2690] sm:$0xff]  ;;  %v560_v43 = vld [vmem:[%s19283_s29 + $0x198] sm:$0xff] }
 0x2be   : > { %9834 = vmatprep.subr.bf16.mxu1 %v17027_v52  ;;  %v1759_v52 = vld [vmem:[%s19283_s29 + $0x2710] sm:$0xff]  ;;  %v568_v44 = vld [vmem:[%s19283_s29 + $0x1d8] sm:$0xff] }
 0x2bf   : > { %9792 = vmatpush1.bf16.msra.mxu0 %v16770_v63  ;;  %v19996_v63 = vpop.f32.mrf.mxu0  ;;  %v1751_v3 = vld [vmem:[%s19283_s29 + $0x26d0] sm:$0xff] }
 0x2c0   : > { %9793 = vmatprep.subr.bf16.mxu0 %v16755_v1  ;;  %v16931_v1 = vcombine.high %v1759_v52, %v1767_v54  ;;  %v16915_v19 = vcombine.high %v1743_v22, %v1751_v3  ;;  %v16914_v30 = vcombine.low %v1743_v22, %v1751_v3  ;;  %v536_v22 = vld [vmem:[%s19283_s29 + $0xd8] sm:$0xff] }
 0x2c1   : > { %9835 = vmatpush1.bf16.msra.mxu1 %v17026_v6  ;;  %v15796_v6 = vcombine.low %v624_v45, %v632_v53 }
 0x2c2   : > { %9836 = vmatprep.subr.bf16.mxu1 %v17011_v2  ;;  %v15781_v2 = vcombine.high %v608_v60, %v616_v61  ;;  %v15732_v60 = vcombine.low %v560_v43, %v568_v44 }
 0x2c3   : > { %9794 = vmatpush1.bf16.msra.mxu0 %v16754_v9  ;;  %v600_v9 = vld [vmem:[%s19283_s29 + $0x2d8] sm:$0xff] }
 0x2c4   : > { %9795 = vmatprep.subr.bf16.mxu0 %v16739_v11  ;;  %v18637_v11 = vld [vmem:[%s22070_s0 + $0x28] ss:$44 sps:$4 sm:$0xff]   ;;  %v15765_v20 = vcombine.high %v592_v8, %v600_v9  ;;  %v15764_v31 = vcombine.low %v592_v8, %v600_v9 }
 0x2c5   : > { %9837 = vmatpush1.bf16.msra.mxu1 %v17010_v10 }
 0x2c6   : > { %9838 = vmatprep.subr.bf16.mxu1 %v16995_v13  ;;  %v16930_v13 = vcombine.low %v1759_v52, %v1767_v54  ;;  %v552_v52 = vld [vmem:[%s19283_s29 + $0x158] sm:$0xff] }
 0x2c7   : > { %9796 = vmatpush1.bf16.msra.mxu0 %v16738_v21  ;;  %v1727_v21 = vld [vmem:[%s19283_s29 + $0x2610] sm:$0xff] }
 0x2c8   : > { %9797 = vmatprep.subr.bf16.mxu0 %v16723_v25 }
 0x2c9   : > { %9839 = vmatpush1.bf16.msra.mxu1 %v16994_v23  ;;  %v18638_v23 = vld [vmem:[%s22070_s0 + $0x4] ss:$44 sps:$4 sm:$0xff]  }
 0x2ca   : > { %9840 = vmatprep.subr.bf16.mxu1 %v16979_v27  ;;  %v576_v27 = vld [vmem:[%s19283_s29 + $0x218] sm:$0xff] }
 0x2cb   : > { %9798 = vmatpush1.bf16.msra.mxu0 %v16722_v33 }
 0x2cc   : > { %9799 = vmatprep.subr.bf16.mxu0 %v16707_v39  ;;  %v1711_v39 = vld [vmem:[%s19283_s29 + $0x2590] sm:$0xff] }
 0x2cd   : > { %9841 = vmatpush1.bf16.msra.mxu1 %v16978_v37  ;;  %v15749_v37 = vcombine.high %v576_v27, %v584_v28 }
 0x2ce   : > { %9842 = vmatprep.subr.bf16.mxu1 %v16963_v41  ;;  %v1719_v41 = vld [vmem:[%s19283_s29 + $0x25d0] sm:$0xff] }
 0x2cf   : > { %9800 = vmatpush1.bf16.msra.mxu0 %v16706_v46  ;;  %v16883_v53 = vcombine.high %v1711_v39, %v1719_v41  ;;  %v15733_v46 = vcombine.high %v560_v43, %v568_v44  ;;  %v16882_v54 = vcombine.low %v1711_v39, %v1719_v41  ;;  %v864_v41 = vld [vmem:[%s19283_s29 + $0xb18] sm:$0xff] }
 0x2d0   : > { %9801 = vmatprep.subr.bf16.mxu0 %v16947_v49  ;;  %v1703_v49 = vld [vmem:[%s19283_s29 + $0x2550] sm:$0xff]  ;;  %v872_v43 = vld [vmem:[%s19283_s29 + $0xb58] sm:$0xff] }
 0x2d1   : > { %9843 = vmatpush1.bf16.msra.mxu1 %v16962_v47  ;;  %v1695_v47 = vld [vmem:[%s19283_s29 + $0x2510] sm:$0xff]  ;;  %v736_v44 = vld [vmem:[%s19283_s29 + $0x718] sm:$0xff] }
 0x2d2   : > { %9871 = vmatprep.subr.bf16.mxu1 %v15797_v51  ;;  %v9518_v4 = vpop.f32.mrf.mxu0  ;;  %v544_v51 = vld [vmem:[%s19283_s29 + $0x118] sm:$0xff]  ;;  %v16867_v61 = vcombine.high %v1695_v47, %v1703_v49  ;;  %v16866_v3 = vcombine.low %v1695_v47, %v1703_v49  ;;  %v16037_v47 = vcombine.high %v864_v41, %v872_v43  ;;  %v20046_v49 = vpop.f32.mrf.mxu1 }
 0x2d3   : > { %v20003_v10 = vadd.f32 %v9518_v4, %v19957_v32  ;;  %9802 = vmatpush2.bf16.msra.mxu0 %v16946_v62  ;;  %v1735_v32 = vld [vmem:[%s19283_s29 + $0x2650] sm:$0xff]  ;;  %v15717_v62 = vcombine.high %v544_v51, %v552_v52  ;;  %v15716_v4 = vcombine.low %v544_v51, %v552_v52  ;;  %v848_v52 = vld [vmem:[%s19283_s29 + $0xa98] sm:$0xff] }
 0x2d4   : > { %9861 = vmatmul.mubr.bf16.vlgmr.msra.gmra.mxu1 %v18637_v11  ;;  %v20008_v14 = vpop.f32.mrf.mxu0  ;;  %9803 = vmatprep.subr.bf16.mxu0 %v16931_v1  ;;  %v16899_v33 = vcombine.high %v1727_v21, %v1735_v32  ;;  %v16898_v45 = vcombine.low %v1727_v21, %v1735_v32  ;;  %v1687_v1 = vld [vmem:[%s19283_s29 + $0x24d0] sm:$0xff] }
 0x2d5   : > { %9872 = vmatpush1.bf16.msra.mxu1 %v15796_v6  ;;  %9903 = vmatprep.mubr.bf16.mxu1 %v18638_v23  ;;  %v1679_v6 = vld [vmem:[%s19283_s29 + $0x2490] sm:$0xff] }
 0x2d6   : > { %9873 = vmatprep.subr.bf16.mxu1 %v15781_v2  ;;  %v9522_v25 = vpop.f32.mrf.mxu0  ;;  %v528_v2 = vld [vmem:[%s19283_s29 + $0x98] sm:$0xff]  ;;  %v16851_v8 = vcombine.high %v1679_v6, %v1687_v1  ;;  %v1663_v11 = vld [vmem:[%s19283_s29 + $0x2410] sm:$0xff] }
 0x2d7   : > { %v20018_v29 = vadd.f32 %v9522_v25, %v19970_v48  ;;  %9804 = vmatpush2.bf16.msra.mxu0 %v16930_v13  ;;  %v15748_v48 = vcombine.low %v576_v27, %v584_v28  ;;  %v15701_v9 = vcombine.high %v528_v2, %v536_v22  ;;  %v1671_v13 = vld [vmem:[%s19283_s29 + $0x2450] sm:$0xff]  ;;  %v15700_v21 = vcombine.low %v528_v2, %v536_v22  ;;  %v880_v25 = vld [vmem:[%s19283_s29 + $0xb98] sm:$0xff] }
 0x2d8   : > { %9805 = vmatprep.subr.bf16.mxu0 %v16915_v19  ;;  %v520_v19 = vld [vmem:[%s19283_s29 + $0x58] sm:$0xff]  ;;  %v16835_v32 = vcombine.high %v1663_v11, %v1671_v13  ;;  %v16036_v2 = vcombine.low %v864_v41, %v872_v43 }
 0x2d9   : > { %9874 = vmatpush1.bf16.msra.mxu1 %v15780_v18  ;;  %v512_v18 = vld [vmem:[%s19283_s29 + $0x18] sm:$0xff] }
 0x2da   : > { %9875 = vmatprep.subr.bf16.mxu1 %v15765_v20  ;;  %v16850_v20 = vcombine.low %v1679_v6, %v1687_v1  ;;  %v15685_v23 = vcombine.high %v512_v18, %v520_v19  ;;  %v888_v27 = vld [vmem:[%s19283_s29 + $0xbd8] sm:$0xff] }
 0x2db   : > { %9806 = vmatpush2.bf16.msra.mxu0 %v16914_v30  ;;  %v752_v28 = vld [vmem:[%s19283_s29 + $0x798] sm:$0xff] }
 0x2dc   : > { %9807 = vmatprep.subr.bf16.mxu0 %v16899_v33  ;;  %v760_v30 = vld [vmem:[%s19283_s29 + $0x7d8] sm:$0xff]  ;;  %v15684_v33 = vcombine.low %v512_v18, %v520_v19 }
 0x2dd   : > { %9876 = vmatpush1.bf16.msra.mxu1 %v15764_v31  ;;  %v16834_v31 = vcombine.low %v1663_v11, %v1671_v13  ;;  %v15925_v39 = vcombine.high %v752_v28, %v760_v30  ;;  %v728_v6 = vld [vmem:[%s19283_s29 + $0x6d8] sm:$0xff] }
 0x2de   : > { %9877 = vmatprep.subr.bf16.mxu1 %v15749_v37  ;;  %v16053_v37 = vcombine.high %v880_v25, %v888_v27  ;;  %v18640_v22 = vld [vmem:[%s22070_s0 + $0xc] ss:$44 sps:$4 sm:$0xff]  }
 0x2df   : > { %9808 = vmatpush2.bf16.msra.mxu0 %v16898_v45  ;;  %v744_v45 = vld [vmem:[%s19283_s29 + $0x758] sm:$0xff] }
 0x2e0   : > { %9809 = vmatprep.subr.bf16.mxu0 %v16883_v53  ;;  %v20044_v53 = vpop.f32.mrf.mxu0  ;;  %v15909_v51 = vcombine.high %v736_v44, %v744_v45  ;;  %v832_v18 = vld [vmem:[%s19283_s29 + $0xa18] sm:$0xff] }
 0x2e1   : > { %9878 = vmatpush1.bf16.msra.mxu1 %v15748_v48  ;;  %v16052_v48 = vcombine.low %v880_v25, %v888_v27  ;;  %v840_v19 = vld [vmem:[%s19283_s29 + $0xa58] sm:$0xff] }
 0x2e2   : > { %9879 = vmatprep.subr.bf16.mxu1 %v15733_v46  ;;  %v15924_v46 = vcombine.low %v752_v28, %v760_v30  ;;  %v16005_v28 = vcombine.high %v832_v18, %v840_v19  ;;  %v688_v41 = vld [vmem:[%s19283_s29 + $0x598] sm:$0xff] }
 0x2e3   : > { %9810 = vmatpush2.bf16.msra.mxu0 %v16882_v54  ;;  %v856_v54 = vld [vmem:[%s19283_s29 + $0xad8] sm:$0xff] }
 0x2e4   : > { %9811 = vmatprep.subr.bf16.mxu0 %v16867_v61  ;;  %v18639_v61 = vld [vmem:[%s22070_s0 + $0x20] ss:$44 sps:$4 sm:$0xff]   ;;  %v696_v43 = vld [vmem:[%s19283_s29 + $0x5d8] sm:$0xff] }
 0x2e5   : > { %9880 = vmatpush1.bf16.msra.mxu1 %v15732_v60 }
 0x2e6   : > { %9881 = vmatprep.subr.bf16.mxu1 %v15717_v62  ;;  %v720_v62 = vld [vmem:[%s19283_s29 + $0x698] sm:$0xff] }
 0x2e7   : > { %9812 = vmatpush2.bf16.msra.mxu0 %v16866_v3  ;;  %v15893_v13 = vcombine.high %v720_v62, %v728_v6  ;;  %v15892_v27 = vcombine.low %v720_v62, %v728_v6  ;;  %v15860_v6 = vcombine.low %v688_v41, %v696_v43 }
 0x2e8   : > { %9813 = vmatprep.subr.bf16.mxu0 %v16851_v8  ;;  %v16021_v8 = vcombine.high %v848_v52, %v856_v54 }
 0x2e9   : > { %9882 = vmatpush1.bf16.msra.mxu1 %v15716_v4  ;;  %v15908_v4 = vcombine.low %v736_v44, %v744_v45  ;;  %v16004_v44 = vcombine.low %v832_v18, %v840_v19 }
 0x2ea   : > { %9883 = vmatprep.subr.bf16.mxu1 %v15701_v9 }
 0x2eb   : > { %9814 = vmatpush2.bf16.msra.mxu0 %v16850_v20 }
 0x2ec   : > { %9815 = vmatprep.subr.bf16.mxu0 %v16835_v32  ;;  %v712_v32 = vld [vmem:[%s19283_s29 + $0x658] sm:$0xff] }
 0x2ed   : > { %9884 = vmatpush1.bf16.msra.mxu1 %v15700_v21  ;;  %v704_v21 = vld [vmem:[%s19283_s29 + $0x618] sm:$0xff] }
 0x2ee   : > { %9885 = vmatprep.subr.bf16.mxu1 %v15685_v23  ;;  %v16020_v23 = vcombine.low %v848_v52, %v856_v54  ;;  %v808_v52 = vld [vmem:[%s19283_s29 + $0x958] sm:$0xff] }
 0x2ef   : > { %9816 = vmatpush2.bf16.msra.mxu0 %v16834_v31  ;;  %v15877_v31 = vcombine.high %v704_v21, %v712_v32 }
 0x2f0   : > { %9914 = vmatprep.subr.bf16.mxu0 %v16053_v37  ;;  %v824_v37 = vld [vmem:[%s19283_s29 + $0x9d8] sm:$0xff] }
 0x2f1   : > { %9886 = vmatpush1.bf16.msra.mxu1 %v15684_v33  ;;  %v816_v33 = vld [vmem:[%s19283_s29 + $0x998] sm:$0xff] }
 0x2f2   : > { %9887 = vmatprep.subr.bf16.mxu1 %v15925_v39  ;;  %v9604_v60 = vpop.f32.mrf.mxu0  ;;  %9818 = vmatmul.mubr.bf16.vlgmr.msra.gmra.mxu0 %v18639_v61  ;;  %v680_v61 = vld [vmem:[%s19283_s29 + $0x558] sm:$0xff]  ;;  %v15988_v62 = vcombine.low %v816_v33, %v824_v37 }
 0x2f3   : > { %9915 = vmatpush1.bf16.msra.mxu0 %v16052_v48  ;;  %9946 = vmatprep.mubr.bf16.mxu0 %v18640_v22  ;;  %v15876_v48 = vcombine.low %v704_v21, %v712_v32  ;;  %v784_v22 = vld [vmem:[%s19283_s29 + $0x898] sm:$0xff] }
 0x2f4   : > { %v9561_v1 = vpop.f32.mrf.mxu1  ;;  %9916 = vmatprep.subr.bf16.mxu0 %v16037_v47  ;;  %v20061_v11 = vpop.f32.mrf.mxu0  ;;  %v15861_v47 = vcombine.high %v688_v41, %v696_v43  ;;  %v768_v21 = vld [vmem:[%s19283_s29 + $0x818] sm:$0xff] }
 0x2f5   : > { %v9562_v3 = vadd.f32 %v9561_v1, %v20003_v10  ;;  %9888 = vmatpush2.bf16.msra.mxu1 %v15924_v46  ;;  %v15989_v46 = vcombine.high %v816_v33, %v824_v37  ;;  %v776_v32 = vld [vmem:[%s19283_s29 + $0x858] sm:$0xff] }
 0x2f6   : > { %v20059_v9 = vpop.f32.mrf.mxu1  ;;  %9889 = vmatprep.subr.bf16.mxu1 %v15909_v51  ;;  %v9608_v30 = vpop.f32.mrf.mxu0  ;;  %v800_v51 = vld [vmem:[%s19283_s29 + $0x918] sm:$0xff]  ;;  %v15940_v41 = vcombine.low %v768_v21, %v776_v32 }
 0x2f7   : > { %v9605_v20 = vadd.f32 %v9604_v60, %v9562_v3  ;;  %9917 = vmatpush1.bf16.msra.mxu0 %v16036_v2  ;;  %v672_v60 = vld [vmem:[%s19283_s29 + $0x518] sm:$0xff]  ;;  %v15973_v1 = vcombine.high %v800_v51, %v808_v52 }
 0x2f8   : > { %v9565_v10 = vpop.f32.mrf.mxu1  ;;  %9918 = vmatprep.subr.bf16.mxu0 %v16021_v8  ;;  %v15845_v2 = vcombine.high %v672_v60, %v680_v61  ;;  %v792_v3 = vld [vmem:[%s19283_s29 + $0x8d8] sm:$0xff]  ;;  %v15844_v18 = vcombine.low %v672_v60, %v680_v61 }
 0x2f9   : > { %v9566_v25 = vadd.f32 %v9565_v10, %v20018_v29  ;;  %9890 = vmatpush2.bf16.msra.mxu1 %v15908_v4  ;;  %v11163_v45 = vmax.f32 %v9605_v20, 0.0  ;;  %v656_v4 = vld [vmem:[%s19283_s29 + $0x498] sm:$0xff]  ;;  %v15957_v19 = vcombine.high %v784_v22, %v792_v3 }
 0x2fa   : > { %9891 = vmatprep.subr.bf16.mxu1 %v15893_v13  ;;  %v664_v8 = vld [vmem:[%s19283_s29 + $0x4d8] sm:$0xff]  ;;  %v15972_v13 = vcombine.low %v800_v51, %v808_v52 }
 0x2fb   : > { %v9609_v39 = vadd.f32 %v9608_v30, %v9566_v25  ;;  %9919 = vmatpush1.bf16.msra.mxu0 %v16020_v23  ;;  %v15829_v20 = vcombine.high %v656_v4, %v664_v8  ;;  %v640_v10 = vld [vmem:[%s19283_s29 + $0x418] sm:$0xff]  ;;  %v15956_v25 = vcombine.low %v784_v22, %v792_v3  ;;  %v18641_v22 = vld [vmem:[%s22070_s0] ss:$44 sps:$4 sm:$0xff]  }
 0x2fc   : > { %9920 = vmatprep.subr.bf16.mxu0 %v16005_v28  ;;  %v648_v23 = vld [vmem:[%s19283_s29 + $0x458] sm:$0xff]  ;;  %v15941_v28 = vcombine.high %v768_v21, %v776_v32 }
 0x2fd   : > { %v11179_v29 = vmax.f32 %v9609_v39, 0.0  ;;  %9892 = vmatpush2.bf16.msra.mxu1 %v15892_v27  ;;  %v15828_v27 = vcombine.low %v656_v4, %v664_v8  ;;  %v15813_v30 = vcombine.high %v640_v10, %v648_v23  ;;  %v1016_v33 = vld [vmem:[%s19283_s29 + $0xfd8] sm:$0xff]  ;;  %v15812_v43 = vcombine.low %v640_v10, %v648_v23 }
 0x2fe   : > { %9893 = vmatprep.subr.bf16.mxu1 %v15877_v31  ;;  %v1008_v31 = vld [vmem:[%s19283_s29 + $0xf98] sm:$0xff] }
 0x2ff   : > { %v20074_v54 = vpack.c.bf16 %v11179_v29, %v11163_v45  ;;  %9921 = vmatpush1.bf16.msra.mxu0 %v16004_v44  ;;  %v1136_v37 = vld [vmem:[%s19283_s29 + $0x1398] sm:$0xff]  ;;  %v16181_v44 = vcombine.high %v1008_v31, %v1016_v33  ;;  %v16180_v51 = vcombine.low %v1008_v31, %v1016_v33 }
 0x300   : > { %9922 = vmatprep.subr.bf16.mxu0 %v15989_v46  ;;  %v1144_v39 = vld [vmem:[%s19283_s29 + $0x13d8] sm:$0xff] }
 0x301   : > { %22131 = vst [vmem:[#allocation27_spill] sm:$0xff] %v20074_v54  ;;  %9894 = vmatpush2.bf16.msra.mxu1 %v15876_v48  ;;  %v16309_v45 = vcombine.high %v1136_v37, %v1144_v39  ;;  %v992_v29 = vld [vmem:[%s19283_s29 + $0xf18] sm:$0xff]  ;;  %v16308_v52 = vcombine.low %v1136_v37, %v1144_v39  ;;  %v953_v54 = vld [vmem:[%s19283_s29 + $0xde0] sm:$0xff] }
 0x302   : > { %9895 = vmatprep.subr.bf16.mxu1 %v15861_v47  ;;  %v1000_v48 = vld [vmem:[%s19283_s29 + $0xf58] sm:$0xff] }
 0x303   : > { %9923 = vmatpush1.bf16.msra.mxu0 %v15988_v62  ;;  %v1120_v46 = vld [vmem:[%s19283_s29 + $0x1318] sm:$0xff]  ;;  %v16165_v60 = vcombine.high %v992_v29, %v1000_v48  ;;  %v16164_v3 = vcombine.low %v992_v29, %v1000_v48 }
 0x304   : > { %9924 = vmatprep.subr.bf16.mxu0 %v15973_v1  ;;  %v1128_v47 = vld [vmem:[%s19283_s29 + $0x1358] sm:$0xff] }
 0x305   : > { %9896 = vmatpush2.bf16.msra.mxu1 %v15860_v6  ;;  %v16293_v61 = vcombine.high %v1120_v46, %v1128_v47  ;;  %v976_v62 = vld [vmem:[%s19283_s29 + $0xe98] sm:$0xff]  ;;  %v16292_v4 = vcombine.low %v1120_v46, %v1128_v47 }
 0x306   : > { %9897 = vmatprep.subr.bf16.mxu1 %v15845_v2  ;;  %v984_v6 = vld [vmem:[%s19283_s29 + $0xed8] sm:$0xff] }
 0x307   : > { %9925 = vmatpush1.bf16.msra.mxu0 %v15972_v13  ;;  %v1104_v1 = vld [vmem:[%s19283_s29 + $0x1298] sm:$0xff]  ;;  %v16149_v8 = vcombine.high %v976_v62, %v984_v6  ;;  %v16148_v10 = vcombine.low %v976_v62, %v984_v6 }
 0x308   : > { %9926 = vmatprep.subr.bf16.mxu0 %v15957_v19  ;;  %v1112_v2 = vld [vmem:[%s19283_s29 + $0x12d8] sm:$0xff] }
 0x309   : > { %9898 = vmatpush2.bf16.msra.mxu1 %v15844_v18  ;;  %v16277_v13 = vcombine.high %v1104_v1, %v1112_v2  ;;  %v960_v18 = vld [vmem:[%s19283_s29 + $0xe18] sm:$0xff]  ;;  %v16276_v23 = vcombine.low %v1104_v1, %v1112_v2 }
 0x30a   : > { %9899 = vmatprep.subr.bf16.mxu1 %v15829_v20  ;;  %v968_v19 = vld [vmem:[%s19283_s29 + $0xe58] sm:$0xff]  ;;  %v18642_v20 = vld [vmem:[%s22070_s0 + $0x14] ss:$44 sps:$4 sm:$0xff]  }
 0x30b   : > { %9927 = vmatpush1.bf16.msra.mxu0 %v15956_v25  ;;  %v1088_v21 = vld [vmem:[%s19283_s29 + $0x1218] sm:$0xff]  ;;  %v16133_v25 = vcombine.high %v960_v18, %v968_v19  ;;  %v16132_v37 = vcombine.low %v960_v18, %v968_v19 }
 0x30c   : > { %9928 = vmatprep.subr.bf16.mxu0 %v15941_v28  ;;  %v1096_v32 = vld [vmem:[%s19283_s29 + $0x1258] sm:$0xff] }
 0x30d   : > { %9900 = vmatpush2.bf16.msra.mxu1 %v15828_v27  ;;  %v16261_v27 = vcombine.high %v1088_v21, %v1096_v32  ;;  %v944_v28 = vld [vmem:[%s19283_s29 + $0xd98] sm:$0xff]  ;;  %v16260_v39 = vcombine.low %v1088_v21, %v1096_v32 }
 0x30e   : > { %9901 = vmatprep.subr.bf16.mxu1 %v15813_v30  ;;  %v952_v30 = vld [vmem:[%s19283_s29 + $0xdd8] sm:$0xff] }
 0x30f   : > { %9929 = vmatpush1.bf16.msra.mxu0 %v15940_v41  ;;  %v1072_v31 = vld [vmem:[%s19283_s29 + $0x1198] sm:$0xff]  ;;  %v16117_v41 = vcombine.high %v944_v28, %v952_v30  ;;  %v16116_v46 = vcombine.low %v944_v28, %v952_v30  ;;  %v22090_v30 = vsub.s32 4, %v19614_v16 }
 0x310   : > { %9930 = vmatprep.subr.bf16.mxu0 %v16181_v44  ;;  %v1080_v33 = vld [vmem:[%s19283_s29 + $0x11d8] sm:$0xff] }
 0x311   : > { %9902 = vmatpush2.bf16.msra.mxu1 %v15812_v43  ;;  %v16245_v43 = vcombine.high %v1072_v31, %v1080_v33  ;;  %v928_v44 = vld [vmem:[%s19283_s29 + $0xd18] sm:$0xff]  ;;  %v16244_v47 = vcombine.low %v1072_v31, %v1080_v33 }
 0x312   : > { %9957 = vmatprep.subr.bf16.mxu1 %v16309_v45  ;;  %v936_v45 = vld [vmem:[%s19283_s29 + $0xd58] sm:$0xff] }
 0x313   : > { %9931 = vmatpush2.bf16.msra.mxu0 %v16180_v51  ;;  %v1056_v29 = vld [vmem:[%s19283_s29 + $0x1118] sm:$0xff]  ;;  %v16101_v51 = vcombine.high %v928_v44, %v936_v45  ;;  %v16100_v1 = vcombine.low %v928_v44, %v936_v45  ;;  %v18643_v45 = vld [vmem:[%s19290_s28] sm:$0xff] }
 0x314   : > { %9904 = vmatmul.mubr.bf16.vlgmr.msra.gmra.mxu1 %v18641_v22  ;;  %9932 = vmatprep.subr.bf16.mxu0 %v16165_v60  ;;  %v1064_v48 = vld [vmem:[%s19283_s29 + $0x1158] sm:$0xff] }
 0x315   : > { %9958 = vmatpush1.bf16.msra.mxu1 %v16308_v52  ;;  %9989 = vmatprep.mubr.bf16.mxu1 %v18642_v20  ;;  %v16229_v52 = vcombine.high %v1056_v29, %v1064_v48  ;;  %v912_v60 = vld [vmem:[%s19283_s29 + $0xc98] sm:$0xff]  ;;  %v16228_v2 = vcombine.low %v1056_v29, %v1064_v48  ;;  %v1940_v29 = vrot.slane %v18643_v45, %v22090_v30  ;;  %v713_v30 = vld [vmem:[%s19283_s29 + $0x660] sm:$0xff] }
 0x316   : > { %9959 = vmatprep.subr.bf16.mxu1 %v16293_v61  ;;  %v920_v61 = vld [vmem:[%s19283_s29 + $0xcd8] sm:$0xff] }
 0x317   : > { %9933 = vmatpush2.bf16.msra.mxu0 %v16164_v3  ;;  %v1040_v62 = vld [vmem:[%s19283_s29 + $0x1098] sm:$0xff]  ;;  %v16085_v22 = vcombine.high %v912_v60, %v920_v61  ;;  %v16084_v19 = vcombine.low %v912_v60, %v920_v61 }
 0x318   : > { %9934 = vmatprep.subr.bf16.mxu0 %v16149_v8  ;;  %v1048_v6 = vld [vmem:[%s19283_s29 + $0x10d8] sm:$0xff] }
 0x319   : > { %9960 = vmatpush1.bf16.msra.mxu1 %v16292_v4  ;;  %v16213_v3 = vcombine.high %v1040_v62, %v1048_v6  ;;  %v896_v4 = vld [vmem:[%s19283_s29 + $0xc18] sm:$0xff]  ;;  %v16212_v20 = vcombine.low %v1040_v62, %v1048_v6 }
 0x31a   : > { %9961 = vmatprep.subr.bf16.mxu1 %v16277_v13  ;;  %v904_v8 = vld [vmem:[%s19283_s29 + $0xc58] sm:$0xff] }
 0x31b   : > { %9935 = vmatpush2.bf16.msra.mxu0 %v16148_v10  ;;  %v1024_v13 = vld [vmem:[%s19283_s29 + $0x1018] sm:$0xff]  ;;  %v16069_v21 = vcombine.high %v896_v4, %v904_v8  ;;  %v16068_v28 = vcombine.low %v896_v4, %v904_v8 }
 0x31c   : > { %9936 = vmatprep.subr.bf16.mxu0 %v16133_v25  ;;  %v1032_v18 = vld [vmem:[%s19283_s29 + $0x1058] sm:$0xff] }
 0x31d   : > { %9962 = vmatpush1.bf16.msra.mxu1 %v16276_v23  ;;  %v16197_v32 = vcombine.high %v1024_v13, %v1032_v18  ;;  %v1392_v10 = vld [vmem:[%s19283_s29 + $0x1b98] sm:$0xff]  ;;  %v16196_v31 = vcombine.low %v1024_v13, %v1032_v18 }
 0x31e   : > { %9963 = vmatprep.subr.bf16.mxu1 %v16261_v27  ;;  %v1400_v23 = vld [vmem:[%s19283_s29 + $0x1bd8] sm:$0xff] }
 0x31f   : > { %9937 = vmatpush2.bf16.msra.mxu0 %v16132_v37  ;;  %v1264_v25 = vld [vmem:[%s19283_s29 + $0x1798] sm:$0xff]  ;;  %v16565_v33 = vcombine.high %v1392_v10, %v1400_v23  ;;  %v16564_v48 = vcombine.low %v1392_v10, %v1400_v23 }
 0x320   : > { %9938 = vmatprep.subr.bf16.mxu0 %v16117_v41  ;;  %v1272_v27 = vld [vmem:[%s19283_s29 + $0x17d8] sm:$0xff] }
 0x321   : > { %9964 = vmatpush1.bf16.msra.mxu1 %v16260_v39  ;;  %v16437_v37 = vcombine.high %v1264_v25, %v1272_v27  ;;  %v1376_v39 = vld [vmem:[%s19283_s29 + $0x1b18] sm:$0xff] }
 0x322   : > { %9965 = vmatprep.subr.bf16.mxu1 %v16245_v43  ;;  %v1384_v41 = vld [vmem:[%s19283_s29 + $0x1b58] sm:$0xff] }
 0x323   : > { %9939 = vmatpush2.bf16.msra.mxu0 %v16116_v46  ;;  %v1248_v43 = vld [vmem:[%s19283_s29 + $0x1718] sm:$0xff]  ;;  %v20136_v46 = vpop.f32.mrf.mxu0  ;;  %v16548_v8 = vcombine.low %v1376_v39, %v1384_v41 }
 0x324   : > { %9940 = vmatprep.subr.bf16.mxu0 %v16101_v51  ;;  %v1256_v44 = vld [vmem:[%s19283_s29 + $0x1758] sm:$0xff]  ;;  %v16549_v51 = vcombine.high %v1376_v39, %v1384_v41 }
 0x325   : > { %9966 = vmatpush1.bf16.msra.mxu1 %v16244_v47  ;;  %v16436_v47 = vcombine.low %v1264_v25, %v1272_v27  ;;  %v16421_v60 = vcombine.high %v1248_v43, %v1256_v44  ;;  %v1360_v61 = vld [vmem:[%s19283_s29 + $0x1a98] sm:$0xff] }
 0x326   : > { %9967 = vmatprep.subr.bf16.mxu1 %v16229_v52  ;;  %v20138_v52 = vpop.f32.mrf.mxu1  ;;  %v1368_v62 = vld [vmem:[%s19283_s29 + $0x1ad8] sm:$0xff] }
 0x327   : > { %9941 = vmatpush2.bf16.msra.mxu0 %v16100_v1  ;;  %v18644_v1 = vld [vmem:[%s22070_s0 + $0x8] ss:$44 sps:$4 sm:$0xff]   ;;  %v1344_v23 = vld [vmem:[%s19283_s29 + $0x1a18] sm:$0xff] }
 0x328   : > { %9942 = vmatprep.subr.bf16.mxu0 %v16085_v22  ;;  %v1240_v22 = vld [vmem:[%s19283_s29 + $0x16d8] sm:$0xff] }
 0x329   : > { %9968 = vmatpush1.bf16.msra.mxu1 %v16228_v2  ;;  %v1232_v2 = vld [vmem:[%s19283_s29 + $0x1698] sm:$0xff] }
 0x32a   : > { %9969 = vmatprep.subr.bf16.mxu1 %v16213_v3  ;;  %v18645_v13 = vld [vmem:[%s22070_s0 + $0x1c] ss:$44 sps:$4 sm:$0xff]   ;;  %v16405_v10 = vcombine.high %v1232_v2, %v1240_v22  ;;  %v16404_v41 = vcombine.low %v1232_v2, %v1240_v22 }
 0x32b   : > { %9943 = vmatpush2.bf16.msra.mxu0 %v16084_v19  ;;  %v16420_v19 = vcombine.low %v1248_v43, %v1256_v44  ;;  %v1352_v25 = vld [vmem:[%s19283_s29 + $0x1a58] sm:$0xff] }
 0x32c   : > { %9944 = vmatprep.subr.bf16.mxu0 %v16069_v21  ;;  %v16517_v43 = vcombine.high %v1344_v23, %v1352_v25  ;;  %v1320_v2 = vld [vmem:[%s19283_s29 + $0x1958] sm:$0xff] }
 0x32d   : > { %9970 = vmatpush1.bf16.msra.mxu1 %v16212_v20  ;;  %v16533_v20 = vcombine.high %v1360_v61, %v1368_v62  ;;  %v1184_v22 = vld [vmem:[%s19283_s29 + $0x1518] sm:$0xff] }
 0x32e   : > { %9971 = vmatprep.subr.bf16.mxu1 %v16197_v32 }
 0x32f   : > { %9945 = vmatpush2.bf16.msra.mxu0 %v16068_v28  ;;  %v1216_v28 = vld [vmem:[%s19283_s29 + $0x1618] sm:$0xff] }
 0x330   : > { %10000 = vmatprep.subr.bf16.mxu0 %v16565_v33 }
 0x331   : > { %9972 = vmatpush1.bf16.msra.mxu1 %v16196_v31  ;;  %v1224_v31 = vld [vmem:[%s19283_s29 + $0x1658] sm:$0xff] }
 0x332   : > { %9973 = vmatprep.subr.bf16.mxu1 %v16437_v37  ;;  %v9647_v6 = vpop.f32.mrf.mxu0  ;;  %9947 = vmatmul.mubr.bf16.vlgmr.msra.gmra.mxu0 %v18644_v1  ;;  %v16532_v37 = vcombine.low %v1360_v61, %v1368_v62  ;;  %v16389_v45 = vcombine.high %v1216_v28, %v1224_v31  ;;  %v16388_v61 = vcombine.low %v1216_v28, %v1224_v31  ;;  %v1312_v1 = vld [vmem:[%s19283_s29 + $0x1918] sm:$0xff] }
 0x333   : > { %v9648_v3 = vadd.f32 %v9647_v6, %v1940_v29  ;;  %10001 = vmatpush1.bf16.msra.mxu0 %v16564_v48  ;;  %10032 = vmatprep.mubr.bf16.mxu0 %v18645_v13  ;;  %v1328_v48 = vld [vmem:[%s19283_s29 + $0x1998] sm:$0xff]  ;;  %v16485_v13 = vcombine.high %v1312_v1, %v1320_v2 }
 0x334   : > { %v9690_v4 = vpop.f32.mrf.mxu1  ;;  %v20150_v18 = vpop.f32.mrf.mxu0  ;;  %10002 = vmatprep.subr.bf16.mxu0 %v16549_v51  ;;  %v1200_v51 = vld [vmem:[%s19283_s29 + $0x1598] sm:$0xff] }
 0x335   : > { %9974 = vmatpush2.bf16.msra.mxu1 %v16436_v47  ;;  %v20152_v21 = vadd.f32 %v9690_v4, %v9648_v3  ;;  %v1336_v47 = vld [vmem:[%s19283_s29 + $0x19d8] sm:$0xff] }
 0x336   : > { %v20154_v32 = vpop.f32.mrf.mxu1  ;;  %9975 = vmatprep.subr.bf16.mxu1 %v16421_v60  ;;  %v9651_v27 = vpop.f32.mrf.mxu0  ;;  %v1208_v60 = vld [vmem:[%s19283_s29 + $0x15d8] sm:$0xff]  ;;  %v16501_v62 = vcombine.high %v1328_v48, %v1336_v47  ;;  %v16500_v4 = vcombine.low %v1328_v48, %v1336_v47 }
 0x337   : > { %v9652_v33 = vadd.f32 %v9651_v27, %v1940_v29  ;;  %10003 = vmatpush1.bf16.msra.mxu0 %v16548_v8  ;;  %v16516_v29 = vcombine.low %v1344_v23, %v1352_v25  ;;  %v16373_v6 = vcombine.high %v1200_v51, %v1208_v60  ;;  %v1192_v3 = vld [vmem:[%s19283_s29 + $0x1558] sm:$0xff]  ;;  %v16372_v8 = vcombine.low %v1200_v51, %v1208_v60 }
 0x338   : > { %v9694_v39 = vpop.f32.mrf.mxu1  ;;  %10004 = vmatprep.subr.bf16.mxu0 %v16533_v20  ;;  %v1296_v20 = vld [vmem:[%s19283_s29 + $0x1898] sm:$0xff]  ;;  %v16484_v27 = vcombine.low %v1312_v1, %v1320_v2  ;;  %v16356_v28 = vcombine.low %v1184_v22, %v1192_v3 }
 0x339   : > { %9976 = vmatpush2.bf16.msra.mxu1 %v16420_v19  ;;  %v20160_v44 = vadd.f32 %v9694_v39, %v9652_v33  ;;  %v16357_v19 = vcombine.high %v1184_v22, %v1192_v3  ;;  %v1168_v23 = vld [vmem:[%s19283_s29 + $0x1498] sm:$0xff] }
 0x33a   : > { %9977 = vmatprep.subr.bf16.mxu1 %v16405_v10  ;;  %v1304_v10 = vld [vmem:[%s19283_s29 + $0x18d8] sm:$0xff] }
 0x33b   : > { %10005 = vmatpush1.bf16.msra.mxu0 %v16532_v37  ;;  %v1176_v25 = vld [vmem:[%s19283_s29 + $0x14d8] sm:$0xff]  ;;  %v16469_v31 = vcombine.high %v1296_v20, %v1304_v10 }
 0x33c   : > { %10006 = vmatprep.subr.bf16.mxu0 %v16517_v43  ;;  %v16341_v33 = vcombine.high %v1168_v23, %v1176_v25  ;;  %v1280_v37 = vld [vmem:[%s19283_s29 + $0x1818] sm:$0xff]  ;;  %v16340_v48 = vcombine.low %v1168_v23, %v1176_v25 }
 0x33d   : > { %9978 = vmatpush2.bf16.msra.mxu1 %v16404_v41  ;;  %v1288_v39 = vld [vmem:[%s19283_s29 + $0x1858] sm:$0xff] }
 0x33e   : > { %9979 = vmatprep.subr.bf16.mxu1 %v16389_v45  ;;  %v1152_v41 = vld [vmem:[%s19283_s29 + $0x1418] sm:$0xff]  ;;  %v16468_v45 = vcombine.low %v1296_v20, %v1304_v10  ;;  %v16453_v47 = vcombine.high %v1280_v37, %v1288_v39 }
 0x33f   : > { %10007 = vmatpush1.bf16.msra.mxu0 %v16516_v29  ;;  %v1160_v43 = vld [vmem:[%s19283_s29 + $0x1458] sm:$0xff] }
 0x340   : > { %10008 = vmatprep.subr.bf16.mxu0 %v16501_v62  ;;  %v16325_v51 = vcombine.high %v1152_v41, %v1160_v43  ;;  %v1520_v60 = vld [vmem:[%s19283_s29 + $0x1f98] sm:$0xff]  ;;  %v16324_v1 = vcombine.low %v1152_v41, %v1160_v43 }
 0x341   : > { %9980 = vmatpush2.bf16.msra.mxu1 %v16388_v61  ;;  %v1528_v29 = vld [vmem:[%s19283_s29 + $0x1fd8] sm:$0xff] }
 0x342   : > { %9981 = vmatprep.subr.bf16.mxu1 %v16373_v6  ;;  %v1648_v61 = vld [vmem:[%s19283_s29 + $0x2398] sm:$0xff]  ;;  %v16452_v6 = vcombine.low %v1280_v37, %v1288_v39  ;;  %v16693_v2 = vcombine.high %v1520_v60, %v1528_v29 }
 0x343   : > { %10009 = vmatpush1.bf16.msra.mxu0 %v16500_v4  ;;  %v1656_v62 = vld [vmem:[%s19283_s29 + $0x23d8] sm:$0xff] }
 0x344   : > { %10010 = vmatprep.subr.bf16.mxu0 %v16485_v13  ;;  %v16821_v22 = vcombine.high %v1648_v61, %v1656_v62  ;;  %v1504_v3 = vld [vmem:[%s19283_s29 + $0x1f18] sm:$0xff]  ;;  %v16820_v20 = vcombine.low %v1648_v61, %v1656_v62 }
 0x345   : > { %9982 = vmatpush2.bf16.msra.mxu1 %v16372_v8  ;;  %v1512_v4 = vld [vmem:[%s19283_s29 + $0x1f58] sm:$0xff] }
 0x346   : > { %9983 = vmatprep.subr.bf16.mxu1 %v16357_v19  ;;  %v1632_v8 = vld [vmem:[%s19283_s29 + $0x2318] sm:$0xff]  ;;  %v16692_v19 = vcombine.low %v1520_v60, %v1528_v29  ;;  %v16677_v10 = vcombine.high %v1504_v3, %v1512_v4  ;;  %v16676_v37 = vcombine.low %v1504_v3, %v1512_v4 }
 0x347   : > { %10011 = vmatpush1.bf16.msra.mxu0 %v16484_v27  ;;  %v1640_v13 = vld [vmem:[%s19283_s29 + $0x2358] sm:$0xff] }
 0x348   : > { %10012 = vmatprep.subr.bf16.mxu0 %v16469_v31  ;;  %v16805_v23 = vcombine.high %v1632_v8, %v1640_v13  ;;  %v1488_v25 = vld [vmem:[%s19283_s29 + $0x1e98] sm:$0xff]  ;;  %v16804_v39 = vcombine.low %v1632_v8, %v1640_v13 }
 0x349   : > { %9984 = vmatpush2.bf16.msra.mxu1 %v16356_v28  ;;  %v1496_v27 = vld [vmem:[%s19283_s29 + $0x1ed8] sm:$0xff] }
 0x34a   : > { %9985 = vmatprep.subr.bf16.mxu1 %v16341_v33  ;;  %v1616_v28 = vld [vmem:[%s19283_s29 + $0x2298] sm:$0xff]  ;;  %v16661_v41 = vcombine.high %v1488_v25, %v1496_v27  ;;  %v16660_v29 = vcombine.low %v1488_v25, %v1496_v27 }
 0x34b   : > { %10013 = vmatpush1.bf16.msra.mxu0 %v16468_v45  ;;  %v1624_v31 = vld [vmem:[%s19283_s29 + $0x22d8] sm:$0xff] }
 0x34c   : > { %10014 = vmatprep.subr.bf16.mxu0 %v16453_v47  ;;  %v18646_v33 = vld [vmem:[%s22070_s0 + $0x10] ss:$44 sps:$4 sm:$0xff]   ;;  %v16789_v43 = vcombine.high %v1616_v28, %v1624_v31  ;;  %v16788_v61 = vcombine.low %v1616_v28, %v1624_v31 }
 0x34d   : > { %9986 = vmatpush2.bf16.msra.mxu1 %v16340_v48  ;;  %v1472_v45 = vld [vmem:[%s19283_s29 + $0x1e18] sm:$0xff]  ;;  %v18647_v47 = vld [vmem:[%s22070_s0 + $0x24] ss:$44 sps:$4 sm:$0xff]  }
 0x34e   : > { %9987 = vmatprep.subr.bf16.mxu1 %v16325_v51  ;;  %v1480_v48 = vld [vmem:[%s19283_s29 + $0x1e58] sm:$0xff] }
 0x34f   : > { %10015 = vmatpush1.bf16.msra.mxu0 %v16452_v6  ;;  %v1600_v51 = vld [vmem:[%s19283_s29 + $0x2218] sm:$0xff]  ;;  %v16645_v62 = vcombine.high %v1472_v45, %v1480_v48  ;;  %v16644_v4 = vcombine.low %v1472_v45, %v1480_v48 }
 0x350   : > { %10016 = vmatprep.subr.bf16.mxu0 %v16693_v2  ;;  %v1608_v60 = vld [vmem:[%s19283_s29 + $0x2258] sm:$0xff] }
 0x351   : > { %9988 = vmatpush2.bf16.msra.mxu1 %v16324_v1  ;;  %v16773_v6 = vcombine.high %v1600_v51, %v1608_v60  ;;  %v1456_v1 = vld [vmem:[%s19283_s29 + $0x1d98] sm:$0xff]  ;;  %v16772_v8 = vcombine.low %v1600_v51, %v1608_v60 }
 0x352   : > { %10043 = vmatprep.subr.bf16.mxu1 %v16821_v22  ;;  %v1464_v2 = vld [vmem:[%s19283_s29 + $0x1dd8] sm:$0xff] }
 0x353   : > { %10017 = vmatpush2.bf16.msra.mxu0 %v16692_v19  ;;  %v1584_v22 = vld [vmem:[%s19283_s29 + $0x2198] sm:$0xff]  ;;  %v16629_v13 = vcombine.high %v1456_v1, %v1464_v2  ;;  %v16628_v27 = vcombine.low %v1456_v1, %v1464_v2 }
 0x354   : > { %9990 = vmatmul.mubr.bf16.vlgmr.msra.gmra.mxu1 %v18646_v33  ;;  %10018 = vmatprep.subr.bf16.mxu0 %v16677_v10  ;;  %v1592_v3 = vld [vmem:[%s19283_s29 + $0x21d8] sm:$0xff] }
 0x355   : > { %10044 = vmatpush1.bf16.msra.mxu1 %v16820_v20  ;;  %10075 = vmatprep.mubr.bf16.mxu1 %v18647_v47  ;;  %v16757_v19 = vcombine.high %v1584_v22, %v1592_v3  ;;  %v1440_v20 = vld [vmem:[%s19283_s29 + $0x1d18] sm:$0xff]  ;;  %v16756_v28 = vcombine.low %v1584_v22, %v1592_v3 }
 0x356   : > { %10045 = vmatprep.subr.bf16.mxu1 %v16805_v23  ;;  %v1448_v10 = vld [vmem:[%s19283_s29 + $0x1d58] sm:$0xff] }
 0x357   : > { %10019 = vmatpush2.bf16.msra.mxu0 %v16676_v37  ;;  %v1568_v23 = vld [vmem:[%s19283_s29 + $0x2118] sm:$0xff]  ;;  %v16613_v31 = vcombine.high %v1440_v20, %v1448_v10  ;;  %v16612_v45 = vcombine.low %v1440_v20, %v1448_v10 }
 0x358   : > { %10020 = vmatprep.subr.bf16.mxu0 %v16661_v41  ;;  %v1576_v25 = vld [vmem:[%s19283_s29 + $0x2158] sm:$0xff] }
 0x359   : > { %10046 = vmatpush1.bf16.msra.mxu1 %v16804_v39  ;;  %v16741_v33 = vcombine.high %v1568_v23, %v1576_v25  ;;  %v1424_v37 = vld [vmem:[%s19283_s29 + $0x1c98] sm:$0xff]  ;;  %v16740_v48 = vcombine.low %v1568_v23, %v1576_v25 }
 0x35a   : > { %10047 = vmatprep.subr.bf16.mxu1 %v16789_v43  ;;  %v1432_v39 = vld [vmem:[%s19283_s29 + $0x1cd8] sm:$0xff] }
 0x35b   : > { %10021 = vmatpush2.bf16.msra.mxu0 %v16660_v29  ;;  %v1552_v41 = vld [vmem:[%s19283_s29 + $0x2098] sm:$0xff]  ;;  %v16597_v47 = vcombine.high %v1424_v37, %v1432_v39 }
 0x35c   : > { %10022 = vmatprep.subr.bf16.mxu0 %v16645_v62  ;;  %v1560_v43 = vld [vmem:[%s19283_s29 + $0x20d8] sm:$0xff] }
 0x35d   : > { %10048 = vmatpush1.bf16.msra.mxu1 %v16788_v61  ;;  %v16725_v51 = vcombine.high %v1552_v41, %v1560_v43  ;;  %v1408_v60 = vld [vmem:[%s19283_s29 + $0x1c18] sm:$0xff]  ;;  %v16724_v1 = vcombine.low %v1552_v41, %v1560_v43  ;;  %v20226_v43 = vpop.f32.mrf.mxu1 }
 0x35e   : > { %10049 = vmatprep.subr.bf16.mxu1 %v16773_v6  ;;  %v1416_v29 = vld [vmem:[%s19283_s29 + $0x1c58] sm:$0xff]  ;;  %v16596_v6 = vcombine.low %v1424_v37, %v1432_v39  ;;  %v20224_v37 = vpop.f32.mrf.mxu0 }
 0x35f   : > { %10023 = vmatpush2.bf16.msra.mxu0 %v16644_v4  ;;  %v1536_v61 = vld [vmem:[%s19283_s29 + $0x2018] sm:$0xff]  ;;  %v16581_v2 = vcombine.high %v1408_v60, %v1416_v29 }
 0x360   : > { %10024 = vmatprep.subr.bf16.mxu0 %v16629_v13  ;;  %v1544_v62 = vld [vmem:[%s19283_s29 + $0x2058] sm:$0xff] }
 0x361   : > { %10050 = vmatpush1.bf16.msra.mxu1 %v16772_v8  ;;  %v16709_v22 = vcombine.high %v1536_v61, %v1544_v62  ;;  %v1904_v3 = vld [vmem:[%s19283_s29 + $0x2b98] sm:$0xff]  ;;  %v16708_v20 = vcombine.low %v1536_v61, %v1544_v62 }
 0x362   : > { %10051 = vmatprep.subr.bf16.mxu1 %v16757_v19  ;;  %v1912_v4 = vld [vmem:[%s19283_s29 + $0x2bd8] sm:$0xff]  ;;  %v16580_v19 = vcombine.low %v1408_v60, %v1416_v29 }
 0x363   : > { %10025 = vmatpush2.bf16.msra.mxu0 %v16628_v27  ;;  %v1776_v8 = vld [vmem:[%s19283_s29 + $0x2798] sm:$0xff]  ;;  %v17077_v10 = vcombine.high %v1904_v3, %v1912_v4 }
 0x364   : > { %10026 = vmatprep.subr.bf16.mxu0 %v16613_v31  ;;  %v1784_v13 = vld [vmem:[%s19283_s29 + $0x27d8] sm:$0xff] }
 0x365   : > { %10052 = vmatpush1.bf16.msra.mxu1 %v16756_v28  ;;  %v16949_v23 = vcombine.high %v1776_v8, %v1784_v13  ;;  %v1888_v25 = vld [vmem:[%s19283_s29 + $0x2b18] sm:$0xff]  ;;  %v16948_v39 = vcombine.low %v1776_v8, %v1784_v13 }
 0x366   : > { %10053 = vmatprep.subr.bf16.mxu1 %v16741_v33  ;;  %v1896_v27 = vld [vmem:[%s19283_s29 + $0x2b58] sm:$0xff]  ;;  %v17076_v33 = vcombine.low %v1904_v3, %v1912_v4 }
 0x367   : > { %10027 = vmatpush2.bf16.msra.mxu0 %v16612_v45  ;;  %v1760_v28 = vld [vmem:[%s19283_s29 + $0x2718] sm:$0xff]  ;;  %v17061_v41 = vcombine.high %v1888_v25, %v1896_v27 }
 0x368   : > { %10028 = vmatprep.subr.bf16.mxu0 %v16597_v47  ;;  %v1768_v31 = vld [vmem:[%s19283_s29 + $0x2758] sm:$0xff] }
 0x369   : > { %10054 = vmatpush1.bf16.msra.mxu1 %v16740_v48  ;;  %v16933_v45 = vcombine.high %v1760_v28, %v1768_v31  ;;  %v1872_v48 = vld [vmem:[%s19283_s29 + $0x2a98] sm:$0xff] }
 0x36a   : > { %10055 = vmatprep.subr.bf16.mxu1 %v16725_v51  ;;  %v1880_v47 = vld [vmem:[%s19283_s29 + $0x2ad8] sm:$0xff] }
 0x36b   : > { %10029 = vmatpush2.bf16.msra.mxu0 %v16596_v6  ;;  %v18648_v60 = vld [vmem:[%s22070_s0 + $0x18] ss:$44 sps:$4 sm:$0xff]   ;;  %v17045_v3 = vcombine.high %v1872_v48, %v1880_v47 }
 0x36c   : > { %10030 = vmatprep.subr.bf16.mxu0 %v16581_v2  ;;  %v1744_v29 = vld [vmem:[%s19283_s29 + $0x2698] sm:$0xff] }
 0x36d   : > { %10056 = vmatpush1.bf16.msra.mxu1 %v16724_v1  ;;  %v1752_v61 = vld [vmem:[%s19283_s29 + $0x26d8] sm:$0xff]  ;;  %v17060_v1 = vcombine.low %v1888_v25, %v1896_v27  ;;  %v17044_v27 = vcombine.low %v1872_v48, %v1880_v47 }
 0x36e   : > { %10057 = vmatprep.subr.bf16.mxu1 %v16709_v22  ;;  %v16932_v22 = vcombine.low %v1760_v28, %v1768_v31  ;;  %v16917_v13 = vcombine.high %v1744_v29, %v1752_v61  ;;  %v16916_v31 = vcombine.low %v1744_v29, %v1752_v61  ;;  %v1824_v61 = vld [vmem:[%s19283_s29 + $0x2918] sm:$0xff] }
 0x36f   : > { %10031 = vmatpush2.bf16.msra.mxu0 %v16580_v19  ;;  %v1864_v19 = vld [vmem:[%s19283_s29 + $0x2a58] sm:$0xff] }
 0x370   : > { %10086 = vmatprep.subr.bf16.mxu0 %v17077_v10  ;;  %v1728_v10 = vld [vmem:[%s19283_s29 + $0x2618] sm:$0xff] }
 0x371   : > { %10058 = vmatpush1.bf16.msra.mxu1 %v16708_v20 }
 0x372   : > { %10059 = vmatprep.subr.bf16.mxu1 %v16949_v23  ;;  %v9733_v51 = vpop.f32.mrf.mxu0  ;;  %10033 = vmatmul.mubr.bf16.vlgmr.msra.gmra.mxu0 %v18648_v60  ;;  %v1736_v23 = vld [vmem:[%s19283_s29 + $0x2658] sm:$0xff] }
 0x373   : > { %v9734_v62 = vadd.f32 %v9733_v51, %v20152_v21  ;;  %10087 = vmatpush1.bf16.msra.mxu0 %v17076_v33  ;;  %10118 = vmatprep.mubr.bf16.mxu0 %v22091_v36  ;;  %v1856_v21 = vld [vmem:[%s19283_s29 + $0x2a18] sm:$0xff]  ;;  %v16900_v48 = vcombine.low %v1728_v10, %v1736_v23 }
 0x374   : > { %v9776_v6 = vpop.f32.mrf.mxu1  ;;  %v20237_v2 = vpop.f32.mrf.mxu0  ;;  %10088 = vmatprep.subr.bf16.mxu0 %v17061_v41  ;;  %v17029_v33 = vcombine.high %v1856_v21, %v1864_v19  ;;  %v16901_v41 = vcombine.high %v1728_v10, %v1736_v23  ;;  %v1848_v51 = vld [vmem:[%s19283_s29 + $0x29d8] sm:$0xff] }
 0x375   : > { %10060 = vmatpush2.bf16.msra.mxu1 %v16948_v39  ;;  %v20239_v4 = vadd.f32 %v9776_v6, %v9734_v62  ;;  %v1712_v60 = vld [vmem:[%s19283_s29 + $0x2598] sm:$0xff] }
 0x376   : > { %v20241_v8 = vpop.f32.mrf.mxu1  ;;  %10061 = vmatprep.subr.bf16.mxu1 %v16933_v45  ;;  %v9737_v20 = vpop.f32.mrf.mxu0  ;;  %v1840_v45 = vld [vmem:[%s19283_s29 + $0x2998] sm:$0xff] }
 0x377   : > { %22132 = vst [vmem:[#allocation28_spill] sm:$0xff] %v20241_v8  ;;  %v9738_v25 = vadd.f32 %v9737_v20, %v20160_v44  ;;  %10089 = vmatpush1.bf16.msra.mxu0 %v17060_v1  ;;  %v1720_v62 = vld [vmem:[%s19283_s29 + $0x25d8] sm:$0xff]  ;;  %v17028_v44 = vcombine.low %v1856_v21, %v1864_v19  ;;  %v17013_v47 = vcombine.high %v1840_v45, %v1848_v51 }
 0x378   : > { %v9780_v28 = vpop.f32.mrf.mxu1  ;;  %10090 = vmatprep.subr.bf16.mxu0 %v17045_v3  ;;  %v16885_v29 = vcombine.high %v1712_v60, %v1720_v62  ;;  %v1832_v6 = vld [vmem:[%s19283_s29 + $0x2958] sm:$0xff]  ;;  %v17012_v3 = vcombine.low %v1840_v45, %v1848_v51 }
 0x379   : > { %10062 = vmatpush2.bf16.msra.mxu1 %v16932_v22  ;;  %v20248_v39 = vadd.f32 %v9780_v28, %v9738_v25  ;;  %v1696_v1 = vld [vmem:[%s19283_s29 + $0x2518] sm:$0xff]  ;;  %v16997_v21 = vcombine.high %v1824_v61, %v1832_v6 }
 0x37a   : > { %10063 = vmatprep.subr.bf16.mxu1 %v16917_v13  ;;  %v1704_v22 = vld [vmem:[%s19283_s29 + $0x2558] sm:$0xff]  ;;  %v16884_v13 = vcombine.low %v1712_v60, %v1720_v62 }
 0x37b   : > { %10091 = vmatpush1.bf16.msra.mxu0 %v17044_v27  ;;  %v16869_v19 = vcombine.high %v1696_v1, %v1704_v22  ;;  %v1808_v20 = vld [vmem:[%s19283_s29 + $0x2898] sm:$0xff]  ;;  %v16996_v27 = vcombine.low %v1824_v61, %v1832_v6  ;;  %v16868_v28 = vcombine.low %v1696_v1, %v1704_v22  ;;  %v633_v61 = vld [vmem:[%s19283_s29 + $0x3e0] sm:$0xff] }
 0x37c   : > { %10092 = vmatprep.subr.bf16.mxu0 %v17029_v33  ;;  %v1816_v10 = vld [vmem:[%s19283_s29 + $0x28d8] sm:$0xff]  ;;  %v881_v6 = vld [vmem:[%s19283_s29 + $0xba0] sm:$0xff] }
 0x37d   : > { %10064 = vmatpush2.bf16.msra.mxu1 %v16916_v31  ;;  %v1680_v23 = vld [vmem:[%s19283_s29 + $0x2498] sm:$0xff]  ;;  %v16981_v31 = vcombine.high %v1808_v20, %v1816_v10  ;;  %v16980_v62 = vcombine.low %v1808_v20, %v1816_v10  ;;  %v889_v1 = vld [vmem:[%s19283_s29 + $0xbe0] sm:$0xff] }
 0x37e   : > { %10065 = vmatprep.subr.bf16.mxu1 %v16901_v41  ;;  %v1688_v25 = vld [vmem:[%s19283_s29 + $0x24d8] sm:$0xff]  ;;  %v617_v20 = vld [vmem:[%s19283_s29 + $0x360] sm:$0xff] }
 0x37f   : > { %10093 = vmatpush1.bf16.msra.mxu0 %v17028_v44  ;;  %v16853_v33 = vcombine.high %v1680_v23, %v1688_v25  ;;  %v1792_v41 = vld [vmem:[%s19283_s29 + $0x2818] sm:$0xff]  ;;  %v16852_v44 = vcombine.low %v1680_v23, %v1688_v25  ;;  %v865_v10 = vld [vmem:[%s19283_s29 + $0xb20] sm:$0xff] }
 0x380   : > { %10094 = vmatprep.subr.bf16.mxu0 %v17013_v47  ;;  %v1800_v45 = vld [vmem:[%s19283_s29 + $0x2858] sm:$0xff]  ;;  %v873_v23 = vld [vmem:[%s19283_s29 + $0xb60] sm:$0xff] }
 0x381   : > { %10066 = vmatpush2.bf16.msra.mxu1 %v16900_v48  ;;  %v1664_v51 = vld [vmem:[%s19283_s29 + $0x2418] sm:$0xff]  ;;  %v16965_v48 = vcombine.high %v1792_v41, %v1800_v45  ;;  %v16964_v22 = vcombine.low %v1792_v41, %v1800_v45  ;;  %v601_v41 = vld [vmem:[%s19283_s29 + $0x2e0] sm:$0xff]  ;;  %v18649_v45 = vld [vmem:[%s22070_s0 + $0x28] ss:$44 sps:$4 sm:$0xff]  }
 0x382   : > { %10067 = vmatprep.subr.bf16.mxu1 %v16885_v29  ;;  %v1672_v60 = vld [vmem:[%s19283_s29 + $0x2458] sm:$0xff]  ;;  %v625_v29 = vld [vmem:[%s19283_s29 + $0x3a0] sm:$0xff] }
 0x383   : > { %10095 = vmatpush1.bf16.msra.mxu0 %v17012_v3  ;;  %v16837_v47 = vcombine.high %v1664_v51, %v1672_v60  ;;  %v16836_v3 = vcombine.low %v1664_v51, %v1672_v60  ;;  %v15798_v25 = vcombine.low %v625_v29, %v633_v61  ;;  %v849_v51 = vld [vmem:[%s19283_s29 + $0xaa0] sm:$0xff] }
 0x384   : > { %10096 = vmatprep.subr.bf16.mxu0 %v16997_v21  ;;  %v16055_v21 = vcombine.high %v881_v6, %v889_v1  ;;  %v857_v60 = vld [vmem:[%s19283_s29 + $0xae0] sm:$0xff] }
 0x385   : > { %10068 = vmatpush2.bf16.msra.mxu1 %v16884_v13  ;;  %v15799_v13 = vcombine.high %v625_v29, %v633_v61  ;;  %v16023_v29 = vcombine.high %v849_v51, %v857_v60  ;;  %v577_v61 = vld [vmem:[%s19283_s29 + $0x220] sm:$0xff] }
 0x386   : > { %10069 = vmatprep.subr.bf16.mxu1 %v16869_v19  ;;  %v609_v19 = vld [vmem:[%s19283_s29 + $0x320] sm:$0xff] }
 0x387   : > { %10097 = vmatpush1.bf16.msra.mxu0 %v16996_v27  ;;  %v16054_v27 = vcombine.low %v881_v6, %v889_v1  ;;  %v585_v6 = vld [vmem:[%s19283_s29 + $0x260] sm:$0xff] }
 0x388   : > { %10098 = vmatprep.subr.bf16.mxu0 %v16981_v31  ;;  %v16039_v31 = vcombine.high %v865_v10, %v873_v23  ;;  %v18651_v1 = vld [vmem:[%s22070_s0 + $0x4] ss:$44 sps:$4 sm:$0xff]  }
 0x389   : > { %10070 = vmatpush2.bf16.msra.mxu1 %v16868_v28  ;;  %v15783_v28 = vcombine.high %v609_v19, %v617_v20 }
 0x38a   : > { %10071 = vmatprep.subr.bf16.mxu1 %v16853_v33  ;;  %v593_v33 = vld [vmem:[%s19283_s29 + $0x2a0] sm:$0xff] }
 0x38b   : > { %10099 = vmatpush1.bf16.msra.mxu0 %v16980_v62  ;;  %v18650_v62 = vld [vmem:[%s22070_s0 + $0x20] ss:$44 sps:$4 sm:$0xff]  }
 0x38c   : > { %10100 = vmatprep.subr.bf16.mxu0 %v16965_v48  ;;  %v16038_v48 = vcombine.low %v865_v10, %v873_v23  ;;  %v561_v23 = vld [vmem:[%s19283_s29 + $0x1a0] sm:$0xff] }
 0x38d   : > { %10072 = vmatpush2.bf16.msra.mxu1 %v16852_v44  ;;  %v15782_v44 = vcombine.low %v609_v19, %v617_v20  ;;  %v16022_v19 = vcombine.low %v849_v51, %v857_v60  ;;  %v15751_v20 = vcombine.high %v577_v61, %v585_v6  ;;  %v545_v51 = vld [vmem:[%s19283_s29 + $0x120] sm:$0xff] }
 0x38e   : > { %10073 = vmatprep.subr.bf16.mxu1 %v16837_v47  ;;  %v15767_v47 = vcombine.high %v593_v33, %v601_v41  ;;  %v553_v60 = vld [vmem:[%s19283_s29 + $0x160] sm:$0xff] }
 0x38f   : > { %10101 = vmatpush1.bf16.msra.mxu0 %v16964_v22  ;;  %v833_v22 = vld [vmem:[%s19283_s29 + $0xa20] sm:$0xff] }
 0x390   : > { %10129 = vmatprep.subr.bf16.mxu0 %v15799_v13  ;;  %v18652_v13 = vld [vmem:[%s22070_s0 + $0xc] ss:$44 sps:$4 sm:$0xff]  }
 0x391   : > { %10074 = vmatpush2.bf16.msra.mxu1 %v16836_v3  ;;  %v841_v3 = vld [vmem:[%s19283_s29 + $0xa60] sm:$0xff] }
 0x392   : > { %10172 = vmatprep.subr.bf16.mxu1 %v16055_v21  ;;  %10119 = vmatmul.mubr.bf16.vlgmr.msra.gmra.mxu0 %v18649_v45  ;;  %v15766_v21 = vcombine.low %v593_v33, %v601_v41  ;;  %v16007_v10 = vcombine.high %v833_v22, %v841_v3  ;;  %v16006_v45 = vcombine.low %v833_v22, %v841_v3  ;;  %v785_v22 = vld [vmem:[%s19283_s29 + $0x8a0] sm:$0xff] }
 0x393   : > { %10130 = vmatpush1.bf16.msra.mxu0 %v15798_v25  ;;  %10161 = vmatprep.mubr.bf16.mxu0 %v18651_v1  ;;  %v569_v25 = vld [vmem:[%s19283_s29 + $0x1e0] sm:$0xff] }
 0x394   : > { %10076 = vmatmul.mubr.bf16.vlgmr.msra.gmra.mxu1 %v18650_v62  ;;  %10131 = vmatprep.subr.bf16.mxu0 %v15783_v28  ;;  %v825_v28 = vld [vmem:[%s19283_s29 + $0x9e0] sm:$0xff]  ;;  %v15735_v33 = vcombine.high %v561_v23, %v569_v25 }
 0x395   : > { %10173 = vmatpush1.bf16.msra.mxu1 %v16054_v27  ;;  %10204 = vmatprep.mubr.bf16.mxu1 %v18652_v13  ;;  %v817_v27 = vld [vmem:[%s19283_s29 + $0x9a0] sm:$0xff]  ;;  %v15718_v13 = vcombine.low %v545_v51, %v553_v60 }
 0x396   : > { %10174 = vmatprep.subr.bf16.mxu1 %v16039_v31  ;;  %v15750_v31 = vcombine.low %v577_v61, %v585_v6  ;;  %v15991_v41 = vcombine.high %v817_v27, %v825_v28  ;;  %v801_v62 = vld [vmem:[%s19283_s29 + $0x920] sm:$0xff] }
 0x397   : > { %10132 = vmatpush1.bf16.msra.mxu0 %v15782_v44  ;;  %v809_v44 = vld [vmem:[%s19283_s29 + $0x960] sm:$0xff] }
 0x398   : > { %10133 = vmatprep.subr.bf16.mxu0 %v15767_v47  ;;  %v15990_v47 = vcombine.low %v817_v27, %v825_v28  ;;  %v15975_v61 = vcombine.high %v801_v62, %v809_v44  ;;  %v529_v6 = vld [vmem:[%s19283_s29 + $0xa0] sm:$0xff] }
 0x399   : > { %10175 = vmatpush1.bf16.msra.mxu1 %v16038_v48  ;;  %v15734_v48 = vcombine.low %v561_v23, %v569_v25  ;;  %v537_v1 = vld [vmem:[%s19283_s29 + $0xe0] sm:$0xff] }
 0x39a   : > { %10176 = vmatprep.subr.bf16.mxu1 %v16023_v29  ;;  %v15719_v29 = vcombine.high %v545_v51, %v553_v60  ;;  %v793_v3 = vld [vmem:[%s19283_s29 + $0x8e0] sm:$0xff]  ;;  %v15702_v28 = vcombine.low %v529_v6, %v537_v1 }
 0x39b   : > { %10134 = vmatpush1.bf16.msra.mxu0 %v15766_v21  ;;  %v15974_v21 = vcombine.low %v801_v62, %v809_v44  ;;  %v521_v23 = vld [vmem:[%s19283_s29 + $0x60] sm:$0xff] }
 0x39c   : > { %10135 = vmatprep.subr.bf16.mxu0 %v15751_v20  ;;  %v15959_v20 = vcombine.high %v785_v22, %v793_v3  ;;  %v769_v25 = vld [vmem:[%s19283_s29 + $0x820] sm:$0xff] }
 0x39d   : > { %10177 = vmatpush1.bf16.msra.mxu1 %v16022_v19  ;;  %v15703_v19 = vcombine.high %v529_v6, %v537_v1  ;;  %v777_v27 = vld [vmem:[%s19283_s29 + $0x860] sm:$0xff]  ;;  %v20316_v1 = vpop.f32.mrf.mxu1 }
 0x39e   : > { %10178 = vmatprep.subr.bf16.mxu1 %v16007_v10  ;;  %v513_v10 = vld [vmem:[%s19283_s29 + $0x20] sm:$0xff]  ;;  %22133 = vst [vmem:[#allocation29_spill] sm:$0xff] %v20316_v1  ;;  %v706_v1 = vld [vmem:[%s19283_s29 + $0x628] sm:$0xff] }
 0x39f   : > { %10136 = vmatpush1.bf16.msra.mxu0 %v15750_v31  ;;  %v15958_v31 = vcombine.low %v785_v22, %v793_v3  ;;  %v761_v51 = vld [vmem:[%s19283_s29 + $0x7e0] sm:$0xff]  ;;  %v15686_v44 = vcombine.low %v513_v10, %v521_v23 }
 0x3a0   : > { %10137 = vmatprep.subr.bf16.mxu0 %v15735_v33  ;;  %v15943_v33 = vcombine.high %v769_v25, %v777_v27  ;;  %v1009_v60 = vld [vmem:[%s19283_s29 + $0xfa0] sm:$0xff] }
 0x3a1   : > { %10179 = vmatpush1.bf16.msra.mxu1 %v16006_v45  ;;  %v15687_v45 = vcombine.high %v513_v10, %v521_v23  ;;  %v1017_v62 = vld [vmem:[%s19283_s29 + $0xfe0] sm:$0xff] }
 0x3a2   : > { %10180 = vmatprep.subr.bf16.mxu1 %v15991_v41  ;;  %v753_v41 = vld [vmem:[%s19283_s29 + $0x7a0] sm:$0xff] }
 0x3a3   : > { %10138 = vmatpush1.bf16.msra.mxu0 %v15734_v48  ;;  %v15942_v48 = vcombine.low %v769_v25, %v777_v27  ;;  %v745_v6 = vld [vmem:[%s19283_s29 + $0x760] sm:$0xff] }
 0x3a4   : > { %10139 = vmatprep.subr.bf16.mxu0 %v15719_v29  ;;  %v16183_v29 = vcombine.high %v1009_v60, %v1017_v62  ;;  %v993_v22 = vld [vmem:[%s19283_s29 + $0xf20] sm:$0xff] }
 0x3a5   : > { %10181 = vmatpush1.bf16.msra.mxu1 %v15990_v47  ;;  %v15927_v47 = vcombine.high %v753_v41, %v761_v51  ;;  %v1001_v3 = vld [vmem:[%s19283_s29 + $0xf60] sm:$0xff] }
 0x3a6   : > { %10182 = vmatprep.subr.bf16.mxu1 %v15975_v61  ;;  %v737_v61 = vld [vmem:[%s19283_s29 + $0x720] sm:$0xff]  ;;  %v16167_v23 = vcombine.high %v993_v22, %v1001_v3 }
 0x3a7   : > { %10140 = vmatpush1.bf16.msra.mxu0 %v15718_v13  ;;  %v15926_v13 = vcombine.low %v753_v41, %v761_v51  ;;  %v15911_v10 = vcombine.high %v737_v61, %v745_v6  ;;  %v721_v25 = vld [vmem:[%s19283_s29 + $0x6a0] sm:$0xff]  ;;  %v15910_v41 = vcombine.low %v737_v61, %v745_v6 }
 0x3a8   : > { %10141 = vmatprep.subr.bf16.mxu0 %v15703_v19  ;;  %v9862_v19 = vpop.f32.mrf.mxu1  ;;  %v729_v27 = vld [vmem:[%s19283_s29 + $0x6e0] sm:$0xff] }
 0x3a9   : > { %10183 = vmatpush1.bf16.msra.mxu1 %v15974_v21  ;;  %v20320_v21 = vpop.f32.mrf.mxu0  ;;  %v969_v61 = vld [vmem:[%s19283_s29 + $0xe60] sm:$0xff] }
 0x3aa   : > { %10184 = vmatprep.subr.bf16.mxu1 %v15959_v20  ;;  %v16182_v20 = vcombine.low %v1009_v60, %v1017_v62  ;;  %v20327_v51 = vpop.f32.mrf.mxu1  ;;  %v16166_v62 = vcombine.low %v993_v22, %v1001_v3 }
 0x3ab   : > { %10142 = vmatpush1.bf16.msra.mxu0 %v15702_v28  ;;  %22134 = vst [vmem:[#allocation30_spill] sm:$0xff] %v20327_v51  ;;  %v1497_v51 = vld [vmem:[%s19283_s29 + $0x1ee0] sm:$0xff] }
 0x3ac   : > { %10143 = vmatprep.subr.bf16.mxu0 %v15687_v45  ;;  %v985_v45 = vld [vmem:[%s19283_s29 + $0xee0] sm:$0xff] }
 0x3ad   : > { %10185 = vmatpush1.bf16.msra.mxu1 %v15958_v31  ;;  %v977_v31 = vld [vmem:[%s19283_s29 + $0xea0] sm:$0xff] }
 0x3ae   : > { %10186 = vmatprep.subr.bf16.mxu1 %v15943_v33  ;;  %v16150_v22 = vcombine.low %v977_v31, %v985_v45 }
 0x3af   : > { %10144 = vmatpush1.bf16.msra.mxu0 %v15686_v44  ;;  %v15895_v44 = vcombine.high %v721_v25, %v729_v27 }
 0x3b0   : > { %10145 = vmatprep.subr.bf16.mxu0 %v15927_v47  ;;  %v16151_v47 = vcombine.high %v977_v31, %v985_v45 }
 0x3b1   : > { %10187 = vmatpush1.bf16.msra.mxu1 %v15942_v48 }
 0x3b2   : > { %10188 = vmatprep.subr.bf16.mxu1 %v16183_v29  ;;  %v9819_v28 = vpop.f32.mrf.mxu0  ;;  %v705_v29 = vld [vmem:[%s19283_s29 + $0x620] sm:$0xff] }
 0x3b3   : > { %v9820_v33 = vadd.f32 %v9819_v28, %v20239_v4  ;;  %10146 = vmatpush2.bf16.msra.mxu0 %v15926_v13  ;;  %v961_v4 = vld [vmem:[%s19283_s29 + $0xe20] sm:$0xff]  ;;  %v15894_v13 = vcombine.low %v721_v25, %v729_v27  ;;  %v15879_v3 = vcombine.high %v705_v29, %v713_v30 }
 0x3b4   : > { %v20329_v60 = vpop.f32.mrf.mxu0  ;;  %10147 = vmatprep.subr.bf16.mxu0 %v15911_v10  ;;  %v16135_v10 = vcombine.high %v961_v4, %v969_v61  ;;  %v697_v28 = vld [vmem:[%s19283_s29 + $0x5e0] sm:$0xff]  ;;  %v16134_v25 = vcombine.low %v961_v4, %v969_v61 }
 0x3b5   : > { %10189 = vmatpush2.bf16.msra.mxu1 %v16182_v20  ;;  %22135 = vst [vmem:[#allocation31_spill] sm:$0xff] %v20329_v60  ;;  %v9863_v48 = vadd.f32 %v9862_v19, %v9820_v33  ;;  %v9866_v20 = vpop.f32.mrf.mxu1  ;;  %v945_v33 = vld [vmem:[%s19283_s29 + $0xda0] sm:$0xff]  ;;  %v22140_v60 = vmov 0  }
 0x3b6   : > { %10190 = vmatprep.subr.bf16.mxu1 %v16167_v23  ;;  %v9823_v36 = vpop.f32.mrf.mxu0  ;;  %v689_v23 = vld [vmem:[%s19283_s29 + $0x5a0] sm:$0xff]  ;;  %v16119_v45 = vcombine.high %v945_v33, %v953_v54 }
 0x3b7   : > { %v9824_v6 = vadd.f32 %v9823_v36, %v20248_v39  ;;  %10148 = vmatpush2.bf16.msra.mxu0 %v15910_v41  ;;  %v11165_v24 = vmax.f32 %v9863_v48, 0.0  ;;  %v15878_v39 = vcombine.low %v705_v29, %v713_v30  ;;  %v15863_v27 = vcombine.high %v689_v23, %v697_v28  ;;  %v673_v41 = vld [vmem:[%s19283_s29 + $0x520] sm:$0xff] }
 0x3b8   : > { %10149 = vmatprep.subr.bf16.mxu0 %v15895_v44  ;;  %v929_v44 = vld [vmem:[%s19283_s29 + $0xd20] sm:$0xff]  ;;  %v15862_v48 = vcombine.low %v689_v23, %v697_v28  ;;  %v16118_v30 = vcombine.low %v945_v33, %v953_v54 }
 0x3b9   : > { %10191 = vmatpush2.bf16.msra.mxu1 %v16166_v62  ;;  %v9867_v19 = vadd.f32 %v9866_v20, %v9824_v6  ;;  %v681_v62 = vld [vmem:[%s19283_s29 + $0x560] sm:$0xff] }
 0x3ba   : > { %10192 = vmatprep.subr.bf16.mxu1 %v16151_v47  ;;  %v937_v47 = vld [vmem:[%s19283_s29 + $0xd60] sm:$0xff]  ;;  %v15847_v29 = vcombine.high %v673_v41, %v681_v62  ;;  %v15846_v20 = vcombine.low %v673_v41, %v681_v62 }
 0x3bb   : > { %v11181_v36 = vmax.f32 %v9867_v19, 0.0  ;;  %10150 = vmatpush2.bf16.msra.mxu0 %v15894_v13  ;;  %v657_v4 = vld [vmem:[%s19283_s29 + $0x4a0] sm:$0xff] }
 0x3bc   : > { %10151 = vmatprep.subr.bf16.mxu0 %v15879_v3  ;;  %v665_v61 = vld [vmem:[%s19283_s29 + $0x4e0] sm:$0xff] }
 0x3bd   : > { %10193 = vmatpush2.bf16.msra.mxu1 %v16150_v22  ;;  %v20340_v31 = vpack.c.bf16 %v11181_v36, %v11165_v24  ;;  %v16103_v24 = vcombine.high %v929_v44, %v937_v47  ;;  %v913_v6 = vld [vmem:[%s19283_s29 + $0xca0] sm:$0xff]  ;;  %v16102_v22 = vcombine.low %v929_v44, %v937_v47  ;;  %v15831_v3 = vcombine.high %v657_v4, %v665_v61 }
 0x3be   : > { %10194 = vmatprep.subr.bf16.mxu1 %v16135_v10  ;;  %v921_v13 = vld [vmem:[%s19283_s29 + $0xce0] sm:$0xff]  ;;  %v15830_v33 = vcombine.low %v657_v4, %v665_v61 }
 0x3bf   : > { %22136 = vst [vmem:[#allocation32_spill] sm:$0xff] %v20340_v31  ;;  %10152 = vmatpush2.bf16.msra.mxu0 %v15878_v39  ;;  %v16087_v54 = vcombine.high %v913_v6, %v921_v13  ;;  %v641_v19 = vld [vmem:[%s19283_s29 + $0x420] sm:$0xff]  ;;  %v16086_v36 = vcombine.low %v913_v6, %v921_v13 }
 0x3c0   : > { %10153 = vmatprep.subr.bf16.mxu0 %v15863_v27  ;;  %v649_v10 = vld [vmem:[%s19283_s29 + $0x460] sm:$0xff] }
 0x3c1   : > { %10195 = vmatpush2.bf16.msra.mxu1 %v16134_v25  ;;  %v897_v23 = vld [vmem:[%s19283_s29 + $0xc20] sm:$0xff]  ;;  %v15815_v39 = vcombine.high %v641_v19, %v649_v10  ;;  %v15814_v44 = vcombine.low %v641_v19, %v649_v10 }
 0x3c2   : > { %10196 = vmatprep.subr.bf16.mxu1 %v16119_v45  ;;  %v905_v28 = vld [vmem:[%s19283_s29 + $0xc60] sm:$0xff] }
 0x3c3   : > { %10154 = vmatpush2.bf16.msra.mxu0 %v15862_v48  ;;  %v16071_v25 = vcombine.high %v897_v23, %v905_v28  ;;  %v1137_v27 = vld [vmem:[%s19283_s29 + $0x13a0] sm:$0xff]  ;;  %v16070_v47 = vcombine.low %v897_v23, %v905_v28  ;;  %v18654_v28 = vld [vmem:[%s22070_s0 + $0x8] ss:$44 sps:$4 sm:$0xff]  }
 0x3c4   : > { %10155 = vmatprep.subr.bf16.mxu0 %v15847_v29  ;;  %v1145_v45 = vld [vmem:[%s19283_s29 + $0x13e0] sm:$0xff] }
 0x3c5   : > { %10197 = vmatpush2.bf16.msra.mxu1 %v16118_v30  ;;  %v1393_v41 = vld [vmem:[%s19283_s29 + $0x1ba0] sm:$0xff]  ;;  %v16311_v48 = vcombine.high %v1137_v27, %v1145_v45  ;;  %v16310_v6 = vcombine.low %v1137_v27, %v1145_v45 }
 0x3c6   : > { %10198 = vmatprep.subr.bf16.mxu1 %v16103_v24  ;;  %v1401_v62 = vld [vmem:[%s19283_s29 + $0x1be0] sm:$0xff] }
 0x3c7   : > { %10156 = vmatpush2.bf16.msra.mxu0 %v15846_v20  ;;  %v16567_v30 = vcombine.high %v1393_v41, %v1401_v62  ;;  %v1121_v29 = vld [vmem:[%s19283_s29 + $0x1320] sm:$0xff]  ;;  %v16566_v13 = vcombine.low %v1393_v41, %v1401_v62 }
 0x3c8   : > { %10157 = vmatprep.subr.bf16.mxu0 %v15831_v3  ;;  %v1129_v24 = vld [vmem:[%s19283_s29 + $0x1360] sm:$0xff] }
 0x3c9   : > { %10199 = vmatpush2.bf16.msra.mxu1 %v16102_v22  ;;  %v1377_v4 = vld [vmem:[%s19283_s29 + $0x1b20] sm:$0xff]  ;;  %v16295_v20 = vcombine.high %v1121_v29, %v1129_v24 }
 0x3ca   : > { %10200 = vmatprep.subr.bf16.mxu1 %v16087_v54  ;;  %v1385_v61 = vld [vmem:[%s19283_s29 + $0x1b60] sm:$0xff] }
 0x3cb   : > { %10158 = vmatpush2.bf16.msra.mxu0 %v15830_v33  ;;  %v16551_v22 = vcombine.high %v1377_v4, %v1385_v61  ;;  %v1105_v3 = vld [vmem:[%s19283_s29 + $0x12a0] sm:$0xff]  ;;  %v16294_v33 = vcombine.low %v1121_v29, %v1129_v24 }
 0x3cc   : > { %10159 = vmatprep.subr.bf16.mxu0 %v15815_v39  ;;  %v1113_v54 = vld [vmem:[%s19283_s29 + $0x12e0] sm:$0xff] }
 0x3cd   : > { %10201 = vmatpush2.bf16.msra.mxu1 %v16086_v36  ;;  %v18653_v19 = vld [vmem:[%s22070_s0] ss:$44 sps:$4 sm:$0xff]   ;;  %v16550_v36 = vcombine.low %v1377_v4, %v1385_v61  ;;  %v16279_v39 = vcombine.high %v1105_v3, %v1113_v54 }
 0x3ce   : > { %10202 = vmatprep.subr.bf16.mxu1 %v16071_v25  ;;  %v1361_v10 = vld [vmem:[%s19283_s29 + $0x1aa0] sm:$0xff] }
 0x3cf   : > { %10160 = vmatpush2.bf16.msra.mxu0 %v15814_v44  ;;  %v1369_v23 = vld [vmem:[%s19283_s29 + $0x1ae0] sm:$0xff] }
 0x3d0   : > { %10215 = vmatprep.subr.bf16.mxu0 %v16311_v48  ;;  %v16535_v25 = vcombine.high %v1361_v10, %v1369_v23  ;;  %v1089_v27 = vld [vmem:[%s19283_s29 + $0x1220] sm:$0xff]  ;;  %v16278_v48 = vcombine.low %v1105_v3, %v1113_v54 }
 0x3d1   : > { %10203 = vmatpush2.bf16.msra.mxu1 %v16070_v47  ;;  %v1097_v45 = vld [vmem:[%s19283_s29 + $0x1260] sm:$0xff]  ;;  %v18656_v47 = vld [vmem:[%s22070_s0 + $0x1c] ss:$44 sps:$4 sm:$0xff]  }
 0x3d2   : > { %10258 = vmatprep.subr.bf16.mxu1 %v16567_v30  ;;  %10162 = vmatmul.mubr.bf16.vlgmr.msra.gmra.mxu0 %v18653_v19  ;;  %v18655_v41 = vld [vmem:[%s22070_s0 + $0x14] ss:$44 sps:$4 sm:$0xff]   ;;  %v16534_v30 = vcombine.low %v1361_v10, %v1369_v23  ;;  %v16263_v29 = vcombine.high %v1089_v27, %v1097_v45 }
 0x3d3   : > { %10216 = vmatpush1.bf16.msra.mxu0 %v16310_v6  ;;  %10247 = vmatprep.mubr.bf16.mxu0 %v18655_v41  ;;  %v1345_v62 = vld [vmem:[%s19283_s29 + $0x1a20] sm:$0xff] }
 0x3d4   : > { %10205 = vmatmul.mubr.bf16.vlgmr.msra.gmra.mxu1 %v18654_v28  ;;  %10217 = vmatprep.subr.bf16.mxu0 %v16295_v20  ;;  %v1353_v44 = vld [vmem:[%s19283_s29 + $0x1a60] sm:$0xff]  ;;  %v16262_v20 = vcombine.low %v1089_v27, %v1097_v45 }
 0x3d5   : > { %10259 = vmatpush1.bf16.msra.mxu1 %v16566_v13  ;;  %10290 = vmatprep.mubr.bf16.mxu1 %v18656_v47  ;;  %v16519_v24 = vcombine.high %v1345_v62, %v1353_v44  ;;  %v1073_v4 = vld [vmem:[%s19283_s29 + $0x11a0] sm:$0xff] }
 0x3d6   : > { %10260 = vmatprep.subr.bf16.mxu1 %v16551_v22  ;;  %v1081_v61 = vld [vmem:[%s19283_s29 + $0x11e0] sm:$0xff]  ;;  %v16518_v22 = vcombine.low %v1345_v62, %v1353_v44 }
 0x3d7   : > { %10218 = vmatpush1.bf16.msra.mxu0 %v16294_v33  ;;  %v1329_v6 = vld [vmem:[%s19283_s29 + $0x19a0] sm:$0xff]  ;;  %v16247_v3 = vcombine.high %v1073_v4, %v1081_v61  ;;  %v16246_v33 = vcombine.low %v1073_v4, %v1081_v61 }
 0x3d8   : > { %10219 = vmatprep.subr.bf16.mxu0 %v16279_v39  ;;  %v1337_v13 = vld [vmem:[%s19283_s29 + $0x19e0] sm:$0xff] }
 0x3d9   : > { %10261 = vmatpush1.bf16.msra.mxu1 %v16550_v36  ;;  %v16503_v54 = vcombine.high %v1329_v6, %v1337_v13  ;;  %v1057_v19 = vld [vmem:[%s19283_s29 + $0x1120] sm:$0xff]  ;;  %v16502_v36 = vcombine.low %v1329_v6, %v1337_v13  ;;  %v20398_v13 = vpop.f32.mrf.mxu1 }
 0x3da   : > { %10262 = vmatprep.subr.bf16.mxu1 %v16535_v25  ;;  %v1065_v10 = vld [vmem:[%s19283_s29 + $0x1160] sm:$0xff]  ;;  %22137 = vst [vmem:[#allocation33_spill] sm:$0xff] %v20398_v13 }
 0x3db   : > { %10220 = vmatpush1.bf16.msra.mxu0 %v16278_v48  ;;  %v1313_v23 = vld [vmem:[%s19283_s29 + $0x1920] sm:$0xff]  ;;  %v16231_v39 = vcombine.high %v1057_v19, %v1065_v10  ;;  %v16230_v44 = vcombine.low %v1057_v19, %v1065_v10 }
 0x3dc   : > { %10221 = vmatprep.subr.bf16.mxu0 %v16263_v29  ;;  %v1321_v28 = vld [vmem:[%s19283_s29 + $0x1960] sm:$0xff] }
 0x3dd   : > { %10263 = vmatpush1.bf16.msra.mxu1 %v16534_v30  ;;  %v16487_v25 = vcombine.high %v1313_v23, %v1321_v28  ;;  %v1041_v27 = vld [vmem:[%s19283_s29 + $0x10a0] sm:$0xff]  ;;  %v16486_v47 = vcombine.low %v1313_v23, %v1321_v28  ;;  %v9905_v23 = vpop.f32.mrf.mxu1 }
 0x3de   : > { %10264 = vmatprep.subr.bf16.mxu1 %v16519_v24  ;;  %v1049_v45 = vld [vmem:[%s19283_s29 + $0x10e0] sm:$0xff] }
 0x3df   : > { %10222 = vmatpush1.bf16.msra.mxu0 %v16262_v20  ;;  %v1297_v41 = vld [vmem:[%s19283_s29 + $0x18a0] sm:$0xff]  ;;  %v16215_v48 = vcombine.high %v1041_v27, %v1049_v45  ;;  %v16214_v6 = vcombine.low %v1041_v27, %v1049_v45 }
 0x3e0   : > { %10223 = vmatprep.subr.bf16.mxu0 %v16247_v3  ;;  %v1305_v62 = vld [vmem:[%s19283_s29 + $0x18e0] sm:$0xff]  ;;  %v22095_v3 = vsub.s32 6, %v19614_v16 }
 0x3e1   : > { %10265 = vmatpush1.bf16.msra.mxu1 %v16518_v22  ;;  %v16471_v30 = vcombine.high %v1297_v41, %v1305_v62  ;;  %v1025_v29 = vld [vmem:[%s19283_s29 + $0x1020] sm:$0xff]  ;;  %v16470_v20 = vcombine.low %v1297_v41, %v1305_v62 }
 0x3e2   : > { %10266 = vmatprep.subr.bf16.mxu1 %v16503_v54  ;;  %v1033_v24 = vld [vmem:[%s19283_s29 + $0x1060] sm:$0xff] }
 0x3e3   : > { %10224 = vmatpush1.bf16.msra.mxu0 %v16246_v33  ;;  %v1281_v4 = vld [vmem:[%s19283_s29 + $0x1820] sm:$0xff]  ;;  %v16199_v22 = vcombine.high %v1025_v29, %v1033_v24 }
 0x3e4   : > { %10225 = vmatprep.subr.bf16.mxu0 %v16231_v39  ;;  %v1289_v61 = vld [vmem:[%s19283_s29 + $0x1860] sm:$0xff] }
 0x3e5   : > { %10267 = vmatpush1.bf16.msra.mxu1 %v16502_v36  ;;  %v16455_v54 = vcombine.high %v1281_v4, %v1289_v61  ;;  %v1265_v19 = vld [vmem:[%s19283_s29 + $0x17a0] sm:$0xff]  ;;  %v16198_v36 = vcombine.low %v1025_v29, %v1033_v24  ;;  %v16454_v39 = vcombine.low %v1281_v4, %v1289_v61  ;;  %v20414_v24 = vpop.f32.mrf.mxu0 }
 0x3e6   : > { %10268 = vmatprep.subr.bf16.mxu1 %v16487_v25  ;;  %v1273_v10 = vld [vmem:[%s19283_s29 + $0x17e0] sm:$0xff]  ;;  %22138 = vst [vmem:[#allocation34_spill] sm:$0xff] %v20414_v24 }
 0x3e7   : > { %10226 = vmatpush1.bf16.msra.mxu0 %v16230_v44  ;;  %v1521_v28 = vld [vmem:[%s19283_s29 + $0x1fa0] sm:$0xff]  ;;  %v16439_v25 = vcombine.high %v1265_v19, %v1273_v10  ;;  %v16438_v29 = vcombine.low %v1265_v19, %v1273_v10 }
 0x3e8   : > { %10227 = vmatprep.subr.bf16.mxu0 %v16215_v48  ;;  %v1529_v33 = vld [vmem:[%s19283_s29 + $0x1fe0] sm:$0xff] }
 0x3e9   : > { %10269 = vmatpush1.bf16.msra.mxu1 %v16486_v47  ;;  %v18657_v27 = vld [vmem:[%s19290_s28] sm:$0xff]  ;;  %v16695_v41 = vcombine.high %v1521_v28, %v1529_v33  ;;  %v20410_v47 = vpop.f32.mrf.mxu1  ;;  %v16694_v4 = vcombine.low %v1521_v28, %v1529_v33 }
 0x3ea   : > { %10270 = vmatprep.subr.bf16.mxu1 %v16471_v30  ;;  %v1948_v45 = vrot.slane %v18657_v27, %v22095_v3  ;;  %v1249_v62 = vld [vmem:[%s19283_s29 + $0x1720] sm:$0xff] }
 0x3eb   : > { %10228 = vmatpush1.bf16.msra.mxu0 %v16214_v6  ;;  %v1257_v44 = vld [vmem:[%s19283_s29 + $0x1760] sm:$0xff]  ;;  %v9909_v27 = vpop.f32.mrf.mxu1 }
 0x3ec   : > { %10229 = vmatprep.subr.bf16.mxu0 %v16199_v22  ;;  %v1505_v48 = vld [vmem:[%s19283_s29 + $0x1f20] sm:$0xff]  ;;  %v16423_v61 = vcombine.high %v1249_v62, %v1257_v44  ;;  %v9906_v6 = vadd.f32 %v9905_v23, %v1948_v45  ;;  %v16422_v10 = vcombine.low %v1249_v62, %v1257_v44 }
 0x3ed   : > { %10271 = vmatpush1.bf16.msra.mxu1 %v16470_v20  ;;  %v1513_v30 = vld [vmem:[%s19283_s29 + $0x1f60] sm:$0xff] }
 0x3ee   : > { %10272 = vmatprep.subr.bf16.mxu1 %v16455_v54  ;;  %v16679_v20 = vcombine.high %v1505_v48, %v1513_v30  ;;  %v1233_v22 = vld [vmem:[%s19283_s29 + $0x16a0] sm:$0xff]  ;;  %v16678_v23 = vcombine.low %v1505_v48, %v1513_v30 }
 0x3ef   : > { %10230 = vmatpush1.bf16.msra.mxu0 %v16198_v36  ;;  %v1241_v54 = vld [vmem:[%s19283_s29 + $0x16e0] sm:$0xff]  ;;  %v9910_v36 = vadd.f32 %v9909_v27, %v1948_v45 }
 0x3f0   : > { %10231 = vmatprep.subr.bf16.mxu0 %v16439_v25  ;;  %v1489_v31 = vld [vmem:[%s19283_s29 + $0x1ea0] sm:$0xff]  ;;  %v16407_v33 = vcombine.high %v1233_v22, %v1241_v54  ;;  %v16406_v62 = vcombine.low %v1233_v22, %v1241_v54 }
 0x3f1   : > { %10273 = vmatpush1.bf16.msra.mxu1 %v16454_v39  ;;  %v16663_v39 = vcombine.high %v1489_v31, %v1497_v51  ;;  %v1217_v25 = vld [vmem:[%s19283_s29 + $0x1620] sm:$0xff]  ;;  %v16662_v44 = vcombine.low %v1489_v31, %v1497_v51 }
 0x3f2   : > { %10274 = vmatprep.subr.bf16.mxu1 %v16695_v41  ;;  %v9948_v3 = vpop.f32.mrf.mxu0  ;;  %v1225_v41 = vld [vmem:[%s19283_s29 + $0x1660] sm:$0xff] }
 0x3f3   : > { %v20420_v19 = vadd.f32 %v9948_v3, %v9906_v6  ;;  %10232 = vmatpush2.bf16.msra.mxu0 %v16438_v29  ;;  %v1473_v3 = vld [vmem:[%s19283_s29 + $0x1e20] sm:$0xff]  ;;  %v16391_v45 = vcombine.high %v1217_v25, %v1225_v41  ;;  %v16390_v27 = vcombine.low %v1217_v25, %v1225_v41 }
 0x3f4   : > { %v20422_v28 = vpop.f32.mrf.mxu0  ;;  %10233 = vmatprep.subr.bf16.mxu0 %v16423_v61  ;;  %v1481_v6 = vld [vmem:[%s19283_s29 + $0x1e60] sm:$0xff] }
 0x3f5   : > { %10275 = vmatpush2.bf16.msra.mxu1 %v16694_v4  ;;  %v16647_v48 = vcombine.high %v1473_v3, %v1481_v6  ;;  %v1201_v30 = vld [vmem:[%s19283_s29 + $0x15a0] sm:$0xff] }
 0x3f6   : > { %10276 = vmatprep.subr.bf16.mxu1 %v16679_v20  ;;  %v9952_v13 = vpop.f32.mrf.mxu0  ;;  %v1209_v4 = vld [vmem:[%s19283_s29 + $0x15e0] sm:$0xff] }
 0x3f7   : > { %v20428_v29 = vadd.f32 %v9952_v13, %v9910_v36  ;;  %10234 = vmatpush2.bf16.msra.mxu0 %v16422_v10  ;;  %v1457_v61 = vld [vmem:[%s19283_s29 + $0x1da0] sm:$0xff]  ;;  %v16646_v13 = vcombine.low %v1473_v3, %v1481_v6  ;;  %v16375_v22 = vcombine.high %v1201_v30, %v1209_v4 }
 0x3f8   : > { %10235 = vmatprep.subr.bf16.mxu0 %v16407_v33  ;;  %v1465_v20 = vld [vmem:[%s19283_s29 + $0x1de0] sm:$0xff]  ;;  %v16374_v33 = vcombine.low %v1201_v30, %v1209_v4 }
 0x3f9   : > { %10277 = vmatpush2.bf16.msra.mxu1 %v16678_v23  ;;  %v16631_v51 = vcombine.high %v1457_v61, %v1465_v20  ;;  %v1185_v31 = vld [vmem:[%s19283_s29 + $0x1520] sm:$0xff]  ;;  %v16630_v36 = vcombine.low %v1457_v61, %v1465_v20 }
 0x3fa   : > { %10278 = vmatprep.subr.bf16.mxu1 %v16663_v39  ;;  %v1193_v54 = vld [vmem:[%s19283_s29 + $0x1560] sm:$0xff] }
 0x3fb   : > { %10236 = vmatpush2.bf16.msra.mxu0 %v16406_v62  ;;  %v1441_v10 = vld [vmem:[%s19283_s29 + $0x1d20] sm:$0xff]  ;;  %v16359_v39 = vcombine.high %v1185_v31, %v1193_v54 }
 0x3fc   : > { %10237 = vmatprep.subr.bf16.mxu0 %v16391_v45  ;;  %v1449_v23 = vld [vmem:[%s19283_s29 + $0x1d60] sm:$0xff] }
 0x3fd   : > { %10279 = vmatpush2.bf16.msra.mxu1 %v16662_v44  ;;  %v16615_v25 = vcombine.high %v1441_v10, %v1449_v23  ;;  %v1169_v41 = vld [vmem:[%s19283_s29 + $0x14a0] sm:$0xff]  ;;  %v16358_v44 = vcombine.low %v1185_v31, %v1193_v54  ;;  %v16614_v45 = vcombine.low %v1441_v10, %v1449_v23 }
 0x3fe   : > { %10280 = vmatprep.subr.bf16.mxu1 %v16647_v48  ;;  %v1177_v3 = vld [vmem:[%s19283_s29 + $0x14e0] sm:$0xff] }
 0x3ff   : > { %10238 = vmatpush2.bf16.msra.mxu0 %v16390_v27  ;;  %v1425_v6 = vld [vmem:[%s19283_s29 + $0x1ca0] sm:$0xff]  ;;  %v16343_v48 = vcombine.high %v1169_v41, %v1177_v3 }
 0x400   : > { %10239 = vmatprep.subr.bf16.mxu0 %v16375_v22  ;;  %v1433_v62 = vld [vmem:[%s19283_s29 + $0x1ce0] sm:$0xff] }
 0x401   : > { %10281 = vmatpush2.bf16.msra.mxu1 %v16646_v13  ;;  %v16599_v30 = vcombine.high %v1425_v6, %v1433_v62  ;;  %v1153_v4 = vld [vmem:[%s19283_s29 + $0x1420] sm:$0xff]  ;;  %v16342_v13 = vcombine.low %v1169_v41, %v1177_v3  ;;  %v16598_v22 = vcombine.low %v1425_v6, %v1433_v62 }
 0x402   : > { %10282 = vmatprep.subr.bf16.mxu1 %v16631_v51  ;;  %v1161_v61 = vld [vmem:[%s19283_s29 + $0x1460] sm:$0xff] }
 0x403   : > { %10240 = vmatpush2.bf16.msra.mxu0 %v16374_v33  ;;  %v1409_v20 = vld [vmem:[%s19283_s29 + $0x1c20] sm:$0xff]  ;;  %v16327_v51 = vcombine.high %v1153_v4, %v1161_v61 }
 0x404   : > { %10241 = vmatprep.subr.bf16.mxu0 %v16359_v39  ;;  %v1417_v27 = vld [vmem:[%s19283_s29 + $0x1c60] sm:$0xff] }
 0x405   : > { %10283 = vmatpush2.bf16.msra.mxu1 %v16630_v36  ;;  %v16583_v31 = vcombine.high %v1409_v20, %v1417_v27  ;;  %v1649_v54 = vld [vmem:[%s19283_s29 + $0x23a0] sm:$0xff]  ;;  %v16326_v36 = vcombine.low %v1153_v4, %v1161_v61  ;;  %v16582_v39 = vcombine.low %v1409_v20, %v1417_v27  ;;  %v20454_v4 = vpop.f32.mrf.mxu1 }
 0x406   : > { %10284 = vmatprep.subr.bf16.mxu1 %v16615_v25  ;;  %v1657_v10 = vld [vmem:[%s19283_s29 + $0x23e0] sm:$0xff] }
 0x407   : > { %10242 = vmatpush2.bf16.msra.mxu0 %v16358_v44  ;;  %v1905_v23 = vld [vmem:[%s19283_s29 + $0x2ba0] sm:$0xff]  ;;  %v16823_v25 = vcombine.high %v1649_v54, %v1657_v10 }
 0x408   : > { %10243 = vmatprep.subr.bf16.mxu0 %v16343_v48  ;;  %v1913_v33 = vld [vmem:[%s19283_s29 + $0x2be0] sm:$0xff] }
 0x409   : > { %10285 = vmatpush2.bf16.msra.mxu1 %v16614_v45  ;;  %v17079_v41 = vcombine.high %v1905_v23, %v1913_v33  ;;  %v1633_v3 = vld [vmem:[%s19283_s29 + $0x2320] sm:$0xff]  ;;  %v16822_v45 = vcombine.low %v1649_v54, %v1657_v10  ;;  %v17078_v48 = vcombine.low %v1905_v23, %v1913_v33 }
 0x40a   : > { %10286 = vmatprep.subr.bf16.mxu1 %v16599_v30  ;;  %v1641_v6 = vld [vmem:[%s19283_s29 + $0x2360] sm:$0xff] }
 0x40b   : > { %10244 = vmatpush2.bf16.msra.mxu0 %v16342_v13  ;;  %v1889_v62 = vld [vmem:[%s19283_s29 + $0x2b20] sm:$0xff]  ;;  %v16807_v30 = vcombine.high %v1633_v3, %v1641_v6  ;;  %v18658_v13 = vld [vmem:[%s22070_s0 + $0x10] ss:$44 sps:$4 sm:$0xff]   ;;  %v16806_v10 = vcombine.low %v1633_v3, %v1641_v6 }
 0x40c   : > { %10245 = vmatprep.subr.bf16.mxu0 %v16327_v51  ;;  %v1897_v44 = vld [vmem:[%s19283_s29 + $0x2b60] sm:$0xff] }
 0x40d   : > { %10287 = vmatpush2.bf16.msra.mxu1 %v16598_v22  ;;  %v17063_v61 = vcombine.high %v1889_v62, %v1897_v44  ;;  %v1617_v20 = vld [vmem:[%s19283_s29 + $0x22a0] sm:$0xff]  ;;  %v17062_v33 = vcombine.low %v1889_v62, %v1897_v44 }
 0x40e   : > { %10288 = vmatprep.subr.bf16.mxu1 %v16583_v31  ;;  %v1625_v27 = vld [vmem:[%s19283_s29 + $0x22e0] sm:$0xff] }
 0x40f   : > { %10246 = vmatpush2.bf16.msra.mxu0 %v16326_v36  ;;  %v1873_v22 = vld [vmem:[%s19283_s29 + $0x2aa0] sm:$0xff]  ;;  %v16791_v36 = vcombine.high %v1617_v20, %v1625_v27  ;;  %v16790_v62 = vcombine.low %v1617_v20, %v1625_v27 }
 0x410   : > { %10301 = vmatprep.subr.bf16.mxu0 %v16823_v25  ;;  %v1881_v51 = vld [vmem:[%s19283_s29 + $0x2ae0] sm:$0xff] }
 0x411   : > { %10289 = vmatpush2.bf16.msra.mxu1 %v16582_v39  ;;  %v18659_v54 = vld [vmem:[%s22070_s0 + $0x18] ss:$44 sps:$4 sm:$0xff]   ;;  %v17047_v25 = vcombine.high %v1873_v22, %v1881_v51 }
 0x412   : > { %10344 = vmatprep.subr.bf16.mxu1 %v17079_v41  ;;  %10248 = vmatmul.mubr.bf16.vlgmr.msra.gmra.mxu0 %v18658_v13  ;;  %v1601_v41 = vld [vmem:[%s19283_s29 + $0x2220] sm:$0xff] }
 0x413   : > { %10302 = vmatpush1.bf16.msra.mxu0 %v16822_v45  ;;  %v1609_v13 = vld [vmem:[%s19283_s29 + $0x2260] sm:$0xff]  ;;  %v17046_v45 = vcombine.low %v1873_v22, %v1881_v51 }
 0x414   : > { %v9991_v31 = vpop.f32.mrf.mxu1  ;;  %10291 = vmatmul.mubr.bf16.vlgmr.msra.gmra.mxu1 %v18659_v54  ;;  %10303 = vmatprep.subr.bf16.mxu0 %v16807_v30  ;;  %v1857_v54 = vld [vmem:[%s19283_s29 + $0x2a20] sm:$0xff] }
 0x415   : > { %v20467_v23 = vadd.f32 %v9991_v31, %v20420_v19  ;;  %10345 = vmatpush1.bf16.msra.mxu1 %v17078_v48  ;;  %10376 = vmatprep.mubr.bf16.mxu1 %v22140_v60  ;;  %v1865_v3 = vld [vmem:[%s19283_s29 + $0x2a60] sm:$0xff]  ;;  %v16775_v48 = vcombine.high %v1601_v41, %v1609_v13 }
 0x416   : > { %v20469_v39 = vpop.f32.mrf.mxu1  ;;  %10346 = vmatprep.subr.bf16.mxu1 %v17063_v61  ;;  %v18660_v19 = vld [vmem:[%s22070_s0 + $0x24] ss:$44 sps:$4 sm:$0xff]   ;;  %v17031_v30 = vcombine.high %v1857_v54, %v1865_v3 }
 0x417   : > { %22139 = vst [vmem:[#allocation35_spill] sm:$0xff] %v20469_v39  ;;  %10333 = vmatprep.mubr.bf16.mxu0 %v18660_v19  ;;  %10304 = vmatpush1.bf16.msra.mxu0 %v16806_v10  ;;  %v1585_v61 = vld [vmem:[%s19283_s29 + $0x21a0] sm:$0xff]  ;;  %v16774_v10 = vcombine.low %v1601_v41, %v1609_v13 }
 0x418   : > { %v9995_v6 = vpop.f32.mrf.mxu1  ;;  %10305 = vmatprep.subr.bf16.mxu0 %v16791_v36  ;;  %v1593_v31 = vld [vmem:[%s19283_s29 + $0x21e0] sm:$0xff] }
 0x419   : > { %v20480_v44 = vadd.f32 %v9995_v6, %v20428_v29  ;;  %10347 = vmatpush1.bf16.msra.mxu1 %v17062_v33  ;;  %v1841_v24 = vld [vmem:[%s19283_s29 + $0x29a0] sm:$0xff]  ;;  %v17030_v29 = vcombine.low %v1857_v54, %v1865_v3  ;;  %v16759_v20 = vcombine.high %v1585_v61, %v1593_v31 }
 0x41a   : > { %10348 = vmatprep.subr.bf16.mxu1 %v17047_v25  ;;  %v1849_v19 = vld [vmem:[%s19283_s29 + $0x29e0] sm:$0xff]  ;;  %v16758_v25 = vcombine.low %v1585_v61, %v1593_v31 }
 0x41b   : > { %10306 = vmatpush1.bf16.msra.mxu0 %v16790_v62  ;;  %v17015_v27 = vcombine.high %v1841_v24, %v1849_v19  ;;  %v1569_v22 = vld [vmem:[%s19283_s29 + $0x2120] sm:$0xff]  ;;  %v17014_v6 = vcombine.low %v1841_v24, %v1849_v19 }
 0x41c   : > { %10307 = vmatprep.subr.bf16.mxu0 %v16775_v48  ;;  %v1577_v51 = vld [vmem:[%s19283_s29 + $0x2160] sm:$0xff] }
 0x41d   : > { %10349 = vmatpush1.bf16.msra.mxu1 %v17046_v45  ;;  %v1825_v33 = vld [vmem:[%s19283_s29 + $0x2920] sm:$0xff]  ;;  %v16743_v41 = vcombine.high %v1569_v22, %v1577_v51  ;;  %v16742_v48 = vcombine.low %v1569_v22, %v1577_v51 }
 0x41e   : > { %10350 = vmatprep.subr.bf16.mxu1 %v17031_v30  ;;  %v1833_v36 = vld [vmem:[%s19283_s29 + $0x2960] sm:$0xff] }
 0x41f   : > { %10308 = vmatpush1.bf16.msra.mxu0 %v16774_v10  ;;  %v16999_v13 = vcombine.high %v1825_v33, %v1833_v36  ;;  %v1553_v54 = vld [vmem:[%s19283_s29 + $0x20a0] sm:$0xff]  ;;  %v16998_v30 = vcombine.low %v1825_v33, %v1833_v36 }
 0x420   : > { %10309 = vmatprep.subr.bf16.mxu0 %v16759_v20  ;;  %v1561_v3 = vld [vmem:[%s19283_s29 + $0x20e0] sm:$0xff] }
 0x421   : > { %10351 = vmatpush1.bf16.msra.mxu1 %v17030_v29  ;;  %v1809_v62 = vld [vmem:[%s19283_s29 + $0x28a0] sm:$0xff]  ;;  %v16727_v61 = vcombine.high %v1553_v54, %v1561_v3  ;;  %v16726_v20 = vcombine.low %v1553_v54, %v1561_v3 }
 0x422   : > { %10352 = vmatprep.subr.bf16.mxu1 %v17015_v27  ;;  %v1817_v45 = vld [vmem:[%s19283_s29 + $0x28e0] sm:$0xff] }
 0x423   : > { %10310 = vmatpush1.bf16.msra.mxu0 %v16758_v25  ;;  %v16983_v24 = vcombine.high %v1809_v62, %v1817_v45  ;;  %v1537_v31 = vld [vmem:[%s19283_s29 + $0x2020] sm:$0xff]  ;;  %v16982_v27 = vcombine.low %v1809_v62, %v1817_v45  ;;  %v626_v25 = vld [vmem:[%s19283_s29 + $0x3a8] sm:$0xff] }
 0x424   : > { %10311 = vmatprep.subr.bf16.mxu0 %v16743_v41  ;;  %v1545_v19 = vld [vmem:[%s19283_s29 + $0x2060] sm:$0xff] }
 0x425   : > { %10353 = vmatpush1.bf16.msra.mxu1 %v17014_v6  ;;  %v1793_v10 = vld [vmem:[%s19283_s29 + $0x2820] sm:$0xff]  ;;  %v16711_v22 = vcombine.high %v1537_v31, %v1545_v19  ;;  %v634_v6 = vld [vmem:[%s19283_s29 + $0x3e8] sm:$0xff]  ;;  %v16710_v41 = vcombine.low %v1537_v31, %v1545_v19 }
 0x426   : > { %10354 = vmatprep.subr.bf16.mxu1 %v16999_v13  ;;  %v1801_v29 = vld [vmem:[%s19283_s29 + $0x2860] sm:$0xff]  ;;  %v15801_v3 = vcombine.high %v626_v25, %v634_v6  ;;  %v15800_v31 = vcombine.low %v626_v25, %v634_v6 }
 0x427   : > { %10312 = vmatpush1.bf16.msra.mxu0 %v16742_v48  ;;  %v16967_v51 = vcombine.high %v1793_v10, %v1801_v29  ;;  %v1777_v33 = vld [vmem:[%s19283_s29 + $0x27a0] sm:$0xff]  ;;  %v16966_v13 = vcombine.low %v1793_v10, %v1801_v29  ;;  %v610_v48 = vld [vmem:[%s19283_s29 + $0x328] sm:$0xff] }
 0x428   : > { %10313 = vmatprep.subr.bf16.mxu0 %v16727_v61  ;;  %v1785_v36 = vld [vmem:[%s19283_s29 + $0x27e0] sm:$0xff] }
 0x429   : > { %10355 = vmatpush1.bf16.msra.mxu1 %v16998_v30  ;;  %v16951_v54 = vcombine.high %v1777_v33, %v1785_v36  ;;  %v1761_v62 = vld [vmem:[%s19283_s29 + $0x2720] sm:$0xff]  ;;  %v618_v30 = vld [vmem:[%s19283_s29 + $0x368] sm:$0xff]  ;;  %v16950_v61 = vcombine.low %v1777_v33, %v1785_v36 }
 0x42a   : > { %10356 = vmatprep.subr.bf16.mxu1 %v16983_v24  ;;  %v1769_v45 = vld [vmem:[%s19283_s29 + $0x2760] sm:$0xff]  ;;  %v20506_v24 = vpop.f32.mrf.mxu0  ;;  %v15785_v10 = vcombine.high %v610_v48, %v618_v30  ;;  %v18661_v33 = vld [vmem:[%s22070_s0 + $0x28] ss:$44 sps:$4 sm:$0xff]   ;;  %v15784_v6 = vcombine.low %v610_v48, %v618_v30 }
 0x42b   : > { %10314 = vmatpush1.bf16.msra.mxu0 %v16726_v20  ;;  %v16935_v19 = vcombine.high %v1761_v62, %v1769_v45  ;;  %v1745_v29 = vld [vmem:[%s19283_s29 + $0x26a0] sm:$0xff]  ;;  %v16934_v36 = vcombine.low %v1761_v62, %v1769_v45  ;;  %v578_v45 = vld [vmem:[%s19283_s29 + $0x228] sm:$0xff] }
 0x42c   : > { %10315 = vmatprep.subr.bf16.mxu0 %v16711_v22  ;;  %v1753_v20 = vld [vmem:[%s19283_s29 + $0x26e0] sm:$0xff]  ;;  %v594_v22 = vld [vmem:[%s19283_s29 + $0x2a8] sm:$0xff] }
 0x42d   : > { %10357 = vmatpush1.bf16.msra.mxu1 %v16982_v27  ;;  %v16918_v48 = vcombine.low %v1745_v29, %v1753_v20 }
 0x42e   : > { %10358 = vmatprep.subr.bf16.mxu1 %v16967_v51  ;;  %v602_v51 = vld [vmem:[%s19283_s29 + $0x2e8] sm:$0xff] }
 0x42f   : > { %10316 = vmatpush1.bf16.msra.mxu0 %v16710_v41  ;;  %v16919_v41 = vcombine.high %v1745_v29, %v1753_v20  ;;  %v15768_v30 = vcombine.low %v594_v22, %v602_v51 }
 0x430   : > { %10317 = vmatprep.subr.bf16.mxu0 %v16951_v54  ;;  %v1729_v54 = vld [vmem:[%s19283_s29 + $0x2620] sm:$0xff] }
 0x431   : > { %10359 = vmatpush1.bf16.msra.mxu1 %v16966_v13  ;;  %v15769_v13 = vcombine.high %v594_v22, %v602_v51  ;;  %v1697_v22 = vld [vmem:[%s19283_s29 + $0x2520] sm:$0xff] }
 0x432   : > { %10387 = vmatprep.subr.bf16.mxu1 %v15801_v3  ;;  %v10034_v27 = vpop.f32.mrf.mxu0  ;;  %v18662_v3 = vld [vmem:[%s22070_s0 + $0x4] ss:$44 sps:$4 sm:$0xff]  }
 0x433   : > { %v20513_v8 = vadd.f32 %v10034_v27, %v20467_v23  ;;  %10318 = vmatpush2.bf16.msra.mxu0 %v16950_v61  ;;  %v1737_v23 = vld [vmem:[%s19283_s29 + $0x2660] sm:$0xff]  ;;  %v586_v61 = vld [vmem:[%s19283_s29 + $0x268] sm:$0xff] }
 0x434   : > { %10377 = vmatmul.mubr.bf16.vlgmr.msra.gmra.mxu1 %v18661_v33  ;;  %v20518_v25 = vpop.f32.mrf.mxu0  ;;  %10319 = vmatprep.subr.bf16.mxu0 %v16935_v19  ;;  %v16903_v19 = vcombine.high %v1729_v54, %v1737_v23  ;;  %v1713_v27 = vld [vmem:[%s19283_s29 + $0x25a0] sm:$0xff]  ;;  %v16902_v39 = vcombine.low %v1729_v54, %v1737_v23 }
 0x435   : > { %10388 = vmatpush1.bf16.msra.mxu1 %v15800_v31  ;;  %22141 = vst [vmem:[#allocation36_spill] sm:$0xff] %v20518_v25  ;;  %10419 = vmatprep.mubr.bf16.mxu1 %v18662_v3  ;;  %v1721_v33 = vld [vmem:[%s19283_s29 + $0x25e0] sm:$0xff]  ;;  %v562_v3 = vld [vmem:[%s19283_s29 + $0x1a8] sm:$0xff] }
 0x436   : > { %10389 = vmatprep.subr.bf16.mxu1 %v15785_v10  ;;  %v10038_v62 = vpop.f32.mrf.mxu0  ;;  %v15753_v10 = vcombine.high %v578_v45, %v586_v61  ;;  %v570_v25 = vld [vmem:[%s19283_s29 + $0x1e8] sm:$0xff]  ;;  %v16887_v29 = vcombine.high %v1713_v27, %v1721_v33  ;;  %v1705_v51 = vld [vmem:[%s19283_s29 + $0x2560] sm:$0xff] }
 0x437   : > { %v20528_v31 = vadd.f32 %v10038_v62, %v20480_v44  ;;  %10320 = vmatpush2.bf16.msra.mxu0 %v16934_v36  ;;  %v15752_v44 = vcombine.low %v578_v45, %v586_v61  ;;  %v15737_v20 = vcombine.high %v562_v3, %v570_v25  ;;  %v546_v36 = vld [vmem:[%s19283_s29 + $0x128] sm:$0xff]  ;;  %v16871_v54 = vcombine.high %v1697_v22, %v1705_v51  ;;  %v1681_v62 = vld [vmem:[%s19283_s29 + $0x24a0] sm:$0xff] }
 0x438   : > { %10321 = vmatprep.subr.bf16.mxu0 %v16919_v41  ;;  %v16886_v41 = vcombine.low %v1713_v27, %v1721_v33  ;;  %v1689_v45 = vld [vmem:[%s19283_s29 + $0x24e0] sm:$0xff]  ;;  %v530_v61 = vld [vmem:[%s19283_s29 + $0xa8] sm:$0xff] }
 0x439   : > { %10390 = vmatpush1.bf16.msra.mxu1 %v15784_v6  ;;  %v554_v6 = vld [vmem:[%s19283_s29 + $0x168] sm:$0xff]  ;;  %v1673_v27 = vld [vmem:[%s19283_s29 + $0x2460] sm:$0xff] }
 0x43a   : > { %10391 = vmatprep.subr.bf16.mxu1 %v15769_v13  ;;  %v15736_v13 = vcombine.low %v562_v3, %v570_v25  ;;  %v15721_v23 = vcombine.high %v546_v36, %v554_v6  ;;  %v514_v33 = vld [vmem:[%s19283_s29 + $0x28] sm:$0xff] }
 0x43b   : > { %10322 = vmatpush2.bf16.msra.mxu0 %v16918_v48  ;;  %v538_v48 = vld [vmem:[%s19283_s29 + $0xe8] sm:$0xff] }
 0x43c   : > { %10323 = vmatprep.subr.bf16.mxu0 %v16903_v19  ;;  %v16855_v19 = vcombine.high %v1681_v62, %v1689_v45  ;;  %v15705_v25 = vcombine.high %v530_v61, %v538_v48  ;;  %v522_v3 = vld [vmem:[%s19283_s29 + $0x68] sm:$0xff] }
 0x43d   : > { %10392 = vmatpush1.bf16.msra.mxu1 %v15768_v30  ;;  %v16870_v30 = vcombine.low %v1697_v22, %v1705_v51  ;;  %v15689_v22 = vcombine.high %v514_v33, %v522_v3  ;;  %v882_v51 = vld [vmem:[%s19283_s29 + $0xba8] sm:$0xff] }
 0x43e   : > { %10393 = vmatprep.subr.bf16.mxu1 %v15753_v10  ;;  %v1665_v10 = vld [vmem:[%s19283_s29 + $0x2420] sm:$0xff] }
 0x43f   : > { %10324 = vmatpush2.bf16.msra.mxu0 %v16902_v39  ;;  %v15720_v39 = vcombine.low %v546_v36, %v554_v6  ;;  %v890_v36 = vld [vmem:[%s19283_s29 + $0xbe8] sm:$0xff] }
 0x440   : > { %10325 = vmatprep.subr.bf16.mxu0 %v16887_v29  ;;  %v15704_v29 = vcombine.low %v530_v61, %v538_v48  ;;  %v754_v6 = vld [vmem:[%s19283_s29 + $0x7a8] sm:$0xff] }
 0x441   : > { %10394 = vmatpush1.bf16.msra.mxu1 %v15752_v44  ;;  %v16854_v44 = vcombine.low %v1681_v62, %v1689_v45  ;;  %v866_v45 = vld [vmem:[%s19283_s29 + $0xb28] sm:$0xff] }
 0x442   : > { %10395 = vmatprep.subr.bf16.mxu1 %v15737_v20  ;;  %v16839_v20 = vcombine.high %v1665_v10, %v1673_v27  ;;  %v874_v61 = vld [vmem:[%s19283_s29 + $0xb68] sm:$0xff] }
 0x443   : > { %10326 = vmatpush2.bf16.msra.mxu0 %v16886_v41  ;;  %v762_v41 = vld [vmem:[%s19283_s29 + $0x7e8] sm:$0xff] }
 0x444   : > { %10327 = vmatprep.subr.bf16.mxu0 %v16871_v54  ;;  %v15688_v54 = vcombine.low %v514_v33, %v522_v3  ;;  %v15929_v62 = vcombine.high %v754_v6, %v762_v41  ;;  %v738_v48 = vld [vmem:[%s19283_s29 + $0x728] sm:$0xff] }
 0x445   : > { %10396 = vmatpush1.bf16.msra.mxu1 %v15736_v13  ;;  %v16838_v13 = vcombine.low %v1665_v10, %v1673_v27  ;;  %v16041_v10 = vcombine.high %v866_v45, %v874_v61  ;;  %v20556_v27 = vpop.f32.mrf.mxu1  ;;  %v850_v3 = vld [vmem:[%s19283_s29 + $0xaa8] sm:$0xff] }
 0x446   : > { %10397 = vmatprep.subr.bf16.mxu1 %v15721_v23  ;;  %v16057_v23 = vcombine.high %v882_v51, %v890_v36  ;;  %22143 = vst [vmem:[#allocation38_spill] sm:$0xff] %v20556_v27  ;;  %v698_v27 = vld [vmem:[%s19283_s29 + $0x5e8] sm:$0xff] }
 0x447   : > { %10328 = vmatpush2.bf16.msra.mxu0 %v16870_v30  ;;  %v746_v30 = vld [vmem:[%s19283_s29 + $0x768] sm:$0xff] }
 0x448   : > { %10329 = vmatprep.subr.bf16.mxu0 %v16855_v19  ;;  %v20554_v19 = vpop.f32.mrf.mxu0  ;;  %v15913_v33 = vcombine.high %v738_v48, %v746_v30 }
 0x449   : > { %10398 = vmatpush1.bf16.msra.mxu1 %v15720_v39  ;;  %v16056_v39 = vcombine.low %v882_v51, %v890_v36  ;;  %22142 = vst [vmem:[#allocation37_spill] sm:$0xff] %v20554_v19  ;;  %v730_v51 = vld [vmem:[%s19283_s29 + $0x6e8] sm:$0xff] }
 0x44a   : > { %10399 = vmatprep.subr.bf16.mxu1 %v15705_v25  ;;  %v15928_v25 = vcombine.low %v754_v6, %v762_v41  ;;  %v16040_v6 = vcombine.low %v866_v45, %v874_v61  ;;  %v18664_v41 = vld [vmem:[%s22070_s0 + $0xc] ss:$44 sps:$4 sm:$0xff]  }
 0x44b   : > { %10330 = vmatpush2.bf16.msra.mxu0 %v16854_v44  ;;  %v858_v44 = vld [vmem:[%s19283_s29 + $0xae8] sm:$0xff] }
 0x44c   : > { %10331 = vmatprep.subr.bf16.mxu0 %v16839_v20  ;;  %v18663_v20 = vld [vmem:[%s22070_s0 + $0x20] ss:$44 sps:$4 sm:$0xff]  }
 0x44d   : > { %10400 = vmatpush1.bf16.msra.mxu1 %v15704_v29  ;;  %v834_v19 = vld [vmem:[%s19283_s29 + $0xa28] sm:$0xff] }
 0x44e   : > { %10401 = vmatprep.subr.bf16.mxu1 %v15689_v22  ;;  %v722_v22 = vld [vmem:[%s19283_s29 + $0x6a8] sm:$0xff] }
 0x44f   : > { %10332 = vmatpush2.bf16.msra.mxu0 %v16838_v13  ;;  %v842_v45 = vld [vmem:[%s19283_s29 + $0xa68] sm:$0xff] }
 0x450   : > { %10430 = vmatprep.subr.bf16.mxu0 %v16057_v23  ;;  %v16025_v23 = vcombine.high %v850_v3, %v858_v44 }
 0x451   : > { %10402 = vmatpush1.bf16.msra.mxu1 %v15688_v54  ;;  %v15912_v54 = vcombine.low %v738_v48, %v746_v30  ;;  %v16024_v48 = vcombine.low %v850_v3, %v858_v44  ;;  %v16008_v3 = vcombine.low %v834_v19, %v842_v45 }
 0x452   : > { %10403 = vmatprep.subr.bf16.mxu1 %v15929_v62  ;;  %v10120_v29 = vpop.f32.mrf.mxu0  ;;  %10334 = vmatmul.mubr.bf16.vlgmr.msra.gmra.mxu0 %v18663_v20 }
 0x453   : > { %10431 = vmatpush1.bf16.msra.mxu0 %v16056_v39  ;;  %10462 = vmatprep.mubr.bf16.mxu0 %v18664_v41  ;;  %v15897_v39 = vcombine.high %v722_v22, %v730_v51  ;;  %v714_v41 = vld [vmem:[%s19283_s29 + $0x668] sm:$0xff] }
 0x454   : > { %v10077_v36 = vpop.f32.mrf.mxu1  ;;  %10432 = vmatprep.subr.bf16.mxu0 %v16041_v10  ;;  %v20571_v20 = vpop.f32.mrf.mxu0  ;;  %v16009_v10 = vcombine.high %v834_v19, %v842_v45 }
 0x455   : > { %v10078_v13 = vadd.f32 %v10077_v36, %v20513_v8  ;;  %10404 = vmatpush2.bf16.msra.mxu1 %v15928_v25  ;;  %22145 = vst [vmem:[#allocation40_spill] sm:$0xff] %v20571_v20  ;;  %v15896_v25 = vcombine.low %v722_v22, %v730_v51  ;;  %v15881_v36 = vcombine.high %v706_v1, %v714_v41  ;;  %v818_v20 = vld [vmem:[%s19283_s29 + $0x9a8] sm:$0xff] }
 0x456   : > { %v20569_v62 = vpop.f32.mrf.mxu1  ;;  %10405 = vmatprep.subr.bf16.mxu1 %v15913_v33  ;;  %v10124_v33 = vpop.f32.mrf.mxu0  ;;  %v15880_v22 = vcombine.low %v706_v1, %v714_v41  ;;  %v786_v41 = vld [vmem:[%s19283_s29 + $0x8a8] sm:$0xff] }
 0x457   : > { %22144 = vst [vmem:[#allocation39_spill] sm:$0xff] %v20569_v62  ;;  %v10121_v61 = vadd.f32 %v10120_v29, %v10078_v13  ;;  %10433 = vmatpush1.bf16.msra.mxu0 %v16040_v6  ;;  %v826_v29 = vld [vmem:[%s19283_s29 + $0x9e8] sm:$0xff] }
 0x458   : > { %v10081_v8 = vpop.f32.mrf.mxu1  ;;  %10434 = vmatprep.subr.bf16.mxu0 %v16025_v23  ;;  %v690_v62 = vld [vmem:[%s19283_s29 + $0x5a8] sm:$0xff]  ;;  %v15993_v51 = vcombine.high %v818_v20, %v826_v29  ;;  %v15992_v19 = vcombine.low %v818_v20, %v826_v29 }
 0x459   : > { %v10082_v30 = vadd.f32 %v10081_v8, %v20528_v31  ;;  %10406 = vmatpush2.bf16.msra.mxu1 %v15912_v54  ;;  %v11167_v44 = vmax.f32 %v10121_v61, 0.0  ;;  %v15865_v6 = vcombine.high %v690_v62, %v698_v27  ;;  %v802_v54 = vld [vmem:[%s19283_s29 + $0x928] sm:$0xff]  ;;  %v15864_v45 = vcombine.low %v690_v62, %v698_v27 }
 0x45a   : > { %10407 = vmatprep.subr.bf16.mxu1 %v15897_v39  ;;  %v810_v23 = vld [vmem:[%s19283_s29 + $0x968] sm:$0xff] }
 0x45b   : > { %v10125_v13 = vadd.f32 %v10124_v33, %v10082_v30  ;;  %10435 = vmatpush1.bf16.msra.mxu0 %v16024_v48  ;;  %v674_v8 = vld [vmem:[%s19283_s29 + $0x528] sm:$0xff]  ;;  %v15977_v1 = vcombine.high %v802_v54, %v810_v23  ;;  %v15976_v33 = vcombine.low %v802_v54, %v810_v23 }
 0x45c   : > { %10436 = vmatprep.subr.bf16.mxu0 %v16009_v10  ;;  %v682_v30 = vld [vmem:[%s19283_s29 + $0x568] sm:$0xff] }
 0x45d   : > { %v11183_v31 = vmax.f32 %v10125_v13, 0.0  ;;  %10408 = vmatpush2.bf16.msra.mxu1 %v15896_v25  ;;  %v15849_v61 = vcombine.high %v674_v8, %v682_v30  ;;  %v794_v48 = vld [vmem:[%s19283_s29 + $0x8e8] sm:$0xff] }
 0x45e   : > { %10409 = vmatprep.subr.bf16.mxu1 %v15881_v36  ;;  %v658_v25 = vld [vmem:[%s19283_s29 + $0x4a8] sm:$0xff]  ;;  %v15848_v36 = vcombine.low %v674_v8, %v682_v30  ;;  %v15961_v20 = vcombine.high %v786_v41, %v794_v48 }
 0x45f   : > { %v20584_v39 = vpack.c.bf16 %v11183_v31, %v11167_v44  ;;  %10437 = vmatpush1.bf16.msra.mxu0 %v16008_v3  ;;  %v666_v10 = vld [vmem:[%s19283_s29 + $0x4e8] sm:$0xff]  ;;  %v15960_v44 = vcombine.low %v786_v41, %v794_v48 }
 0x460   : > { %10438 = vmatprep.subr.bf16.mxu0 %v15993_v51  ;;  %v15833_v27 = vcombine.high %v658_v25, %v666_v10  ;;  %v770_v62 = vld [vmem:[%s19283_s29 + $0x828] sm:$0xff]  ;;  %v15832_v31 = vcombine.low %v658_v25, %v666_v10 }
 0x461   : > { %22146 = vst [vmem:[#allocation41_spill] sm:$0xff] %v20584_v39  ;;  %10410 = vmatpush2.bf16.msra.mxu1 %v15880_v22  ;;  %v778_v29 = vld [vmem:[%s19283_s29 + $0x868] sm:$0xff] }
 0x462   : > { %10411 = vmatprep.subr.bf16.mxu1 %v15865_v6  ;;  %v642_v13 = vld [vmem:[%s19283_s29 + $0x428] sm:$0xff]  ;;  %v15945_v22 = vcombine.high %v770_v62, %v778_v29  ;;  %v15944_v30 = vcombine.low %v770_v62, %v778_v29 }
 0x463   : > { %10439 = vmatpush1.bf16.msra.mxu0 %v15992_v19  ;;  %v650_v3 = vld [vmem:[%s19283_s29 + $0x468] sm:$0xff] }
 0x464   : > { %10440 = vmatprep.subr.bf16.mxu0 %v15977_v1  ;;  %v15817_v51 = vcombine.high %v642_v13, %v650_v3  ;;  %v1010_v6 = vld [vmem:[%s19283_s29 + $0xfa8] sm:$0xff]  ;;  %v15816_v19 = vcombine.low %v642_v13, %v650_v3 }
 0x465   : > { %10412 = vmatpush2.bf16.msra.mxu1 %v15864_v45  ;;  %v1018_v54 = vld [vmem:[%s19283_s29 + $0xfe8] sm:$0xff] }
 0x466   : > { %10413 = vmatprep.subr.bf16.mxu1 %v15849_v61  ;;  %v1138_v23 = vld [vmem:[%s19283_s29 + $0x13a8] sm:$0xff]  ;;  %v16185_v45 = vcombine.high %v1010_v6, %v1018_v54  ;;  %v16184_v10 = vcombine.low %v1010_v6, %v1018_v54 }
 0x467   : > { %10441 = vmatpush1.bf16.msra.mxu0 %v15976_v33  ;;  %v1146_v8 = vld [vmem:[%s19283_s29 + $0x13e8] sm:$0xff] }
 0x468   : > { %10442 = vmatprep.subr.bf16.mxu0 %v15961_v20  ;;  %v16313_v1 = vcombine.high %v1138_v23, %v1146_v8  ;;  %v994_v61 = vld [vmem:[%s19283_s29 + $0xf28] sm:$0xff]  ;;  %v16312_v33 = vcombine.low %v1138_v23, %v1146_v8  ;;  %v18666_v23 = vld [vmem:[%s22070_s0 + $0x14] ss:$44 sps:$4 sm:$0xff]  }
 0x469   : > { %10414 = vmatpush2.bf16.msra.mxu1 %v15848_v36  ;;  %v1002_v41 = vld [vmem:[%s19283_s29 + $0xf68] sm:$0xff] }
 0x46a   : > { %10415 = vmatprep.subr.bf16.mxu1 %v15833_v27  ;;  %v1122_v48 = vld [vmem:[%s19283_s29 + $0x1328] sm:$0xff]  ;;  %v16169_v36 = vcombine.high %v994_v61, %v1002_v41 }
 0x46b   : > { %10443 = vmatpush1.bf16.msra.mxu0 %v15960_v44  ;;  %v1130_v25 = vld [vmem:[%s19283_s29 + $0x1368] sm:$0xff]  ;;  %v16168_v44 = vcombine.low %v994_v61, %v1002_v41 }
 0x46c   : > { %10444 = vmatprep.subr.bf16.mxu0 %v15945_v22  ;;  %v16297_v20 = vcombine.high %v1122_v48, %v1130_v25  ;;  %v978_v27 = vld [vmem:[%s19283_s29 + $0xea8] sm:$0xff] }
 0x46d   : > { %10416 = vmatpush2.bf16.msra.mxu1 %v15832_v31  ;;  %v986_v62 = vld [vmem:[%s19283_s29 + $0xee8] sm:$0xff]  ;;  %v16296_v31 = vcombine.low %v1122_v48, %v1130_v25 }
 0x46e   : > { %10417 = vmatprep.subr.bf16.mxu1 %v15817_v51  ;;  %v1106_v29 = vld [vmem:[%s19283_s29 + $0x12a8] sm:$0xff]  ;;  %v16153_v22 = vcombine.high %v978_v27, %v986_v62 }
 0x46f   : > { %10445 = vmatpush1.bf16.msra.mxu0 %v15944_v30  ;;  %v1114_v13 = vld [vmem:[%s19283_s29 + $0x12e8] sm:$0xff] }
 0x470   : > { %10446 = vmatprep.subr.bf16.mxu0 %v16185_v45  ;;  %v18665_v3 = vld [vmem:[%s22070_s0] ss:$44 sps:$4 sm:$0xff]   ;;  %v16281_v51 = vcombine.high %v1106_v29, %v1114_v13  ;;  %v16280_v45 = vcombine.low %v1106_v29, %v1114_v13 }
 0x471   : > { %10418 = vmatpush2.bf16.msra.mxu1 %v15816_v19  ;;  %v962_v6 = vld [vmem:[%s19283_s29 + $0xe28] sm:$0xff]  ;;  %v16152_v19 = vcombine.low %v978_v27, %v986_v62 }
 0x472   : > { %10473 = vmatprep.subr.bf16.mxu1 %v16313_v1  ;;  %v970_v54 = vld [vmem:[%s19283_s29 + $0xe68] sm:$0xff] }
 0x473   : > { %10447 = vmatpush2.bf16.msra.mxu0 %v16184_v10  ;;  %v1090_v8 = vld [vmem:[%s19283_s29 + $0x1228] sm:$0xff]  ;;  %v16137_v1 = vcombine.high %v962_v6, %v970_v54 }
 0x474   : > { %10420 = vmatmul.mubr.bf16.vlgmr.msra.gmra.mxu1 %v18665_v3  ;;  %10448 = vmatprep.subr.bf16.mxu0 %v16169_v36  ;;  %v1098_v30 = vld [vmem:[%s19283_s29 + $0x1268] sm:$0xff] }
 0x475   : > { %10474 = vmatpush1.bf16.msra.mxu1 %v16312_v33  ;;  %10505 = vmatprep.mubr.bf16.mxu1 %v18666_v23  ;;  %v16265_v61 = vcombine.high %v1090_v8, %v1098_v30  ;;  %v946_v41 = vld [vmem:[%s19283_s29 + $0xda8] sm:$0xff]  ;;  %v16136_v33 = vcombine.low %v962_v6, %v970_v54  ;;  %v16264_v36 = vcombine.low %v1090_v8, %v1098_v30 }
 0x476   : > { %10475 = vmatprep.subr.bf16.mxu1 %v16297_v20  ;;  %v954_v48 = vld [vmem:[%s19283_s29 + $0xde8] sm:$0xff] }
 0x477   : > { %10449 = vmatpush2.bf16.msra.mxu0 %v16168_v44  ;;  %v1074_v25 = vld [vmem:[%s19283_s29 + $0x11a8] sm:$0xff]  ;;  %v16121_v20 = vcombine.high %v946_v41, %v954_v48  ;;  %v16120_v44 = vcombine.low %v946_v41, %v954_v48 }
 0x478   : > { %10450 = vmatprep.subr.bf16.mxu0 %v16153_v22  ;;  %v1082_v10 = vld [vmem:[%s19283_s29 + $0x11e8] sm:$0xff] }
 0x479   : > { %10476 = vmatpush1.bf16.msra.mxu1 %v16296_v31  ;;  %v16249_v27 = vcombine.high %v1074_v25, %v1082_v10  ;;  %v930_v62 = vld [vmem:[%s19283_s29 + $0xd28] sm:$0xff]  ;;  %v16248_v31 = vcombine.low %v1074_v25, %v1082_v10 }
 0x47a   : > { %10477 = vmatprep.subr.bf16.mxu1 %v16281_v51  ;;  %v938_v29 = vld [vmem:[%s19283_s29 + $0xd68] sm:$0xff] }
 0x47b   : > { %10451 = vmatpush2.bf16.msra.mxu0 %v16152_v19  ;;  %v1058_v13 = vld [vmem:[%s19283_s29 + $0x1128] sm:$0xff]  ;;  %v16105_v22 = vcombine.high %v930_v62, %v938_v29  ;;  %v16104_v30 = vcombine.low %v930_v62, %v938_v29 }
 0x47c   : > { %10452 = vmatprep.subr.bf16.mxu0 %v16137_v1  ;;  %v1066_v3 = vld [vmem:[%s19283_s29 + $0x1168] sm:$0xff] }
 0x47d   : > { %10478 = vmatpush1.bf16.msra.mxu1 %v16280_v45  ;;  %v16233_v51 = vcombine.high %v1058_v13, %v1066_v3  ;;  %v914_v6 = vld [vmem:[%s19283_s29 + $0xca8] sm:$0xff]  ;;  %v16232_v19 = vcombine.low %v1058_v13, %v1066_v3 }
 0x47e   : > { %10479 = vmatprep.subr.bf16.mxu1 %v16265_v61  ;;  %v922_v54 = vld [vmem:[%s19283_s29 + $0xce8] sm:$0xff] }
 0x47f   : > { %10453 = vmatpush2.bf16.msra.mxu0 %v16136_v33  ;;  %v1042_v23 = vld [vmem:[%s19283_s29 + $0x10a8] sm:$0xff]  ;;  %v16089_v45 = vcombine.high %v914_v6, %v922_v54  ;;  %v16088_v10 = vcombine.low %v914_v6, %v922_v54 }
 0x480   : > { %10454 = vmatprep.subr.bf16.mxu0 %v16121_v20  ;;  %v1050_v8 = vld [vmem:[%s19283_s29 + $0x10e8] sm:$0xff] }
 0x481   : > { %10480 = vmatpush1.bf16.msra.mxu1 %v16264_v36  ;;  %v16217_v1 = vcombine.high %v1042_v23, %v1050_v8  ;;  %v898_v61 = vld [vmem:[%s19283_s29 + $0xc28] sm:$0xff]  ;;  %v16216_v33 = vcombine.low %v1042_v23, %v1050_v8 }
 0x482   : > { %10481 = vmatprep.subr.bf16.mxu1 %v16249_v27  ;;  %v906_v41 = vld [vmem:[%s19283_s29 + $0xc68] sm:$0xff] }
 0x483   : > { %10455 = vmatpush2.bf16.msra.mxu0 %v16120_v44  ;;  %v1026_v48 = vld [vmem:[%s19283_s29 + $0x1028] sm:$0xff]  ;;  %v16073_v36 = vcombine.high %v898_v61, %v906_v41  ;;  %v16072_v3 = vcombine.low %v898_v61, %v906_v41  ;;  %v20646_v41 = vpop.f32.mrf.mxu1 }
 0x484   : > { %10456 = vmatprep.subr.bf16.mxu0 %v16105_v22  ;;  %v1034_v25 = vld [vmem:[%s19283_s29 + $0x1068] sm:$0xff]  ;;  %22148 = vst [vmem:[#allocation43_spill] sm:$0xff] %v20646_v41 }
 0x485   : > { %10482 = vmatpush1.bf16.msra.mxu1 %v16248_v31  ;;  %v16201_v20 = vcombine.high %v1026_v48, %v1034_v25  ;;  %v1394_v27 = vld [vmem:[%s19283_s29 + $0x1ba8] sm:$0xff]  ;;  %v16200_v44 = vcombine.low %v1026_v48, %v1034_v25 }
 0x486   : > { %10483 = vmatprep.subr.bf16.mxu1 %v16233_v51  ;;  %v1402_v62 = vld [vmem:[%s19283_s29 + $0x1be8] sm:$0xff] }
 0x487   : > { %10457 = vmatpush2.bf16.msra.mxu0 %v16104_v30  ;;  %v1266_v29 = vld [vmem:[%s19283_s29 + $0x17a8] sm:$0xff]  ;;  %v16569_v22 = vcombine.high %v1394_v27, %v1402_v62 }
 0x488   : > { %10458 = vmatprep.subr.bf16.mxu0 %v16089_v45  ;;  %v1274_v13 = vld [vmem:[%s19283_s29 + $0x17e8] sm:$0xff]  ;;  %v20644_v45 = vpop.f32.mrf.mxu0 }
 0x489   : > { %10484 = vmatpush1.bf16.msra.mxu1 %v16232_v19  ;;  %v1918_v31 = vld [vmem:[%s19290_s28 + $0x8] sm:$0xff]  ;;  %v16441_v51 = vcombine.high %v1266_v29, %v1274_v13  ;;  %v16568_v19 = vcombine.low %v1394_v27, %v1402_v62  ;;  %22147 = vst [vmem:[#allocation42_spill] sm:$0xff] %v20644_v45 }
 0x48a   : > { %10485 = vmatprep.subr.bf16.mxu1 %v16217_v1  ;;  %v1378_v6 = vld [vmem:[%s19283_s29 + $0x1b28] sm:$0xff]  ;;  %v1956_v30 = vrot.slane %v1918_v31, %v19622_v26  ;;  %v16440_v1 = vcombine.low %v1266_v29, %v1274_v13 }
 0x48b   : > { %10459 = vmatpush2.bf16.msra.mxu0 %v16088_v10  ;;  %v1386_v54 = vld [vmem:[%s19283_s29 + $0x1b68] sm:$0xff] }
 0x48c   : > { %10460 = vmatprep.subr.bf16.mxu0 %v16073_v36  ;;  %v1250_v23 = vld [vmem:[%s19283_s29 + $0x1728] sm:$0xff]  ;;  %v16553_v61 = vcombine.high %v1378_v6, %v1386_v54  ;;  %v16552_v13 = vcombine.low %v1378_v6, %v1386_v54 }
 0x48d   : > { %10486 = vmatpush1.bf16.msra.mxu1 %v16216_v33  ;;  %v1258_v8 = vld [vmem:[%s19283_s29 + $0x1768] sm:$0xff] }
 0x48e   : > { %10487 = vmatprep.subr.bf16.mxu1 %v16201_v20  ;;  %v16425_v48 = vcombine.high %v1250_v23, %v1258_v8  ;;  %v1362_v25 = vld [vmem:[%s19283_s29 + $0x1aa8] sm:$0xff]  ;;  %v16424_v31 = vcombine.low %v1250_v23, %v1258_v8 }
 0x48f   : > { %10461 = vmatpush2.bf16.msra.mxu0 %v16072_v3  ;;  %v1370_v10 = vld [vmem:[%s19283_s29 + $0x1ae8] sm:$0xff] }
 0x490   : > { %10516 = vmatprep.subr.bf16.mxu0 %v16569_v22  ;;  %v18667_v36 = vld [vmem:[%s22070_s0 + $0x8] ss:$44 sps:$4 sm:$0xff]   ;;  %v16537_v22 = vcombine.high %v1362_v25, %v1370_v10  ;;  %v16536_v23 = vcombine.low %v1362_v25, %v1370_v10 }
 0x491   : > { %10488 = vmatpush1.bf16.msra.mxu1 %v16200_v44  ;;  %v1234_v20 = vld [vmem:[%s19283_s29 + $0x16a8] sm:$0xff] }
 0x492   : > { %10489 = vmatprep.subr.bf16.mxu1 %v16441_v51  ;;  %v10163_v33 = vpop.f32.mrf.mxu0  ;;  %10463 = vmatmul.mubr.bf16.vlgmr.msra.gmra.mxu0 %v18667_v36  ;;  %v1242_v27 = vld [vmem:[%s19283_s29 + $0x16e8] sm:$0xff] }
 0x493   : > { %v10164_v62 = vadd.f32 %v10163_v33, %v1956_v30  ;;  %10517 = vmatpush1.bf16.msra.mxu0 %v16568_v19  ;;  %v18668_v3 = vld [vmem:[%s22070_s0 + $0x1c] ss:$44 sps:$4 sm:$0xff]   ;;  %v16409_v19 = vcombine.high %v1234_v20, %v1242_v27 }
 0x494   : > { %v10206_v29 = vpop.f32.mrf.mxu1  ;;  %10548 = vmatprep.mubr.bf16.mxu0 %v18668_v3  ;;  %v20658_v44 = vpop.f32.mrf.mxu0  ;;  %10518 = vmatprep.subr.bf16.mxu0 %v16553_v61  ;;  %v1346_v36 = vld [vmem:[%s19283_s29 + $0x1a28] sm:$0xff]  ;;  %v16408_v61 = vcombine.low %v1234_v20, %v1242_v27 }
 0x495   : > { %10490 = vmatpush2.bf16.msra.mxu1 %v16440_v1  ;;  %22149 = vst [vmem:[#allocation44_spill] sm:$0xff] %v20658_v44  ;;  %v20660_v51 = vadd.f32 %v10206_v29, %v10164_v62  ;;  %v1354_v6 = vld [vmem:[%s19283_s29 + $0x1a68] sm:$0xff] }
 0x496   : > { %v20662_v33 = vpop.f32.mrf.mxu1  ;;  %10491 = vmatprep.subr.bf16.mxu1 %v16425_v48  ;;  %v10167_v54 = vpop.f32.mrf.mxu0  ;;  %v1218_v26 = vld [vmem:[%s19283_s29 + $0x1628] sm:$0xff]  ;;  %v16521_v62 = vcombine.high %v1346_v36, %v1354_v6 }
 0x497   : > { %22150 = vst [vmem:[#allocation45_spill] sm:$0xff] %v20662_v33  ;;  %v1226_v1 = vld [vmem:[%s19283_s29 + $0x1668] sm:$0xff]  ;;  %v10168_v3 = vadd.f32 %v10167_v54, %v1956_v30  ;;  %10519 = vmatpush1.bf16.msra.mxu0 %v16552_v13  ;;  %v16520_v30 = vcombine.low %v1346_v36, %v1354_v6 }
 0x498   : > { %v10210_v8 = vpop.f32.mrf.mxu1  ;;  %10520 = vmatprep.subr.bf16.mxu0 %v16537_v22  ;;  %v16393_v29 = vcombine.high %v1218_v26, %v1226_v1  ;;  %v1330_v39 = vld [vmem:[%s19283_s29 + $0x19a8] sm:$0xff]  ;;  %v16392_v25 = vcombine.low %v1218_v26, %v1226_v1 }
 0x499   : > { %10492 = vmatpush2.bf16.msra.mxu1 %v16424_v31  ;;  %v20668_v48 = vadd.f32 %v10210_v8, %v10168_v3  ;;  %v1338_v33 = vld [vmem:[%s19283_s29 + $0x19e8] sm:$0xff] }
 0x49a   : > { %10493 = vmatprep.subr.bf16.mxu1 %v16409_v19  ;;  %v1202_v44 = vld [vmem:[%s19283_s29 + $0x15a8] sm:$0xff]  ;;  %v16505_v10 = vcombine.high %v1330_v39, %v1338_v33  ;;  %v16504_v19 = vcombine.low %v1330_v39, %v1338_v33 }
 0x49b   : > { %v1210_v45 = vld [vmem:[%s19283_s29 + $0x15e8] sm:$0xff]  ;;  %10521 = vmatpush1.bf16.msra.mxu0 %v16536_v23 }
 0x49c   : > { %10522 = vmatprep.subr.bf16.mxu0 %v16521_v62  ;;  %v16377_v20 = vcombine.high %v1202_v44, %v1210_v45  ;;  %v1314_v27 = vld [vmem:[%s19283_s29 + $0x1928] sm:$0xff]  ;;  %v16376_v54 = vcombine.low %v1202_v44, %v1210_v45 }
 0x49d   : > { %10494 = vmatpush2.bf16.msra.mxu1 %v16408_v61  ;;  %v1322_v13 = vld [vmem:[%s19283_s29 + $0x1968] sm:$0xff] }
 0x49e   : > { %10495 = vmatprep.subr.bf16.mxu1 %v16393_v29  ;;  %v1186_v31 = vld [vmem:[%s19283_s29 + $0x1528] sm:$0xff]  ;;  %v16489_v36 = vcombine.high %v1314_v27, %v1322_v13  ;;  %v16488_v8 = vcombine.low %v1314_v27, %v1322_v13 }
 0x49f   : > { %v1194_v22 = vld [vmem:[%s19283_s29 + $0x1568] sm:$0xff]  ;;  %10523 = vmatpush1.bf16.msra.mxu0 %v16520_v30 }
 0x4a0   : > { %10524 = vmatprep.subr.bf16.mxu0 %v16505_v10  ;;  %v16361_v26 = vcombine.high %v1186_v31, %v1194_v22  ;;  %v1298_v6 = vld [vmem:[%s19283_s29 + $0x18a8] sm:$0xff]  ;;  %v16360_v61 = vcombine.low %v1186_v31, %v1194_v22 }
 0x4a1   : > { %10496 = vmatpush2.bf16.msra.mxu1 %v16392_v25  ;;  %v1306_v1 = vld [vmem:[%s19283_s29 + $0x18e8] sm:$0xff] }
 0x4a2   : > { %10497 = vmatprep.subr.bf16.mxu1 %v16377_v20  ;;  %v1170_v3 = vld [vmem:[%s19283_s29 + $0x14a8] sm:$0xff]  ;;  %v16473_v39 = vcombine.high %v1298_v6, %v1306_v1  ;;  %v16472_v30 = vcombine.low %v1298_v6, %v1306_v1 }
 0x4a3   : > { %v1178_v23 = vld [vmem:[%s19283_s29 + $0x14e8] sm:$0xff]  ;;  %10525 = vmatpush1.bf16.msra.mxu0 %v16504_v19 }
 0x4a4   : > { %10526 = vmatprep.subr.bf16.mxu0 %v16489_v36  ;;  %v16345_v45 = vcombine.high %v1170_v3, %v1178_v23  ;;  %v1282_v44 = vld [vmem:[%s19283_s29 + $0x1828] sm:$0xff]  ;;  %v16344_v25 = vcombine.low %v1170_v3, %v1178_v23 }
 0x4a5   : > { %10498 = vmatpush2.bf16.msra.mxu1 %v16376_v54  ;;  %v1290_v33 = vld [vmem:[%s19283_s29 + $0x1868] sm:$0xff] }
 0x4a6   : > { %10499 = vmatprep.subr.bf16.mxu1 %v16361_v26  ;;  %v1154_v62 = vld [vmem:[%s19283_s29 + $0x1428] sm:$0xff]  ;;  %v16457_v10 = vcombine.high %v1282_v44, %v1290_v33  ;;  %v16456_v19 = vcombine.low %v1282_v44, %v1290_v33 }
 0x4a7   : > { %v1162_v29 = vld [vmem:[%s19283_s29 + $0x1468] sm:$0xff]  ;;  %10527 = vmatpush1.bf16.msra.mxu0 %v16488_v8 }
 0x4a8   : > { %10528 = vmatprep.subr.bf16.mxu0 %v16473_v39  ;;  %v16329_v20 = vcombine.high %v1154_v62, %v1162_v29  ;;  %v1522_v27 = vld [vmem:[%s19283_s29 + $0x1fa8] sm:$0xff]  ;;  %v16328_v54 = vcombine.low %v1154_v62, %v1162_v29 }
 0x4a9   : > { %10500 = vmatpush2.bf16.msra.mxu1 %v16360_v61  ;;  %v1530_v13 = vld [vmem:[%s19283_s29 + $0x1fe8] sm:$0xff] }
 0x4aa   : > { %10501 = vmatprep.subr.bf16.mxu1 %v16345_v45  ;;  %v1650_v31 = vld [vmem:[%s19283_s29 + $0x23a8] sm:$0xff]  ;;  %v16697_v36 = vcombine.high %v1522_v27, %v1530_v13  ;;  %v16696_v8 = vcombine.low %v1522_v27, %v1530_v13 }
 0x4ab   : > { %v1658_v22 = vld [vmem:[%s19283_s29 + $0x23e8] sm:$0xff]  ;;  %10529 = vmatpush1.bf16.msra.mxu0 %v16472_v30  ;;  %v18669_v30 = vld [vmem:[%s22070_s0 + $0x10] ss:$44 sps:$4 sm:$0xff]  }
 0x4ac   : > { %10530 = vmatprep.subr.bf16.mxu0 %v16457_v10  ;;  %v16825_v26 = vcombine.high %v1650_v31, %v1658_v22  ;;  %v1506_v6 = vld [vmem:[%s19283_s29 + $0x1f28] sm:$0xff]  ;;  %v16824_v61 = vcombine.low %v1650_v31, %v1658_v22  ;;  %v18670_v22 = vld [vmem:[%s22070_s0 + $0x24] ss:$44 sps:$4 sm:$0xff]  }
 0x4ad   : > { %10502 = vmatpush2.bf16.msra.mxu1 %v16344_v25  ;;  %v1514_v1 = vld [vmem:[%s19283_s29 + $0x1f68] sm:$0xff] }
 0x4ae   : > { %10503 = vmatprep.subr.bf16.mxu1 %v16329_v20  ;;  %v1634_v3 = vld [vmem:[%s19283_s29 + $0x2328] sm:$0xff]  ;;  %v16681_v39 = vcombine.high %v1506_v6, %v1514_v1  ;;  %v16680_v25 = vcombine.low %v1506_v6, %v1514_v1 }
 0x4af   : > { %v1642_v23 = vld [vmem:[%s19283_s29 + $0x2368] sm:$0xff]  ;;  %10531 = vmatpush1.bf16.msra.mxu0 %v16456_v19 }
 0x4b0   : > { %10532 = vmatprep.subr.bf16.mxu0 %v16697_v36  ;;  %v16809_v45 = vcombine.high %v1634_v3, %v1642_v23  ;;  %v1490_v44 = vld [vmem:[%s19283_s29 + $0x1ea8] sm:$0xff]  ;;  %v16808_v10 = vcombine.low %v1634_v3, %v1642_v23 }
 0x4b1   : > { %10504 = vmatpush2.bf16.msra.mxu1 %v16328_v54  ;;  %v1498_v33 = vld [vmem:[%s19283_s29 + $0x1ee8] sm:$0xff] }
 0x4b2   : > { %10559 = vmatprep.subr.bf16.mxu1 %v16825_v26  ;;  %v1618_v62 = vld [vmem:[%s19283_s29 + $0x22a8] sm:$0xff]  ;;  %v16665_v20 = vcombine.high %v1490_v44, %v1498_v33  ;;  %v16664_v36 = vcombine.low %v1490_v44, %v1498_v33 }
 0x4b3   : > { %v1626_v29 = vld [vmem:[%s19283_s29 + $0x22e8] sm:$0xff]  ;;  %10533 = vmatpush2.bf16.msra.mxu0 %v16696_v8 }
 0x4b4   : > { %10506 = vmatmul.mubr.bf16.vlgmr.msra.gmra.mxu1 %v18669_v30  ;;  %10534 = vmatprep.subr.bf16.mxu0 %v16681_v39  ;;  %v16793_v27 = vcombine.high %v1618_v62, %v1626_v29  ;;  %v1474_v13 = vld [vmem:[%s19283_s29 + $0x1e28] sm:$0xff]  ;;  %v16792_v26 = vcombine.low %v1618_v62, %v1626_v29 }
 0x4b5   : > { %10560 = vmatpush1.bf16.msra.mxu1 %v16824_v61  ;;  %v1482_v31 = vld [vmem:[%s19283_s29 + $0x1e68] sm:$0xff]  ;;  %10591 = vmatprep.mubr.bf16.mxu1 %v18670_v22 }
 0x4b6   : > { %10561 = vmatprep.subr.bf16.mxu1 %v16809_v45  ;;  %v1602_v19 = vld [vmem:[%s19283_s29 + $0x2228] sm:$0xff]  ;;  %v16649_v6 = vcombine.high %v1474_v13, %v1482_v31  ;;  %v16648_v39 = vcombine.low %v1474_v13, %v1482_v31 }
 0x4b7   : > { %v1610_v54 = vld [vmem:[%s19283_s29 + $0x2268] sm:$0xff]  ;;  %10535 = vmatpush2.bf16.msra.mxu0 %v16680_v25 }
 0x4b8   : > { %10536 = vmatprep.subr.bf16.mxu0 %v16665_v20  ;;  %v16777_v1 = vcombine.high %v1602_v19, %v1610_v54  ;;  %v1458_v3 = vld [vmem:[%s19283_s29 + $0x1da8] sm:$0xff]  ;;  %v16776_v45 = vcombine.low %v1602_v19, %v1610_v54 }
 0x4b9   : > { %10562 = vmatpush1.bf16.msra.mxu1 %v16808_v10  ;;  %v1466_v23 = vld [vmem:[%s19283_s29 + $0x1de8] sm:$0xff] }
 0x4ba   : > { %10563 = vmatprep.subr.bf16.mxu1 %v16793_v27  ;;  %v1586_v8 = vld [vmem:[%s19283_s29 + $0x21a8] sm:$0xff]  ;;  %v16633_v44 = vcombine.high %v1458_v3, %v1466_v23  ;;  %v16632_v10 = vcombine.low %v1458_v3, %v1466_v23 }
 0x4bb   : > { %v1594_v61 = vld [vmem:[%s19283_s29 + $0x21e8] sm:$0xff]  ;;  %10537 = vmatpush2.bf16.msra.mxu0 %v16664_v36 }
 0x4bc   : > { %10538 = vmatprep.subr.bf16.mxu0 %v16649_v6  ;;  %v16761_v33 = vcombine.high %v1586_v8, %v1594_v61  ;;  %v1442_v62 = vld [vmem:[%s19283_s29 + $0x1d28] sm:$0xff]  ;;  %v16760_v20 = vcombine.low %v1586_v8, %v1594_v61 }
 0x4bd   : > { %10564 = vmatpush1.bf16.msra.mxu1 %v16792_v26  ;;  %v1450_v29 = vld [vmem:[%s19283_s29 + $0x1d68] sm:$0xff] }
 0x4be   : > { %10565 = vmatprep.subr.bf16.mxu1 %v16777_v1  ;;  %v1570_v30 = vld [vmem:[%s19283_s29 + $0x2128] sm:$0xff]  ;;  %v16617_v27 = vcombine.high %v1442_v62, %v1450_v29  ;;  %v16616_v36 = vcombine.low %v1442_v62, %v1450_v29 }
 0x4bf   : > { %v1578_v25 = vld [vmem:[%s19283_s29 + $0x2168] sm:$0xff]  ;;  %10539 = vmatpush2.bf16.msra.mxu0 %v16648_v39 }
 0x4c0   : > { %10540 = vmatprep.subr.bf16.mxu0 %v16633_v44  ;;  %v16745_v13 = vcombine.high %v1570_v30, %v1578_v25  ;;  %v1426_v31 = vld [vmem:[%s19283_s29 + $0x1ca8] sm:$0xff]  ;;  %v16744_v26 = vcombine.low %v1570_v30, %v1578_v25 }
 0x4c1   : > { %10566 = vmatpush1.bf16.msra.mxu1 %v16776_v45  ;;  %v1434_v22 = vld [vmem:[%s19283_s29 + $0x1ce8] sm:$0xff] }
 0x4c2   : > { %10567 = vmatprep.subr.bf16.mxu1 %v16761_v33  ;;  %v1554_v19 = vld [vmem:[%s19283_s29 + $0x20a8] sm:$0xff]  ;;  %v16601_v6 = vcombine.high %v1426_v31, %v1434_v22  ;;  %v16600_v39 = vcombine.low %v1426_v31, %v1434_v22 }
 0x4c3   : > { %v1562_v54 = vld [vmem:[%s19283_s29 + $0x20e8] sm:$0xff]  ;;  %10541 = vmatpush2.bf16.msra.mxu0 %v16632_v10 }
 0x4c4   : > { %10542 = vmatprep.subr.bf16.mxu0 %v16617_v27  ;;  %v16729_v1 = vcombine.high %v1554_v19, %v1562_v54  ;;  %v1410_v3 = vld [vmem:[%s19283_s29 + $0x1c28] sm:$0xff]  ;;  %v16728_v45 = vcombine.low %v1554_v19, %v1562_v54 }
 0x4c5   : > { %10568 = vmatpush1.bf16.msra.mxu1 %v16760_v20  ;;  %v1418_v23 = vld [vmem:[%s19283_s29 + $0x1c68] sm:$0xff] }
 0x4c6   : > { %10569 = vmatprep.subr.bf16.mxu1 %v16745_v13  ;;  %v1538_v8 = vld [vmem:[%s19283_s29 + $0x2028] sm:$0xff]  ;;  %v16585_v44 = vcombine.high %v1410_v3, %v1418_v23  ;;  %v16584_v10 = vcombine.low %v1410_v3, %v1418_v23  ;;  %v20734_v3 = vpop.f32.mrf.mxu1 }
 0x4c7   : > { %v1546_v61 = vld [vmem:[%s19283_s29 + $0x2068] sm:$0xff]  ;;  %10543 = vmatpush2.bf16.msra.mxu0 %v16616_v36  ;;  %22152 = vst [vmem:[#allocation47_spill] sm:$0xff] %v20734_v3 }
 0x4c8   : > { %10544 = vmatprep.subr.bf16.mxu0 %v16601_v6  ;;  %v16713_v33 = vcombine.high %v1538_v8, %v1546_v61  ;;  %v1906_v62 = vld [vmem:[%s19283_s29 + $0x2ba8] sm:$0xff]  ;;  %v16712_v20 = vcombine.low %v1538_v8, %v1546_v61 }
 0x4c9   : > { %10570 = vmatpush1.bf16.msra.mxu1 %v16744_v26  ;;  %v1914_v29 = vld [vmem:[%s19283_s29 + $0x2be8] sm:$0xff]  ;;  %v20732_v26 = vpop.f32.mrf.mxu0 }
 0x4ca   : > { %10571 = vmatprep.subr.bf16.mxu1 %v16729_v1  ;;  %v1778_v30 = vld [vmem:[%s19283_s29 + $0x27a8] sm:$0xff]  ;;  %v17081_v27 = vcombine.high %v1906_v62, %v1914_v29  ;;  %v17080_v36 = vcombine.low %v1906_v62, %v1914_v29  ;;  %22151 = vst [vmem:[#allocation46_spill] sm:$0xff] %v20732_v26 }
 0x4cb   : > { %v1786_v25 = vld [vmem:[%s19283_s29 + $0x27e8] sm:$0xff]  ;;  %10545 = vmatpush2.bf16.msra.mxu0 %v16600_v39 }
 0x4cc   : > { %10546 = vmatprep.subr.bf16.mxu0 %v16585_v44  ;;  %v16953_v13 = vcombine.high %v1778_v30, %v1786_v25  ;;  %v1890_v31 = vld [vmem:[%s19283_s29 + $0x2b28] sm:$0xff]  ;;  %v16952_v6 = vcombine.low %v1778_v30, %v1786_v25 }
 0x4cd   : > { %10572 = vmatpush1.bf16.msra.mxu1 %v16728_v45  ;;  %v1898_v22 = vld [vmem:[%s19283_s29 + $0x2b68] sm:$0xff]  ;;  %v18671_v45 = vld [vmem:[%s22070_s0 + $0x18] ss:$44 sps:$4 sm:$0xff]  }
 0x4ce   : > { %10573 = vmatprep.subr.bf16.mxu1 %v16713_v33  ;;  %v1762_v19 = vld [vmem:[%s19283_s29 + $0x2728] sm:$0xff]  ;;  %v17065_v1 = vcombine.high %v1890_v31, %v1898_v22  ;;  %v17064_v30 = vcombine.low %v1890_v31, %v1898_v22 }
 0x4cf   : > { %v1770_v54 = vld [vmem:[%s19283_s29 + $0x2768] sm:$0xff]  ;;  %10547 = vmatpush2.bf16.msra.mxu0 %v16584_v10 }
 0x4d0   : > { %10602 = vmatprep.subr.bf16.mxu0 %v17081_v27  ;;  %v16937_v23 = vcombine.high %v1762_v19, %v1770_v54  ;;  %v1874_v8 = vld [vmem:[%s19283_s29 + $0x2aa8] sm:$0xff]  ;;  %v16936_v10 = vcombine.low %v1762_v19, %v1770_v54 }
 0x4d1   : > { %10574 = vmatpush1.bf16.msra.mxu1 %v16712_v20  ;;  %v1882_v61 = vld [vmem:[%s19283_s29 + $0x2ae8] sm:$0xff] }
 0x4d2   : > { %10575 = vmatprep.subr.bf16.mxu1 %v16953_v13  ;;  %v10249_v39 = vpop.f32.mrf.mxu0  ;;  %10549 = vmatmul.mubr.bf16.vlgmr.msra.gmra.mxu0 %v18671_v45  ;;  %v1746_v44 = vld [vmem:[%s19283_s29 + $0x26a8] sm:$0xff]  ;;  %v17049_v20 = vcombine.high %v1874_v8, %v1882_v61  ;;  %v17048_v19 = vcombine.low %v1874_v8, %v1882_v61 }
 0x4d3   : > { %v1754_v33 = vld [vmem:[%s19283_s29 + $0x26e8] sm:$0xff]  ;;  %v10250_v62 = vadd.f32 %v10249_v39, %v20660_v51  ;;  %10603 = vmatpush1.bf16.msra.mxu0 %v17080_v36  ;;  %10634 = vmatprep.mubr.bf16.mxu0 %v22140_v60 }
 0x4d4   : > { %v10292_v29 = vpop.f32.mrf.mxu1  ;;  %v20745_v25 = vpop.f32.mrf.mxu0  ;;  %10604 = vmatprep.subr.bf16.mxu0 %v17065_v1  ;;  %v16921_v45 = vcombine.high %v1746_v44, %v1754_v33  ;;  %v1858_v51 = vld [vmem:[%s19283_s29 + $0x2a28] sm:$0xff]  ;;  %v16920_v1 = vcombine.low %v1746_v44, %v1754_v33 }
 0x4d5   : > { %10576 = vmatpush2.bf16.msra.mxu1 %v16952_v6  ;;  %22153 = vst [vmem:[#allocation48_spill] sm:$0xff] %v20745_v25  ;;  %v20747_v27 = vadd.f32 %v10292_v29, %v10250_v62  ;;  %v1866_v39 = vld [vmem:[%s19283_s29 + $0x2a68] sm:$0xff] }
 0x4d6   : > { %v20749_v13 = vpop.f32.mrf.mxu1  ;;  %10577 = vmatprep.subr.bf16.mxu1 %v16937_v23  ;;  %v10253_v36 = vpop.f32.mrf.mxu0  ;;  %v1730_v31 = vld [vmem:[%s19283_s29 + $0x2628] sm:$0xff]  ;;  %v17033_v62 = vcombine.high %v1858_v51, %v1866_v39 }
 0x4d7   : > { %22154 = vst [vmem:[#allocation49_spill] sm:$0xff] %v20749_v13  ;;  %v1738_v22 = vld [vmem:[%s19283_s29 + $0x2668] sm:$0xff]  ;;  %v10254_v6 = vadd.f32 %v10253_v36, %v20668_v48  ;;  %10605 = vmatpush1.bf16.msra.mxu0 %v17064_v30  ;;  %v17032_v48 = vcombine.low %v1858_v51, %v1866_v39 }
 0x4d8   : > { %v10296_v54 = vpop.f32.mrf.mxu1  ;;  %10606 = vmatprep.subr.bf16.mxu0 %v17049_v20  ;;  %v16905_v29 = vcombine.high %v1730_v31, %v1738_v22  ;;  %v1842_v13 = vld [vmem:[%s19283_s29 + $0x29a8] sm:$0xff]  ;;  %v16904_v8 = vcombine.low %v1730_v31, %v1738_v22 }
 0x4d9   : > { %10578 = vmatpush2.bf16.msra.mxu1 %v16936_v10  ;;  %v20756_v23 = vadd.f32 %v10296_v54, %v10254_v6  ;;  %v1850_v25 = vld [vmem:[%s19283_s29 + $0x29e8] sm:$0xff] }
 0x4da   : > { %10579 = vmatprep.subr.bf16.mxu1 %v16921_v45  ;;  %v1714_v3 = vld [vmem:[%s19283_s29 + $0x25a8] sm:$0xff]  ;;  %v17017_v61 = vcombine.high %v1842_v13, %v1850_v25  ;;  %v17016_v45 = vcombine.low %v1842_v13, %v1850_v25 }
 0x4db   : > { %v1722_v26 = vld [vmem:[%s19283_s29 + $0x25e8] sm:$0xff]  ;;  %10607 = vmatpush1.bf16.msra.mxu0 %v17048_v19 }
 0x4dc   : > { %10608 = vmatprep.subr.bf16.mxu0 %v17033_v62  ;;  %v16889_v44 = vcombine.high %v1714_v3, %v1722_v26  ;;  %v1826_v33 = vld [vmem:[%s19283_s29 + $0x2928] sm:$0xff]  ;;  %v16888_v36 = vcombine.low %v1714_v3, %v1722_v26 }
 0x4dd   : > { %10580 = vmatpush2.bf16.msra.mxu1 %v16920_v1  ;;  %v1834_v30 = vld [vmem:[%s19283_s29 + $0x2968] sm:$0xff] }
 0x4de   : > { %10581 = vmatprep.subr.bf16.mxu1 %v16905_v29  ;;  %v1698_v10 = vld [vmem:[%s19283_s29 + $0x2528] sm:$0xff]  ;;  %v17001_v51 = vcombine.high %v1826_v33, %v1834_v30  ;;  %v17000_v54 = vcombine.low %v1826_v33, %v1834_v30  ;;  %v627_v33 = vld [vmem:[%s19283_s29 + $0x3b0] sm:$0xff] }
 0x4df   : > { %v1706_v20 = vld [vmem:[%s19283_s29 + $0x2568] sm:$0xff]  ;;  %10609 = vmatpush1.bf16.msra.mxu0 %v17032_v48  ;;  %v635_v30 = vld [vmem:[%s19283_s29 + $0x3f0] sm:$0xff] }
 0x4e0   : > { %10610 = vmatprep.subr.bf16.mxu0 %v17017_v61  ;;  %v16873_v39 = vcombine.high %v1698_v10, %v1706_v20  ;;  %v1810_v31 = vld [vmem:[%s19283_s29 + $0x28a8] sm:$0xff]  ;;  %v16872_v1 = vcombine.low %v1698_v10, %v1706_v20  ;;  %v883_v10 = vld [vmem:[%s19283_s29 + $0xbb0] sm:$0xff] }
 0x4e1   : > { %10582 = vmatpush2.bf16.msra.mxu1 %v16904_v8  ;;  %v1818_v22 = vld [vmem:[%s19283_s29 + $0x28e8] sm:$0xff]  ;;  %v891_v20 = vld [vmem:[%s19283_s29 + $0xbf0] sm:$0xff] }
 0x4e2   : > { %10583 = vmatprep.subr.bf16.mxu1 %v16889_v44  ;;  %v1682_v6 = vld [vmem:[%s19283_s29 + $0x24a8] sm:$0xff]  ;;  %v16985_v25 = vcombine.high %v1810_v31, %v1818_v22  ;;  %v16984_v48 = vcombine.low %v1810_v31, %v1818_v22  ;;  %v611_v31 = vld [vmem:[%s19283_s29 + $0x330] sm:$0xff] }
 0x4e3   : > { %v1690_v19 = vld [vmem:[%s19283_s29 + $0x24e8] sm:$0xff]  ;;  %10611 = vmatpush1.bf16.msra.mxu0 %v17016_v45  ;;  %v619_v22 = vld [vmem:[%s19283_s29 + $0x370] sm:$0xff] }
 0x4e4   : > { %10612 = vmatprep.subr.bf16.mxu0 %v17001_v51  ;;  %v16857_v26 = vcombine.high %v1682_v6, %v1690_v19  ;;  %v1794_v3 = vld [vmem:[%s19283_s29 + $0x2828] sm:$0xff]  ;;  %v16856_v8 = vcombine.low %v1682_v6, %v1690_v19  ;;  %v15803_v51 = vcombine.high %v627_v33, %v635_v30  ;;  %v867_v6 = vld [vmem:[%s19283_s29 + $0xb30] sm:$0xff] }
 0x4e5   : > { %10584 = vmatpush2.bf16.msra.mxu1 %v16888_v36  ;;  %v1802_v13 = vld [vmem:[%s19283_s29 + $0x2868] sm:$0xff]  ;;  %v875_v19 = vld [vmem:[%s19283_s29 + $0xb70] sm:$0xff] }
 0x4e6   : > { %10585 = vmatprep.subr.bf16.mxu1 %v16873_v39  ;;  %v1666_v62 = vld [vmem:[%s19283_s29 + $0x2428] sm:$0xff]  ;;  %v16969_v61 = vcombine.high %v1794_v3, %v1802_v13  ;;  %v16968_v45 = vcombine.low %v1794_v3, %v1802_v13  ;;  %v16059_v39 = vcombine.high %v883_v10, %v891_v20  ;;  %v595_v3 = vld [vmem:[%s19283_s29 + $0x2b0] sm:$0xff] }
 0x4e7   : > { %v1674_v29 = vld [vmem:[%s19283_s29 + $0x2468] sm:$0xff]  ;;  %10613 = vmatpush1.bf16.msra.mxu0 %v17000_v54  ;;  %v15802_v54 = vcombine.low %v627_v33, %v635_v30  ;;  %v603_v13 = vld [vmem:[%s19283_s29 + $0x2f0] sm:$0xff] }
 0x4e8   : > { %10614 = vmatprep.subr.bf16.mxu0 %v16985_v25  ;;  %v16841_v44 = vcombine.high %v1666_v62, %v1674_v29  ;;  %v16840_v36 = vcombine.low %v1666_v62, %v1674_v29  ;;  %v15787_v25 = vcombine.high %v611_v31, %v619_v22  ;;  %v18672_v62 = vld [vmem:[%s22070_s0 + $0x28] ss:$44 sps:$4 sm:$0xff]   ;;  %v15771_v33 = vcombine.high %v595_v3, %v603_v13 }
 0x4e9   : > { %10586 = vmatpush2.bf16.msra.mxu1 %v16872_v1  ;;  %v16058_v1 = vcombine.low %v883_v10, %v891_v20  ;;  %v851_v29 = vld [vmem:[%s19283_s29 + $0xab0] sm:$0xff] }
 0x4ea   : > { %10587 = vmatprep.subr.bf16.mxu1 %v16857_v26  ;;  %v16043_v26 = vcombine.high %v867_v6, %v875_v19  ;;  %v579_v10 = vld [vmem:[%s19283_s29 + $0x230] sm:$0xff] }
 0x4eb   : > { %10615 = vmatpush1.bf16.msra.mxu0 %v16984_v48  ;;  %v859_v48 = vld [vmem:[%s19283_s29 + $0xaf0] sm:$0xff] }
 0x4ec   : > { %10616 = vmatprep.subr.bf16.mxu0 %v16969_v61  ;;  %v15786_v61 = vcombine.low %v611_v31, %v619_v22  ;;  %v16027_v30 = vcombine.high %v851_v29, %v859_v48  ;;  %v587_v20 = vld [vmem:[%s19283_s29 + $0x270] sm:$0xff]  ;;  %v15770_v31 = vcombine.low %v595_v3, %v603_v13  ;;  %v16026_v22 = vcombine.low %v851_v29, %v859_v48 }
 0x4ed   : > { %10588 = vmatpush2.bf16.msra.mxu1 %v16856_v8  ;;  %v18673_v8 = vld [vmem:[%s22070_s0 + $0x20] ss:$44 sps:$4 sm:$0xff]   ;;  %v547_v29 = vld [vmem:[%s19283_s29 + $0x130] sm:$0xff] }
 0x4ee   : > { %10589 = vmatprep.subr.bf16.mxu1 %v16841_v44  ;;  %v16042_v44 = vcombine.low %v867_v6, %v875_v19  ;;  %v15755_v6 = vcombine.high %v579_v10, %v587_v20  ;;  %v555_v48 = vld [vmem:[%s19283_s29 + $0x170] sm:$0xff] }
 0x4ef   : > { %10617 = vmatpush1.bf16.msra.mxu0 %v16968_v45  ;;  %v18674_v45 = vld [vmem:[%s22070_s0 + $0x4] ss:$44 sps:$4 sm:$0xff]  }
 0x4f0   : > { %10645 = vmatprep.subr.bf16.mxu0 %v15803_v51  ;;  %v843_v51 = vld [vmem:[%s19283_s29 + $0xa70] sm:$0xff] }
 0x4f1   : > { %10590 = vmatpush2.bf16.msra.mxu1 %v16840_v36  ;;  %v835_v36 = vld [vmem:[%s19283_s29 + $0xa30] sm:$0xff] }
 0x4f2   : > { %10688 = vmatprep.subr.bf16.mxu1 %v16059_v39  ;;  %10635 = vmatmul.mubr.bf16.vlgmr.msra.gmra.mxu0 %v18672_v62  ;;  %v18675_v39 = vld [vmem:[%s22070_s0 + $0xc] ss:$44 sps:$4 sm:$0xff]   ;;  %v16011_v19 = vcombine.high %v835_v36, %v843_v51  ;;  %v15754_v62 = vcombine.low %v579_v10, %v587_v20  ;;  %v15723_v10 = vcombine.high %v547_v29, %v555_v48 }
 0x4f3   : > { %10646 = vmatpush1.bf16.msra.mxu0 %v15802_v54  ;;  %10677 = vmatprep.mubr.bf16.mxu0 %v18674_v45  ;;  %v563_v54 = vld [vmem:[%s19283_s29 + $0x1b0] sm:$0xff] }
 0x4f4   : > { %10592 = vmatmul.mubr.bf16.vlgmr.msra.gmra.mxu1 %v18673_v8  ;;  %10647 = vmatprep.subr.bf16.mxu0 %v15787_v25  ;;  %v819_v25 = vld [vmem:[%s19283_s29 + $0x9b0] sm:$0xff]  ;;  %v16010_v8 = vcombine.low %v835_v36, %v843_v51 }
 0x4f5   : > { %10689 = vmatpush1.bf16.msra.mxu1 %v16058_v1  ;;  %10720 = vmatprep.mubr.bf16.mxu1 %v18675_v39  ;;  %v571_v1 = vld [vmem:[%s19283_s29 + $0x1f0] sm:$0xff] }
 0x4f6   : > { %10690 = vmatprep.subr.bf16.mxu1 %v16043_v26  ;;  %v827_v26 = vld [vmem:[%s19283_s29 + $0x9f0] sm:$0xff]  ;;  %v15739_v3 = vcombine.high %v563_v54, %v571_v1 }
 0x4f7   : > { %10648 = vmatpush1.bf16.msra.mxu0 %v15786_v61  ;;  %v15995_v13 = vcombine.high %v819_v25, %v827_v26  ;;  %v803_v61 = vld [vmem:[%s19283_s29 + $0x930] sm:$0xff] }
 0x4f8   : > { %10649 = vmatprep.subr.bf16.mxu0 %v15771_v33  ;;  %v15738_v33 = vcombine.low %v563_v54, %v571_v1  ;;  %v531_v45 = vld [vmem:[%s19283_s29 + $0xb0] sm:$0xff] }
 0x4f9   : > { %10691 = vmatpush1.bf16.msra.mxu1 %v16042_v44  ;;  %v811_v44 = vld [vmem:[%s19283_s29 + $0x970] sm:$0xff] }
 0x4fa   : > { %10692 = vmatprep.subr.bf16.mxu1 %v16027_v30  ;;  %v15994_v30 = vcombine.low %v819_v25, %v827_v26  ;;  %v15979_v20 = vcombine.high %v803_v61, %v811_v44  ;;  %v539_v36 = vld [vmem:[%s19283_s29 + $0xf0] sm:$0xff] }
 0x4fb   : > { %10650 = vmatpush1.bf16.msra.mxu0 %v15770_v31  ;;  %v787_v51 = vld [vmem:[%s19283_s29 + $0x8b0] sm:$0xff]  ;;  %v15722_v31 = vcombine.low %v547_v29, %v555_v48 }
 0x4fc   : > { %10651 = vmatprep.subr.bf16.mxu0 %v15755_v6  ;;  %v795_v39 = vld [vmem:[%s19283_s29 + $0x8f0] sm:$0xff]  ;;  %v15707_v6 = vcombine.high %v531_v45, %v539_v36 }
 0x4fd   : > { %10693 = vmatpush1.bf16.msra.mxu1 %v16026_v22  ;;  %v15978_v22 = vcombine.low %v803_v61, %v811_v44  ;;  %v515_v54 = vld [vmem:[%s19283_s29 + $0x30] sm:$0xff] }
 0x4fe   : > { %10694 = vmatprep.subr.bf16.mxu1 %v16011_v19  ;;  %v15963_v19 = vcombine.high %v787_v51, %v795_v39  ;;  %v523_v1 = vld [vmem:[%s19283_s29 + $0x70] sm:$0xff] }
 0x4ff   : > { %10652 = vmatpush1.bf16.msra.mxu0 %v15754_v62  ;;  %v771_v25 = vld [vmem:[%s19283_s29 + $0x830] sm:$0xff]  ;;  %v15706_v62 = vcombine.low %v531_v45, %v539_v36 }
 0x500   : > { %10653 = vmatprep.subr.bf16.mxu0 %v15739_v3  ;;  %v779_v26 = vld [vmem:[%s19283_s29 + $0x870] sm:$0xff]  ;;  %v15691_v3 = vcombine.high %v515_v54, %v523_v1 }
 0x501   : > { %10695 = vmatpush1.bf16.msra.mxu1 %v16010_v8  ;;  %v15962_v8 = vcombine.low %v787_v51, %v795_v39  ;;  %v755_v29 = vld [vmem:[%s19283_s29 + $0x7b0] sm:$0xff]  ;;  %v20824_v51 = vpop.f32.mrf.mxu1 }
 0x502   : > { %10696 = vmatprep.subr.bf16.mxu1 %v15995_v13  ;;  %v15947_v13 = vcombine.high %v771_v25, %v779_v26  ;;  %v763_v48 = vld [vmem:[%s19283_s29 + $0x7f0] sm:$0xff]  ;;  %22155 = vst [vmem:[#allocation50_spill] sm:$0xff] %v20824_v51 }
 0x503   : > { %10654 = vmatpush1.bf16.msra.mxu0 %v15738_v33  ;;  %v1011_v61 = vld [vmem:[%s19283_s29 + $0xfb0] sm:$0xff]  ;;  %v15690_v33 = vcombine.low %v515_v54, %v523_v1 }
 0x504   : > { %10655 = vmatprep.subr.bf16.mxu0 %v15723_v10  ;;  %v1019_v44 = vld [vmem:[%s19283_s29 + $0xff0] sm:$0xff]  ;;  %v15931_v10 = vcombine.high %v755_v29, %v763_v48 }
 0x505   : > { %10697 = vmatpush1.bf16.msra.mxu1 %v15994_v30  ;;  %v15946_v30 = vcombine.low %v771_v25, %v779_v26  ;;  %v739_v45 = vld [vmem:[%s19283_s29 + $0x730] sm:$0xff]  ;;  %v16186_v54 = vcombine.low %v1011_v61, %v1019_v44 }
 0x506   : > { %10698 = vmatprep.subr.bf16.mxu1 %v15979_v20  ;;  %v16187_v20 = vcombine.high %v1011_v61, %v1019_v44  ;;  %v747_v36 = vld [vmem:[%s19283_s29 + $0x770] sm:$0xff] }
 0x507   : > { %10656 = vmatpush1.bf16.msra.mxu0 %v15722_v31  ;;  %v995_v39 = vld [vmem:[%s19283_s29 + $0xf30] sm:$0xff]  ;;  %v15915_v1 = vcombine.high %v739_v45, %v747_v36 }
 0x508   : > { %10657 = vmatprep.subr.bf16.mxu0 %v15707_v6  ;;  %v1003_v31 = vld [vmem:[%s19283_s29 + $0xf70] sm:$0xff]  ;;  %v20828_v6 = vpop.f32.mrf.mxu0 }
 0x509   : > { %10699 = vmatpush1.bf16.msra.mxu1 %v15978_v22  ;;  %v15930_v22 = vcombine.low %v755_v29, %v763_v48  ;;  %22156 = vst [vmem:[#allocation51_spill] sm:$0xff] %v20828_v6  ;;  %v16171_v25 = vcombine.high %v995_v39, %v1003_v31  ;;  %v723_v26 = vld [vmem:[%s19283_s29 + $0x6b0] sm:$0xff]  ;;  %v15914_v29 = vcombine.low %v739_v45, %v747_v36 }
 0x50a   : > { %10700 = vmatprep.subr.bf16.mxu1 %v15963_v19  ;;  %v10378_v19 = vpop.f32.mrf.mxu1  ;;  %v16170_v44 = vcombine.low %v995_v39, %v1003_v31  ;;  %v707_v51 = vld [vmem:[%s19283_s29 + $0x630] sm:$0xff] }
 0x50b   : > { %10658 = vmatpush1.bf16.msra.mxu0 %v15706_v62  ;;  %v731_v62 = vld [vmem:[%s19283_s29 + $0x6f0] sm:$0xff] }
 0x50c   : > { %10659 = vmatprep.subr.bf16.mxu0 %v15691_v3  ;;  %v979_v3 = vld [vmem:[%s19283_s29 + $0xeb0] sm:$0xff]  ;;  %v20835_v48 = vpop.f32.mrf.mxu1 }
 0x50d   : > { %10701 = vmatpush1.bf16.msra.mxu1 %v15962_v8  ;;  %22157 = vst [vmem:[#allocation52_spill] sm:$0xff] %v20835_v48  ;;  %v715_v6 = vld [vmem:[%s19283_s29 + $0x670] sm:$0xff] }
 0x50e   : > { %10702 = vmatprep.subr.bf16.mxu1 %v15947_v13  ;;  %v987_v13 = vld [vmem:[%s19283_s29 + $0xef0] sm:$0xff]  ;;  %v15883_v31 = vcombine.high %v707_v51, %v715_v6 }
 0x50f   : > { %10660 = vmatpush1.bf16.msra.mxu0 %v15690_v33  ;;  %v971_v45 = vld [vmem:[%s19283_s29 + $0xe70] sm:$0xff]  ;;  %v16154_v39 = vcombine.low %v979_v3, %v987_v13 }
 0x510   : > { %10661 = vmatprep.subr.bf16.mxu0 %v15931_v10  ;;  %v955_v48 = vld [vmem:[%s19283_s29 + $0xdf0] sm:$0xff] }
 0x511   : > { %10703 = vmatpush1.bf16.msra.mxu1 %v15946_v30  ;;  %v15899_v30 = vcombine.high %v723_v26, %v731_v62 }
 0x512   : > { %10704 = vmatprep.subr.bf16.mxu1 %v16187_v20  ;;  %v10335_v8 = vpop.f32.mrf.mxu0  ;;  %v16155_v20 = vcombine.high %v979_v3, %v987_v13 }
 0x513   : > { %v10336_v33 = vadd.f32 %v10335_v8, %v20747_v27  ;;  %10662 = vmatpush2.bf16.msra.mxu0 %v15930_v22  ;;  %v963_v27 = vld [vmem:[%s19283_s29 + $0xe30] sm:$0xff]  ;;  %v15898_v22 = vcombine.low %v723_v26, %v731_v62 }
 0x514   : > { %v20837_v61 = vpop.f32.mrf.mxu0  ;;  %10663 = vmatprep.subr.bf16.mxu0 %v15915_v1  ;;  %v16139_v1 = vcombine.high %v963_v27, %v971_v45  ;;  %v699_v8 = vld [vmem:[%s19283_s29 + $0x5f0] sm:$0xff]  ;;  %v16138_v26 = vcombine.low %v963_v27, %v971_v45 }
 0x515   : > { %10705 = vmatpush2.bf16.msra.mxu1 %v16186_v54  ;;  %22158 = vst [vmem:[#allocation53_spill] sm:$0xff] %v20837_v61  ;;  %v10379_v10 = vadd.f32 %v10378_v19, %v10336_v33  ;;  %v10382_v54 = vpop.f32.mrf.mxu1  ;;  %v947_v33 = vld [vmem:[%s19283_s29 + $0xdb0] sm:$0xff] }
 0x516   : > { %10706 = vmatprep.subr.bf16.mxu1 %v16171_v25  ;;  %v10339_v41 = vpop.f32.mrf.mxu0  ;;  %v691_v25 = vld [vmem:[%s19283_s29 + $0x5b0] sm:$0xff]  ;;  %v16123_v13 = vcombine.high %v947_v33, %v955_v48 }
 0x517   : > { %v10340_v36 = vadd.f32 %v10339_v41, %v20756_v23  ;;  %10664 = vmatpush2.bf16.msra.mxu0 %v15914_v29  ;;  %v11169_v61 = vmax.f32 %v10379_v10, 0.0  ;;  %v15882_v23 = vcombine.low %v707_v51, %v715_v6  ;;  %v15867_v62 = vcombine.high %v691_v25, %v699_v8  ;;  %v675_v29 = vld [vmem:[%s19283_s29 + $0x530] sm:$0xff] }
 0x518   : > { %10665 = vmatprep.subr.bf16.mxu0 %v15899_v30  ;;  %v931_v30 = vld [vmem:[%s19283_s29 + $0xd30] sm:$0xff]  ;;  %v15866_v10 = vcombine.low %v691_v25, %v699_v8  ;;  %v16122_v51 = vcombine.low %v947_v33, %v955_v48 }
 0x519   : > { %10707 = vmatpush2.bf16.msra.mxu1 %v16170_v44  ;;  %v10383_v19 = vadd.f32 %v10382_v54, %v10340_v36  ;;  %v683_v44 = vld [vmem:[%s19283_s29 + $0x570] sm:$0xff] }
 0x51a   : > { %10708 = vmatprep.subr.bf16.mxu1 %v16155_v20  ;;  %v939_v20 = vld [vmem:[%s19283_s29 + $0xd70] sm:$0xff]  ;;  %v15851_v6 = vcombine.high %v675_v29, %v683_v44  ;;  %v15850_v54 = vcombine.low %v675_v29, %v683_v44 }
 0x51b   : > { %v11185_v41 = vmax.f32 %v10383_v19, 0.0  ;;  %10666 = vmatpush2.bf16.msra.mxu0 %v15898_v22  ;;  %v659_v27 = vld [vmem:[%s19283_s29 + $0x4b0] sm:$0xff] }
 0x51c   : > { %10667 = vmatprep.subr.bf16.mxu0 %v15883_v31  ;;  %v667_v45 = vld [vmem:[%s19283_s29 + $0x4f0] sm:$0xff] }
 0x51d   : > { %10709 = vmatpush2.bf16.msra.mxu1 %v16154_v39  ;;  %v20848_v3 = vpack.c.bf16 %v11185_v41, %v11169_v61  ;;  %v16107_v61 = vcombine.high %v931_v30, %v939_v20  ;;  %v915_v36 = vld [vmem:[%s19283_s29 + $0xcb0] sm:$0xff]  ;;  %v16106_v39 = vcombine.low %v931_v30, %v939_v20  ;;  %v15835_v31 = vcombine.high %v659_v27, %v667_v45 }
 0x51e   : > { %10710 = vmatprep.subr.bf16.mxu1 %v16139_v1  ;;  %v923_v22 = vld [vmem:[%s19283_s29 + $0xcf0] sm:$0xff]  ;;  %v15834_v33 = vcombine.low %v659_v27, %v667_v45 }
 0x51f   : > { %22159 = vst [vmem:[#allocation54_spill] sm:$0xff] %v20848_v3  ;;  %10668 = vmatpush2.bf16.msra.mxu0 %v15882_v23  ;;  %v16091_v48 = vcombine.high %v915_v36, %v923_v22  ;;  %v643_v19 = vld [vmem:[%s19283_s29 + $0x430] sm:$0xff]  ;;  %v16090_v41 = vcombine.low %v915_v36, %v923_v22 }
 0x520   : > { %10669 = vmatprep.subr.bf16.mxu0 %v15867_v62  ;;  %v651_v1 = vld [vmem:[%s19283_s29 + $0x470] sm:$0xff] }
 0x521   : > { %10711 = vmatpush2.bf16.msra.mxu1 %v16138_v26  ;;  %v899_v25 = vld [vmem:[%s19283_s29 + $0xc30] sm:$0xff]  ;;  %v15819_v23 = vcombine.high %v643_v19, %v651_v1  ;;  %v15818_v30 = vcombine.low %v643_v19, %v651_v1  ;;  %v18676_v19 = vld [vmem:[%s22070_s0] ss:$44 sps:$4 sm:$0xff]  }
 0x522   : > { %10712 = vmatprep.subr.bf16.mxu1 %v16123_v13  ;;  %v907_v8 = vld [vmem:[%s19283_s29 + $0xc70] sm:$0xff] }
 0x523   : > { %10670 = vmatpush2.bf16.msra.mxu0 %v15866_v10  ;;  %v16075_v26 = vcombine.high %v899_v25, %v907_v8  ;;  %v1139_v62 = vld [vmem:[%s19283_s29 + $0x13b0] sm:$0xff]  ;;  %v16074_v20 = vcombine.low %v899_v25, %v907_v8 }
 0x524   : > { %10671 = vmatprep.subr.bf16.mxu0 %v15851_v6  ;;  %v1147_v13 = vld [vmem:[%s19283_s29 + $0x13f0] sm:$0xff] }
 0x525   : > { %10713 = vmatpush2.bf16.msra.mxu1 %v16122_v51  ;;  %v1395_v29 = vld [vmem:[%s19283_s29 + $0x1bb0] sm:$0xff]  ;;  %v16315_v10 = vcombine.high %v1139_v62, %v1147_v13  ;;  %v16314_v36 = vcombine.low %v1139_v62, %v1147_v13 }
 0x526   : > { %10714 = vmatprep.subr.bf16.mxu1 %v16107_v61  ;;  %v1403_v44 = vld [vmem:[%s19283_s29 + $0x1bf0] sm:$0xff] }
 0x527   : > { %10672 = vmatpush2.bf16.msra.mxu0 %v15850_v54  ;;  %v16571_v51 = vcombine.high %v1395_v29, %v1403_v44  ;;  %v1123_v6 = vld [vmem:[%s19283_s29 + $0x1330] sm:$0xff]  ;;  %v16570_v22 = vcombine.low %v1395_v29, %v1403_v44 }
 0x528   : > { %10673 = vmatprep.subr.bf16.mxu0 %v15835_v31  ;;  %v1131_v61 = vld [vmem:[%s19283_s29 + $0x1370] sm:$0xff] }
 0x529   : > { %10715 = vmatpush2.bf16.msra.mxu1 %v16106_v39  ;;  %v1379_v27 = vld [vmem:[%s19283_s29 + $0x1b30] sm:$0xff]  ;;  %v16299_v54 = vcombine.high %v1123_v6, %v1131_v61 }
 0x52a   : > { %10716 = vmatprep.subr.bf16.mxu1 %v16091_v48  ;;  %v1387_v45 = vld [vmem:[%s19283_s29 + $0x1b70] sm:$0xff] }
 0x52b   : > { %10674 = vmatpush2.bf16.msra.mxu0 %v15834_v33  ;;  %v16555_v39 = vcombine.high %v1379_v27, %v1387_v45  ;;  %v1107_v31 = vld [vmem:[%s19283_s29 + $0x12b0] sm:$0xff]  ;;  %v16298_v33 = vcombine.low %v1123_v6, %v1131_v61 }
 0x52c   : > { %10675 = vmatprep.subr.bf16.mxu0 %v15819_v23  ;;  %v1115_v48 = vld [vmem:[%s19283_s29 + $0x12f0] sm:$0xff] }
 0x52d   : > { %10717 = vmatpush2.bf16.msra.mxu1 %v16090_v41  ;;  %v1363_v1 = vld [vmem:[%s19283_s29 + $0x1ab0] sm:$0xff]  ;;  %v16554_v41 = vcombine.low %v1379_v27, %v1387_v45  ;;  %v16283_v23 = vcombine.high %v1107_v31, %v1115_v48 }
 0x52e   : > { %10718 = vmatprep.subr.bf16.mxu1 %v16075_v26  ;;  %v1371_v25 = vld [vmem:[%s19283_s29 + $0x1af0] sm:$0xff] }
 0x52f   : > { %10676 = vmatpush2.bf16.msra.mxu0 %v15818_v30  ;;  %v18677_v8 = vld [vmem:[%s22070_s0 + $0x8] ss:$44 sps:$4 sm:$0xff]   ;;  %v16539_v26 = vcombine.high %v1363_v1, %v1371_v25 }
 0x530   : > { %10731 = vmatprep.subr.bf16.mxu0 %v16315_v10  ;;  %v1091_v62 = vld [vmem:[%s19283_s29 + $0x1230] sm:$0xff]  ;;  %v16282_v10 = vcombine.low %v1107_v31, %v1115_v48 }
 0x531   : > { %10719 = vmatpush2.bf16.msra.mxu1 %v16074_v20  ;;  %v1099_v13 = vld [vmem:[%s19283_s29 + $0x1270] sm:$0xff]  ;;  %v18679_v20 = vld [vmem:[%s22070_s0 + $0x1c] ss:$44 sps:$4 sm:$0xff]  }
 0x532   : > { %10774 = vmatprep.subr.bf16.mxu1 %v16571_v51  ;;  %10678 = vmatmul.mubr.bf16.vlgmr.msra.gmra.mxu0 %v18676_v19  ;;  %v18678_v29 = vld [vmem:[%s22070_s0 + $0x14] ss:$44 sps:$4 sm:$0xff]   ;;  %v16538_v51 = vcombine.low %v1363_v1, %v1371_v25  ;;  %v16267_v6 = vcombine.high %v1091_v62, %v1099_v13 }
 0x533   : > { %10732 = vmatpush1.bf16.msra.mxu0 %v16314_v36  ;;  %10763 = vmatprep.mubr.bf16.mxu0 %v18678_v29  ;;  %v1347_v44 = vld [vmem:[%s19283_s29 + $0x1a30] sm:$0xff] }
 0x534   : > { %10721 = vmatmul.mubr.bf16.vlgmr.msra.gmra.mxu1 %v18677_v8  ;;  %10733 = vmatprep.subr.bf16.mxu0 %v16299_v54  ;;  %v1355_v30 = vld [vmem:[%s19283_s29 + $0x1a70] sm:$0xff]  ;;  %v16266_v54 = vcombine.low %v1091_v62, %v1099_v13 }
 0x535   : > { %10775 = vmatpush1.bf16.msra.mxu1 %v16570_v22  ;;  %10806 = vmatprep.mubr.bf16.mxu1 %v18679_v20  ;;  %v16523_v61 = vcombine.high %v1347_v44, %v1355_v30  ;;  %v1075_v27 = vld [vmem:[%s19283_s29 + $0x11b0] sm:$0xff] }
 0x536   : > { %10776 = vmatprep.subr.bf16.mxu1 %v16555_v39  ;;  %v1083_v45 = vld [vmem:[%s19283_s29 + $0x11f0] sm:$0xff]  ;;  %v16522_v39 = vcombine.low %v1347_v44, %v1355_v30 }
 0x537   : > { %10734 = vmatpush1.bf16.msra.mxu0 %v16298_v33  ;;  %v1331_v36 = vld [vmem:[%s19283_s29 + $0x19b0] sm:$0xff]  ;;  %v16251_v31 = vcombine.high %v1075_v27, %v1083_v45  ;;  %v16250_v33 = vcombine.low %v1075_v27, %v1083_v45 }
 0x538   : > { %10735 = vmatprep.subr.bf16.mxu0 %v16283_v23  ;;  %v1339_v22 = vld [vmem:[%s19283_s29 + $0x19f0] sm:$0xff] }
 0x539   : > { %10777 = vmatpush1.bf16.msra.mxu1 %v16554_v41  ;;  %v16507_v48 = vcombine.high %v1331_v36, %v1339_v22  ;;  %v1059_v19 = vld [vmem:[%s19283_s29 + $0x1130] sm:$0xff]  ;;  %v16506_v41 = vcombine.low %v1331_v36, %v1339_v22  ;;  %v20906_v22 = vpop.f32.mrf.mxu1 }
 0x53a   : > { %10778 = vmatprep.subr.bf16.mxu1 %v16539_v26  ;;  %v1067_v1 = vld [vmem:[%s19283_s29 + $0x1170] sm:$0xff]  ;;  %22160 = vst [vmem:[#allocation55_spill] sm:$0xff] %v20906_v22 }
 0x53b   : > { %10736 = vmatpush1.bf16.msra.mxu0 %v16282_v10  ;;  %v1315_v25 = vld [vmem:[%s19283_s29 + $0x1930] sm:$0xff]  ;;  %v16235_v23 = vcombine.high %v1059_v19, %v1067_v1  ;;  %v16234_v30 = vcombine.low %v1059_v19, %v1067_v1  ;;  %v10421_v1 = vpop.f32.mrf.mxu1 }
 0x53c   : > { %10737 = vmatprep.subr.bf16.mxu0 %v16267_v6  ;;  %v1323_v8 = vld [vmem:[%s19283_s29 + $0x1970] sm:$0xff] }
 0x53d   : > { %10779 = vmatpush1.bf16.msra.mxu1 %v16538_v51  ;;  %v16491_v26 = vcombine.high %v1315_v25, %v1323_v8  ;;  %v1043_v62 = vld [vmem:[%s19283_s29 + $0x10b0] sm:$0xff]  ;;  %v16490_v20 = vcombine.low %v1315_v25, %v1323_v8 }
 0x53e   : > { %10780 = vmatprep.subr.bf16.mxu1 %v16523_v61  ;;  %v1051_v13 = vld [vmem:[%s19283_s29 + $0x10f0] sm:$0xff] }
 0x53f   : > { %10738 = vmatpush1.bf16.msra.mxu0 %v16266_v54  ;;  %v1299_v29 = vld [vmem:[%s19283_s29 + $0x18b0] sm:$0xff]  ;;  %v16219_v10 = vcombine.high %v1043_v62, %v1051_v13  ;;  %v16218_v36 = vcombine.low %v1043_v62, %v1051_v13 }
 0x540   : > { %10739 = vmatprep.subr.bf16.mxu0 %v16251_v31  ;;  %v1307_v44 = vld [vmem:[%s19283_s29 + $0x18f0] sm:$0xff] }
 0x541   : > { %10781 = vmatpush1.bf16.msra.mxu1 %v16522_v39  ;;  %v16475_v51 = vcombine.high %v1299_v29, %v1307_v44  ;;  %v1027_v6 = vld [vmem:[%s19283_s29 + $0x1030] sm:$0xff]  ;;  %v16474_v54 = vcombine.low %v1299_v29, %v1307_v44 }
 0x542   : > { %10782 = vmatprep.subr.bf16.mxu1 %v16507_v48  ;;  %v1035_v61 = vld [vmem:[%s19283_s29 + $0x1070] sm:$0xff] }
 0x543   : > { %10740 = vmatpush1.bf16.msra.mxu0 %v16250_v33  ;;  %v1283_v27 = vld [vmem:[%s19283_s29 + $0x1830] sm:$0xff]  ;;  %v16203_v39 = vcombine.high %v1027_v6, %v1035_v61  ;;  %v16202_v33 = vcombine.low %v1027_v6, %v1035_v61  ;;  %v20920_v6 = vpop.f32.mrf.mxu0 }
 0x544   : > { %10741 = vmatprep.subr.bf16.mxu0 %v16235_v23  ;;  %v1291_v45 = vld [vmem:[%s19283_s29 + $0x1870] sm:$0xff]  ;;  %22162 = vst [vmem:[#allocation57_spill] sm:$0xff] %v20920_v6 }
 0x545   : > { %10783 = vmatpush1.bf16.msra.mxu1 %v16506_v41  ;;  %v16459_v31 = vcombine.high %v1283_v27, %v1291_v45  ;;  %v1267_v48 = vld [vmem:[%s19283_s29 + $0x17b0] sm:$0xff]  ;;  %v16458_v41 = vcombine.low %v1283_v27, %v1291_v45 }
 0x546   : > { %10784 = vmatprep.subr.bf16.mxu1 %v16491_v26  ;;  %v1275_v19 = vld [vmem:[%s19283_s29 + $0x17f0] sm:$0xff]  ;;  %v18680_v26 = vld [vmem:[%s19290_s28 + $0x8] sm:$0xff] }
 0x547   : > { %10742 = vmatpush1.bf16.msra.mxu0 %v16234_v30  ;;  %v1523_v25 = vld [vmem:[%s19283_s29 + $0x1fb0] sm:$0xff]  ;;  %v16443_v23 = vcombine.high %v1267_v48, %v1275_v19  ;;  %v1964_v62 = vrot.slane %v18680_v26, %v19890_v17  ;;  %v20916_v30 = vpop.f32.mrf.mxu1 }
 0x548   : > { %10743 = vmatprep.subr.bf16.mxu0 %v16219_v10  ;;  %v1531_v8 = vld [vmem:[%s19283_s29 + $0x1ff0] sm:$0xff]  ;;  %22161 = vst [vmem:[#allocation56_spill] sm:$0xff] %v20916_v30  ;;  %v1852_v30 = vld [vmem:[%s19283_s29 + $0x29f8] sm:$0xff] }
 0x549   : > { %10785 = vmatpush1.bf16.msra.mxu1 %v16490_v20  ;;  %v16699_v13 = vcombine.high %v1523_v25, %v1531_v8  ;;  %v1251_v29 = vld [vmem:[%s19283_s29 + $0x1730] sm:$0xff]  ;;  %v16698_v61 = vcombine.low %v1523_v25, %v1531_v8  ;;  %v10422_v45 = vadd.f32 %v10421_v1, %v1964_v62 }
 0x54a   : > { %10786 = vmatprep.subr.bf16.mxu1 %v16475_v51  ;;  %v1259_v44 = vld [vmem:[%s19283_s29 + $0x1770] sm:$0xff]  ;;  %v16442_v51 = vcombine.low %v1267_v48, %v1275_v19 }
 0x54b   : > { %10744 = vmatpush1.bf16.msra.mxu0 %v16218_v36  ;;  %v1507_v20 = vld [vmem:[%s19283_s29 + $0x1f30] sm:$0xff]  ;;  %v16427_v27 = vcombine.high %v1251_v29, %v1259_v44  ;;  %v16426_v19 = vcombine.low %v1251_v29, %v1259_v44 }
 0x54c   : > { %10745 = vmatprep.subr.bf16.mxu0 %v16203_v39  ;;  %v1515_v10 = vld [vmem:[%s19283_s29 + $0x1f70] sm:$0xff] }
 0x54d   : > { %10787 = vmatpush1.bf16.msra.mxu1 %v16474_v54  ;;  %v16683_v36 = vcombine.high %v1507_v20, %v1515_v10  ;;  %v1235_v54 = vld [vmem:[%s19283_s29 + $0x16b0] sm:$0xff]  ;;  %v16682_v1 = vcombine.low %v1507_v20, %v1515_v10 }
 0x54e   : > { %10788 = vmatprep.subr.bf16.mxu1 %v16459_v31  ;;  %v1243_v39 = vld [vmem:[%s19283_s29 + $0x16f0] sm:$0xff]  ;;  %v10425_v31 = vpop.f32.mrf.mxu1 }
 0x54f   : > { %10746 = vmatpush1.bf16.msra.mxu0 %v16202_v33  ;;  %v1491_v17 = vld [vmem:[%s19283_s29 + $0x1eb0] sm:$0xff]  ;;  %v16411_v8 = vcombine.high %v1235_v54, %v1243_v39  ;;  %v10426_v33 = vadd.f32 %v10425_v31, %v1964_v62  ;;  %v16410_v29 = vcombine.low %v1235_v54, %v1243_v39 }
 0x550   : > { %10747 = vmatprep.subr.bf16.mxu0 %v16443_v23  ;;  %v1499_v3 = vld [vmem:[%s19283_s29 + $0x1ef0] sm:$0xff] }
 0x551   : > { %10789 = vmatpush1.bf16.msra.mxu1 %v16458_v41  ;;  %v16667_v41 = vcombine.high %v1491_v17, %v1499_v3  ;;  %v1219_v23 = vld [vmem:[%s19283_s29 + $0x1630] sm:$0xff]  ;;  %v16666_v44 = vcombine.low %v1491_v17, %v1499_v3 }
 0x552   : > { %10790 = vmatprep.subr.bf16.mxu1 %v16699_v13  ;;  %v10464_v26 = vpop.f32.mrf.mxu0  ;;  %v1227_v13 = vld [vmem:[%s19283_s29 + $0x1670] sm:$0xff] }
 0x553   : > { %v20926_v48 = vadd.f32 %v10464_v26, %v10422_v45  ;;  %10748 = vmatpush2.bf16.msra.mxu0 %v16442_v51  ;;  %v1475_v45 = vld [vmem:[%s19283_s29 + $0x1e30] sm:$0xff]  ;;  %v16395_v62 = vcombine.high %v1219_v23, %v1227_v13  ;;  %v16394_v31 = vcombine.low %v1219_v23, %v1227_v13 }
 0x554   : > { %v20928_v25 = vpop.f32.mrf.mxu0  ;;  %10749 = vmatprep.subr.bf16.mxu0 %v16427_v27  ;;  %v1483_v26 = vld [vmem:[%s19283_s29 + $0x1e70] sm:$0xff] }
 0x555   : > { %10791 = vmatpush2.bf16.msra.mxu1 %v16698_v61  ;;  %22163 = vst [vmem:[#allocation58_spill] sm:$0xff] %v20928_v25  ;;  %v16651_v20 = vcombine.high %v1475_v45, %v1483_v26  ;;  %v1203_v10 = vld [vmem:[%s19283_s29 + $0x15b0] sm:$0xff] }
 0x556   : > { %10792 = vmatprep.subr.bf16.mxu1 %v16683_v36  ;;  %v10468_v22 = vpop.f32.mrf.mxu0  ;;  %v1211_v61 = vld [vmem:[%s19283_s29 + $0x15f0] sm:$0xff] }
 0x557   : > { %v20934_v51 = vadd.f32 %v10468_v22, %v10426_v33  ;;  %10750 = vmatpush2.bf16.msra.mxu0 %v16426_v19  ;;  %v1459_v27 = vld [vmem:[%s19283_s29 + $0x1db0] sm:$0xff]  ;;  %v16650_v22 = vcombine.low %v1475_v45, %v1483_v26  ;;  %v16379_v54 = vcombine.high %v1203_v10, %v1211_v61 }
 0x558   : > { %10751 = vmatprep.subr.bf16.mxu0 %v16411_v8  ;;  %v1467_v36 = vld [vmem:[%s19283_s29 + $0x1df0] sm:$0xff]  ;;  %v16378_v8 = vcombine.low %v1203_v10, %v1211_v61 }
 0x559   : > { %10793 = vmatpush2.bf16.msra.mxu1 %v16682_v1  ;;  %v16635_v17 = vcombine.high %v1459_v27, %v1467_v36  ;;  %v1187_v3 = vld [vmem:[%s19283_s29 + $0x1530] sm:$0xff]  ;;  %v16634_v33 = vcombine.low %v1459_v27, %v1467_v36 }
 0x55a   : > { %10794 = vmatprep.subr.bf16.mxu1 %v16667_v41  ;;  %v1195_v39 = vld [vmem:[%s19283_s29 + $0x1570] sm:$0xff] }
 0x55b   : > { %10752 = vmatpush2.bf16.msra.mxu0 %v16410_v29  ;;  %v1443_v19 = vld [vmem:[%s19283_s29 + $0x1d30] sm:$0xff]  ;;  %v16363_v41 = vcombine.high %v1187_v3, %v1195_v39 }
 0x55c   : > { %10753 = vmatprep.subr.bf16.mxu0 %v16395_v62  ;;  %v1451_v1 = vld [vmem:[%s19283_s29 + $0x1d70] sm:$0xff] }
 0x55d   : > { %10795 = vmatpush2.bf16.msra.mxu1 %v16666_v44  ;;  %v16619_v23 = vcombine.high %v1443_v19, %v1451_v1  ;;  %v1171_v13 = vld [vmem:[%s19283_s29 + $0x14b0] sm:$0xff]  ;;  %v16362_v44 = vcombine.low %v1187_v3, %v1195_v39  ;;  %v16618_v62 = vcombine.low %v1443_v19, %v1451_v1 }
 0x55e   : > { %10796 = vmatprep.subr.bf16.mxu1 %v16651_v20  ;;  %v1179_v45 = vld [vmem:[%s19283_s29 + $0x14f0] sm:$0xff] }
 0x55f   : > { %10754 = vmatpush2.bf16.msra.mxu0 %v16394_v31  ;;  %v1427_v26 = vld [vmem:[%s19283_s29 + $0x1cb0] sm:$0xff]  ;;  %v16347_v20 = vcombine.high %v1171_v13, %v1179_v45 }
 0x560   : > { %10755 = vmatprep.subr.bf16.mxu0 %v16379_v54  ;;  %v1435_v29 = vld [vmem:[%s19283_s29 + $0x1cf0] sm:$0xff] }
 0x561   : > { %10797 = vmatpush2.bf16.msra.mxu1 %v16650_v22  ;;  %v16603_v10 = vcombine.high %v1427_v26, %v1435_v29  ;;  %v1155_v61 = vld [vmem:[%s19283_s29 + $0x1430] sm:$0xff]  ;;  %v16346_v22 = vcombine.low %v1171_v13, %v1179_v45  ;;  %v16602_v54 = vcombine.low %v1427_v26, %v1435_v29 }
 0x562   : > { %10798 = vmatprep.subr.bf16.mxu1 %v16635_v17  ;;  %v1163_v27 = vld [vmem:[%s19283_s29 + $0x1470] sm:$0xff] }
 0x563   : > { %10756 = vmatpush2.bf16.msra.mxu0 %v16378_v8  ;;  %v1411_v36 = vld [vmem:[%s19283_s29 + $0x1c30] sm:$0xff]  ;;  %v16331_v17 = vcombine.high %v1155_v61, %v1163_v27 }
 0x564   : > { %10757 = vmatprep.subr.bf16.mxu0 %v16363_v41  ;;  %v1419_v31 = vld [vmem:[%s19283_s29 + $0x1c70] sm:$0xff] }
 0x565   : > { %10799 = vmatpush2.bf16.msra.mxu1 %v16634_v33  ;;  %v16587_v3 = vcombine.high %v1411_v36, %v1419_v31  ;;  %v1651_v39 = vld [vmem:[%s19283_s29 + $0x23b0] sm:$0xff]  ;;  %v16330_v33 = vcombine.low %v1155_v61, %v1163_v27  ;;  %v16586_v41 = vcombine.low %v1411_v36, %v1419_v31  ;;  %v20960_v61 = vpop.f32.mrf.mxu1 }
 0x566   : > { %10800 = vmatprep.subr.bf16.mxu1 %v16619_v23  ;;  %v1659_v19 = vld [vmem:[%s19283_s29 + $0x23f0] sm:$0xff]  ;;  %22164 = vst [vmem:[#allocation59_spill] sm:$0xff] %v20960_v61  ;;  %v1708_v61 = vld [vmem:[%s19283_s29 + $0x2578] sm:$0xff] }
 0x567   : > { %10758 = vmatpush2.bf16.msra.mxu0 %v16362_v44  ;;  %v1907_v1 = vld [vmem:[%s19283_s29 + $0x2bb0] sm:$0xff]  ;;  %v16827_v23 = vcombine.high %v1651_v39, %v1659_v19 }
 0x568   : > { %10759 = vmatprep.subr.bf16.mxu0 %v16347_v20  ;;  %v1915_v8 = vld [vmem:[%s19283_s29 + $0x2bf0] sm:$0xff] }
 0x569   : > { %10801 = vmatpush2.bf16.msra.mxu1 %v16618_v62  ;;  %v17083_v13 = vcombine.high %v1907_v1, %v1915_v8  ;;  %v1635_v45 = vld [vmem:[%s19283_s29 + $0x2330] sm:$0xff]  ;;  %v16826_v62 = vcombine.low %v1651_v39, %v1659_v19  ;;  %v17082_v20 = vcombine.low %v1907_v1, %v1915_v8  ;;  %v18682_v39 = vld [vmem:[%s22070_s0 + $0x18] ss:$44 sps:$4 sm:$0xff]  }
 0x56a   : > { %10802 = vmatprep.subr.bf16.mxu1 %v16603_v10  ;;  %v1643_v26 = vld [vmem:[%s19283_s29 + $0x2370] sm:$0xff] }
 0x56b   : > { %10760 = vmatpush2.bf16.msra.mxu0 %v16346_v22  ;;  %v1891_v29 = vld [vmem:[%s19283_s29 + $0x2b30] sm:$0xff]  ;;  %v16811_v10 = vcombine.high %v1635_v45, %v1643_v26  ;;  %v16810_v19 = vcombine.low %v1635_v45, %v1643_v26 }
 0x56c   : > { %10761 = vmatprep.subr.bf16.mxu0 %v16331_v17  ;;  %v1899_v44 = vld [vmem:[%s19283_s29 + $0x2b70] sm:$0xff] }
 0x56d   : > { %10803 = vmatpush2.bf16.msra.mxu1 %v16602_v54  ;;  %v17067_v27 = vcombine.high %v1891_v29, %v1899_v44  ;;  %v1619_v36 = vld [vmem:[%s19283_s29 + $0x22b0] sm:$0xff]  ;;  %v17066_v8 = vcombine.low %v1891_v29, %v1899_v44 }
 0x56e   : > { %10804 = vmatprep.subr.bf16.mxu1 %v16587_v3  ;;  %v1627_v31 = vld [vmem:[%s19283_s29 + $0x22f0] sm:$0xff] }
 0x56f   : > { %10762 = vmatpush2.bf16.msra.mxu0 %v16330_v33  ;;  %v18681_v22 = vld [vmem:[%s22070_s0 + $0x10] ss:$44 sps:$4 sm:$0xff]   ;;  %v16795_v33 = vcombine.high %v1619_v36, %v1627_v31  ;;  %v16794_v29 = vcombine.low %v1619_v36, %v1627_v31 }
 0x570   : > { %10817 = vmatprep.subr.bf16.mxu0 %v16827_v23  ;;  %v1875_v54 = vld [vmem:[%s19283_s29 + $0x2ab0] sm:$0xff] }
 0x571   : > { %10805 = vmatpush2.bf16.msra.mxu1 %v16586_v41  ;;  %v1883_v17 = vld [vmem:[%s19283_s29 + $0x2af0] sm:$0xff] }
 0x572   : > { %10860 = vmatprep.subr.bf16.mxu1 %v17083_v13  ;;  %10764 = vmatmul.mubr.bf16.vlgmr.msra.gmra.mxu0 %v18681_v22  ;;  %v17051_v23 = vcombine.high %v1875_v54, %v1883_v17  ;;  %v1603_v13 = vld [vmem:[%s19283_s29 + $0x2230] sm:$0xff] }
 0x573   : > { %10818 = vmatpush1.bf16.msra.mxu0 %v16826_v62  ;;  %v1611_v22 = vld [vmem:[%s19283_s29 + $0x2270] sm:$0xff]  ;;  %v17050_v62 = vcombine.low %v1875_v54, %v1883_v17 }
 0x574   : > { %v10507_v3 = vpop.f32.mrf.mxu1  ;;  %10807 = vmatmul.mubr.bf16.vlgmr.msra.gmra.mxu1 %v18682_v39  ;;  %10819 = vmatprep.subr.bf16.mxu0 %v16811_v10  ;;  %v1859_v39 = vld [vmem:[%s19283_s29 + $0x2a30] sm:$0xff] }
 0x575   : > { %v20973_v1 = vadd.f32 %v10507_v3, %v20926_v48  ;;  %10861 = vmatpush1.bf16.msra.mxu1 %v17082_v20  ;;  %10892 = vmatprep.mubr.bf16.mxu1 %v22140_v60  ;;  %v1867_v45 = vld [vmem:[%s19283_s29 + $0x2a70] sm:$0xff]  ;;  %v16779_v20 = vcombine.high %v1603_v13, %v1611_v22 }
 0x576   : > { %v20975_v41 = vpop.f32.mrf.mxu1  ;;  %10862 = vmatprep.subr.bf16.mxu1 %v17067_v27  ;;  %v18683_v48 = vld [vmem:[%s22070_s0 + $0x24] ss:$44 sps:$4 sm:$0xff]   ;;  %v17035_v10 = vcombine.high %v1859_v39, %v1867_v45 }
 0x577   : > { %22165 = vst [vmem:[#allocation60_spill] sm:$0xff] %v20975_v41  ;;  %10849 = vmatprep.mubr.bf16.mxu0 %v18683_v48  ;;  %10820 = vmatpush1.bf16.msra.mxu0 %v16810_v19  ;;  %v1587_v27 = vld [vmem:[%s19283_s29 + $0x21b0] sm:$0xff]  ;;  %v16778_v19 = vcombine.low %v1603_v13, %v1611_v22 }
 0x578   : > { %v10511_v26 = vpop.f32.mrf.mxu1  ;;  %10821 = vmatprep.subr.bf16.mxu0 %v16795_v33  ;;  %v1595_v3 = vld [vmem:[%s19283_s29 + $0x21f0] sm:$0xff] }
 0x579   : > { %v20986_v44 = vadd.f32 %v10511_v26, %v20934_v51  ;;  %10863 = vmatpush1.bf16.msra.mxu1 %v17066_v8  ;;  %v1843_v6 = vld [vmem:[%s19283_s29 + $0x29b0] sm:$0xff]  ;;  %v17034_v51 = vcombine.low %v1859_v39, %v1867_v45  ;;  %v16763_v36 = vcombine.high %v1587_v27, %v1595_v3 }
 0x57a   : > { %10864 = vmatprep.subr.bf16.mxu1 %v17051_v23  ;;  %v1851_v48 = vld [vmem:[%s19283_s29 + $0x29f0] sm:$0xff]  ;;  %v16762_v23 = vcombine.low %v1587_v27, %v1595_v3 }
 0x57b   : > { %10822 = vmatpush1.bf16.msra.mxu0 %v16794_v29  ;;  %v17019_v31 = vcombine.high %v1843_v6, %v1851_v48  ;;  %v1571_v54 = vld [vmem:[%s19283_s29 + $0x2130] sm:$0xff]  ;;  %v17018_v26 = vcombine.low %v1843_v6, %v1851_v48 }
 0x57c   : > { %10823 = vmatprep.subr.bf16.mxu0 %v16779_v20  ;;  %v1579_v17 = vld [vmem:[%s19283_s29 + $0x2170] sm:$0xff] }
 0x57d   : > { %10865 = vmatpush1.bf16.msra.mxu1 %v17050_v62  ;;  %v1827_v8 = vld [vmem:[%s19283_s29 + $0x2930] sm:$0xff]  ;;  %v16747_v13 = vcombine.high %v1571_v54, %v1579_v17  ;;  %v16746_v20 = vcombine.low %v1571_v54, %v1579_v17 }
 0x57e   : > { %10866 = vmatprep.subr.bf16.mxu1 %v17035_v10  ;;  %v1835_v33 = vld [vmem:[%s19283_s29 + $0x2970] sm:$0xff] }
 0x57f   : > { %10824 = vmatpush1.bf16.msra.mxu0 %v16778_v19  ;;  %v17003_v22 = vcombine.high %v1827_v8, %v1835_v33  ;;  %v1555_v39 = vld [vmem:[%s19283_s29 + $0x20b0] sm:$0xff]  ;;  %v17002_v10 = vcombine.low %v1827_v8, %v1835_v33 }
 0x580   : > { %10825 = vmatprep.subr.bf16.mxu0 %v16763_v36  ;;  %v1563_v45 = vld [vmem:[%s19283_s29 + $0x20f0] sm:$0xff] }
 0x581   : > { %10867 = vmatpush1.bf16.msra.mxu1 %v17034_v51  ;;  %v1811_v29 = vld [vmem:[%s19283_s29 + $0x28b0] sm:$0xff]  ;;  %v16731_v27 = vcombine.high %v1555_v39, %v1563_v45  ;;  %v16730_v36 = vcombine.low %v1555_v39, %v1563_v45 }
 0x582   : > { %10868 = vmatprep.subr.bf16.mxu1 %v17019_v31  ;;  %v1819_v62 = vld [vmem:[%s19283_s29 + $0x28f0] sm:$0xff] }
 0x583   : > { %10826 = vmatpush1.bf16.msra.mxu0 %v16762_v23  ;;  %v16987_v6 = vcombine.high %v1811_v29, %v1819_v62  ;;  %v1539_v3 = vld [vmem:[%s19283_s29 + $0x2030] sm:$0xff]  ;;  %v16986_v31 = vcombine.low %v1811_v29, %v1819_v62  ;;  %v628_v23 = vld [vmem:[%s19283_s29 + $0x3b8] sm:$0xff] }
 0x584   : > { %10827 = vmatprep.subr.bf16.mxu0 %v16747_v13  ;;  %v1547_v48 = vld [vmem:[%s19283_s29 + $0x2070] sm:$0xff] }
 0x585   : > { %10869 = vmatpush1.bf16.msra.mxu1 %v17018_v26  ;;  %v1795_v19 = vld [vmem:[%s19283_s29 + $0x2830] sm:$0xff]  ;;  %v16715_v54 = vcombine.high %v1539_v3, %v1547_v48  ;;  %v636_v26 = vld [vmem:[%s19283_s29 + $0x3f8] sm:$0xff]  ;;  %v16714_v13 = vcombine.low %v1539_v3, %v1547_v48 }
 0x586   : > { %10870 = vmatprep.subr.bf16.mxu1 %v17003_v22  ;;  %v1803_v51 = vld [vmem:[%s19283_s29 + $0x2870] sm:$0xff]  ;;  %v15805_v45 = vcombine.high %v628_v23, %v636_v26  ;;  %v15804_v3 = vcombine.low %v628_v23, %v636_v26 }
 0x587   : > { %10828 = vmatpush1.bf16.msra.mxu0 %v16746_v20  ;;  %v16971_v17 = vcombine.high %v1795_v19, %v1803_v51  ;;  %v1779_v8 = vld [vmem:[%s19283_s29 + $0x27b0] sm:$0xff]  ;;  %v16970_v22 = vcombine.low %v1795_v19, %v1803_v51  ;;  %v612_v20 = vld [vmem:[%s19283_s29 + $0x338] sm:$0xff] }
 0x588   : > { %10829 = vmatprep.subr.bf16.mxu0 %v16731_v27  ;;  %v1787_v33 = vld [vmem:[%s19283_s29 + $0x27f0] sm:$0xff] }
 0x589   : > { %10871 = vmatpush1.bf16.msra.mxu1 %v17002_v10  ;;  %v16955_v39 = vcombine.high %v1779_v8, %v1787_v33  ;;  %v1763_v29 = vld [vmem:[%s19283_s29 + $0x2730] sm:$0xff]  ;;  %v620_v10 = vld [vmem:[%s19283_s29 + $0x378] sm:$0xff]  ;;  %v16954_v27 = vcombine.low %v1779_v8, %v1787_v33 }
 0x58a   : > { %10872 = vmatprep.subr.bf16.mxu1 %v16987_v6  ;;  %v1771_v62 = vld [vmem:[%s19283_s29 + $0x2770] sm:$0xff]  ;;  %v21012_v6 = vpop.f32.mrf.mxu0  ;;  %v15789_v19 = vcombine.high %v612_v20, %v620_v10  ;;  %v15788_v26 = vcombine.low %v612_v20, %v620_v10 }
 0x58b   : > { %10830 = vmatpush1.bf16.msra.mxu0 %v16730_v36  ;;  %22166 = vst [vmem:[#allocation61_spill] sm:$0xff] %v21012_v6  ;;  %v16939_v48 = vcombine.high %v1763_v29, %v1771_v62  ;;  %v1747_v51 = vld [vmem:[%s19283_s29 + $0x26b0] sm:$0xff]  ;;  %v16938_v33 = vcombine.low %v1763_v29, %v1771_v62  ;;  %v580_v62 = vld [vmem:[%s19283_s29 + $0x238] sm:$0xff] }
 0x58c   : > { %10831 = vmatprep.subr.bf16.mxu0 %v16715_v54  ;;  %v1755_v36 = vld [vmem:[%s19283_s29 + $0x26f0] sm:$0xff]  ;;  %v596_v54 = vld [vmem:[%s19283_s29 + $0x2b8] sm:$0xff] }
 0x58d   : > { %10873 = vmatpush1.bf16.msra.mxu1 %v16986_v31  ;;  %v18684_v8 = vld [vmem:[%s22070_s0 + $0x28] ss:$44 sps:$4 sm:$0xff]   ;;  %v16922_v20 = vcombine.low %v1747_v51, %v1755_v36  ;;  %v700_v6 = vld [vmem:[%s19283_s29 + $0x5f8] sm:$0xff] }
 0x58e   : > { %10874 = vmatprep.subr.bf16.mxu1 %v16971_v17  ;;  %v604_v17 = vld [vmem:[%s19283_s29 + $0x2f8] sm:$0xff] }
 0x58f   : > { %10832 = vmatpush1.bf16.msra.mxu0 %v16714_v13  ;;  %v16923_v13 = vcombine.high %v1747_v51, %v1755_v36  ;;  %v15772_v10 = vcombine.low %v596_v54, %v604_v17 }
 0x590   : > { %10833 = vmatprep.subr.bf16.mxu0 %v16955_v39  ;;  %v1731_v39 = vld [vmem:[%s19283_s29 + $0x2630] sm:$0xff] }
 0x591   : > { %10875 = vmatpush1.bf16.msra.mxu1 %v16970_v22  ;;  %v15773_v22 = vcombine.high %v596_v54, %v604_v17  ;;  %v1699_v54 = vld [vmem:[%s19283_s29 + $0x2530] sm:$0xff] }
 0x592   : > { %10903 = vmatprep.subr.bf16.mxu1 %v15805_v45  ;;  %v10550_v31 = vpop.f32.mrf.mxu0  ;;  %v18685_v45 = vld [vmem:[%s22070_s0 + $0x4] ss:$44 sps:$4 sm:$0xff]  }
 0x593   : > { %v21019_v41 = vadd.f32 %v10550_v31, %v20973_v1  ;;  %10834 = vmatpush2.bf16.msra.mxu0 %v16954_v27  ;;  %v1739_v1 = vld [vmem:[%s19283_s29 + $0x2670] sm:$0xff]  ;;  %v588_v27 = vld [vmem:[%s19283_s29 + $0x278] sm:$0xff] }
 0x594   : > { %10893 = vmatmul.mubr.bf16.vlgmr.msra.gmra.mxu1 %v18684_v8  ;;  %v21024_v23 = vpop.f32.mrf.mxu0  ;;  %10835 = vmatprep.subr.bf16.mxu0 %v16939_v48  ;;  %v16907_v48 = vcombine.high %v1731_v39, %v1739_v1  ;;  %v1715_v31 = vld [vmem:[%s19283_s29 + $0x25b0] sm:$0xff]  ;;  %v16906_v25 = vcombine.low %v1731_v39, %v1739_v1 }
 0x595   : > { %10904 = vmatpush1.bf16.msra.mxu1 %v15804_v3  ;;  %22167 = vst [vmem:[#allocation62_spill] sm:$0xff] %v21024_v23  ;;  %10935 = vmatprep.mubr.bf16.mxu1 %v18685_v45  ;;  %v1723_v8 = vld [vmem:[%s19283_s29 + $0x25f0] sm:$0xff]  ;;  %v564_v45 = vld [vmem:[%s19283_s29 + $0x1b8] sm:$0xff] }
 0x596   : > { %10905 = vmatprep.subr.bf16.mxu1 %v15789_v19  ;;  %v10554_v29 = vpop.f32.mrf.mxu0  ;;  %v15757_v19 = vcombine.high %v580_v62, %v588_v27  ;;  %v572_v23 = vld [vmem:[%s19283_s29 + $0x1f8] sm:$0xff]  ;;  %v16891_v51 = vcombine.high %v1715_v31, %v1723_v8  ;;  %v1707_v17 = vld [vmem:[%s19283_s29 + $0x2570] sm:$0xff] }
 0x597   : > { %v21034_v3 = vadd.f32 %v10554_v29, %v20986_v44  ;;  %10836 = vmatpush2.bf16.msra.mxu0 %v16938_v33  ;;  %v15756_v44 = vcombine.low %v580_v62, %v588_v27  ;;  %v15741_v36 = vcombine.high %v564_v45, %v572_v23  ;;  %v548_v33 = vld [vmem:[%s19283_s29 + $0x138] sm:$0xff]  ;;  %v16875_v39 = vcombine.high %v1699_v54, %v1707_v17  ;;  %v1683_v29 = vld [vmem:[%s19283_s29 + $0x24b0] sm:$0xff] }
 0x598   : > { %10837 = vmatprep.subr.bf16.mxu0 %v16923_v13  ;;  %v16890_v13 = vcombine.low %v1715_v31, %v1723_v8  ;;  %v1691_v62 = vld [vmem:[%s19283_s29 + $0x24f0] sm:$0xff]  ;;  %v532_v27 = vld [vmem:[%s19283_s29 + $0xb8] sm:$0xff] }
 0x599   : > { %10906 = vmatpush1.bf16.msra.mxu1 %v15788_v26  ;;  %v556_v26 = vld [vmem:[%s19283_s29 + $0x178] sm:$0xff]  ;;  %v1675_v31 = vld [vmem:[%s19283_s29 + $0x2470] sm:$0xff] }
 0x59a   : > { %10907 = vmatprep.subr.bf16.mxu1 %v15773_v22  ;;  %v15740_v22 = vcombine.low %v564_v45, %v572_v23  ;;  %v15725_v1 = vcombine.high %v548_v33, %v556_v26  ;;  %v516_v8 = vld [vmem:[%s19283_s29 + $0x38] sm:$0xff] }
 0x59b   : > { %10838 = vmatpush2.bf16.msra.mxu0 %v16922_v20  ;;  %v540_v20 = vld [vmem:[%s19283_s29 + $0xf8] sm:$0xff] }
 0x59c   : > { %10839 = vmatprep.subr.bf16.mxu0 %v16907_v48  ;;  %v16859_v48 = vcombine.high %v1683_v29, %v1691_v62  ;;  %v15709_v23 = vcombine.high %v532_v27, %v540_v20  ;;  %v524_v45 = vld [vmem:[%s19283_s29 + $0x78] sm:$0xff] }
 0x59d   : > { %10908 = vmatpush1.bf16.msra.mxu1 %v15772_v10  ;;  %v16874_v10 = vcombine.low %v1699_v54, %v1707_v17  ;;  %v15693_v54 = vcombine.high %v516_v8, %v524_v45  ;;  %v884_v17 = vld [vmem:[%s19283_s29 + $0xbb8] sm:$0xff] }
 0x59e   : > { %10909 = vmatprep.subr.bf16.mxu1 %v15757_v19  ;;  %v1667_v19 = vld [vmem:[%s19283_s29 + $0x2430] sm:$0xff] }
 0x59f   : > { %10840 = vmatpush2.bf16.msra.mxu0 %v16906_v25  ;;  %v15724_v25 = vcombine.low %v548_v33, %v556_v26  ;;  %v892_v33 = vld [vmem:[%s19283_s29 + $0xbf8] sm:$0xff] }
 0x5a0   : > { %10841 = vmatprep.subr.bf16.mxu0 %v16891_v51  ;;  %v15708_v51 = vcombine.low %v532_v27, %v540_v20  ;;  %v756_v26 = vld [vmem:[%s19283_s29 + $0x7b8] sm:$0xff] }
 0x5a1   : > { %10910 = vmatpush1.bf16.msra.mxu1 %v15756_v44  ;;  %v16858_v44 = vcombine.low %v1683_v29, %v1691_v62  ;;  %v868_v62 = vld [vmem:[%s19283_s29 + $0xb38] sm:$0xff] }
 0x5a2   : > { %10911 = vmatprep.subr.bf16.mxu1 %v15741_v36  ;;  %v16843_v36 = vcombine.high %v1667_v19, %v1675_v31  ;;  %v876_v27 = vld [vmem:[%s19283_s29 + $0xb78] sm:$0xff] }
 0x5a3   : > { %10842 = vmatpush2.bf16.msra.mxu0 %v16890_v13  ;;  %v764_v13 = vld [vmem:[%s19283_s29 + $0x7f8] sm:$0xff] }
 0x5a4   : > { %10843 = vmatprep.subr.bf16.mxu0 %v16875_v39  ;;  %v15692_v39 = vcombine.low %v516_v8, %v524_v45  ;;  %v15933_v29 = vcombine.high %v756_v26, %v764_v13  ;;  %v740_v20 = vld [vmem:[%s19283_s29 + $0x738] sm:$0xff] }
 0x5a5   : > { %10912 = vmatpush1.bf16.msra.mxu1 %v15740_v22  ;;  %v16842_v22 = vcombine.low %v1667_v19, %v1675_v31  ;;  %v16045_v19 = vcombine.high %v868_v62, %v876_v27  ;;  %v21062_v31 = vpop.f32.mrf.mxu1  ;;  %v852_v45 = vld [vmem:[%s19283_s29 + $0xab8] sm:$0xff] }
 0x5a6   : > { %10913 = vmatprep.subr.bf16.mxu1 %v15725_v1  ;;  %v16061_v1 = vcombine.high %v884_v17, %v892_v33  ;;  %22169 = vst [vmem:[#allocation64_spill] sm:$0xff] %v21062_v31  ;;  %v708_v31 = vld [vmem:[%s19283_s29 + $0x638] sm:$0xff] }
 0x5a7   : > { %10844 = vmatpush2.bf16.msra.mxu0 %v16874_v10  ;;  %v748_v10 = vld [vmem:[%s19283_s29 + $0x778] sm:$0xff] }
 0x5a8   : > { %10845 = vmatprep.subr.bf16.mxu0 %v16859_v48  ;;  %v21060_v48 = vpop.f32.mrf.mxu0  ;;  %v15917_v8 = vcombine.high %v740_v20, %v748_v10 }
 0x5a9   : > { %10914 = vmatpush1.bf16.msra.mxu1 %v15724_v25  ;;  %v16060_v25 = vcombine.low %v884_v17, %v892_v33  ;;  %22168 = vst [vmem:[#allocation63_spill] sm:$0xff] %v21060_v48  ;;  %v732_v17 = vld [vmem:[%s19283_s29 + $0x6f8] sm:$0xff] }
 0x5aa   : > { %10915 = vmatprep.subr.bf16.mxu1 %v15709_v23  ;;  %v15932_v23 = vcombine.low %v756_v26, %v764_v13  ;;  %v16044_v26 = vcombine.low %v868_v62, %v876_v27  ;;  %v18687_v13 = vld [vmem:[%s22070_s0 + $0xc] ss:$44 sps:$4 sm:$0xff]  }
 0x5ab   : > { %10846 = vmatpush2.bf16.msra.mxu0 %v16858_v44  ;;  %v860_v44 = vld [vmem:[%s19283_s29 + $0xaf8] sm:$0xff] }
 0x5ac   : > { %10847 = vmatprep.subr.bf16.mxu0 %v16843_v36  ;;  %v18686_v36 = vld [vmem:[%s22070_s0 + $0x20] ss:$44 sps:$4 sm:$0xff]   ;;  %v836_v48 = vld [vmem:[%s19283_s29 + $0xa38] sm:$0xff] }
 0x5ad   : > { %10916 = vmatpush1.bf16.msra.mxu1 %v15708_v51  ;;  %v844_v62 = vld [vmem:[%s19283_s29 + $0xa78] sm:$0xff] }
 0x5ae   : > { %10917 = vmatprep.subr.bf16.mxu1 %v15693_v54  ;;  %v724_v54 = vld [vmem:[%s19283_s29 + $0x6b8] sm:$0xff] }
 0x5af   : > { %10848 = vmatpush2.bf16.msra.mxu0 %v16842_v22 }
 0x5b0   : > { %10946 = vmatprep.subr.bf16.mxu0 %v16061_v1  ;;  %v16029_v1 = vcombine.high %v852_v45, %v860_v44 }
 0x5b1   : > { %10918 = vmatpush1.bf16.msra.mxu1 %v15692_v39  ;;  %v15916_v39 = vcombine.low %v740_v20, %v748_v10  ;;  %v16028_v20 = vcombine.low %v852_v45, %v860_v44  ;;  %v16012_v45 = vcombine.low %v836_v48, %v844_v62 }
 0x5b2   : > { %10919 = vmatprep.subr.bf16.mxu1 %v15933_v29  ;;  %v10636_v51 = vpop.f32.mrf.mxu0  ;;  %10850 = vmatmul.mubr.bf16.vlgmr.msra.gmra.mxu0 %v18686_v36 }
 0x5b3   : > { %10947 = vmatpush1.bf16.msra.mxu0 %v16060_v25  ;;  %10978 = vmatprep.mubr.bf16.mxu0 %v18687_v13  ;;  %v15901_v25 = vcombine.high %v724_v54, %v732_v17  ;;  %v716_v13 = vld [vmem:[%s19283_s29 + $0x678] sm:$0xff] }
 0x5b4   : > { %v10593_v33 = vpop.f32.mrf.mxu1  ;;  %10948 = vmatprep.subr.bf16.mxu0 %v16045_v19  ;;  %v21077_v36 = vpop.f32.mrf.mxu0  ;;  %v16013_v19 = vcombine.high %v836_v48, %v844_v62 }
 0x5b5   : > { %v10594_v22 = vadd.f32 %v10593_v33, %v21019_v41  ;;  %10920 = vmatpush2.bf16.msra.mxu1 %v15932_v23  ;;  %22171 = vst [vmem:[#allocation66_spill] sm:$0xff] %v21077_v36  ;;  %v15900_v23 = vcombine.low %v724_v54, %v732_v17  ;;  %v15885_v33 = vcombine.high %v708_v31, %v716_v13  ;;  %v820_v36 = vld [vmem:[%s19283_s29 + $0x9b8] sm:$0xff] }
 0x5b6   : > { %v21075_v29 = vpop.f32.mrf.mxu1  ;;  %10921 = vmatprep.subr.bf16.mxu1 %v15917_v8  ;;  %v10640_v8 = vpop.f32.mrf.mxu0  ;;  %v15884_v54 = vcombine.low %v708_v31, %v716_v13  ;;  %v788_v13 = vld [vmem:[%s19283_s29 + $0x8b8] sm:$0xff] }
 0x5b7   : > { %22170 = vst [vmem:[#allocation65_spill] sm:$0xff] %v21075_v29  ;;  %v10637_v27 = vadd.f32 %v10636_v51, %v10594_v22  ;;  %10949 = vmatpush1.bf16.msra.mxu0 %v16044_v26  ;;  %v828_v51 = vld [vmem:[%s19283_s29 + $0x9f8] sm:$0xff] }
 0x5b8   : > { %v10597_v41 = vpop.f32.mrf.mxu1  ;;  %10950 = vmatprep.subr.bf16.mxu0 %v16029_v1  ;;  %v692_v29 = vld [vmem:[%s19283_s29 + $0x5b8] sm:$0xff]  ;;  %v15997_v17 = vcombine.high %v820_v36, %v828_v51  ;;  %v15996_v48 = vcombine.low %v820_v36, %v828_v51 }
 0x5b9   : > { %v10598_v10 = vadd.f32 %v10597_v41, %v21034_v3  ;;  %10922 = vmatpush2.bf16.msra.mxu1 %v15916_v39  ;;  %v11171_v44 = vmax.f32 %v10637_v27, 0.0  ;;  %v15869_v26 = vcombine.high %v692_v29, %v700_v6  ;;  %v804_v39 = vld [vmem:[%s19283_s29 + $0x938] sm:$0xff]  ;;  %v15868_v62 = vcombine.low %v692_v29, %v700_v6 }
 0x5ba   : > { %10923 = vmatprep.subr.bf16.mxu1 %v15901_v25  ;;  %v812_v1 = vld [vmem:[%s19283_s29 + $0x978] sm:$0xff] }
 0x5bb   : > { %v10641_v22 = vadd.f32 %v10640_v8, %v10598_v10  ;;  %10951 = vmatpush1.bf16.msra.mxu0 %v16028_v20  ;;  %v676_v41 = vld [vmem:[%s19283_s29 + $0x538] sm:$0xff]  ;;  %v15981_v31 = vcombine.high %v804_v39, %v812_v1  ;;  %v15980_v8 = vcombine.low %v804_v39, %v812_v1 }
 0x5bc   : > { %10952 = vmatprep.subr.bf16.mxu0 %v16013_v19  ;;  %v684_v10 = vld [vmem:[%s19283_s29 + $0x578] sm:$0xff] }
 0x5bd   : > { %v11187_v3 = vmax.f32 %v10641_v22, 0.0  ;;  %10924 = vmatpush2.bf16.msra.mxu1 %v15900_v23  ;;  %v15853_v27 = vcombine.high %v676_v41, %v684_v10  ;;  %v796_v20 = vld [vmem:[%s19283_s29 + $0x8f8] sm:$0xff] }
 0x5be   : > { %10925 = vmatprep.subr.bf16.mxu1 %v15885_v33  ;;  %v660_v23 = vld [vmem:[%s19283_s29 + $0x4b8] sm:$0xff]  ;;  %v15852_v33 = vcombine.low %v676_v41, %v684_v10  ;;  %v15965_v36 = vcombine.high %v788_v13, %v796_v20 }
 0x5bf   : > { %v21090_v25 = vpack.c.bf16 %v11187_v3, %v11171_v44  ;;  %10953 = vmatpush1.bf16.msra.mxu0 %v16012_v45  ;;  %v668_v19 = vld [vmem:[%s19283_s29 + $0x4f8] sm:$0xff]  ;;  %v15964_v44 = vcombine.low %v788_v13, %v796_v20 }
 0x5c0   : > { %10954 = vmatprep.subr.bf16.mxu0 %v15997_v17  ;;  %v15837_v6 = vcombine.high %v660_v23, %v668_v19  ;;  %v772_v29 = vld [vmem:[%s19283_s29 + $0x838] sm:$0xff]  ;;  %v15836_v3 = vcombine.low %v660_v23, %v668_v19 }
 0x5c1   : > { %22172 = vst [vmem:[#allocation67_spill] sm:$0xff] %v21090_v25  ;;  %10926 = vmatpush2.bf16.msra.mxu1 %v15884_v54  ;;  %v780_v51 = vld [vmem:[%s19283_s29 + $0x878] sm:$0xff] }
 0x5c2   : > { %10927 = vmatprep.subr.bf16.mxu1 %v15869_v26  ;;  %v644_v22 = vld [vmem:[%s19283_s29 + $0x438] sm:$0xff]  ;;  %v15949_v54 = vcombine.high %v772_v29, %v780_v51  ;;  %v15948_v10 = vcombine.low %v772_v29, %v780_v51 }
 0x5c3   : > { %10955 = vmatpush1.bf16.msra.mxu0 %v15996_v48  ;;  %v652_v45 = vld [vmem:[%s19283_s29 + $0x478] sm:$0xff] }
 0x5c4   : > { %10956 = vmatprep.subr.bf16.mxu0 %v15981_v31  ;;  %v15821_v17 = vcombine.high %v644_v22, %v652_v45  ;;  %v1012_v26 = vld [vmem:[%s19283_s29 + $0xfb8] sm:$0xff]  ;;  %v15820_v48 = vcombine.low %v644_v22, %v652_v45  ;;  %v18688_v45 = vld [vmem:[%s22070_s0] ss:$44 sps:$4 sm:$0xff]  }
 0x5c5   : > { %10928 = vmatpush2.bf16.msra.mxu1 %v15868_v62  ;;  %v1020_v39 = vld [vmem:[%s19283_s29 + $0xff8] sm:$0xff] }
 0x5c6   : > { %10929 = vmatprep.subr.bf16.mxu1 %v15853_v27  ;;  %v1140_v1 = vld [vmem:[%s19283_s29 + $0x13b8] sm:$0xff]  ;;  %v16189_v62 = vcombine.high %v1012_v26, %v1020_v39  ;;  %v16188_v19 = vcombine.low %v1012_v26, %v1020_v39 }
 0x5c7   : > { %10957 = vmatpush1.bf16.msra.mxu0 %v15980_v8  ;;  %v1148_v41 = vld [vmem:[%s19283_s29 + $0x13f8] sm:$0xff] }
 0x5c8   : > { %10958 = vmatprep.subr.bf16.mxu0 %v15965_v36  ;;  %v16317_v31 = vcombine.high %v1140_v1, %v1148_v41  ;;  %v996_v27 = vld [vmem:[%s19283_s29 + $0xf38] sm:$0xff]  ;;  %v16316_v8 = vcombine.low %v1140_v1, %v1148_v41  ;;  %v18689_v1 = vld [vmem:[%s22070_s0 + $0x14] ss:$44 sps:$4 sm:$0xff]  }
 0x5c9   : > { %10930 = vmatpush2.bf16.msra.mxu1 %v15852_v33  ;;  %v1004_v13 = vld [vmem:[%s19283_s29 + $0xf78] sm:$0xff] }
 0x5ca   : > { %10931 = vmatprep.subr.bf16.mxu1 %v15837_v6  ;;  %v1124_v20 = vld [vmem:[%s19283_s29 + $0x1338] sm:$0xff]  ;;  %v16173_v33 = vcombine.high %v996_v27, %v1004_v13 }
 0x5cb   : > { %10959 = vmatpush1.bf16.msra.mxu0 %v15964_v44  ;;  %v1132_v23 = vld [vmem:[%s19283_s29 + $0x1378] sm:$0xff]  ;;  %v16172_v44 = vcombine.low %v996_v27, %v1004_v13 }
 0x5cc   : > { %10960 = vmatprep.subr.bf16.mxu0 %v15949_v54  ;;  %v16301_v36 = vcombine.high %v1124_v20, %v1132_v23  ;;  %v980_v6 = vld [vmem:[%s19283_s29 + $0xeb8] sm:$0xff] }
 0x5cd   : > { %10932 = vmatpush2.bf16.msra.mxu1 %v15836_v3  ;;  %v988_v29 = vld [vmem:[%s19283_s29 + $0xef8] sm:$0xff]  ;;  %v16300_v3 = vcombine.low %v1124_v20, %v1132_v23 }
 0x5ce   : > { %10933 = vmatprep.subr.bf16.mxu1 %v15821_v17  ;;  %v1108_v51 = vld [vmem:[%s19283_s29 + $0x12b8] sm:$0xff]  ;;  %v16157_v54 = vcombine.high %v980_v6, %v988_v29 }
 0x5cf   : > { %10961 = vmatpush1.bf16.msra.mxu0 %v15948_v10  ;;  %v1116_v22 = vld [vmem:[%s19283_s29 + $0x12f8] sm:$0xff] }
 0x5d0   : > { %10962 = vmatprep.subr.bf16.mxu0 %v16189_v62  ;;  %v16285_v17 = vcombine.high %v1108_v51, %v1116_v22  ;;  %v964_v26 = vld [vmem:[%s19283_s29 + $0xe38] sm:$0xff]  ;;  %v16284_v62 = vcombine.low %v1108_v51, %v1116_v22 }
 0x5d1   : > { %10934 = vmatpush2.bf16.msra.mxu1 %v15820_v48  ;;  %v972_v39 = vld [vmem:[%s19283_s29 + $0xe78] sm:$0xff]  ;;  %v16156_v48 = vcombine.low %v980_v6, %v988_v29 }
 0x5d2   : > { %10989 = vmatprep.subr.bf16.mxu1 %v16317_v31  ;;  %v1092_v41 = vld [vmem:[%s19283_s29 + $0x1238] sm:$0xff]  ;;  %v16141_v31 = vcombine.high %v964_v26, %v972_v39 }
 0x5d3   : > { %10963 = vmatpush2.bf16.msra.mxu0 %v16188_v19  ;;  %v1100_v10 = vld [vmem:[%s19283_s29 + $0x1278] sm:$0xff] }
 0x5d4   : > { %10936 = vmatmul.mubr.bf16.vlgmr.msra.gmra.mxu1 %v18688_v45  ;;  %10964 = vmatprep.subr.bf16.mxu0 %v16173_v33  ;;  %v16269_v27 = vcombine.high %v1092_v41, %v1100_v10  ;;  %v948_v13 = vld [vmem:[%s19283_s29 + $0xdb8] sm:$0xff]  ;;  %v16268_v33 = vcombine.low %v1092_v41, %v1100_v10 }
 0x5d5   : > { %10990 = vmatpush1.bf16.msra.mxu1 %v16316_v8  ;;  %11021 = vmatprep.mubr.bf16.mxu1 %v18689_v1  ;;  %v956_v20 = vld [vmem:[%s19283_s29 + $0xdf8] sm:$0xff]  ;;  %v16140_v8 = vcombine.low %v964_v26, %v972_v39 }
 0x5d6   : > { %10991 = vmatprep.subr.bf16.mxu1 %v16301_v36  ;;  %v1076_v23 = vld [vmem:[%s19283_s29 + $0x11b8] sm:$0xff]  ;;  %v16125_v36 = vcombine.high %v948_v13, %v956_v20 }
 0x5d7   : > { %10965 = vmatpush2.bf16.msra.mxu0 %v16172_v44  ;;  %v1084_v19 = vld [vmem:[%s19283_s29 + $0x11f8] sm:$0xff]  ;;  %v16124_v44 = vcombine.low %v948_v13, %v956_v20 }
 0x5d8   : > { %10966 = vmatprep.subr.bf16.mxu0 %v16157_v54  ;;  %v16253_v6 = vcombine.high %v1076_v23, %v1084_v19  ;;  %v932_v29 = vld [vmem:[%s19283_s29 + $0xd38] sm:$0xff] }
 0x5d9   : > { %10992 = vmatpush1.bf16.msra.mxu1 %v16300_v3  ;;  %v940_v51 = vld [vmem:[%s19283_s29 + $0xd78] sm:$0xff]  ;;  %v16252_v3 = vcombine.low %v1076_v23, %v1084_v19 }
 0x5da   : > { %10993 = vmatprep.subr.bf16.mxu1 %v16285_v17  ;;  %v1060_v22 = vld [vmem:[%s19283_s29 + $0x1138] sm:$0xff]  ;;  %v16109_v54 = vcombine.high %v932_v29, %v940_v51  ;;  %v16108_v10 = vcombine.low %v932_v29, %v940_v51 }
 0x5db   : > { %10967 = vmatpush2.bf16.msra.mxu0 %v16156_v48  ;;  %v1068_v45 = vld [vmem:[%s19283_s29 + $0x1178] sm:$0xff] }
 0x5dc   : > { %10968 = vmatprep.subr.bf16.mxu0 %v16141_v31  ;;  %v16237_v17 = vcombine.high %v1060_v22, %v1068_v45  ;;  %v916_v26 = vld [vmem:[%s19283_s29 + $0xcb8] sm:$0xff]  ;;  %v16236_v48 = vcombine.low %v1060_v22, %v1068_v45 }
 0x5dd   : > { %10994 = vmatpush1.bf16.msra.mxu1 %v16284_v62  ;;  %v924_v39 = vld [vmem:[%s19283_s29 + $0xcf8] sm:$0xff] }
 0x5de   : > { %10995 = vmatprep.subr.bf16.mxu1 %v16269_v27  ;;  %v1044_v1 = vld [vmem:[%s19283_s29 + $0x10b8] sm:$0xff]  ;;  %v16093_v62 = vcombine.high %v916_v26, %v924_v39  ;;  %v16092_v19 = vcombine.low %v916_v26, %v924_v39 }
 0x5df   : > { %10969 = vmatpush2.bf16.msra.mxu0 %v16140_v8  ;;  %v1052_v41 = vld [vmem:[%s19283_s29 + $0x10f8] sm:$0xff] }
 0x5e0   : > { %10970 = vmatprep.subr.bf16.mxu0 %v16125_v36  ;;  %v16221_v31 = vcombine.high %v1044_v1, %v1052_v41  ;;  %v900_v27 = vld [vmem:[%s19283_s29 + $0xc38] sm:$0xff]  ;;  %v16220_v8 = vcombine.low %v1044_v1, %v1052_v41 }
 0x5e1   : > { %10996 = vmatpush1.bf16.msra.mxu1 %v16268_v33  ;;  %v908_v13 = vld [vmem:[%s19283_s29 + $0xc78] sm:$0xff] }
 0x5e2   : > { %10997 = vmatprep.subr.bf16.mxu1 %v16253_v6  ;;  %v1028_v20 = vld [vmem:[%s19283_s29 + $0x1038] sm:$0xff]  ;;  %v16077_v33 = vcombine.high %v900_v27, %v908_v13  ;;  %v16076_v45 = vcombine.low %v900_v27, %v908_v13 }
 0x5e3   : > { %10971 = vmatpush2.bf16.msra.mxu0 %v16124_v44  ;;  %v1036_v23 = vld [vmem:[%s19283_s29 + $0x1078] sm:$0xff] }
 0x5e4   : > { %10972 = vmatprep.subr.bf16.mxu0 %v16109_v54  ;;  %v16205_v36 = vcombine.high %v1028_v20, %v1036_v23  ;;  %v1396_v6 = vld [vmem:[%s19283_s29 + $0x1bb8] sm:$0xff]  ;;  %v16204_v44 = vcombine.low %v1028_v20, %v1036_v23  ;;  %v21153_v20 = vpop.f32.mrf.mxu1 }
 0x5e5   : > { %10998 = vmatpush1.bf16.msra.mxu1 %v16252_v3  ;;  %v1404_v29 = vld [vmem:[%s19283_s29 + $0x1bf8] sm:$0xff]  ;;  %22175 = vst [vmem:[#allocation69_spill] sm:$0xff] %v21153_v20 }
 0x5e6   : > { %10999 = vmatprep.subr.bf16.mxu1 %v16237_v17  ;;  %v1268_v51 = vld [vmem:[%s19283_s29 + $0x17b8] sm:$0xff]  ;;  %v16573_v3 = vcombine.high %v1396_v6, %v1404_v29 }
 0x5e7   : > { %10973 = vmatpush2.bf16.msra.mxu0 %v16108_v10  ;;  %v1276_v22 = vld [vmem:[%s19283_s29 + $0x17f8] sm:$0xff]  ;;  %v22173_v10 = vsub.s32 4, %v19614_v16 }
 0x5e8   : > { %10974 = vmatprep.subr.bf16.mxu0 %v16093_v62  ;;  %v16445_v54 = vcombine.high %v1268_v51, %v1276_v22  ;;  %v1380_v17 = vld [vmem:[%s19283_s29 + $0x1b38] sm:$0xff]  ;;  %v16572_v62 = vcombine.low %v1396_v6, %v1404_v29  ;;  %v16444_v27 = vcombine.low %v1268_v51, %v1276_v22 }
 0x5e9   : > { %11000 = vmatpush1.bf16.msra.mxu1 %v16236_v48  ;;  %v1388_v26 = vld [vmem:[%s19283_s29 + $0x1b78] sm:$0xff] }
 0x5ea   : > { %11001 = vmatprep.subr.bf16.mxu1 %v16221_v31  ;;  %v1252_v39 = vld [vmem:[%s19283_s29 + $0x1738] sm:$0xff]  ;;  %v21151_v31 = vpop.f32.mrf.mxu0  ;;  %v16557_v13 = vcombine.high %v1380_v17, %v1388_v26  ;;  %v16556_v22 = vcombine.low %v1380_v17, %v1388_v26 }
 0x5eb   : > { %10975 = vmatpush2.bf16.msra.mxu0 %v16092_v19  ;;  %v1260_v1 = vld [vmem:[%s19283_s29 + $0x1778] sm:$0xff]  ;;  %22174 = vst [vmem:[#allocation68_spill] sm:$0xff] %v21151_v31 }
 0x5ec   : > { %10976 = vmatprep.subr.bf16.mxu0 %v16077_v33  ;;  %v18690_v41 = vld [vmem:[%s19290_s28 + $0x8] sm:$0xff]  ;;  %v16429_v23 = vcombine.high %v1252_v39, %v1260_v1 }
 0x5ed   : > { %11002 = vmatpush1.bf16.msra.mxu1 %v16220_v8  ;;  %v1972_v48 = vrot.slane %v18690_v41, %v22173_v10  ;;  %v1364_v19 = vld [vmem:[%s19283_s29 + $0x1ab8] sm:$0xff] }
 0x5ee   : > { %11003 = vmatprep.subr.bf16.mxu1 %v16205_v36  ;;  %v1372_v8 = vld [vmem:[%s19283_s29 + $0x1af8] sm:$0xff]  ;;  %v18691_v36 = vld [vmem:[%s22070_s0 + $0x8] ss:$44 sps:$4 sm:$0xff]  }
 0x5ef   : > { %10977 = vmatpush2.bf16.msra.mxu0 %v16076_v45  ;;  %v1236_v45 = vld [vmem:[%s19283_s29 + $0x16b8] sm:$0xff]  ;;  %v16541_v41 = vcombine.high %v1364_v19, %v1372_v8 }
 0x5f0   : > { %11032 = vmatprep.subr.bf16.mxu0 %v16573_v3  ;;  %v1244_v6 = vld [vmem:[%s19283_s29 + $0x16f8] sm:$0xff] }
 0x5f1   : > { %11004 = vmatpush1.bf16.msra.mxu1 %v16204_v44  ;;  %v18692_v44 = vld [vmem:[%s22070_s0 + $0x1c] ss:$44 sps:$4 sm:$0xff]  }
 0x5f2   : > { %11005 = vmatprep.subr.bf16.mxu1 %v16445_v54  ;;  %v10679_v33 = vpop.f32.mrf.mxu0  ;;  %10979 = vmatmul.mubr.bf16.vlgmr.msra.gmra.mxu0 %v18691_v36  ;;  %v16428_v54 = vcombine.low %v1252_v39, %v1260_v1  ;;  %v1348_v36 = vld [vmem:[%s19283_s29 + $0x1a38] sm:$0xff]  ;;  %v16540_v39 = vcombine.low %v1364_v19, %v1372_v8 }
 0x5f3   : > { %v10680_v29 = vadd.f32 %v10679_v33, %v1972_v48  ;;  %11033 = vmatpush1.bf16.msra.mxu0 %v16572_v62  ;;  %11064 = vmatprep.mubr.bf16.mxu0 %v18692_v44  ;;  %v16413_v62 = vcombine.high %v1236_v45, %v1244_v6  ;;  %v1356_v17 = vld [vmem:[%s19283_s29 + $0x1a78] sm:$0xff] }
 0x5f4   : > { %v10722_v51 = vpop.f32.mrf.mxu1  ;;  %v21165_v3 = vpop.f32.mrf.mxu0  ;;  %11034 = vmatprep.subr.bf16.mxu0 %v16557_v13  ;;  %v1220_v25 = vld [vmem:[%s19283_s29 + $0x1638] sm:$0xff]  ;;  %v16412_v13 = vcombine.low %v1236_v45, %v1244_v6 }
 0x5f5   : > { %11006 = vmatpush2.bf16.msra.mxu1 %v16444_v27  ;;  %22176 = vst [vmem:[#allocation70_spill] sm:$0xff] %v21165_v3  ;;  %v21167_v10 = vadd.f32 %v10722_v51, %v10680_v29  ;;  %v1228_v27 = vld [vmem:[%s19283_s29 + $0x1678] sm:$0xff]  ;;  %v16525_v29 = vcombine.high %v1348_v36, %v1356_v17 }
 0x5f6   : > { %v21169_v33 = vpop.f32.mrf.mxu1  ;;  %11007 = vmatprep.subr.bf16.mxu1 %v16429_v23  ;;  %v10683_v26 = vpop.f32.mrf.mxu0  ;;  %v16397_v51 = vcombine.high %v1220_v25, %v1228_v27  ;;  %v1340_v3 = vld [vmem:[%s19283_s29 + $0x19f8] sm:$0xff]  ;;  %v16396_v19 = vcombine.low %v1220_v25, %v1228_v27 }
 0x5f7   : > { %22177 = vst [vmem:[#allocation71_spill] sm:$0xff] %v21169_v33  ;;  %v10684_v44 = vadd.f32 %v10683_v26, %v1972_v48  ;;  %11035 = vmatpush1.bf16.msra.mxu0 %v16556_v22  ;;  %v1332_v33 = vld [vmem:[%s19283_s29 + $0x19b8] sm:$0xff]  ;;  %v16524_v48 = vcombine.low %v1348_v36, %v1356_v17 }
 0x5f8   : > { %v10726_v1 = vpop.f32.mrf.mxu1  ;;  %11036 = vmatprep.subr.bf16.mxu0 %v16541_v41  ;;  %v1204_v31 = vld [vmem:[%s19283_s29 + $0x15b8] sm:$0xff]  ;;  %v16509_v8 = vcombine.high %v1332_v33, %v1340_v3 }
 0x5f9   : > { %11008 = vmatpush2.bf16.msra.mxu1 %v16428_v54  ;;  %v21175_v23 = vadd.f32 %v10726_v1, %v10684_v44  ;;  %v1212_v20 = vld [vmem:[%s19283_s29 + $0x15f8] sm:$0xff] }
 0x5fa   : > { %11009 = vmatprep.subr.bf16.mxu1 %v16413_v62  ;;  %v16381_v45 = vcombine.high %v1204_v31, %v1212_v20  ;;  %v1316_v6 = vld [vmem:[%s19283_s29 + $0x1938] sm:$0xff]  ;;  %v16508_v62 = vcombine.low %v1332_v33, %v1340_v3  ;;  %v16380_v26 = vcombine.low %v1204_v31, %v1212_v20 }
 0x5fb   : > { %11037 = vmatpush1.bf16.msra.mxu0 %v16540_v39  ;;  %v1324_v22 = vld [vmem:[%s19283_s29 + $0x1978] sm:$0xff] }
 0x5fc   : > { %11038 = vmatprep.subr.bf16.mxu0 %v16525_v29  ;;  %v1188_v54 = vld [vmem:[%s19283_s29 + $0x1538] sm:$0xff]  ;;  %v16493_v36 = vcombine.high %v1316_v6, %v1324_v22  ;;  %v16492_v1 = vcombine.low %v1316_v6, %v1324_v22 }
 0x5fd   : > { %11010 = vmatpush2.bf16.msra.mxu1 %v16412_v13  ;;  %v1196_v41 = vld [vmem:[%s19283_s29 + $0x1578] sm:$0xff] }
 0x5fe   : > { %11011 = vmatprep.subr.bf16.mxu1 %v16397_v51  ;;  %v16365_v25 = vcombine.high %v1188_v54, %v1196_v41  ;;  %v1300_v17 = vld [vmem:[%s19283_s29 + $0x18b8] sm:$0xff]  ;;  %v16364_v13 = vcombine.low %v1188_v54, %v1196_v41 }
 0x5ff   : > { %11039 = vmatpush1.bf16.msra.mxu0 %v16524_v48  ;;  %v1308_v27 = vld [vmem:[%s19283_s29 + $0x18f8] sm:$0xff] }
 0x600   : > { %11040 = vmatprep.subr.bf16.mxu0 %v16509_v8  ;;  %v1172_v44 = vld [vmem:[%s19283_s29 + $0x14b8] sm:$0xff]  ;;  %v16477_v3 = vcombine.high %v1300_v17, %v1308_v27  ;;  %v16476_v48 = vcombine.low %v1300_v17, %v1308_v27 }
 0x601   : > { %11012 = vmatpush2.bf16.msra.mxu1 %v16396_v19  ;;  %v1180_v39 = vld [vmem:[%s19283_s29 + $0x14f8] sm:$0xff] }
 0x602   : > { %11013 = vmatprep.subr.bf16.mxu1 %v16381_v45  ;;  %v16349_v31 = vcombine.high %v1172_v44, %v1180_v39  ;;  %v1284_v20 = vld [vmem:[%s19283_s29 + $0x1838] sm:$0xff]  ;;  %v16348_v19 = vcombine.low %v1172_v44, %v1180_v39 }
 0x603   : > { %11041 = vmatpush1.bf16.msra.mxu0 %v16508_v62  ;;  %v1292_v33 = vld [vmem:[%s19283_s29 + $0x1878] sm:$0xff] }
 0x604   : > { %11042 = vmatprep.subr.bf16.mxu0 %v16493_v36  ;;  %v1156_v29 = vld [vmem:[%s19283_s29 + $0x1438] sm:$0xff]  ;;  %v16461_v8 = vcombine.high %v1284_v20, %v1292_v33  ;;  %v16460_v62 = vcombine.low %v1284_v20, %v1292_v33 }
 0x605   : > { %11014 = vmatpush2.bf16.msra.mxu1 %v16380_v26  ;;  %v1164_v51 = vld [vmem:[%s19283_s29 + $0x1478] sm:$0xff] }
 0x606   : > { %11015 = vmatprep.subr.bf16.mxu1 %v16365_v25  ;;  %v16333_v45 = vcombine.high %v1156_v29, %v1164_v51  ;;  %v1524_v6 = vld [vmem:[%s19283_s29 + $0x1fb8] sm:$0xff]  ;;  %v16332_v26 = vcombine.low %v1156_v29, %v1164_v51 }
 0x607   : > { %11043 = vmatpush1.bf16.msra.mxu0 %v16492_v1  ;;  %v1532_v22 = vld [vmem:[%s19283_s29 + $0x1ff8] sm:$0xff] }
 0x608   : > { %11044 = vmatprep.subr.bf16.mxu0 %v16477_v3  ;;  %v1652_v54 = vld [vmem:[%s19283_s29 + $0x23b8] sm:$0xff]  ;;  %v16701_v36 = vcombine.high %v1524_v6, %v1532_v22  ;;  %v16700_v1 = vcombine.low %v1524_v6, %v1532_v22 }
 0x609   : > { %11016 = vmatpush2.bf16.msra.mxu1 %v16364_v13  ;;  %v1660_v41 = vld [vmem:[%s19283_s29 + $0x23f8] sm:$0xff] }
 0x60a   : > { %11017 = vmatprep.subr.bf16.mxu1 %v16349_v31  ;;  %v16829_v25 = vcombine.high %v1652_v54, %v1660_v41  ;;  %v1508_v17 = vld [vmem:[%s19283_s29 + $0x1f38] sm:$0xff]  ;;  %v16828_v13 = vcombine.low %v1652_v54, %v1660_v41  ;;  %v18694_v41 = vld [vmem:[%s22070_s0 + $0x24] ss:$44 sps:$4 sm:$0xff]  }
 0x60b   : > { %11045 = vmatpush1.bf16.msra.mxu0 %v16476_v48  ;;  %v1516_v27 = vld [vmem:[%s19283_s29 + $0x1f78] sm:$0xff] }
 0x60c   : > { %11046 = vmatprep.subr.bf16.mxu0 %v16461_v8  ;;  %v1636_v44 = vld [vmem:[%s19283_s29 + $0x2338] sm:$0xff]  ;;  %v16685_v3 = vcombine.high %v1508_v17, %v1516_v27 }
 0x60d   : > { %11018 = vmatpush2.bf16.msra.mxu1 %v16348_v19  ;;  %v1644_v39 = vld [vmem:[%s19283_s29 + $0x2378] sm:$0xff]  ;;  %v16684_v19 = vcombine.low %v1508_v17, %v1516_v27 }
 0x60e   : > { %11019 = vmatprep.subr.bf16.mxu1 %v16333_v45  ;;  %v16813_v31 = vcombine.high %v1636_v44, %v1644_v39  ;;  %v1492_v20 = vld [vmem:[%s19283_s29 + $0x1eb8] sm:$0xff]  ;;  %v16812_v8 = vcombine.low %v1636_v44, %v1644_v39 }
 0x60f   : > { %11047 = vmatpush1.bf16.msra.mxu0 %v16460_v62  ;;  %v1500_v33 = vld [vmem:[%s19283_s29 + $0x1ef8] sm:$0xff] }
 0x610   : > { %11048 = vmatprep.subr.bf16.mxu0 %v16701_v36  ;;  %v1620_v29 = vld [vmem:[%s19283_s29 + $0x22b8] sm:$0xff]  ;;  %v16669_v45 = vcombine.high %v1492_v20, %v1500_v33  ;;  %v16668_v36 = vcombine.low %v1492_v20, %v1500_v33 }
 0x611   : > { %11020 = vmatpush2.bf16.msra.mxu1 %v16332_v26  ;;  %v1628_v51 = vld [vmem:[%s19283_s29 + $0x22f8] sm:$0xff] }
 0x612   : > { %11075 = vmatprep.subr.bf16.mxu1 %v16829_v25  ;;  %v18693_v48 = vld [vmem:[%s22070_s0 + $0x10] ss:$44 sps:$4 sm:$0xff]   ;;  %v16797_v6 = vcombine.high %v1620_v29, %v1628_v51  ;;  %v16796_v25 = vcombine.low %v1620_v29, %v1628_v51 }
 0x613   : > { %11049 = vmatpush2.bf16.msra.mxu0 %v16700_v1  ;;  %v1476_v22 = vld [vmem:[%s19283_s29 + $0x1e38] sm:$0xff] }
 0x614   : > { %11022 = vmatmul.mubr.bf16.vlgmr.msra.gmra.mxu1 %v18693_v48  ;;  %11050 = vmatprep.subr.bf16.mxu0 %v16685_v3  ;;  %v1484_v54 = vld [vmem:[%s19283_s29 + $0x1e78] sm:$0xff] }
 0x615   : > { %11076 = vmatpush1.bf16.msra.mxu1 %v16828_v13  ;;  %11107 = vmatprep.mubr.bf16.mxu1 %v18694_v41  ;;  %v1604_v62 = vld [vmem:[%s19283_s29 + $0x2238] sm:$0xff]  ;;  %v16653_v17 = vcombine.high %v1476_v22, %v1484_v54  ;;  %v16652_v3 = vcombine.low %v1476_v22, %v1484_v54 }
 0x616   : > { %11077 = vmatprep.subr.bf16.mxu1 %v16813_v31  ;;  %v1612_v26 = vld [vmem:[%s19283_s29 + $0x2278] sm:$0xff] }
 0x617   : > { %11051 = vmatpush2.bf16.msra.mxu0 %v16684_v19  ;;  %v16781_v27 = vcombine.high %v1604_v62, %v1612_v26  ;;  %v1460_v44 = vld [vmem:[%s19283_s29 + $0x1db8] sm:$0xff]  ;;  %v16780_v31 = vcombine.low %v1604_v62, %v1612_v26 }
 0x618   : > { %11052 = vmatprep.subr.bf16.mxu0 %v16669_v45  ;;  %v1468_v39 = vld [vmem:[%s19283_s29 + $0x1df8] sm:$0xff] }
 0x619   : > { %11078 = vmatpush1.bf16.msra.mxu1 %v16812_v8  ;;  %v1588_v1 = vld [vmem:[%s19283_s29 + $0x21b8] sm:$0xff]  ;;  %v16637_v20 = vcombine.high %v1460_v44, %v1468_v39  ;;  %v16636_v8 = vcombine.low %v1460_v44, %v1468_v39 }
 0x61a   : > { %11079 = vmatprep.subr.bf16.mxu1 %v16797_v6  ;;  %v1596_v13 = vld [vmem:[%s19283_s29 + $0x21f8] sm:$0xff] }
 0x61b   : > { %11053 = vmatpush2.bf16.msra.mxu0 %v16668_v36  ;;  %v16765_v33 = vcombine.high %v1588_v1, %v1596_v13  ;;  %v1444_v29 = vld [vmem:[%s19283_s29 + $0x1d38] sm:$0xff]  ;;  %v16764_v45 = vcombine.low %v1588_v1, %v1596_v13 }
 0x61c   : > { %11054 = vmatprep.subr.bf16.mxu0 %v16653_v17  ;;  %v1452_v51 = vld [vmem:[%s19283_s29 + $0x1d78] sm:$0xff] }
 0x61d   : > { %11080 = vmatpush1.bf16.msra.mxu1 %v16796_v25  ;;  %v1572_v48 = vld [vmem:[%s19283_s29 + $0x2138] sm:$0xff]  ;;  %v16621_v6 = vcombine.high %v1444_v29, %v1452_v51  ;;  %v16620_v36 = vcombine.low %v1444_v29, %v1452_v51 }
 0x61e   : > { %11081 = vmatprep.subr.bf16.mxu1 %v16781_v27  ;;  %v1580_v19 = vld [vmem:[%s19283_s29 + $0x2178] sm:$0xff] }
 0x61f   : > { %11055 = vmatpush2.bf16.msra.mxu0 %v16652_v3  ;;  %v16749_v22 = vcombine.high %v1572_v48, %v1580_v19  ;;  %v1428_v54 = vld [vmem:[%s19283_s29 + $0x1cb8] sm:$0xff]  ;;  %v16748_v25 = vcombine.low %v1572_v48, %v1580_v19 }
 0x620   : > { %11056 = vmatprep.subr.bf16.mxu0 %v16637_v20  ;;  %v1436_v41 = vld [vmem:[%s19283_s29 + $0x1cf8] sm:$0xff] }
 0x621   : > { %11082 = vmatpush1.bf16.msra.mxu1 %v16780_v31  ;;  %v1556_v62 = vld [vmem:[%s19283_s29 + $0x20b8] sm:$0xff]  ;;  %v16605_v17 = vcombine.high %v1428_v54, %v1436_v41  ;;  %v16604_v3 = vcombine.low %v1428_v54, %v1436_v41 }
 0x622   : > { %11083 = vmatprep.subr.bf16.mxu1 %v16765_v33  ;;  %v1564_v26 = vld [vmem:[%s19283_s29 + $0x20f8] sm:$0xff] }
 0x623   : > { %11057 = vmatpush2.bf16.msra.mxu0 %v16636_v8  ;;  %v16733_v27 = vcombine.high %v1556_v62, %v1564_v26  ;;  %v1412_v44 = vld [vmem:[%s19283_s29 + $0x1c38] sm:$0xff]  ;;  %v16732_v31 = vcombine.low %v1556_v62, %v1564_v26 }
 0x624   : > { %11058 = vmatprep.subr.bf16.mxu0 %v16621_v6  ;;  %v1420_v39 = vld [vmem:[%s19283_s29 + $0x1c78] sm:$0xff] }
 0x625   : > { %11084 = vmatpush1.bf16.msra.mxu1 %v16764_v45  ;;  %v1540_v1 = vld [vmem:[%s19283_s29 + $0x2038] sm:$0xff]  ;;  %v16589_v20 = vcombine.high %v1412_v44, %v1420_v39  ;;  %v16588_v8 = vcombine.low %v1412_v44, %v1420_v39  ;;  %v21241_v44 = vpop.f32.mrf.mxu1 }
 0x626   : > { %11085 = vmatprep.subr.bf16.mxu1 %v16749_v22  ;;  %v1548_v13 = vld [vmem:[%s19283_s29 + $0x2078] sm:$0xff]  ;;  %22179 = vst [vmem:[#allocation73_spill] sm:$0xff] %v21241_v44 }
 0x627   : > { %11059 = vmatpush2.bf16.msra.mxu0 %v16620_v36  ;;  %v16717_v33 = vcombine.high %v1540_v1, %v1548_v13  ;;  %v1908_v29 = vld [vmem:[%s19283_s29 + $0x2bb8] sm:$0xff]  ;;  %v16716_v45 = vcombine.low %v1540_v1, %v1548_v13 }
 0x628   : > { %11060 = vmatprep.subr.bf16.mxu0 %v16605_v17  ;;  %v1916_v51 = vld [vmem:[%s19283_s29 + $0x2bf8] sm:$0xff] }
 0x629   : > { %11086 = vmatpush1.bf16.msra.mxu1 %v16748_v25  ;;  %v1780_v48 = vld [vmem:[%s19283_s29 + $0x27b8] sm:$0xff]  ;;  %v17085_v6 = vcombine.high %v1908_v29, %v1916_v51  ;;  %v17084_v36 = vcombine.low %v1908_v29, %v1916_v51  ;;  %v21239_v25 = vpop.f32.mrf.mxu0  ;;  %v21251_v29 = vsub.s32 1, %v19614_v16 }
 0x62a   : > { %11087 = vmatprep.subr.bf16.mxu1 %v16733_v27  ;;  %v1788_v19 = vld [vmem:[%s19283_s29 + $0x27f8] sm:$0xff]  ;;  %22178 = vst [vmem:[#allocation72_spill] sm:$0xff] %v21239_v25 }
 0x62b   : > { %11061 = vmatpush2.bf16.msra.mxu0 %v16604_v3  ;;  %v16957_v22 = vcombine.high %v1780_v48, %v1788_v19  ;;  %v1892_v54 = vld [vmem:[%s19283_s29 + $0x2b38] sm:$0xff]  ;;  %v16956_v17 = vcombine.low %v1780_v48, %v1788_v19 }
 0x62c   : > { %11062 = vmatprep.subr.bf16.mxu0 %v16589_v20  ;;  %v1900_v41 = vld [vmem:[%s19283_s29 + $0x2b78] sm:$0xff] }
 0x62d   : > { %11088 = vmatpush1.bf16.msra.mxu1 %v16732_v31  ;;  %v1764_v62 = vld [vmem:[%s19283_s29 + $0x2738] sm:$0xff]  ;;  %v17069_v27 = vcombine.high %v1892_v54, %v1900_v41  ;;  %v17068_v19 = vcombine.low %v1892_v54, %v1900_v41 }
 0x62e   : > { %11089 = vmatprep.subr.bf16.mxu1 %v16717_v33  ;;  %v1772_v26 = vld [vmem:[%s19283_s29 + $0x2778] sm:$0xff] }
 0x62f   : > { %11063 = vmatpush2.bf16.msra.mxu0 %v16588_v8  ;;  %v16941_v39 = vcombine.high %v1764_v62, %v1772_v26  ;;  %v1876_v1 = vld [vmem:[%s19283_s29 + $0x2ab8] sm:$0xff] }
 0x630   : > { %11118 = vmatprep.subr.bf16.mxu0 %v17085_v6  ;;  %v1884_v13 = vld [vmem:[%s19283_s29 + $0x2af8] sm:$0xff] }
 0x631   : > { %11090 = vmatpush1.bf16.msra.mxu1 %v16716_v45  ;;  %v18695_v31 = vld [vmem:[%s22070_s0 + $0x18] ss:$44 sps:$4 sm:$0xff]   ;;  %v16940_v45 = vcombine.low %v1764_v62, %v1772_v26  ;;  %v17053_v6 = vcombine.high %v1876_v1, %v1884_v13  ;;  %v17052_v26 = vcombine.low %v1876_v1, %v1884_v13 }
 0x632   : > { %11091 = vmatprep.subr.bf16.mxu1 %v16957_v22  ;;  %v10765_v3 = vpop.f32.mrf.mxu0  ;;  %11065 = vmatmul.mubr.bf16.vlgmr.msra.gmra.mxu0 %v18695_v31  ;;  %v1748_v20 = vld [vmem:[%s19283_s29 + $0x26b8] sm:$0xff] }
 0x633   : > { %v1756_v33 = vld [vmem:[%s19283_s29 + $0x26f8] sm:$0xff]  ;;  %v10766_v51 = vadd.f32 %v10765_v3, %v21167_v10  ;;  %11119 = vmatpush1.bf16.msra.mxu0 %v17084_v36  ;;  %11150 = vmatprep.mubr.bf16.mxu0 %v22140_v60  ;;  %v21266_v60 = vld [vmem:[%s19290_s28] sm:$0xff] }
 0x634   : > { %v10808_v48 = vpop.f32.mrf.mxu1  ;;  %v21255_v8 = vpop.f32.mrf.mxu0  ;;  %11120 = vmatprep.subr.bf16.mxu0 %v17069_v27  ;;  %v16925_v10 = vcombine.high %v1748_v20, %v1756_v33  ;;  %v1860_v3 = vld [vmem:[%s19283_s29 + $0x2a38] sm:$0xff]  ;;  %v1928_v41 = vrot.slane %v21266_v60, %v21251_v29  ;;  %v16924_v27 = vcombine.low %v1748_v20, %v1756_v33 }
 0x635   : > { %11092 = vmatpush2.bf16.msra.mxu1 %v16956_v17  ;;  %22180 = vst [vmem:[#allocation74_spill] sm:$0xff] %v21255_v8  ;;  %v21257_v22 = vadd.f32 %v10808_v48, %v10766_v51  ;;  %v1868_v44 = vld [vmem:[%s19283_s29 + $0x2a78] sm:$0xff]  ;;  %v21272_v51 = vsub.s32 3, %v19614_v16 }
 0x636   : > { %v21259_v31 = vpop.f32.mrf.mxu1  ;;  %11093 = vmatprep.subr.bf16.mxu1 %v16941_v39  ;;  %v10769_v36 = vpop.f32.mrf.mxu0  ;;  %v1732_v25 = vld [vmem:[%s19283_s29 + $0x2638] sm:$0xff]  ;;  %v17037_v39 = vcombine.high %v1860_v3, %v1868_v44  ;;  %v9134_v20 = vadd.f32 %v19639_v50, %v1928_v41  ;;  %v17036_v33 = vcombine.low %v1860_v3, %v1868_v44 }
 0x637   : > { %22181 = vst [vmem:[#allocation75_spill] sm:$0xff] %v21259_v31  ;;  %v1740_v54 = vld [vmem:[%s19283_s29 + $0x2678] sm:$0xff]  ;;  %v10770_v62 = vadd.f32 %v10769_v36, %v21175_v23  ;;  %11121 = vmatpush1.bf16.msra.mxu0 %v17068_v19  ;;  %v9138_v23 = vadd.f32 %v19713_v0, %v1928_v41 }
 0x638   : > { %v10812_v17 = vpop.f32.mrf.mxu1  ;;  %11122 = vmatprep.subr.bf16.mxu0 %v17053_v6  ;;  %v16909_v31 = vcombine.high %v1732_v25, %v1740_v54  ;;  %v1844_v8 = vld [vmem:[%s19283_s29 + $0x29b8] sm:$0xff]  ;;  %v16908_v19 = vcombine.low %v1732_v25, %v1740_v54  ;;  %v1936_v6 = vrot.slane %v21266_v60, %v21272_v51  ;;  %v9177_v50 = vadd.f32 %v19646_v57, %v9134_v20 }
 0x639   : > { %11094 = vmatpush2.bf16.msra.mxu1 %v16940_v45  ;;  %v21274_v48 = vadd.f32 %v10812_v17, %v10770_v62  ;;  %v1716_v1 = vld [vmem:[%s19283_s29 + $0x25b8] sm:$0xff]  ;;  %v17021_v45 = vcombine.high %v1844_v8, %v1852_v30  ;;  %v9181_v0 = vadd.f32 %v19718_v7, %v9138_v23  ;;  %v17020_v44 = vcombine.low %v1844_v8, %v1852_v30 }
 0x63a   : > { %11095 = vmatprep.subr.bf16.mxu1 %v16925_v10  ;;  %v1724_v13 = vld [vmem:[%s19283_s29 + $0x25f8] sm:$0xff]  ;;  %v9396_v25 = vadd.f32 %v19944_v35, %v1936_v6  ;;  %v9392_v7 = vadd.f32 %v19900_v34, %v1936_v6 }
 0x63b   : > { %11123 = vmatpush1.bf16.msra.mxu0 %v17052_v26  ;;  %v16893_v10 = vcombine.high %v1716_v1, %v1724_v13  ;;  %v1828_v36 = vld [vmem:[%s19283_s29 + $0x2938] sm:$0xff]  ;;  %v9224_v3 = vadd.f32 %v19809_v42, %v9181_v0 }
 0x63c   : > { %11124 = vmatprep.subr.bf16.mxu0 %v17037_v39  ;;  %v1836_v62 = vld [vmem:[%s19283_s29 + $0x2978] sm:$0xff]  ;;  %v9439_v41 = vadd.f32 %v19996_v63, %v9396_v25  ;;  %v9220_v39 = vadd.f32 %v19726_v15, %v9177_v50  ;;  %v9435_v42 = vadd.f32 %v19912_v59, %v9392_v7  ;;  %v17859_v7 = vld [vmem:[%s19296_s25 + $0x2c4] ss:$16 sps:$4 sm:$0xff]  }
 0x63d   : > { %11096 = vmatpush2.bf16.msra.mxu1 %v16924_v27  ;;  %v1700_v17 = vld [vmem:[%s19283_s29 + $0x2538] sm:$0xff]  ;;  %v17005_v54 = vcombine.high %v1828_v36, %v1836_v62  ;;  %v17004_v34 = vcombine.low %v1828_v36, %v1836_v62  ;;  %v9267_v63 = vadd.f32 %v19805_v5, %v9224_v3 }
 0x63e   : > { %11097 = vmatprep.subr.bf16.mxu1 %v16909_v31  ;;  %v16892_v31 = vcombine.low %v1716_v1, %v1724_v13  ;;  %v16877_v26 = vcombine.high %v1700_v17, %v1708_v61  ;;  %v1812_v27 = vld [vmem:[%s19283_s29 + $0x28b8] sm:$0xff]  ;;  %v9482_v8 = vadd.f32 %v20046_v49, %v9439_v41  ;;  %v16876_v23 = vcombine.low %v1700_v17, %v1708_v61  ;;  %v17850_v17 = vld [vmem:[%s19296_s25 + $0xe4] ss:$16 sps:$4 sm:$0xff]  }
 0x63f   : > { %11125 = vmatpush1.bf16.msra.mxu0 %v17036_v33  ;;  %v1820_v57 = vld [vmem:[%s19283_s29 + $0x28f8] sm:$0xff]  ;;  %v9478_v15 = vadd.f32 %v19959_v38, %v9435_v42  ;;  %v9263_v49 = vadd.f32 %v19733_v56, %v9220_v39  ;;  %v17862_v39 = vld [vmem:[%s19296_s25 + $0xa4] ss:$16 sps:$4 sm:$0xff]   ;;  %v17863_v42 = vld [vmem:[%s19296_s25 + $0x2a0] ss:$16 sps:$4 sm:$0xff]  }
 0x640   : > { %11126 = vmatprep.subr.bf16.mxu0 %v17021_v45  ;;  %v1684_v35 = vld [vmem:[%s19283_s29 + $0x24b8] sm:$0xff]  ;;  %v16989_v1 = vcombine.high %v1812_v27, %v1820_v57  ;;  %v9525_v13 = vadd.f32 %v20044_v53, %v9482_v8  ;;  %v17868_v8 = vld [vmem:[%s19296_s25 + $0x84] ss:$16 sps:$4 sm:$0xff]  }
 0x641   : > { %11098 = vmatpush2.bf16.msra.mxu1 %v16908_v19  ;;  %v1692_v30 = vld [vmem:[%s19283_s29 + $0x24f8] sm:$0xff]  ;;  %v9310_v19 = vadd.f32 %v19904_v40, %v9267_v63  ;;  %v9521_v5 = vadd.f32 %v20008_v14, %v9478_v15  ;;  %v9306_v38 = vadd.f32 %v19818_v58, %v9263_v49  ;;  %v17866_v63 = vld [vmem:[%s19296_s25 + $0x80] ss:$16 sps:$4 sm:$0xff]   ;;  %v17877_v15 = vld [vmem:[%s19296_s25 + $0x264] ss:$16 sps:$4 sm:$0xff]  }
 0x642   : > { %11099 = vmatprep.subr.bf16.mxu1 %v16893_v10  ;;  %v16861_v20 = vcombine.high %v1684_v35, %v1692_v30  ;;  %v1796_v33 = vld [vmem:[%s19283_s29 + $0x2838] sm:$0xff]  ;;  %v9568_v61 = vadd.f32 %v20138_v52, %v9525_v13  ;;  %v16988_v10 = vcombine.low %v1812_v27, %v1820_v57  ;;  %v16860_v53 = vcombine.low %v1684_v35, %v1692_v30  ;;  %v17854_v27 = vld [vmem:[%s19296_s25 + $0xc0] ss:$16 sps:$4 sm:$0xff]   ;;  %v17865_v35 = vld [vmem:[%s19296_s25 + $0x2a4] ss:$16 sps:$4 sm:$0xff]  }
 0x643   : > { %11127 = vmatpush1.bf16.msra.mxu0 %v17020_v44  ;;  %v1804_v59 = vld [vmem:[%s19283_s29 + $0x2878] sm:$0xff]  ;;  %v9564_v56 = vadd.f32 %v20059_v9, %v9521_v5  ;;  %v9353_v62 = vadd.f32 %v19887_v12, %v9310_v19  ;;  %v9349_v58 = vadd.f32 %v19816_v55, %v9306_v38  ;;  %v17853_v9 = vld [vmem:[%s19296_s25 + $0x2e4] ss:$16 sps:$4 sm:$0xff]   ;;  %v17848_v12 = vld [vmem:[%s19296_s25 + $0xe0] ss:$16 sps:$4 sm:$0xff]  }
 0x644   : > { %11128 = vmatprep.subr.bf16.mxu0 %v17005_v54  ;;  %v1668_v45 = vld [vmem:[%s19283_s29 + $0x2438] sm:$0xff]  ;;  %v16973_v36 = vcombine.high %v1796_v33, %v1804_v59  ;;  %v9611_v14 = vadd.f32 %v20136_v46, %v9568_v61  ;;  %v16972_v52 = vcombine.low %v1796_v33, %v1804_v59  ;;  %v17851_v55 = vld [vmem:[%s19296_s25 + $0x2e0] ss:$16 sps:$4 sm:$0xff]   ;;  %v17880_v33 = vld [vmem:[%s19296_s25 + $0x44] ss:$16 sps:$4 sm:$0xff]  }
 0x645   : > { %11100 = vmatpush2.bf16.msra.mxu1 %v16892_v31  ;;  %v1676_v6 = vld [vmem:[%s19283_s29 + $0x2478] sm:$0xff]  ;;  %v9607_v50 = vadd.f32 %v20061_v11, %v9564_v56  ;;  %v11178_v25 = vmax.f32 %v9353_v62, 0.0  ;;  %v11162_v46 = vmax.f32 %v9349_v58, 0.0  ;;  %v17856_v31 = vld [vmem:[%s19296_s25 + $0xc4] ss:$16 sps:$4 sm:$0xff]   ;;  %v21364_v62 = vpop.f32.mrf.mxu1 }
 0x646   : > { %11101 = vmatprep.subr.bf16.mxu1 %v16877_v26  ;;  %v16845_v40 = vcombine.high %v1668_v45, %v1676_v6  ;;  %v16844_v0 = vcombine.low %v1668_v45, %v1676_v6  ;;  %v11180_v44 = vmax.f32 %v9611_v14, 0.0  ;;  %v18697_v11 = vld [vmem:[%s22070_s0 + $0x28] ss:$44 sps:$4 sm:$0xff]   ;;  %v18698_v26 = vld [vmem:[%s22070_s0 + $0x20] ss:$44 sps:$4 sm:$0xff]  }
 0x647   : > { %11129 = vmatpush1.bf16.msra.mxu0 %v17004_v34  ;;  %v11164_v3 = vmax.f32 %v9607_v50, 0.0  ;;  %v21326_v54 = vpack.c.bf16 %v11178_v25, %v11162_v46  ;;  %v17857_v57 = vld [vmem:[%s19296_s25 + $0x2c0] ss:$16 sps:$4 sm:$0xff]   ;;  %v17871_v34 = vld [vmem:[%s19296_s25 + $0x284] ss:$16 sps:$4 sm:$0xff]  }
 0x648   : > { %11130 = vmatprep.subr.bf16.mxu0 %v16989_v1  ;;  %v17860_v30 = vld [vmem:[%s19296_s25 + $0xa0] ss:$16 sps:$4 sm:$0xff]   ;;  %v17874_v1 = vld [vmem:[%s19296_s25 + $0x64] ss:$16 sps:$4 sm:$0xff]  }
 0x649   : > { %11102 = vmatpush2.bf16.msra.mxu1 %v16876_v23  ;;  %v21329_v41 = vpack.c.bf16 %v11180_v44, %v11164_v3  ;;  %v17869_v23 = vld [vmem:[%s19296_s25 + $0x280] ss:$16 sps:$4 sm:$0xff]   ;;  %v17883_v59 = vld [vmem:[%s19296_s25 + $0x244] ss:$16 sps:$4 sm:$0xff]  }
 0x64a   : > { %11103 = vmatprep.subr.bf16.mxu1 %v16861_v20  ;;  %v17872_v13 = vld [vmem:[%s19296_s25 + $0x60] ss:$16 sps:$4 sm:$0xff]   ;;  %v17886_v45 = vld [vmem:[%s19296_s25 + $0x24] ss:$16 sps:$4 sm:$0xff]  }
 0x64b   : > { %11131 = vmatpush1.bf16.msra.mxu0 %v16988_v10  ;;  %v17875_v20 = vld [vmem:[%s19296_s25 + $0x260] ss:$16 sps:$4 sm:$0xff]   ;;  %v17889_v6 = vld [vmem:[%s19296_s25 + $0x224] ss:$16 sps:$4 sm:$0xff]  }
 0x64c   : > { %11132 = vmatprep.subr.bf16.mxu0 %v16973_v36  ;;  %v17878_v49 = vld [vmem:[%s19296_s25 + $0x40] ss:$16 sps:$4 sm:$0xff]   ;;  %v17892_v10 = vld [vmem:[%s19296_s25 + $0x4] ss:$16 sps:$4 sm:$0xff]  }
 0x64d   : > { %11104 = vmatpush2.bf16.msra.mxu1 %v16860_v53  ;;  %v17881_v19 = vld [vmem:[%s19296_s25 + $0x240] ss:$16 sps:$4 sm:$0xff]   ;;  %v17895_v38 = vld [vmem:[%s19296_s25 + $0x204] ss:$16 sps:$4 sm:$0xff]  }
 0x64e   : > { %11105 = vmatprep.subr.bf16.mxu1 %v16845_v40  ;;  %v17884_v5 = vld [vmem:[%s19296_s25 + $0x20] ss:$16 sps:$4 sm:$0xff]   ;;  %v17898_v56 = vld [vmem:[%s19296_s25 + $0x1e4] ss:$16 sps:$4 sm:$0xff]  }
 0x64f   : > { %11133 = vmatpush1.bf16.msra.mxu0 %v16972_v52  ;;  %v17887_v61 = vld [vmem:[%s19296_s25 + $0x220] ss:$16 sps:$4 sm:$0xff]   ;;  %v17901_v40 = vld [vmem:[%s19296_s25 + $0x3e4] ss:$16 sps:$4 sm:$0xff]   ;;  %v21367_v52 = vpop.f32.mrf.mxu0 }
 0x650   : > { %14289 = vmatprep.subr.bf16.mxu0 %v17850_v17  ;;  %v17890_v53 = vld [vmem:[%s19296_s25] ss:$16 sps:$4 sm:$0xff]   ;;  %v17904_v17 = vld [vmem:[%s19296_s25 + $0x1c4] ss:$16 sps:$4 sm:$0xff]  }
 0x651   : > { %11106 = vmatpush2.bf16.msra.mxu1 %v16844_v0  ;;  %v17893_v36 = vld [vmem:[%s19296_s25 + $0x200] ss:$16 sps:$4 sm:$0xff]   ;;  %v17907_v50 = vld [vmem:[%s19296_s25 + $0x3c4] ss:$16 sps:$4 sm:$0xff]  }
 0x652   : > { %14332 = vmatprep.subr.bf16.mxu1 %v17853_v9  ;;  %11151 = vmatmul.mubr.bf16.vlgmr.msra.gmra.mxu0 %v18697_v11  ;;  %v17896_v14 = vld [vmem:[%s19296_s25 + $0x1e0] ss:$16 sps:$4 sm:$0xff]  }
 0x653   : > { %14290 = vmatpush1.bf16.msra.mxu0 %v17848_v12  ;;  %14321 = vmatprep.mubr.bf16.mxu0 %v21326_v54  ;;  %v17899_v0 = vld [vmem:[%s19296_s25 + $0x3e0] ss:$16 sps:$4 sm:$0xff]   ;;  %v1943_v12 = vsub.s32 5, %v19614_v16 }
 0x654   : > { %11108 = vmatmul.mubr.bf16.vlgmr.msra.gmra.mxu1 %v18698_v26  ;;  %14291 = vmatprep.subr.bf16.mxu0 %v17856_v31  ;;  %v10894_v58 = vpop.f32.mrf.mxu1  ;;  %v17902_v44 = vld [vmem:[%s19296_s25 + $0x1c0] ss:$16 sps:$4 sm:$0xff]   ;;  %v17910_v31 = vld [vmem:[%s19296_s25 + $0x1a4] ss:$16 sps:$4 sm:$0xff]  }
 0x655   : > { %14333 = vmatpush1.bf16.msra.mxu1 %v17851_v55  ;;  %14364 = vmatprep.mubr.bf16.mxu1 %v21329_v41  ;;  %v17905_v3 = vld [vmem:[%s19296_s25 + $0x3c0] ss:$16 sps:$4 sm:$0xff]  }
 0x656   : > { %14334 = vmatprep.subr.bf16.mxu1 %v17859_v7  ;;  %v21375_v46 = vpop.f32.mrf.mxu1  ;;  %v17913_v7 = vld [vmem:[%s19296_s25 + $0x3a4] ss:$16 sps:$4 sm:$0xff]  }
 0x657   : > { %14292 = vmatpush1.bf16.msra.mxu0 %v17854_v27  ;;  %v17908_v27 = vld [vmem:[%s19296_s25 + $0x1a0] ss:$16 sps:$4 sm:$0xff]  }
 0x658   : > { %14293 = vmatprep.subr.bf16.mxu0 %v17862_v39  ;;  %v10898_v39 = vpop.f32.mrf.mxu1 }
 0x659   : > { %14335 = vmatpush1.bf16.msra.mxu1 %v17857_v57  ;;  %v1944_v57 = vrot.slane %v21266_v60, %v1943_v12 }
 0x65a   : > { %14336 = vmatprep.subr.bf16.mxu1 %v17865_v35  ;;  %v17911_v35 = vld [vmem:[%s19296_s25 + $0x3a0] ss:$16 sps:$4 sm:$0xff]  }
 0x65b   : > { %14294 = vmatpush1.bf16.msra.mxu0 %v17860_v30  ;;  %v17916_v30 = vld [vmem:[%s19296_s25 + $0x184] ss:$16 sps:$4 sm:$0xff]  }
 0x65c   : > { %14295 = vmatprep.subr.bf16.mxu0 %v17868_v8 }
 0x65d   : > { %14337 = vmatpush1.bf16.msra.mxu1 %v17863_v42  ;;  %v1951_v42 = vsub.s32 7, %v19614_v16 }
 0x65e   : > { %14338 = vmatprep.subr.bf16.mxu1 %v17871_v34  ;;  %v9654_v34 = vadd.f32 %v20224_v37, %v1944_v57  ;;  %v17925_v37 = vld [vmem:[%s19296_s25 + $0x364] ss:$16 sps:$4 sm:$0xff]  }
 0x65f   : > { %14296 = vmatpush1.bf16.msra.mxu0 %v17866_v63 }
 0x660   : > { %14297 = vmatprep.subr.bf16.mxu0 %v17874_v1  ;;  %v17914_v1 = vld [vmem:[%s19296_s25 + $0x180] ss:$16 sps:$4 sm:$0xff]  }
 0x661   : > { %14339 = vmatpush1.bf16.msra.mxu1 %v17869_v23 }
 0x662   : > { %14340 = vmatprep.subr.bf16.mxu1 %v17877_v15  ;;  %v9650_v15 = vadd.f32 %v20150_v18, %v1944_v57  ;;  %v17920_v18 = vld [vmem:[%s19296_s25 + $0x160] ss:$16 sps:$4 sm:$0xff]  }
 0x663   : > { %14298 = vmatpush1.bf16.msra.mxu0 %v17872_v13  ;;  %v17917_v13 = vld [vmem:[%s19296_s25 + $0x380] ss:$16 sps:$4 sm:$0xff]  }
 0x664   : > { %14299 = vmatprep.subr.bf16.mxu0 %v17880_v33  ;;  %v1952_v33 = vrot.slane %v21266_v60, %v1951_v42  ;;  %v17923_v60 = vld [vmem:[%s19296_s25 + $0x360] ss:$16 sps:$4 sm:$0xff]  }
 0x665   : > { %14341 = vmatpush1.bf16.msra.mxu1 %v17875_v20  ;;  %v17922_v20 = vld [vmem:[%s19296_s25 + $0x164] ss:$16 sps:$4 sm:$0xff]  }
 0x666   : > { %14342 = vmatprep.subr.bf16.mxu1 %v17883_v59  ;;  %v22191_v57 = vld [vmem:[#allocation39_spill] sm:$0xff] }
 0x667   : > { %14300 = vmatpush1.bf16.msra.mxu0 %v17878_v49  ;;  %v9697_v49 = vadd.f32 %v20226_v43, %v9654_v34  ;;  %v17931_v43 = vld [vmem:[%s19296_s25 + $0x344] ss:$16 sps:$4 sm:$0xff]  }
 0x668   : > { %14301 = vmatprep.subr.bf16.mxu0 %v17886_v45  ;;  %v9693_v45 = vadd.f32 %v20154_v32, %v9650_v15  ;;  %v22182_v32 = vld [vmem:[#allocation38_spill] sm:$0xff]  ;;  %v17941_v15 = vld [vmem:[%s19296_s25 + $0x300] ss:$16 sps:$4 sm:$0xff]  }
 0x669   : > { %14343 = vmatpush1.bf16.msra.mxu1 %v17881_v19  ;;  %v9912_v19 = vadd.f32 %v20454_v4, %v1952_v33 }
 0x66a   : > { %14344 = vmatprep.subr.bf16.mxu1 %v17889_v6  ;;  %v9740_v6 = vadd.f32 %v20320_v21, %v9697_v49  ;;  %v9736_v4 = vadd.f32 %v20237_v2, %v9693_v45  ;;  %v17926_v21 = vld [vmem:[%s19296_s25 + $0x140] ss:$16 sps:$4 sm:$0xff]   ;;  %v17937_v2 = vld [vmem:[%s19296_s25 + $0x324] ss:$16 sps:$4 sm:$0xff]  }
 0x66b   : > { %14302 = vmatpush1.bf16.msra.mxu0 %v17884_v5  ;;  %v17928_v5 = vld [vmem:[%s19296_s25 + $0x144] ss:$16 sps:$4 sm:$0xff]  }
 0x66c   : > { %14303 = vmatprep.subr.bf16.mxu0 %v17892_v10  ;;  %v9955_v10 = vadd.f32 %v20506_v24, %v9912_v19  ;;  %v17934_v24 = vld [vmem:[%s19296_s25 + $0x124] ss:$16 sps:$4 sm:$0xff]  }
 0x66d   : > { %14345 = vmatpush1.bf16.msra.mxu1 %v17887_v61  ;;  %v9908_v61 = vadd.f32 %v20410_v47, %v1952_v33  ;;  %v17929_v47 = vld [vmem:[%s19296_s25 + $0x340] ss:$16 sps:$4 sm:$0xff]  }
 0x66e   : > { %14346 = vmatprep.subr.bf16.mxu1 %v17895_v38 }
 0x66f   : > { %14304 = vmatpush1.bf16.msra.mxu0 %v17890_v53  ;;  %v9951_v38 = vadd.f32 %v20422_v28, %v9908_v61  ;;  %v9998_v53 = vadd.f32 %v22182_v32, %v9955_v10  ;;  %v22186_v28 = vld [vmem:[#allocation28_spill] sm:$0xff]  ;;  %v22196_v61 = vld [vmem:[#allocation25_spill] sm:$0xff] }
 0x670   : > { %14305 = vmatprep.subr.bf16.mxu0 %v17898_v56  ;;  %v17950_v32 = vld [vmem:[%s19296_s25 + $0x4c0] ss:$16 sps:$4 sm:$0xff]  }
 0x671   : > { %14347 = vmatpush1.bf16.msra.mxu1 %v17893_v36  ;;  %v22183_v36 = vld [vmem:[#allocation29_spill] sm:$0xff] }
 0x672   : > { %14348 = vmatprep.subr.bf16.mxu1 %v17901_v40  ;;  %v10851_v9 = vpop.f32.mrf.mxu0  ;;  %v9783_v56 = vadd.f32 %v22183_v36, %v9740_v6  ;;  %v22184_v40 = vld [vmem:[#allocation35_spill] sm:$0xff] }
 0x673   : > { %v10852_v25 = vadd.f32 %v10851_v9, %v21257_v22  ;;  %14306 = vmatpush2.bf16.msra.mxu0 %v17896_v14  ;;  %v9994_v14 = vadd.f32 %v22184_v40, %v9951_v38  ;;  %v17947_v6 = vld [vmem:[%s19296_s25 + $0x6e0] ss:$16 sps:$4 sm:$0xff]   ;;  %v17961_v36 = vld [vmem:[%s19296_s25 + $0x6a4] ss:$16 sps:$4 sm:$0xff]  }
 0x674   : > { %v21377_v55 = vpop.f32.mrf.mxu0  ;;  %14307 = vmatprep.subr.bf16.mxu0 %v17904_v17  ;;  %v9779_v17 = vadd.f32 %v22186_v28, %v9736_v4  ;;  %v22197_v38 = vld [vmem:[#allocation27_spill] sm:$0xff] }
 0x675   : > { %14349 = vmatpush2.bf16.msra.mxu1 %v17899_v0  ;;  %v10895_v11 = vadd.f32 %v10894_v58, %v10852_v25  ;;  %v22185_v58 = vld [vmem:[#allocation37_spill] sm:$0xff]  ;;  %v22188_v25 = vld [vmem:[#allocation36_spill] sm:$0xff] }
 0x676   : > { %14350 = vmatprep.subr.bf16.mxu1 %v17907_v50  ;;  %v10855_v22 = vpop.f32.mrf.mxu0  ;;  %v10041_v0 = vadd.f32 %v22185_v58, %v9998_v53  ;;  %v22187_v50 = vld [vmem:[#allocation34_spill] sm:$0xff]  ;;  %v17953_v53 = vld [vmem:[%s19296_s25 + $0x6c0] ss:$16 sps:$4 sm:$0xff]   ;;  %v17967_v40 = vld [vmem:[%s19296_s25 + $0x684] ss:$16 sps:$4 sm:$0xff]  }
 0x677   : > { %v10856_v26 = vadd.f32 %v10855_v22, %v21274_v48  ;;  %14308 = vmatpush2.bf16.msra.mxu0 %v17902_v44  ;;  %v17919_v48 = vld [vmem:[%s19296_s25 + $0x384] ss:$16 sps:$4 sm:$0xff]   ;;  %v11173_v63 = vmax.f32 %v10895_v11, 0.0  ;;  %v9826_v9 = vadd.f32 %v22187_v50, %v9783_v56  ;;  %v10037_v44 = vadd.f32 %v22188_v25, %v9994_v14  ;;  %v17932_v11 = vld [vmem:[%s19296_s25 + $0x120] ss:$16 sps:$4 sm:$0xff]  }
 0x678   : > { %14309 = vmatprep.subr.bf16.mxu0 %v17910_v31  ;;  %v17956_v56 = vld [vmem:[%s19296_s25 + $0x4a0] ss:$16 sps:$4 sm:$0xff]   ;;  %v17976_v50 = vld [vmem:[%s19296_s25 + $0x444] ss:$16 sps:$4 sm:$0xff]  }
 0x679   : > { %14351 = vmatpush2.bf16.msra.mxu1 %v17905_v3  ;;  %v10899_v8 = vadd.f32 %v10898_v39, %v10856_v26  ;;  %v22189_v3 = vld [vmem:[#allocation43_spill] sm:$0xff]  ;;  %v10080_v39 = vadd.f32 %v22191_v57, %v10037_v44 }
 0x67a   : > { %14352 = vmatprep.subr.bf16.mxu1 %v17913_v7  ;;  %v10084_v31 = vadd.f32 %v22189_v3, %v10041_v0  ;;  %v22190_v7 = vld [vmem:[#allocation31_spill] sm:$0xff] }
 0x67b   : > { %v11189_v23 = vmax.f32 %v10899_v8, 0.0  ;;  %14310 = vmatpush2.bf16.msra.mxu0 %v17908_v27  ;;  %v9822_v22 = vadd.f32 %v22190_v7, %v9779_v17  ;;  %v17935_v26 = vld [vmem:[%s19296_s25 + $0x320] ss:$16 sps:$4 sm:$0xff]   ;;  %v17940_v27 = vld [vmem:[%s19296_s25 + $0x104] ss:$16 sps:$4 sm:$0xff]  }
 0x67c   : > { %14311 = vmatprep.subr.bf16.mxu0 %v17916_v30  ;;  %v22192_v30 = vld [vmem:[#allocation33_spill] sm:$0xff] }
 0x67d   : > { %14353 = vmatpush2.bf16.msra.mxu1 %v17911_v35  ;;  %v21399_v59 = vpack.c.bf16 %v11189_v23, %v11173_v63  ;;  %v17943_v35 = vld [vmem:[%s19296_s25 + $0x304] ss:$16 sps:$4 sm:$0xff]   ;;  %v9869_v8 = vadd.f32 %v22192_v30, %v9826_v9  ;;  %v17938_v63 = vld [vmem:[%s19296_s25 + $0x100] ss:$16 sps:$4 sm:$0xff]   ;;  %v22194_v23 = vld [vmem:[#allocation30_spill] sm:$0xff] }
 0x67e   : > { %14354 = vmatprep.subr.bf16.mxu1 %v17919_v48  ;;  %v22193_v48 = vld [vmem:[#allocation42_spill] sm:$0xff]  ;;  %v17962_v14 = vld [vmem:[%s19296_s25 + $0x480] ss:$16 sps:$4 sm:$0xff]   ;;  %v17970_v0 = vld [vmem:[%s19296_s25 + $0x464] ss:$16 sps:$4 sm:$0xff]  }
 0x67f   : > { %14312 = vmatpush2.bf16.msra.mxu0 %v17914_v1  ;;  %v10127_v34 = vadd.f32 %v22193_v48, %v10084_v31  ;;  %v9865_v1 = vadd.f32 %v22194_v23, %v9822_v22  ;;  %v11182_v49 = vmax.f32 %v9869_v8, 0.0  ;;  %v17965_v58 = vld [vmem:[%s19296_s25 + $0x680] ss:$16 sps:$4 sm:$0xff]   ;;  %v17979_v9 = vld [vmem:[%s19296_s25 + $0x644] ss:$16 sps:$4 sm:$0xff]  }
 0x680   : > { %14313 = vmatprep.subr.bf16.mxu0 %v17922_v20  ;;  %v22195_v20 = vld [vmem:[#allocation40_spill] sm:$0xff]  ;;  %v17968_v28 = vld [vmem:[%s19296_s25 + $0x460] ss:$16 sps:$4 sm:$0xff]   ;;  %v17982_v3 = vld [vmem:[%s19296_s25 + $0x424] ss:$16 sps:$4 sm:$0xff]  }
 0x681   : > { %14355 = vmatpush2.bf16.msra.mxu1 %v17917_v13  ;;  %v17946_v13 = vld [vmem:[%s19296_s25 + $0x4e4] ss:$16 sps:$4 sm:$0xff]   ;;  %v10123_v33 = vadd.f32 %v22195_v20, %v10080_v39  ;;  %v11184_v19 = vmax.f32 %v10127_v34, 0.0  ;;  %v11166_v45 = vmax.f32 %v9865_v1, 0.0  ;;  %v17971_v17 = vld [vmem:[%s19296_s25 + $0x660] ss:$16 sps:$4 sm:$0xff]  }
 0x682   : > { %14356 = vmatprep.subr.bf16.mxu1 %v17925_v37  ;;  %v17949_v37 = vld [vmem:[%s19296_s25 + $0x6e4] ss:$16 sps:$4 sm:$0xff]   ;;  %v17974_v25 = vld [vmem:[%s19296_s25 + $0x440] ss:$16 sps:$4 sm:$0xff]   ;;  %v21490_v20 = vld [vmem:[%s19290_s28 + $0x8] sm:$0xff] }
 0x683   : > { %14314 = vmatpush2.bf16.msra.mxu0 %v17920_v18  ;;  %v17944_v18 = vld [vmem:[%s19296_s25 + $0x4e0] ss:$16 sps:$4 sm:$0xff]   ;;  %v21444_v10 = vpack.c.bf16 %v11182_v49, %v11166_v45  ;;  %v17985_v31 = vld [vmem:[%s19296_s25 + $0x624] ss:$16 sps:$4 sm:$0xff]  }
 0x684   : > { %14315 = vmatprep.subr.bf16.mxu0 %v17928_v5  ;;  %v17952_v5 = vld [vmem:[%s19296_s25 + $0x4c4] ss:$16 sps:$4 sm:$0xff]   ;;  %v17977_v44 = vld [vmem:[%s19296_s25 + $0x640] ss:$16 sps:$4 sm:$0xff]  }
 0x685   : > { %14357 = vmatpush2.bf16.msra.mxu1 %v17923_v60  ;;  %v11168_v60 = vmax.f32 %v10123_v33, 0.0  ;;  %v17983_v7 = vld [vmem:[%s19296_s25 + $0x620] ss:$16 sps:$4 sm:$0xff]   ;;  %v17988_v22 = vld [vmem:[%s19296_s25 + $0x404] ss:$16 sps:$4 sm:$0xff]   ;;  %v1960_v33 = vrot.slane %v21490_v20, %v21251_v29 }
 0x686   : > { %14358 = vmatprep.subr.bf16.mxu1 %v17931_v43  ;;  %v17955_v43 = vld [vmem:[%s19296_s25 + $0x6c4] ss:$16 sps:$4 sm:$0xff]   ;;  %v17989_v57 = vld [vmem:[%s19296_s25 + $0x600] ss:$16 sps:$4 sm:$0xff]  }
 0x687   : > { %14316 = vmatpush2.bf16.msra.mxu0 %v17926_v21  ;;  %v21447_v4 = vpack.c.bf16 %v11184_v19, %v11168_v60  ;;  %v17958_v21 = vld [vmem:[%s19296_s25 + $0x4a4] ss:$16 sps:$4 sm:$0xff]   ;;  %v17992_v30 = vld [vmem:[%s19296_s25 + $0x5e0] ss:$16 sps:$4 sm:$0xff]   ;;  %v22199_v60 = vld [vmem:[#allocation44_spill] sm:$0xff] }
 0x688   : > { %14317 = vmatprep.subr.bf16.mxu0 %v17934_v24  ;;  %v17964_v24 = vld [vmem:[%s19296_s25 + $0x484] ss:$16 sps:$4 sm:$0xff]   ;;  %v17995_v8 = vld [vmem:[%s19296_s25 + $0x7e0] ss:$16 sps:$4 sm:$0xff]  }
 0x689   : > { %14359 = vmatpush2.bf16.msra.mxu1 %v17929_v47  ;;  %v17959_v47 = vld [vmem:[%s19296_s25 + $0x6a0] ss:$16 sps:$4 sm:$0xff]   ;;  %v17994_v39 = vld [vmem:[%s19296_s25 + $0x5e4] ss:$16 sps:$4 sm:$0xff]  }
 0x68a   : > { %14360 = vmatprep.subr.bf16.mxu1 %v17937_v2  ;;  %v17973_v2 = vld [vmem:[%s19296_s25 + $0x664] ss:$16 sps:$4 sm:$0xff]   ;;  %v18001_v23 = vld [vmem:[%s19296_s25 + $0x7c0] ss:$16 sps:$4 sm:$0xff]  }
 0x68b   : > { %14318 = vmatpush2.bf16.msra.mxu0 %v17932_v11  ;;  %v17980_v11 = vld [vmem:[%s19296_s25 + $0x420] ss:$16 sps:$4 sm:$0xff]   ;;  %v18000_v48 = vld [vmem:[%s19296_s25 + $0x5c4] ss:$16 sps:$4 sm:$0xff]  }
 0x68c   : > { %14319 = vmatprep.subr.bf16.mxu0 %v17940_v27  ;;  %v17986_v27 = vld [vmem:[%s19296_s25 + $0x400] ss:$16 sps:$4 sm:$0xff]   ;;  %v18003_v34 = vld [vmem:[%s19296_s25 + $0x7c4] ss:$16 sps:$4 sm:$0xff]  }
 0x68d   : > { %14361 = vmatpush2.bf16.msra.mxu1 %v17935_v26  ;;  %v17991_v26 = vld [vmem:[%s19296_s25 + $0x604] ss:$16 sps:$4 sm:$0xff]  }
 0x68e   : > { %14362 = vmatprep.subr.bf16.mxu1 %v17943_v35  ;;  %v17997_v35 = vld [vmem:[%s19296_s25 + $0x7e4] ss:$16 sps:$4 sm:$0xff]  }
 0x68f   : > { %14320 = vmatpush2.bf16.msra.mxu0 %v17938_v63  ;;  %v17998_v63 = vld [vmem:[%s19296_s25 + $0x5c0] ss:$16 sps:$4 sm:$0xff]   ;;  %v18006_v1 = vld [vmem:[%s19296_s25 + $0x5a4] ss:$16 sps:$4 sm:$0xff]  }
 0x690   : > { %14375 = vmatprep.subr.bf16.mxu0 %v17946_v13  ;;  %v18004_v13 = vld [vmem:[%s19296_s25 + $0x5a0] ss:$16 sps:$4 sm:$0xff]   ;;  %v18012_v49 = vld [vmem:[%s19296_s25 + $0x584] ss:$16 sps:$4 sm:$0xff]  }
 0x691   : > { %14363 = vmatpush2.bf16.msra.mxu1 %v17941_v15  ;;  %v18009_v15 = vld [vmem:[%s19296_s25 + $0x7a4] ss:$16 sps:$4 sm:$0xff]  }
 0x692   : > { %14418 = vmatprep.subr.bf16.mxu1 %v17949_v37  ;;  %14322 = vmatmul.mubr.bf16.vlgmr.msra.gmra.mxu0 %v22196_v61  ;;  %v18007_v37 = vld [vmem:[%s19296_s25 + $0x7a0] ss:$16 sps:$4 sm:$0xff]   ;;  %v18015_v19 = vld [vmem:[%s19296_s25 + $0x784] ss:$16 sps:$4 sm:$0xff]  }
 0x693   : > { %14376 = vmatpush1.bf16.msra.mxu0 %v17944_v18  ;;  %14407 = vmatprep.mubr.bf16.mxu0 %v21444_v10  ;;  %v22198_v18 = vld [vmem:[#allocation46_spill] sm:$0xff] }
 0x694   : > { %14365 = vmatmul.mubr.bf16.vlgmr.msra.gmra.mxu1 %v22197_v38  ;;  %14377 = vmatprep.subr.bf16.mxu0 %v17952_v5  ;;  %v10170_v45 = vadd.f32 %v22198_v18, %v1960_v33  ;;  %v10166_v5 = vadd.f32 %v22199_v60, %v1960_v33  ;;  %v22213_v33 = vld [vmem:[#allocation57_spill] sm:$0xff] }
 0x695   : > { %14419 = vmatpush1.bf16.msra.mxu1 %v17947_v6  ;;  %14450 = vmatprep.mubr.bf16.mxu1 %v21447_v4  ;;  %v18010_v6 = vld [vmem:[%s19296_s25 + $0x580] ss:$16 sps:$4 sm:$0xff]  }
 0x696   : > { %14420 = vmatprep.subr.bf16.mxu1 %v17955_v43  ;;  %v18013_v43 = vld [vmem:[%s19296_s25 + $0x780] ss:$16 sps:$4 sm:$0xff]  }
 0x697   : > { %14378 = vmatpush1.bf16.msra.mxu0 %v17950_v32  ;;  %v18018_v32 = vld [vmem:[%s19296_s25 + $0x564] ss:$16 sps:$4 sm:$0xff]  }
 0x698   : > { %14379 = vmatprep.subr.bf16.mxu0 %v17958_v21  ;;  %v18021_v21 = vld [vmem:[%s19296_s25 + $0x764] ss:$16 sps:$4 sm:$0xff]  }
 0x699   : > { %14421 = vmatpush1.bf16.msra.mxu1 %v17953_v53  ;;  %v1968_v53 = vrot.slane %v21490_v20, %v21272_v51  ;;  %v22215_v18 = vld [vmem:[#allocation69_spill] sm:$0xff] }
 0x69a   : > { %14422 = vmatprep.subr.bf16.mxu1 %v17961_v36  ;;  %v22200_v36 = vld [vmem:[#allocation47_spill] sm:$0xff]  ;;  %v22216_v60 = vld [vmem:[#allocation53_spill] sm:$0xff] }
 0x69b   : > { %14380 = vmatpush1.bf16.msra.mxu0 %v17956_v56  ;;  %v10213_v56 = vadd.f32 %v22200_v36, %v10170_v45  ;;  %v18039_v36 = vld [vmem:[%s19296_s25 + $0x704] ss:$16 sps:$4 sm:$0xff]  }
 0x69c   : > { %14381 = vmatprep.subr.bf16.mxu0 %v17964_v24 }
 0x69d   : > { %14423 = vmatpush1.bf16.msra.mxu1 %v17959_v47  ;;  %v22201_v47 = vld [vmem:[#allocation59_spill] sm:$0xff] }
 0x69e   : > { %14424 = vmatprep.subr.bf16.mxu1 %v17967_v40  ;;  %v10428_v24 = vadd.f32 %v22201_v47, %v1968_v53  ;;  %v18016_v40 = vld [vmem:[%s19296_s25 + $0x560] ss:$16 sps:$4 sm:$0xff]  }
 0x69f   : > { %14382 = vmatpush1.bf16.msra.mxu0 %v17962_v14  ;;  %v22202_v14 = vld [vmem:[#allocation45_spill] sm:$0xff] }
 0x6a0   : > { %14383 = vmatprep.subr.bf16.mxu0 %v17970_v0  ;;  %v22203_v0 = vld [vmem:[#allocation51_spill] sm:$0xff] }
 0x6a1   : > { %14425 = vmatpush1.bf16.msra.mxu1 %v17965_v58  ;;  %v10209_v58 = vadd.f32 %v22202_v14, %v10166_v5  ;;  %v18034_v14 = vld [vmem:[%s19296_s25 + $0x500] ss:$16 sps:$4 sm:$0xff]  }
 0x6a2   : > { %14426 = vmatprep.subr.bf16.mxu1 %v17973_v2  ;;  %v10256_v2 = vadd.f32 %v22203_v0, %v10213_v56  ;;  %v22218_v56 = vld [vmem:[#allocation55_spill] sm:$0xff] }
 0x6a3   : > { %14384 = vmatpush1.bf16.msra.mxu0 %v17968_v28  ;;  %v18019_v28 = vld [vmem:[%s19296_s25 + $0x760] ss:$16 sps:$4 sm:$0xff]  }
 0x6a4   : > { %14385 = vmatprep.subr.bf16.mxu0 %v17976_v50  ;;  %v22204_v50 = vld [vmem:[#allocation56_spill] sm:$0xff] }
 0x6a5   : > { %14427 = vmatpush1.bf16.msra.mxu1 %v17971_v17  ;;  %v18024_v17 = vld [vmem:[%s19296_s25 + $0x544] ss:$16 sps:$4 sm:$0xff]  }
 0x6a6   : > { %14428 = vmatprep.subr.bf16.mxu1 %v17979_v9  ;;  %v10424_v9 = vadd.f32 %v22204_v50, %v1968_v53  ;;  %v22217_v53 = vld [vmem:[#allocation65_spill] sm:$0xff] }
 0x6a7   : > { %14386 = vmatpush1.bf16.msra.mxu0 %v17974_v25  ;;  %v22205_v25 = vld [vmem:[#allocation61_spill] sm:$0xff] }
 0x6a8   : > { %14387 = vmatprep.subr.bf16.mxu0 %v17982_v3  ;;  %v18027_v3 = vld [vmem:[%s19296_s25 + $0x744] ss:$16 sps:$4 sm:$0xff]  }
 0x6a9   : > { %14429 = vmatpush1.bf16.msra.mxu1 %v17977_v44  ;;  %v10471_v44 = vadd.f32 %v22205_v25, %v10428_v24  ;;  %v22219_v24 = vld [vmem:[#allocation68_spill] sm:$0xff] }
 0x6aa   : > { %14430 = vmatprep.subr.bf16.mxu1 %v17985_v31  ;;  %v22206_v31 = vld [vmem:[#allocation48_spill] sm:$0xff] }
 0x6ab   : > { %14388 = vmatpush1.bf16.msra.mxu0 %v17980_v11  ;;  %v10252_v11 = vadd.f32 %v22206_v31, %v10209_v58  ;;  %v22220_v58 = vld [vmem:[#allocation52_spill] sm:$0xff] }
 0x6ac   : > { %14389 = vmatprep.subr.bf16.mxu0 %v17988_v22 }
 0x6ad   : > { %14431 = vmatpush1.bf16.msra.mxu1 %v17983_v7  ;;  %v22207_v7 = vld [vmem:[#allocation58_spill] sm:$0xff] }
 0x6ae   : > { %14432 = vmatprep.subr.bf16.mxu1 %v17991_v26  ;;  %v10467_v22 = vadd.f32 %v22207_v7, %v10424_v9  ;;  %v22208_v26 = vld [vmem:[#allocation64_spill] sm:$0xff]  ;;  %v18045_v9 = vld [vmem:[%s19296_s25 + $0xae4] ss:$16 sps:$4 sm:$0xff]  }
 0x6af   : > { %14390 = vmatpush1.bf16.msra.mxu0 %v17986_v27  ;;  %v10514_v27 = vadd.f32 %v22208_v26, %v10471_v44  ;;  %v22222_v26 = vld [vmem:[#allocation32_spill] sm:$0xff] }
 0x6b0   : > { %14391 = vmatprep.subr.bf16.mxu0 %v17994_v39  ;;  %v22209_v39 = vld [vmem:[#allocation50_spill] sm:$0xff] }
 0x6b1   : > { %14433 = vmatpush1.bf16.msra.mxu1 %v17989_v57  ;;  %v18022_v57 = vld [vmem:[%s19296_s25 + $0x540] ss:$16 sps:$4 sm:$0xff]  }
 0x6b2   : > { %14434 = vmatprep.subr.bf16.mxu1 %v17997_v35  ;;  %v10299_v35 = vadd.f32 %v22209_v39, %v10256_v2  ;;  %v18037_v2 = vld [vmem:[%s19296_s25 + $0x700] ss:$16 sps:$4 sm:$0xff]  }
 0x6b3   : > { %14392 = vmatpush2.bf16.msra.mxu0 %v17992_v30  ;;  %v18025_v30 = vld [vmem:[%s19296_s25 + $0x740] ss:$16 sps:$4 sm:$0xff]  }
 0x6b4   : > { %14393 = vmatprep.subr.bf16.mxu0 %v18000_v48  ;;  %v22210_v48 = vld [vmem:[#allocation60_spill] sm:$0xff] }
 0x6b5   : > { %14435 = vmatpush2.bf16.msra.mxu1 %v17995_v8  ;;  %v18030_v8 = vld [vmem:[%s19296_s25 + $0x524] ss:$16 sps:$4 sm:$0xff]  }
 0x6b6   : > { %14436 = vmatprep.subr.bf16.mxu1 %v18003_v34  ;;  %v10510_v34 = vadd.f32 %v22210_v48, %v10467_v22  ;;  %v18048_v22 = vld [vmem:[%s19296_s25 + $0x8c4] ss:$16 sps:$4 sm:$0xff]  }
 0x6b7   : > { %14394 = vmatpush2.bf16.msra.mxu0 %v17998_v63  ;;  %v22211_v63 = vld [vmem:[#allocation63_spill] sm:$0xff] }
 0x6b8   : > { %14395 = vmatprep.subr.bf16.mxu0 %v18006_v1  ;;  %v18033_v1 = vld [vmem:[%s19296_s25 + $0x724] ss:$16 sps:$4 sm:$0xff]  }
 0x6b9   : > { %14437 = vmatpush2.bf16.msra.mxu1 %v18001_v23  ;;  %v10557_v23 = vadd.f32 %v22211_v63, %v10514_v27  ;;  %v18054_v48 = vld [vmem:[%s19296_s25 + $0x8a4] ss:$16 sps:$4 sm:$0xff]   ;;  %v18052_v63 = vld [vmem:[%s19296_s25 + $0x8a0] ss:$16 sps:$4 sm:$0xff]  }
 0x6ba   : > { %14438 = vmatprep.subr.bf16.mxu1 %v18009_v15  ;;  %v22212_v15 = vld [vmem:[#allocation49_spill] sm:$0xff] }
 0x6bb   : > { %14396 = vmatpush2.bf16.msra.mxu0 %v18004_v13  ;;  %v10295_v13 = vadd.f32 %v22212_v15, %v10252_v11  ;;  %v10600_v45 = vadd.f32 %v22215_v18, %v10557_v23  ;;  %v18043_v11 = vld [vmem:[%s19296_s25 + $0xae0] ss:$16 sps:$4 sm:$0xff]   ;;  %v18063_v15 = vld [vmem:[%s19296_s25 + $0xa84] ss:$16 sps:$4 sm:$0xff]  }
 0x6bc   : > { %14397 = vmatprep.subr.bf16.mxu0 %v18012_v49  ;;  %v22214_v49 = vld [vmem:[#allocation62_spill] sm:$0xff]  ;;  %v18055_v23 = vld [vmem:[%s19296_s25 + $0xaa0] ss:$16 sps:$4 sm:$0xff]  }
 0x6bd   : > { %14439 = vmatpush2.bf16.msra.mxu1 %v18007_v37  ;;  %v10342_v37 = vadd.f32 %v22213_v33, %v10299_v35  ;;  %v10338_v5 = vadd.f32 %v22216_v60, %v10295_v13  ;;  %v22223_v35 = vld [vmem:[#allocation41_spill] sm:$0xff] }
 0x6be   : > { %14440 = vmatprep.subr.bf16.mxu1 %v18015_v19  ;;  %v10553_v19 = vadd.f32 %v22214_v49, %v10510_v34  ;;  %v18057_v34 = vld [vmem:[%s19296_s25 + $0xaa4] ss:$16 sps:$4 sm:$0xff]   ;;  %v18058_v13 = vld [vmem:[%s19296_s25 + $0x880] ss:$16 sps:$4 sm:$0xff]  }
 0x6bf   : > { %14398 = vmatpush2.bf16.msra.mxu0 %v18010_v6  ;;  %v18028_v6 = vld [vmem:[%s19296_s25 + $0x520] ss:$16 sps:$4 sm:$0xff]   ;;  %v10385_v47 = vadd.f32 %v22218_v56, %v10342_v37  ;;  %v10381_v0 = vadd.f32 %v22220_v58, %v10338_v5  ;;  %v18066_v37 = vld [vmem:[%s19296_s25 + $0x864] ss:$16 sps:$4 sm:$0xff]  }
 0x6c0   : > { %14399 = vmatprep.subr.bf16.mxu0 %v18018_v32  ;;  %v18036_v32 = vld [vmem:[%s19296_s25 + $0x504] ss:$16 sps:$4 sm:$0xff]   ;;  %v18061_v33 = vld [vmem:[%s19296_s25 + $0xa80] ss:$16 sps:$4 sm:$0xff]  }
 0x6c1   : > { %14441 = vmatpush2.bf16.msra.mxu1 %v18013_v43  ;;  %v18031_v43 = vld [vmem:[%s19296_s25 + $0x720] ss:$16 sps:$4 sm:$0xff]   ;;  %v11186_v25 = vmax.f32 %v10385_v47, 0.0  ;;  %v11170_v31 = vmax.f32 %v10381_v0, 0.0  ;;  %v18069_v49 = vld [vmem:[%s19296_s25 + $0xa64] ss:$16 sps:$4 sm:$0xff]  }
 0x6c2   : > { %14442 = vmatprep.subr.bf16.mxu1 %v18021_v21  ;;  %v10596_v21 = vadd.f32 %v22217_v53, %v10553_v19  ;;  %v18064_v19 = vld [vmem:[%s19296_s25 + $0x860] ss:$16 sps:$4 sm:$0xff]   ;;  %v18087_v56 = vld [vmem:[%s19296_s25 + $0xa04] ss:$16 sps:$4 sm:$0xff]  }
 0x6c3   : > { %14400 = vmatpush2.bf16.msra.mxu0 %v18016_v40  ;;  %v10643_v40 = vadd.f32 %v22219_v24, %v10600_v45  ;;  %v21547_v27 = vpack.c.bf16 %v11186_v25, %v11170_v31  ;;  %v18067_v18 = vld [vmem:[%s19296_s25 + $0xa60] ss:$16 sps:$4 sm:$0xff]   ;;  %v18072_v45 = vld [vmem:[%s19296_s25 + $0x844] ss:$16 sps:$4 sm:$0xff]  }
 0x6c4   : > { %14401 = vmatprep.subr.bf16.mxu0 %v18024_v17  ;;  %v22221_v17 = vld [vmem:[#allocation66_spill] sm:$0xff]  ;;  %v18070_v60 = vld [vmem:[%s19296_s25 + $0x840] ss:$16 sps:$4 sm:$0xff]   ;;  %v18102_v25 = vld [vmem:[%s19296_s25 + $0x9a4] ss:$16 sps:$4 sm:$0xff]  }
 0x6c5   : > { %14443 = vmatpush2.bf16.msra.mxu1 %v18019_v28  ;;  %v18042_v28 = vld [vmem:[%s19296_s25 + $0x8e4] ss:$16 sps:$4 sm:$0xff]   ;;  %v10639_v50 = vadd.f32 %v22221_v17, %v10596_v21  ;;  %v11188_v44 = vmax.f32 %v10643_v40, 0.0  ;;  %v18073_v5 = vld [vmem:[%s19296_s25 + $0xa40] ss:$16 sps:$4 sm:$0xff]  }
 0x6c6   : > { %14444 = vmatprep.subr.bf16.mxu1 %v18027_v3  ;;  %v18040_v3 = vld [vmem:[%s19296_s25 + $0x8e0] ss:$16 sps:$4 sm:$0xff]   ;;  %v18090_v40 = vld [vmem:[%s19296_s25 + $0x9e4] ss:$16 sps:$4 sm:$0xff]  }
 0x6c7   : > { %14402 = vmatpush2.bf16.msra.mxu0 %v18022_v57  ;;  %v11172_v7 = vmax.f32 %v10639_v50, 0.0  ;;  %v18051_v57 = vld [vmem:[%s19296_s25 + $0xac4] ss:$16 sps:$4 sm:$0xff]   ;;  %v18076_v53 = vld [vmem:[%s19296_s25 + $0x820] ss:$16 sps:$4 sm:$0xff]   ;;  %v10857_v50 = vpop.f32.mrf.mxu0 }
 0x6c8   : > { %14403 = vmatprep.subr.bf16.mxu0 %v18030_v8  ;;  %v18049_v8 = vld [vmem:[%s19296_s25 + $0xac0] ss:$16 sps:$4 sm:$0xff]  }
 0x6c9   : > { %14445 = vmatpush2.bf16.msra.mxu1 %v18025_v30  ;;  %v21550_v39 = vpack.c.bf16 %v11188_v44, %v11172_v7  ;;  %v18046_v30 = vld [vmem:[%s19296_s25 + $0x8c0] ss:$16 sps:$4 sm:$0xff]   ;;  %v21590_v44 = vpop.f32.mrf.mxu1  ;;  %v21593_v31 = vpop.f32.mrf.mxu0 }
 0x6ca   : > { %14446 = vmatprep.subr.bf16.mxu1 %v18033_v1  ;;  %v18060_v1 = vld [vmem:[%s19296_s25 + $0x884] ss:$16 sps:$4 sm:$0xff]   ;;  %v18079_v21 = vld [vmem:[%s19296_s25 + $0xa20] ss:$16 sps:$4 sm:$0xff]  }
 0x6cb   : > { %14404 = vmatpush2.bf16.msra.mxu0 %v18028_v6  ;;  %v18075_v6 = vld [vmem:[%s19296_s25 + $0xa44] ss:$16 sps:$4 sm:$0xff]   ;;  %v18082_v47 = vld [vmem:[%s19296_s25 + $0x800] ss:$16 sps:$4 sm:$0xff]  }
 0x6cc   : > { %14405 = vmatprep.subr.bf16.mxu0 %v18036_v32  ;;  %v18081_v32 = vld [vmem:[%s19296_s25 + $0xa24] ss:$16 sps:$4 sm:$0xff]   ;;  %v18085_v24 = vld [vmem:[%s19296_s25 + $0xa00] ss:$16 sps:$4 sm:$0xff]  }
 0x6cd   : > { %14447 = vmatpush2.bf16.msra.mxu1 %v18031_v43  ;;  %v18078_v43 = vld [vmem:[%s19296_s25 + $0x824] ss:$16 sps:$4 sm:$0xff]   ;;  %v18088_v58 = vld [vmem:[%s19296_s25 + $0x9e0] ss:$16 sps:$4 sm:$0xff]  }
 0x6ce   : > { %14448 = vmatprep.subr.bf16.mxu1 %v18039_v36  ;;  %v18084_v36 = vld [vmem:[%s19296_s25 + $0x804] ss:$16 sps:$4 sm:$0xff]   ;;  %v18091_v0 = vld [vmem:[%s19296_s25 + $0xbe0] ss:$16 sps:$4 sm:$0xff]  }
 0x6cf   : > { %14406 = vmatpush2.bf16.msra.mxu0 %v18034_v14  ;;  %v18093_v14 = vld [vmem:[%s19296_s25 + $0xbe4] ss:$16 sps:$4 sm:$0xff]   ;;  %v18094_v17 = vld [vmem:[%s19296_s25 + $0x9c0] ss:$16 sps:$4 sm:$0xff]  }
 0x6d0   : > { %14461 = vmatprep.subr.bf16.mxu0 %v18042_v28  ;;  %v18099_v28 = vld [vmem:[%s19296_s25 + $0xbc4] ss:$16 sps:$4 sm:$0xff]   ;;  %v18100_v7 = vld [vmem:[%s19296_s25 + $0x9a0] ss:$16 sps:$4 sm:$0xff]  }
 0x6d1   : > { %14449 = vmatpush2.bf16.msra.mxu1 %v18037_v2  ;;  %v18096_v2 = vld [vmem:[%s19296_s25 + $0x9c4] ss:$16 sps:$4 sm:$0xff]  }
 0x6d2   : > { %14504 = vmatprep.subr.bf16.mxu1 %v18045_v9  ;;  %14408 = vmatmul.mubr.bf16.vlgmr.msra.gmra.mxu0 %v22222_v26  ;;  %v18097_v9 = vld [vmem:[%s19296_s25 + $0xbc0] ss:$16 sps:$4 sm:$0xff]  }
 0x6d3   : > { %14462 = vmatpush1.bf16.msra.mxu0 %v18040_v3  ;;  %14493 = vmatprep.mubr.bf16.mxu0 %v21547_v27  ;;  %v18105_v3 = vld [vmem:[%s19296_s25 + $0xba4] ss:$16 sps:$4 sm:$0xff]  }
 0x6d4   : > { %14451 = vmatmul.mubr.bf16.vlgmr.msra.gmra.mxu1 %v22223_v35  ;;  %14463 = vmatprep.subr.bf16.mxu0 %v18048_v22  ;;  %v1976_v22 = vrot.slane %v21490_v20, %v1943_v12  ;;  %v18109_v12 = vld [vmem:[%s19296_s25 + $0xb80] ss:$16 sps:$4 sm:$0xff]  }
 0x6d5   : > { %14505 = vmatpush1.bf16.msra.mxu1 %v18043_v11  ;;  %14536 = vmatprep.mubr.bf16.mxu1 %v21550_v39  ;;  %v21595_v11 = vpop.f32.mrf.mxu1 }
 0x6d6   : > { %14506 = vmatprep.subr.bf16.mxu1 %v18051_v57  ;;  %v18103_v57 = vld [vmem:[%s19296_s25 + $0xba0] ss:$16 sps:$4 sm:$0xff]  }
 0x6d7   : > { %14464 = vmatpush1.bf16.msra.mxu0 %v18046_v30  ;;  %v18108_v30 = vld [vmem:[%s19296_s25 + $0x984] ss:$16 sps:$4 sm:$0xff]  }
 0x6d8   : > { %14465 = vmatprep.subr.bf16.mxu0 %v18054_v48  ;;  %v22224_v48 = vld [vmem:[#allocation72_spill] sm:$0xff] }
 0x6d9   : > { %14507 = vmatpush1.bf16.msra.mxu1 %v18049_v8  ;;  %v18111_v8 = vld [vmem:[%s19296_s25 + $0xb84] ss:$16 sps:$4 sm:$0xff]  }
 0x6da   : > { %14508 = vmatprep.subr.bf16.mxu1 %v18057_v34  ;;  %v10686_v34 = vadd.f32 %v22224_v48, %v1976_v22 }
 0x6db   : > { %14466 = vmatpush1.bf16.msra.mxu0 %v18052_v63  ;;  %v21605_v63 = vpop.f32.mrf.mxu0 }
 0x6dc   : > { %14467 = vmatprep.subr.bf16.mxu0 %v18060_v1  ;;  %v18106_v1 = vld [vmem:[%s19296_s25 + $0x980] ss:$16 sps:$4 sm:$0xff]  }
 0x6dd   : > { %14509 = vmatpush1.bf16.msra.mxu1 %v18055_v23  ;;  %v21607_v23 = vpop.f32.mrf.mxu1 }
 0x6de   : > { %14510 = vmatprep.subr.bf16.mxu1 %v18063_v15  ;;  %v22225_v15 = vld [vmem:[#allocation70_spill] sm:$0xff] }
 0x6df   : > { %14468 = vmatpush1.bf16.msra.mxu0 %v18058_v13  ;;  %v10682_v13 = vadd.f32 %v22225_v15, %v1976_v22  ;;  %v18127_v22 = vld [vmem:[%s19296_s25 + $0xb20] ss:$16 sps:$4 sm:$0xff]  }
 0x6e0   : > { %14469 = vmatprep.subr.bf16.mxu0 %v18066_v37  ;;  %v18117_v37 = vld [vmem:[%s19296_s25 + $0xb64] ss:$16 sps:$4 sm:$0xff]   ;;  %v18133_v15 = vld [vmem:[%s19296_s25 + $0xb00] ss:$16 sps:$4 sm:$0xff]  }
 0x6e1   : > { %14511 = vmatpush1.bf16.msra.mxu1 %v18061_v33  ;;  %v18114_v33 = vld [vmem:[%s19296_s25 + $0x964] ss:$16 sps:$4 sm:$0xff]  }
 0x6e2   : > { %14512 = vmatprep.subr.bf16.mxu1 %v18069_v49  ;;  %v22226_v49 = vld [vmem:[#allocation73_spill] sm:$0xff] }
 0x6e3   : > { %14470 = vmatpush1.bf16.msra.mxu0 %v18064_v19  ;;  %v10729_v19 = vadd.f32 %v22226_v49, %v10686_v34 }
 0x6e4   : > { %14471 = vmatprep.subr.bf16.mxu0 %v18072_v45  ;;  %v21617_v45 = vpop.f32.mrf.mxu1 }
 0x6e5   : > { %14513 = vmatpush1.bf16.msra.mxu1 %v18067_v18  ;;  %v21615_v18 = vpop.f32.mrf.mxu0 }
 0x6e6   : > { %14514 = vmatprep.subr.bf16.mxu1 %v18075_v6  ;;  %v18112_v6 = vld [vmem:[%s19296_s25 + $0x960] ss:$16 sps:$4 sm:$0xff]  }
 0x6e7   : > { %14472 = vmatpush1.bf16.msra.mxu0 %v18070_v60  ;;  %v22227_v60 = vld [vmem:[#allocation71_spill] sm:$0xff] }
 0x6e8   : > { %14473 = vmatprep.subr.bf16.mxu0 %v18078_v43  ;;  %v10772_v43 = vadd.f32 %v21367_v52, %v10729_v19  ;;  %v18121_v52 = vld [vmem:[%s19296_s25 + $0xb40] ss:$16 sps:$4 sm:$0xff]  }
 0x6e9   : > { %14515 = vmatpush1.bf16.msra.mxu1 %v18073_v5  ;;  %v10725_v5 = vadd.f32 %v22227_v60, %v10682_v13  ;;  %v18138_v13 = vld [vmem:[%s19296_s25 + $0xce4] ss:$16 sps:$4 sm:$0xff]  }
 0x6ea   : > { %14516 = vmatprep.subr.bf16.mxu1 %v18081_v32  ;;  %v18115_v32 = vld [vmem:[%s19296_s25 + $0xb60] ss:$16 sps:$4 sm:$0xff]  }
 0x6eb   : > { %14474 = vmatpush1.bf16.msra.mxu0 %v18076_v53  ;;  %v18120_v53 = vld [vmem:[%s19296_s25 + $0x944] ss:$16 sps:$4 sm:$0xff]  }
 0x6ec   : > { %14475 = vmatprep.subr.bf16.mxu0 %v18084_v36  ;;  %v22228_v36 = vld [vmem:[#allocation74_spill] sm:$0xff] }
 0x6ed   : > { %14517 = vmatpush1.bf16.msra.mxu1 %v18079_v21  ;;  %v18123_v21 = vld [vmem:[%s19296_s25 + $0xb44] ss:$16 sps:$4 sm:$0xff]  }
 0x6ee   : > { %14518 = vmatprep.subr.bf16.mxu1 %v18087_v56  ;;  %v10768_v56 = vadd.f32 %v22228_v36, %v10725_v5  ;;  %v18144_v5 = vld [vmem:[%s19296_s25 + $0xcc4] ss:$16 sps:$4 sm:$0xff]  }
 0x6ef   : > { %14476 = vmatpush1.bf16.msra.mxu0 %v18082_v47  ;;  %v10986_v47 = vpop.f32.mrf.mxu0 }
 0x6f0   : > { %14477 = vmatprep.subr.bf16.mxu0 %v18090_v40  ;;  %v18118_v40 = vld [vmem:[%s19296_s25 + $0x940] ss:$16 sps:$4 sm:$0xff]  }
 0x6f1   : > { %14519 = vmatpush1.bf16.msra.mxu1 %v18085_v24  ;;  %v10943_v24 = vpop.f32.mrf.mxu1 }
 0x6f2   : > { %14520 = vmatprep.subr.bf16.mxu1 %v18093_v14  ;;  %v10815_v14 = vadd.f32 %v21364_v62, %v10772_v43  ;;  %v18147_v43 = vld [vmem:[%s19296_s25 + $0xec4] ss:$16 sps:$4 sm:$0xff]  }
 0x6f3   : > { %14478 = vmatpush2.bf16.msra.mxu0 %v18088_v58  ;;  %v21628_v58 = vpop.f32.mrf.mxu0 }
 0x6f4   : > { %14479 = vmatprep.subr.bf16.mxu0 %v18096_v2  ;;  %v21632_v2 = vpop.f32.mrf.mxu1 }
 0x6f5   : > { %14521 = vmatpush2.bf16.msra.mxu1 %v18091_v0  ;;  %v18126_v0 = vld [vmem:[%s19296_s25 + $0x924] ss:$16 sps:$4 sm:$0xff]  }
 0x6f6   : > { %14522 = vmatprep.subr.bf16.mxu1 %v18099_v28  ;;  %v18129_v28 = vld [vmem:[%s19296_s25 + $0xb24] ss:$16 sps:$4 sm:$0xff]  }
 0x6f7   : > { %14480 = vmatpush2.bf16.msra.mxu0 %v18094_v17  ;;  %v22229_v17 = vld [vmem:[#allocation75_spill] sm:$0xff] }
 0x6f8   : > { %14481 = vmatprep.subr.bf16.mxu0 %v18102_v25  ;;  %v10858_v25 = vadd.f32 %v10857_v50, %v10815_v14  ;;  %v1984_v50 = vrot.slane %v21490_v20, %v1951_v42 }
 0x6f9   : > { %14523 = vmatpush2.bf16.msra.mxu1 %v18097_v9  ;;  %v10811_v9 = vadd.f32 %v22229_v17, %v10768_v56  ;;  %v22231_v56 = vld [vmem:[#allocation67_spill] sm:$0xff] }
 0x6fa   : > { %14524 = vmatprep.subr.bf16.mxu1 %v18105_v3  ;;  %v18124_v3 = vld [vmem:[%s19296_s25 + $0x920] ss:$16 sps:$4 sm:$0xff]   ;;  %v10901_v48 = vadd.f32 %v21590_v44, %v10858_v25  ;;  %v18141_v44 = vld [vmem:[%s19296_s25 + $0xee4] ss:$16 sps:$4 sm:$0xff]   ;;  %v10940_v42 = vadd.f32 %v21607_v23, %v1984_v50  ;;  %v22230_v23 = vld [vmem:[#allocation54_spill] sm:$0xff] }
 0x6fb   : > { %14482 = vmatpush2.bf16.msra.mxu0 %v18100_v7  ;;  %v10854_v62 = vadd.f32 %v21377_v55, %v10811_v9  ;;  %v11068_v7 = vpop.f32.mrf.mxu0  ;;  %v18130_v55 = vld [vmem:[%s19296_s25 + $0x900] ss:$16 sps:$4 sm:$0xff]   ;;  %v18153_v9 = vld [vmem:[%s19296_s25 + $0xea4] ss:$16 sps:$4 sm:$0xff]  }
 0x6fc   : > { %14483 = vmatprep.subr.bf16.mxu0 %v18108_v30  ;;  %v11025_v30 = vpop.f32.mrf.mxu1 }
 0x6fd   : > { %14525 = vmatpush2.bf16.msra.mxu1 %v18103_v57  ;;  %v18132_v57 = vld [vmem:[%s19296_s25 + $0x904] ss:$16 sps:$4 sm:$0xff]   ;;  %v10897_v34 = vadd.f32 %v21375_v46, %v10854_v62  ;;  %v10983_v46 = vadd.f32 %v21605_v63, %v10940_v42 }
 0x6fe   : > { %14526 = vmatprep.subr.bf16.mxu1 %v18111_v8  ;;  %v18135_v8 = vld [vmem:[%s19296_s25 + $0xb04] ss:$16 sps:$4 sm:$0xff]  }
 0x6ff   : > { %14484 = vmatpush2.bf16.msra.mxu0 %v18106_v1  ;;  %v21647_v1 = vpop.f32.mrf.mxu0  ;;  %v11174_v49 = vmax.f32 %v10897_v34, 0.0  ;;  %v18165_v42 = vld [vmem:[%s19296_s25 + $0xe64] ss:$16 sps:$4 sm:$0xff]  }
 0x700   : > { %14485 = vmatprep.subr.bf16.mxu0 %v18114_v33  ;;  %v11190_v33 = vmax.f32 %v10901_v48, 0.0  ;;  %v18159_v48 = vld [vmem:[%s19296_s25 + $0xe84] ss:$16 sps:$4 sm:$0xff]  }
 0x701   : > { %14527 = vmatpush2.bf16.msra.mxu1 %v18109_v12  ;;  %v21651_v12 = vpop.f32.mrf.mxu1  ;;  %v11072_v19 = vpop.f32.mrf.mxu0 }
 0x702   : > { %14528 = vmatprep.subr.bf16.mxu1 %v18117_v37  ;;  %v18136_v37 = vld [vmem:[%s19296_s25 + $0xce0] ss:$16 sps:$4 sm:$0xff]   ;;  %v21663_v36 = vpack.c.bf16 %v11190_v33, %v11174_v49  ;;  %v18162_v33 = vld [vmem:[%s19296_s25 + $0xc64] ss:$16 sps:$4 sm:$0xff]  }
 0x703   : > { %14486 = vmatpush2.bf16.msra.mxu0 %v18112_v6  ;;  %v18139_v6 = vld [vmem:[%s19296_s25 + $0xee0] ss:$16 sps:$4 sm:$0xff]   ;;  %v11029_v60 = vpop.f32.mrf.mxu1 }
 0x704   : > { %14487 = vmatprep.subr.bf16.mxu0 %v18120_v53  ;;  %v11026_v53 = vadd.f32 %v11025_v30, %v10983_v46  ;;  %v18156_v30 = vld [vmem:[%s19296_s25 + $0xc84] ss:$16 sps:$4 sm:$0xff]   ;;  %v18160_v46 = vld [vmem:[%s19296_s25 + $0xc60] ss:$16 sps:$4 sm:$0xff]  }
 0x705   : > { %14529 = vmatpush2.bf16.msra.mxu1 %v18115_v32  ;;  %v10944_v32 = vadd.f32 %v10943_v24, %v1984_v50 }
 0x706   : > { %14530 = vmatprep.subr.bf16.mxu1 %v18123_v21 }
 0x707   : > { %14488 = vmatpush2.bf16.msra.mxu0 %v18118_v40  ;;  %v18142_v40 = vld [vmem:[%s19296_s25 + $0xcc0] ss:$16 sps:$4 sm:$0xff]   ;;  %v10987_v14 = vadd.f32 %v10986_v47, %v10944_v32 }
 0x708   : > { %14489 = vmatprep.subr.bf16.mxu0 %v18126_v0  ;;  %v18145_v0 = vld [vmem:[%s19296_s25 + $0xec0] ss:$16 sps:$4 sm:$0xff]  }
 0x709   : > { %14531 = vmatpush2.bf16.msra.mxu1 %v18121_v52  ;;  %v11069_v52 = vadd.f32 %v11068_v7, %v11026_v53  ;;  %v11030_v25 = vadd.f32 %v11029_v60, %v10987_v14  ;;  %v18148_v7 = vld [vmem:[%s19296_s25 + $0xca0] ss:$16 sps:$4 sm:$0xff]   ;;  %v18168_v60 = vld [vmem:[%s19296_s25 + $0xc44] ss:$16 sps:$4 sm:$0xff]  }
 0x70a   : > { %14532 = vmatprep.subr.bf16.mxu1 %v18129_v28  ;;  %v18150_v28 = vld [vmem:[%s19296_s25 + $0xca4] ss:$16 sps:$4 sm:$0xff]   ;;  %v18169_v32 = vld [vmem:[%s19296_s25 + $0xe40] ss:$16 sps:$4 sm:$0xff]  }
 0x70b   : > { %14490 = vmatpush2.bf16.msra.mxu0 %v18124_v3  ;;  %v18174_v53 = vld [vmem:[%s19296_s25 + $0xc24] ss:$16 sps:$4 sm:$0xff]   ;;  %v18172_v14 = vld [vmem:[%s19296_s25 + $0xc20] ss:$16 sps:$4 sm:$0xff]  }
 0x70c   : > { %14491 = vmatprep.subr.bf16.mxu0 %v18132_v57  ;;  %v18151_v57 = vld [vmem:[%s19296_s25 + $0xea0] ss:$16 sps:$4 sm:$0xff]  }
 0x70d   : > { %14533 = vmatpush2.bf16.msra.mxu1 %v18127_v22  ;;  %v11073_v22 = vadd.f32 %v11072_v19, %v11030_v25  ;;  %v18189_v25 = vld [vmem:[%s19296_s25 + $0xfe4] ss:$16 sps:$4 sm:$0xff]  }
 0x70e   : > { %14534 = vmatprep.subr.bf16.mxu1 %v18135_v8 }
 0x70f   : > { %14492 = vmatpush2.bf16.msra.mxu0 %v18130_v55 }
 0x710   : > { %14547 = vmatprep.subr.bf16.mxu0 %v18138_v13 }
 0x711   : > { %14535 = vmatpush2.bf16.msra.mxu1 %v18133_v15  ;;  %v18154_v15 = vld [vmem:[%s19296_s25 + $0xc80] ss:$16 sps:$4 sm:$0xff]  }
 0x712   : > { %14590 = vmatprep.subr.bf16.mxu1 %v18141_v44  ;;  %v21660_v21 = vpop.f32.mrf.mxu0  ;;  %14494 = vmatmul.mubr.bf16.vlgmr.msra.gmra.mxu0 %v22230_v23  ;;  %v18157_v44 = vld [vmem:[%s19296_s25 + $0xe80] ss:$16 sps:$4 sm:$0xff]  }
 0x713   : > { %14548 = vmatpush1.bf16.msra.mxu0 %v18136_v37  ;;  %14579 = vmatprep.mubr.bf16.mxu0 %v21663_v36 }
 0x714   : > { %v21665_v63 = vpop.f32.mrf.mxu1  ;;  %14537 = vmatmul.mubr.bf16.vlgmr.msra.gmra.mxu1 %v22231_v56  ;;  %v11154_v24 = vpop.f32.mrf.mxu0  ;;  %14549 = vmatprep.subr.bf16.mxu0 %v18144_v5  ;;  %v18171_v5 = vld [vmem:[%s19296_s25 + $0xe44] ss:$16 sps:$4 sm:$0xff]  }
 0x715   : > { %14591 = vmatpush1.bf16.msra.mxu1 %v18139_v6  ;;  %v18163_v6 = vld [vmem:[%s19296_s25 + $0xe60] ss:$16 sps:$4 sm:$0xff]  }
 0x716   : > { %v11111_v17 = vpop.f32.mrf.mxu1  ;;  %14592 = vmatprep.subr.bf16.mxu1 %v18147_v43  ;;  %v21675_v47 = vpop.f32.mrf.mxu0  ;;  %v18166_v43 = vld [vmem:[%s19296_s25 + $0xc40] ss:$16 sps:$4 sm:$0xff]  }
 0x717   : > { %v11112_v3 = vadd.f32 %v11111_v17, %v11069_v52  ;;  %14550 = vmatpush1.bf16.msra.mxu0 %v18142_v40  ;;  %v18177_v40 = vld [vmem:[%s19296_s25 + $0xe24] ss:$16 sps:$4 sm:$0xff]   ;;  %v18175_v52 = vld [vmem:[%s19296_s25 + $0xe20] ss:$16 sps:$4 sm:$0xff]  }
 0x718   : > { %v21673_v62 = vpop.f32.mrf.mxu1  ;;  %14551 = vmatprep.subr.bf16.mxu0 %v18150_v28  ;;  %v11158_v34 = vpop.f32.mrf.mxu0  ;;  %v18178_v28 = vld [vmem:[%s19296_s25 + $0xc00] ss:$16 sps:$4 sm:$0xff]  }
 0x719   : > { %14593 = vmatpush1.bf16.msra.mxu1 %v18145_v0  ;;  %v11155_v50 = vadd.f32 %v11154_v24, %v11112_v3  ;;  %v18180_v24 = vld [vmem:[%s19296_s25 + $0xc04] ss:$16 sps:$4 sm:$0xff]   ;;  %v18181_v17 = vld [vmem:[%s19296_s25 + $0xe00] ss:$16 sps:$4 sm:$0xff]  }
 0x71a   : > { %v11115_v8 = vpop.f32.mrf.mxu1  ;;  %14594 = vmatprep.subr.bf16.mxu1 %v18153_v9  ;;  %v18183_v0 = vld [vmem:[%s19296_s25 + $0xe04] ss:$16 sps:$4 sm:$0xff]   ;;  %v18184_v3 = vld [vmem:[%s19296_s25 + $0xde0] ss:$16 sps:$4 sm:$0xff]  }
 0x71b   : > { %v11116_v55 = vadd.f32 %v11115_v8, %v11073_v22  ;;  %14552 = vmatpush1.bf16.msra.mxu0 %v18148_v7  ;;  %v11176_v37 = vmax.f32 %v11155_v50, 0.0  ;;  %v18186_v9 = vld [vmem:[%s19296_s25 + $0xde4] ss:$16 sps:$4 sm:$0xff]   ;;  %v18187_v7 = vld [vmem:[%s19296_s25 + $0xfe0] ss:$16 sps:$4 sm:$0xff]  }
 0x71c   : > { %14553 = vmatprep.subr.bf16.mxu0 %v18156_v30  ;;  %v18192_v22 = vld [vmem:[%s19296_s25 + $0xdc4] ss:$16 sps:$4 sm:$0xff]   ;;  %v18190_v30 = vld [vmem:[%s19296_s25 + $0xdc0] ss:$16 sps:$4 sm:$0xff]  }
 0x71d   : > { %v11159_v13 = vadd.f32 %v11158_v34, %v11116_v55  ;;  %14595 = vmatpush1.bf16.msra.mxu1 %v18151_v57  ;;  %v18195_v57 = vld [vmem:[%s19296_s25 + $0xfc4] ss:$16 sps:$4 sm:$0xff]   ;;  %v18193_v8 = vld [vmem:[%s19296_s25 + $0xfc0] ss:$16 sps:$4 sm:$0xff]  }
 0x71e   : > { %14596 = vmatprep.subr.bf16.mxu1 %v18159_v48  ;;  %v18198_v48 = vld [vmem:[%s19296_s25 + $0xda4] ss:$16 sps:$4 sm:$0xff]   ;;  %v18196_v55 = vld [vmem:[%s19296_s25 + $0xda0] ss:$16 sps:$4 sm:$0xff]  }
 0x71f   : > { %v11192_v49 = vmax.f32 %v11159_v13, 0.0  ;;  %14554 = vmatpush1.bf16.msra.mxu0 %v18154_v15  ;;  %v18201_v50 = vld [vmem:[%s19296_s25 + $0xfa4] ss:$16 sps:$4 sm:$0xff]   ;;  %v18199_v34 = vld [vmem:[%s19296_s25 + $0xfa0] ss:$16 sps:$4 sm:$0xff]   ;;  %v22232_v13 = vsub.s32 6, %v19614_v16 }
 0x720   : > { %14555 = vmatprep.subr.bf16.mxu0 %v18162_v33  ;;  %v18204_v15 = vld [vmem:[%s19296_s25 + $0xd84] ss:$16 sps:$4 sm:$0xff]  }
 0x721   : > { %v21686_v19 = vpack.c.bf16 %v11192_v49, %v11176_v37  ;;  %14597 = vmatpush1.bf16.msra.mxu1 %v18157_v44  ;;  %v1980_v44 = vrot.slane %v21490_v20, %v22232_v13  ;;  %v18207_v33 = vld [vmem:[%s19296_s25 + $0xf84] ss:$16 sps:$4 sm:$0xff]   ;;  %v18205_v37 = vld [vmem:[%s19296_s25 + $0xf80] ss:$16 sps:$4 sm:$0xff]   ;;  %v18247_v13 = vld [vmem:[%s19296_s25 + $0x2a8] ss:$16 sps:$4 sm:$0xff]  }
 0x722   : > { %14598 = vmatprep.subr.bf16.mxu1 %v18165_v42  ;;  %v18202_v42 = vld [vmem:[%s19296_s25 + $0xd80] ss:$16 sps:$4 sm:$0xff]   ;;  %v18210_v49 = vld [vmem:[%s19296_s25 + $0xd64] ss:$16 sps:$4 sm:$0xff]  }
 0x723   : > { %14622 = vmatprep.mubr.bf16.mxu1 %v21686_v19  ;;  %14556 = vmatpush1.bf16.msra.mxu0 %v18160_v46  ;;  %v10942_v46 = vadd.f32 %v21617_v45, %v1980_v44  ;;  %v10938_v16 = vadd.f32 %v21595_v11, %v1980_v44  ;;  %v18255_v44 = vld [vmem:[%s19296_s25 + $0x28c] ss:$16 sps:$4 sm:$0xff]  }
 0x724   : > { %14557 = vmatprep.subr.bf16.mxu0 %v18168_v60  ;;  %v18208_v60 = vld [vmem:[%s19296_s25 + $0xd60] ss:$16 sps:$4 sm:$0xff]  }
 0x725   : > { %14599 = vmatpush1.bf16.msra.mxu1 %v18163_v6  ;;  %v18213_v6 = vld [vmem:[%s19296_s25 + $0xf64] ss:$16 sps:$4 sm:$0xff]   ;;  %v10985_v20 = vadd.f32 %v21615_v18, %v10942_v46  ;;  %v18259_v46 = vld [vmem:[%s19296_s25 + $0x268] ss:$16 sps:$4 sm:$0xff]  }
 0x726   : > { %14600 = vmatprep.subr.bf16.mxu1 %v18171_v5  ;;  %v18211_v5 = vld [vmem:[%s19296_s25 + $0xf60] ss:$16 sps:$4 sm:$0xff]  }
 0x727   : > { %14558 = vmatpush1.bf16.msra.mxu0 %v18166_v43  ;;  %v18216_v43 = vld [vmem:[%s19296_s25 + $0xd44] ss:$16 sps:$4 sm:$0xff]   ;;  %v11028_v45 = vadd.f32 %v21651_v12, %v10985_v20  ;;  %v18262_v20 = vld [vmem:[%s19296_s25 + $0x48] ss:$16 sps:$4 sm:$0xff]  }
 0x728   : > { %14559 = vmatprep.subr.bf16.mxu0 %v18174_v53  ;;  %v18219_v53 = vld [vmem:[%s19296_s25 + $0xf44] ss:$16 sps:$4 sm:$0xff]  }
 0x729   : > { %14601 = vmatpush1.bf16.msra.mxu1 %v18169_v32  ;;  %v10981_v32 = vadd.f32 %v21593_v31, %v10938_v16  ;;  %v11071_v18 = vadd.f32 %v21647_v1, %v11028_v45  ;;  %v18220_v1 = vld [vmem:[%s19296_s25 + $0xd20] ss:$16 sps:$4 sm:$0xff]   ;;  %v18267_v16 = vld [vmem:[%s19296_s25 + $0x24c] ss:$16 sps:$4 sm:$0xff]   ;;  %v18271_v45 = vld [vmem:[%s19296_s25 + $0x228] ss:$16 sps:$4 sm:$0xff]  }
 0x72a   : > { %14602 = vmatprep.subr.bf16.mxu1 %v18177_v40  ;;  %v18214_v40 = vld [vmem:[%s19296_s25 + $0xd40] ss:$16 sps:$4 sm:$0xff]  }
 0x72b   : > { %14560 = vmatpush1.bf16.msra.mxu0 %v18172_v14  ;;  %v11024_v11 = vadd.f32 %v21632_v2, %v10981_v32  ;;  %v18217_v14 = vld [vmem:[%s19296_s25 + $0xf40] ss:$16 sps:$4 sm:$0xff]   ;;  %v11114_v12 = vadd.f32 %v21673_v62, %v11071_v18  ;;  %v18268_v32 = vld [vmem:[%s19296_s25 + $0x28] ss:$16 sps:$4 sm:$0xff]  }
 0x72c   : > { %14561 = vmatprep.subr.bf16.mxu0 %v18180_v24  ;;  %v18225_v24 = vld [vmem:[%s19296_s25 + $0xf24] ss:$16 sps:$4 sm:$0xff]   ;;  %v18274_v18 = vld [vmem:[%s19296_s25 + $0x8] ss:$16 sps:$4 sm:$0xff]  }
 0x72d   : > { %14603 = vmatpush1.bf16.msra.mxu1 %v18175_v52  ;;  %v18222_v52 = vld [vmem:[%s19296_s25 + $0xd24] ss:$16 sps:$4 sm:$0xff]   ;;  %v11067_v31 = vadd.f32 %v21628_v58, %v11024_v11  ;;  %v18279_v11 = vld [vmem:[%s19296_s25 + $0x20c] ss:$16 sps:$4 sm:$0xff]  }
 0x72e   : > { %14604 = vmatprep.subr.bf16.mxu1 %v18183_v0  ;;  %v18223_v0 = vld [vmem:[%s19296_s25 + $0xf20] ss:$16 sps:$4 sm:$0xff]   ;;  %v18231_v58 = vld [vmem:[%s19296_s25 + $0xf04] ss:$16 sps:$4 sm:$0xff]  }
 0x72f   : > { %14562 = vmatpush1.bf16.msra.mxu0 %v18178_v28  ;;  %v11110_v2 = vadd.f32 %v21665_v63, %v11067_v31  ;;  %v18228_v28 = vld [vmem:[%s19296_s25 + $0xd04] ss:$16 sps:$4 sm:$0xff]   ;;  %v18229_v63 = vld [vmem:[%s19296_s25 + $0xf00] ss:$16 sps:$4 sm:$0xff]   ;;  %v18280_v31 = vld [vmem:[%s19296_s25 + $0x1e8] ss:$16 sps:$4 sm:$0xff]  }
 0x730   : > { %14563 = vmatprep.subr.bf16.mxu0 %v18186_v9  ;;  %v18226_v9 = vld [vmem:[%s19296_s25 + $0xd00] ss:$16 sps:$4 sm:$0xff]  }
 0x731   : > { %14605 = vmatpush1.bf16.msra.mxu1 %v18181_v17  ;;  %v11157_v17 = vadd.f32 %v21675_v47, %v11114_v12  ;;  %v11153_v62 = vadd.f32 %v21660_v21, %v11110_v2  ;;  %v18232_v47 = vld [vmem:[%s19296_s25 + $0xe8] ss:$16 sps:$4 sm:$0xff]   ;;  %v18291_v2 = vld [vmem:[%s19296_s25 + $0x3cc] ss:$16 sps:$4 sm:$0xff]  }
 0x732   : > { %14606 = vmatprep.subr.bf16.mxu1 %v18189_v25  ;;  %v18234_v25 = vld [vmem:[%s19296_s25 + $0xec] ss:$16 sps:$4 sm:$0xff]   ;;  %v18235_v21 = vld [vmem:[%s19296_s25 + $0x2e8] ss:$16 sps:$4 sm:$0xff]  }
 0x733   : > { %14564 = vmatpush2.bf16.msra.mxu0 %v18184_v3  ;;  %v11191_v3 = vmax.f32 %v11157_v17, 0.0  ;;  %v18283_v12 = vld [vmem:[%s19296_s25 + $0x3e8] ss:$16 sps:$4 sm:$0xff]   ;;  %v18297_v17 = vld [vmem:[%s19296_s25 + $0x3ac] ss:$16 sps:$4 sm:$0xff]  }
 0x734   : > { %14565 = vmatprep.subr.bf16.mxu0 %v18192_v22  ;;  %v11175_v22 = vmax.f32 %v11153_v62, 0.0  ;;  %v18295_v62 = vld [vmem:[%s19296_s25 + $0x3a8] ss:$16 sps:$4 sm:$0xff]  }
 0x735   : > { %14607 = vmatpush2.bf16.msra.mxu1 %v18187_v7  ;;  %v18237_v7 = vld [vmem:[%s19296_s25 + $0x2ec] ss:$16 sps:$4 sm:$0xff]  }
 0x736   : > { %14608 = vmatprep.subr.bf16.mxu1 %v18195_v57  ;;  %v21753_v57 = vpack.c.bf16 %v11191_v3, %v11175_v22  ;;  %v18301_v3 = vld [vmem:[%s19296_s25 + $0x388] ss:$16 sps:$4 sm:$0xff]   ;;  %v18309_v22 = vld [vmem:[%s19296_s25 + $0x36c] ss:$16 sps:$4 sm:$0xff]  }
 0x737   : > { %14566 = vmatpush2.bf16.msra.mxu0 %v18190_v30  ;;  %v18240_v30 = vld [vmem:[%s19296_s25 + $0xcc] ss:$16 sps:$4 sm:$0xff]  }
 0x738   : > { %14567 = vmatprep.subr.bf16.mxu0 %v18198_v48  ;;  %v18238_v48 = vld [vmem:[%s19296_s25 + $0xc8] ss:$16 sps:$4 sm:$0xff]  }
 0x739   : > { %14609 = vmatpush2.bf16.msra.mxu1 %v18193_v8  ;;  %v18243_v8 = vld [vmem:[%s19296_s25 + $0x2cc] ss:$16 sps:$4 sm:$0xff]  }
 0x73a   : > { %14610 = vmatprep.subr.bf16.mxu1 %v18201_v50  ;;  %v18241_v50 = vld [vmem:[%s19296_s25 + $0x2c8] ss:$16 sps:$4 sm:$0xff]  }
 0x73b   : > { %14568 = vmatpush2.bf16.msra.mxu0 %v18196_v55  ;;  %v18246_v55 = vld [vmem:[%s19296_s25 + $0xac] ss:$16 sps:$4 sm:$0xff]  }
 0x73c   : > { %14569 = vmatprep.subr.bf16.mxu0 %v18204_v15  ;;  %v18244_v15 = vld [vmem:[%s19296_s25 + $0xa8] ss:$16 sps:$4 sm:$0xff]  }
 0x73d   : > { %14611 = vmatpush2.bf16.msra.mxu1 %v18199_v34  ;;  %v18249_v34 = vld [vmem:[%s19296_s25 + $0x2ac] ss:$16 sps:$4 sm:$0xff]  }
 0x73e   : > { %14612 = vmatprep.subr.bf16.mxu1 %v18207_v33  ;;  %v18253_v33 = vld [vmem:[%s19296_s25 + $0x288] ss:$16 sps:$4 sm:$0xff]  }
 0x73f   : > { %14570 = vmatpush2.bf16.msra.mxu0 %v18202_v42  ;;  %v18258_v42 = vld [vmem:[%s19296_s25 + $0x6c] ss:$16 sps:$4 sm:$0xff]  }
 0x740   : > { %14571 = vmatprep.subr.bf16.mxu0 %v18210_v49  ;;  %v18256_v49 = vld [vmem:[%s19296_s25 + $0x68] ss:$16 sps:$4 sm:$0xff]  }
 0x741   : > { %14613 = vmatpush2.bf16.msra.mxu1 %v18205_v37  ;;  %v18261_v37 = vld [vmem:[%s19296_s25 + $0x26c] ss:$16 sps:$4 sm:$0xff]  }
 0x742   : > { %14614 = vmatprep.subr.bf16.mxu1 %v18213_v6  ;;  %v18264_v6 = vld [vmem:[%s19296_s25 + $0x4c] ss:$16 sps:$4 sm:$0xff]  }
 0x743   : > { %14572 = vmatpush2.bf16.msra.mxu0 %v18208_v60  ;;  %v18265_v60 = vld [vmem:[%s19296_s25 + $0x248] ss:$16 sps:$4 sm:$0xff]  }
 0x744   : > { %14573 = vmatprep.subr.bf16.mxu0 %v18216_v43  ;;  %v18273_v43 = vld [vmem:[%s19296_s25 + $0x22c] ss:$16 sps:$4 sm:$0xff]  }
 0x745   : > { %14615 = vmatpush2.bf16.msra.mxu1 %v18211_v5  ;;  %v18270_v5 = vld [vmem:[%s19296_s25 + $0x2c] ss:$16 sps:$4 sm:$0xff]  }
 0x746   : > { %14616 = vmatprep.subr.bf16.mxu1 %v18219_v53  ;;  %v18276_v53 = vld [vmem:[%s19296_s25 + $0xc] ss:$16 sps:$4 sm:$0xff]  }
 0x747   : > { %14574 = vmatpush2.bf16.msra.mxu0 %v18214_v40  ;;  %v18277_v40 = vld [vmem:[%s19296_s25 + $0x208] ss:$16 sps:$4 sm:$0xff]  }
 0x748   : > { %14575 = vmatprep.subr.bf16.mxu0 %v18222_v52  ;;  %v18285_v52 = vld [vmem:[%s19296_s25 + $0x3ec] ss:$16 sps:$4 sm:$0xff]  }
 0x749   : > { %14617 = vmatpush2.bf16.msra.mxu1 %v18217_v14  ;;  %v18282_v14 = vld [vmem:[%s19296_s25 + $0x1ec] ss:$16 sps:$4 sm:$0xff]  }
 0x74a   : > { %14618 = vmatprep.subr.bf16.mxu1 %v18225_v24  ;;  %v18288_v24 = vld [vmem:[%s19296_s25 + $0x1cc] ss:$16 sps:$4 sm:$0xff]  }
 0x74b   : > { %14576 = vmatpush2.bf16.msra.mxu0 %v18220_v1  ;;  %v18286_v1 = vld [vmem:[%s19296_s25 + $0x1c8] ss:$16 sps:$4 sm:$0xff]  }
 0x74c   : > { %14577 = vmatprep.subr.bf16.mxu0 %v18228_v28  ;;  %v18294_v28 = vld [vmem:[%s19296_s25 + $0x1ac] ss:$16 sps:$4 sm:$0xff]  }
 0x74d   : > { %14619 = vmatpush2.bf16.msra.mxu1 %v18223_v0  ;;  %v18289_v0 = vld [vmem:[%s19296_s25 + $0x3c8] ss:$16 sps:$4 sm:$0xff]  }
 0x74e   : > { %14620 = vmatprep.subr.bf16.mxu1 %v18231_v58  ;;  %v18292_v58 = vld [vmem:[%s19296_s25 + $0x1a8] ss:$16 sps:$4 sm:$0xff]  }
 0x74f   : > { %14578 = vmatpush2.bf16.msra.mxu0 %v18226_v9  ;;  %v18300_v9 = vld [vmem:[%s19296_s25 + $0x18c] ss:$16 sps:$4 sm:$0xff]  }
 0x750   : > { %14633 = vmatprep.subr.bf16.mxu0 %v18234_v25  ;;  %v18298_v25 = vld [vmem:[%s19296_s25 + $0x188] ss:$16 sps:$4 sm:$0xff]  }
 0x751   : > { %14621 = vmatpush2.bf16.msra.mxu1 %v18229_v63  ;;  %v18303_v63 = vld [vmem:[%s19296_s25 + $0x38c] ss:$16 sps:$4 sm:$0xff]  }
 0x752   : > { %14676 = vmatprep.subr.bf16.mxu1 %v18237_v7  ;;  %14580 = vmatmul.mubr.bf16.vlgmr.msra.gmra.mxu0 %v21399_v59  ;;  %v18306_v7 = vld [vmem:[%s19296_s25 + $0x16c] ss:$16 sps:$4 sm:$0xff]  }
 0x753   : > { %14634 = vmatpush1.bf16.msra.mxu0 %v18232_v47  ;;  %14665 = vmatprep.mubr.bf16.mxu0 %v21326_v54  ;;  %v18252_v54 = vld [vmem:[%s19296_s25 + $0x8c] ss:$16 sps:$4 sm:$0xff]   ;;  %v18304_v47 = vld [vmem:[%s19296_s25 + $0x168] ss:$16 sps:$4 sm:$0xff]  }
 0x754   : > { %14623 = vmatmul.mubr.bf16.vlgmr.msra.gmra.mxu1 %v21753_v57  ;;  %14635 = vmatprep.subr.bf16.mxu0 %v18240_v30  ;;  %v18312_v30 = vld [vmem:[%s19296_s25 + $0x14c] ss:$16 sps:$4 sm:$0xff]  }
 0x755   : > { %14677 = vmatpush1.bf16.msra.mxu1 %v18235_v21  ;;  %14708 = vmatprep.mubr.bf16.mxu1 %v21329_v41  ;;  %v18250_v41 = vld [vmem:[%s19296_s25 + $0x88] ss:$16 sps:$4 sm:$0xff]  }
 0x756   : > { %14678 = vmatprep.subr.bf16.mxu1 %v18243_v8  ;;  %v18307_v21 = vld [vmem:[%s19296_s25 + $0x368] ss:$16 sps:$4 sm:$0xff]   ;;  %v18315_v8 = vld [vmem:[%s19296_s25 + $0x34c] ss:$16 sps:$4 sm:$0xff]  }
 0x757   : > { %14636 = vmatpush1.bf16.msra.mxu0 %v18238_v48  ;;  %v18310_v48 = vld [vmem:[%s19296_s25 + $0x148] ss:$16 sps:$4 sm:$0xff]  }
 0x758   : > { %14637 = vmatprep.subr.bf16.mxu0 %v18246_v55  ;;  %v18318_v55 = vld [vmem:[%s19296_s25 + $0x12c] ss:$16 sps:$4 sm:$0xff]  }
 0x759   : > { %14679 = vmatpush1.bf16.msra.mxu1 %v18241_v50  ;;  %v18313_v50 = vld [vmem:[%s19296_s25 + $0x348] ss:$16 sps:$4 sm:$0xff]  }
 0x75a   : > { %14680 = vmatprep.subr.bf16.mxu1 %v18249_v34  ;;  %v18321_v34 = vld [vmem:[%s19296_s25 + $0x32c] ss:$16 sps:$4 sm:$0xff]  }
 0x75b   : > { %14638 = vmatpush1.bf16.msra.mxu0 %v18244_v15  ;;  %v18316_v15 = vld [vmem:[%s19296_s25 + $0x128] ss:$16 sps:$4 sm:$0xff]  }
 0x75c   : > { %14639 = vmatprep.subr.bf16.mxu0 %v18252_v54  ;;  %v18324_v54 = vld [vmem:[%s19296_s25 + $0x10c] ss:$16 sps:$4 sm:$0xff]  }
 0x75d   : > { %14681 = vmatpush1.bf16.msra.mxu1 %v18247_v13  ;;  %v18319_v13 = vld [vmem:[%s19296_s25 + $0x328] ss:$16 sps:$4 sm:$0xff]  }
 0x75e   : > { %14682 = vmatprep.subr.bf16.mxu1 %v18255_v44  ;;  %v18327_v44 = vld [vmem:[%s19296_s25 + $0x30c] ss:$16 sps:$4 sm:$0xff]  }
 0x75f   : > { %14640 = vmatpush1.bf16.msra.mxu0 %v18250_v41  ;;  %v18322_v41 = vld [vmem:[%s19296_s25 + $0x108] ss:$16 sps:$4 sm:$0xff]  }
 0x760   : > { %14641 = vmatprep.subr.bf16.mxu0 %v18258_v42  ;;  %v18330_v42 = vld [vmem:[%s19296_s25 + $0x4ec] ss:$16 sps:$4 sm:$0xff]  }
 0x761   : > { %14683 = vmatpush1.bf16.msra.mxu1 %v18253_v33  ;;  %v18325_v33 = vld [vmem:[%s19296_s25 + $0x308] ss:$16 sps:$4 sm:$0xff]  }
 0x762   : > { %14684 = vmatprep.subr.bf16.mxu1 %v18261_v37  ;;  %v18333_v37 = vld [vmem:[%s19296_s25 + $0x6ec] ss:$16 sps:$4 sm:$0xff]  }
 0x763   : > { %14642 = vmatpush1.bf16.msra.mxu0 %v18256_v49  ;;  %v18328_v49 = vld [vmem:[%s19296_s25 + $0x4e8] ss:$16 sps:$4 sm:$0xff]  }
 0x764   : > { %14643 = vmatprep.subr.bf16.mxu0 %v18264_v6  ;;  %v18336_v6 = vld [vmem:[%s19296_s25 + $0x4cc] ss:$16 sps:$4 sm:$0xff]  }
 0x765   : > { %14685 = vmatpush1.bf16.msra.mxu1 %v18259_v46  ;;  %v18331_v46 = vld [vmem:[%s19296_s25 + $0x6e8] ss:$16 sps:$4 sm:$0xff]  }
 0x766   : > { %14686 = vmatprep.subr.bf16.mxu1 %v18267_v16  ;;  %v18339_v16 = vld [vmem:[%s19296_s25 + $0x6cc] ss:$16 sps:$4 sm:$0xff]  }
 0x767   : > { %14644 = vmatpush1.bf16.msra.mxu0 %v18262_v20  ;;  %v18334_v20 = vld [vmem:[%s19296_s25 + $0x4c8] ss:$16 sps:$4 sm:$0xff]  }
 0x768   : > { %14645 = vmatprep.subr.bf16.mxu0 %v18270_v5  ;;  %v18342_v5 = vld [vmem:[%s19296_s25 + $0x4ac] ss:$16 sps:$4 sm:$0xff]  }
 0x769   : > { %14687 = vmatpush1.bf16.msra.mxu1 %v18265_v60  ;;  %v18337_v60 = vld [vmem:[%s19296_s25 + $0x6c8] ss:$16 sps:$4 sm:$0xff]  }
 0x76a   : > { %14688 = vmatprep.subr.bf16.mxu1 %v18273_v43  ;;  %v18343_v43 = vld [vmem:[%s19296_s25 + $0x6a8] ss:$16 sps:$4 sm:$0xff]  }
 0x76b   : > { %14646 = vmatpush1.bf16.msra.mxu0 %v18268_v32  ;;  %v18351_v32 = vld [vmem:[%s19296_s25 + $0x68c] ss:$16 sps:$4 sm:$0xff]  }
 0x76c   : > { %14647 = vmatprep.subr.bf16.mxu0 %v18276_v53  ;;  %v18354_v53 = vld [vmem:[%s19296_s25 + $0x46c] ss:$16 sps:$4 sm:$0xff]  }
 0x76d   : > { %14689 = vmatpush1.bf16.msra.mxu1 %v18271_v45  ;;  %v18349_v45 = vld [vmem:[%s19296_s25 + $0x688] ss:$16 sps:$4 sm:$0xff]  }
 0x76e   : > { %14690 = vmatprep.subr.bf16.mxu1 %v18279_v11  ;;  %v18357_v11 = vld [vmem:[%s19296_s25 + $0x66c] ss:$16 sps:$4 sm:$0xff]  }
 0x76f   : > { %14648 = vmatpush1.bf16.msra.mxu0 %v18274_v18  ;;  %v18352_v18 = vld [vmem:[%s19296_s25 + $0x468] ss:$16 sps:$4 sm:$0xff]  }
 0x770   : > { %14649 = vmatprep.subr.bf16.mxu0 %v18282_v14  ;;  %v18360_v14 = vld [vmem:[%s19296_s25 + $0x44c] ss:$16 sps:$4 sm:$0xff]  }
 0x771   : > { %14691 = vmatpush1.bf16.msra.mxu1 %v18277_v40  ;;  %v18355_v40 = vld [vmem:[%s19296_s25 + $0x668] ss:$16 sps:$4 sm:$0xff]  }
 0x772   : > { %14692 = vmatprep.subr.bf16.mxu1 %v18285_v52  ;;  %v18363_v52 = vld [vmem:[%s19296_s25 + $0x64c] ss:$16 sps:$4 sm:$0xff]  }
 0x773   : > { %14650 = vmatpush2.bf16.msra.mxu0 %v18280_v31  ;;  %v18358_v31 = vld [vmem:[%s19296_s25 + $0x448] ss:$16 sps:$4 sm:$0xff]  }
 0x774   : > { %14651 = vmatprep.subr.bf16.mxu0 %v18288_v24  ;;  %v18366_v24 = vld [vmem:[%s19296_s25 + $0x42c] ss:$16 sps:$4 sm:$0xff]  }
 0x775   : > { %14693 = vmatpush2.bf16.msra.mxu1 %v18283_v12  ;;  %v18361_v12 = vld [vmem:[%s19296_s25 + $0x648] ss:$16 sps:$4 sm:$0xff]  }
 0x776   : > { %14694 = vmatprep.subr.bf16.mxu1 %v18291_v2  ;;  %v18369_v2 = vld [vmem:[%s19296_s25 + $0x62c] ss:$16 sps:$4 sm:$0xff]  }
 0x777   : > { %14652 = vmatpush2.bf16.msra.mxu0 %v18286_v1  ;;  %v18364_v1 = vld [vmem:[%s19296_s25 + $0x428] ss:$16 sps:$4 sm:$0xff]  }
 0x778   : > { %14653 = vmatprep.subr.bf16.mxu0 %v18294_v28  ;;  %v18372_v28 = vld [vmem:[%s19296_s25 + $0x40c] ss:$16 sps:$4 sm:$0xff]  }
 0x779   : > { %14695 = vmatpush2.bf16.msra.mxu1 %v18289_v0  ;;  %v18367_v0 = vld [vmem:[%s19296_s25 + $0x628] ss:$16 sps:$4 sm:$0xff]  }
 0x77a   : > { %14696 = vmatprep.subr.bf16.mxu1 %v18297_v17  ;;  %v18375_v17 = vld [vmem:[%s19296_s25 + $0x60c] ss:$16 sps:$4 sm:$0xff]  }
 0x77b   : > { %14654 = vmatpush2.bf16.msra.mxu0 %v18292_v58  ;;  %v18370_v58 = vld [vmem:[%s19296_s25 + $0x408] ss:$16 sps:$4 sm:$0xff]  }
 0x77c   : > { %14655 = vmatprep.subr.bf16.mxu0 %v18300_v9  ;;  %v18378_v9 = vld [vmem:[%s19296_s25 + $0x5ec] ss:$16 sps:$4 sm:$0xff]  }
 0x77d   : > { %14697 = vmatpush2.bf16.msra.mxu1 %v18295_v62  ;;  %v18373_v62 = vld [vmem:[%s19296_s25 + $0x608] ss:$16 sps:$4 sm:$0xff]  }
 0x77e   : > { %14698 = vmatprep.subr.bf16.mxu1 %v18303_v63  ;;  %v18381_v63 = vld [vmem:[%s19296_s25 + $0x7ec] ss:$16 sps:$4 sm:$0xff]  }
 0x77f   : > { %14656 = vmatpush2.bf16.msra.mxu0 %v18298_v25  ;;  %v18376_v25 = vld [vmem:[%s19296_s25 + $0x5e8] ss:$16 sps:$4 sm:$0xff]  }
 0x780   : > { %14657 = vmatprep.subr.bf16.mxu0 %v18306_v7  ;;  %v18384_v7 = vld [vmem:[%s19296_s25 + $0x5cc] ss:$16 sps:$4 sm:$0xff]  }
 0x781   : > { %14699 = vmatpush2.bf16.msra.mxu1 %v18301_v3  ;;  %v18379_v3 = vld [vmem:[%s19296_s25 + $0x7e8] ss:$16 sps:$4 sm:$0xff]  }
 0x782   : > { %14700 = vmatprep.subr.bf16.mxu1 %v18309_v22  ;;  %v18387_v22 = vld [vmem:[%s19296_s25 + $0x7cc] ss:$16 sps:$4 sm:$0xff]  }
 0x783   : > { %14658 = vmatpush2.bf16.msra.mxu0 %v18304_v47  ;;  %v18382_v47 = vld [vmem:[%s19296_s25 + $0x5c8] ss:$16 sps:$4 sm:$0xff]  }
 0x784   : > { %14659 = vmatprep.subr.bf16.mxu0 %v18312_v30  ;;  %v18390_v30 = vld [vmem:[%s19296_s25 + $0x5ac] ss:$16 sps:$4 sm:$0xff]  }
 0x785   : > { %14701 = vmatpush2.bf16.msra.mxu1 %v18307_v21  ;;  %v18385_v21 = vld [vmem:[%s19296_s25 + $0x7c8] ss:$16 sps:$4 sm:$0xff]  }
 0x786   : > { %14702 = vmatprep.subr.bf16.mxu1 %v18315_v8  ;;  %v18393_v8 = vld [vmem:[%s19296_s25 + $0x7ac] ss:$16 sps:$4 sm:$0xff]  }
 0x787   : > { %14660 = vmatpush2.bf16.msra.mxu0 %v18310_v48  ;;  %v18388_v48 = vld [vmem:[%s19296_s25 + $0x5a8] ss:$16 sps:$4 sm:$0xff]  }
 0x788   : > { %14661 = vmatprep.subr.bf16.mxu0 %v18318_v55  ;;  %v18396_v55 = vld [vmem:[%s19296_s25 + $0x58c] ss:$16 sps:$4 sm:$0xff]  }
 0x789   : > { %14703 = vmatpush2.bf16.msra.mxu1 %v18313_v50  ;;  %v18391_v50 = vld [vmem:[%s19296_s25 + $0x7a8] ss:$16 sps:$4 sm:$0xff]  }
 0x78a   : > { %14704 = vmatprep.subr.bf16.mxu1 %v18321_v34  ;;  %v18399_v34 = vld [vmem:[%s19296_s25 + $0x78c] ss:$16 sps:$4 sm:$0xff]  }
 0x78b   : > { %14662 = vmatpush2.bf16.msra.mxu0 %v18316_v15  ;;  %v18394_v15 = vld [vmem:[%s19296_s25 + $0x588] ss:$16 sps:$4 sm:$0xff]  }
 0x78c   : > { %14663 = vmatprep.subr.bf16.mxu0 %v18324_v54  ;;  %v18402_v54 = vld [vmem:[%s19296_s25 + $0x56c] ss:$16 sps:$4 sm:$0xff]  }
 0x78d   : > { %14705 = vmatpush2.bf16.msra.mxu1 %v18319_v13  ;;  %v18397_v13 = vld [vmem:[%s19296_s25 + $0x788] ss:$16 sps:$4 sm:$0xff]  }
 0x78e   : > { %14706 = vmatprep.subr.bf16.mxu1 %v18327_v44  ;;  %v18405_v44 = vld [vmem:[%s19296_s25 + $0x76c] ss:$16 sps:$4 sm:$0xff]  }
 0x78f   : > { %14664 = vmatpush2.bf16.msra.mxu0 %v18322_v41  ;;  %v18400_v41 = vld [vmem:[%s19296_s25 + $0x568] ss:$16 sps:$4 sm:$0xff]  }
 0x790   : > { %14719 = vmatprep.subr.bf16.mxu0 %v18330_v42  ;;  %v18408_v42 = vld [vmem:[%s19296_s25 + $0x54c] ss:$16 sps:$4 sm:$0xff]  }
 0x791   : > { %14707 = vmatpush2.bf16.msra.mxu1 %v18325_v33  ;;  %v18403_v33 = vld [vmem:[%s19296_s25 + $0x768] ss:$16 sps:$4 sm:$0xff]  }
 0x792   : > { %14762 = vmatprep.subr.bf16.mxu1 %v18333_v37  ;;  %14666 = vmatmul.mubr.bf16.vlgmr.msra.gmra.mxu0 %v22196_v61  ;;  %v18345_v61 = vld [vmem:[%s19296_s25 + $0x6ac] ss:$16 sps:$4 sm:$0xff]  }
 0x793   : > { %14720 = vmatpush1.bf16.msra.mxu0 %v18328_v49  ;;  %14751 = vmatprep.mubr.bf16.mxu0 %v21444_v10  ;;  %v18348_v10 = vld [vmem:[%s19296_s25 + $0x48c] ss:$16 sps:$4 sm:$0xff]   ;;  %v18406_v49 = vld [vmem:[%s19296_s25 + $0x548] ss:$16 sps:$4 sm:$0xff]  }
 0x794   : > { %14709 = vmatmul.mubr.bf16.vlgmr.msra.gmra.mxu1 %v22197_v38  ;;  %14721 = vmatprep.subr.bf16.mxu0 %v18336_v6  ;;  %v18340_v38 = vld [vmem:[%s19296_s25 + $0x4a8] ss:$16 sps:$4 sm:$0xff]   ;;  %v18411_v37 = vld [vmem:[%s19296_s25 + $0x74c] ss:$16 sps:$4 sm:$0xff]  }
 0x795   : > { %14763 = vmatpush1.bf16.msra.mxu1 %v18331_v46  ;;  %14794 = vmatprep.mubr.bf16.mxu1 %v21447_v4  ;;  %v18346_v4 = vld [vmem:[%s19296_s25 + $0x488] ss:$16 sps:$4 sm:$0xff]   ;;  %v18414_v6 = vld [vmem:[%s19296_s25 + $0x52c] ss:$16 sps:$4 sm:$0xff]  }
 0x796   : > { %14764 = vmatprep.subr.bf16.mxu1 %v18339_v16  ;;  %v18409_v46 = vld [vmem:[%s19296_s25 + $0x748] ss:$16 sps:$4 sm:$0xff]   ;;  %v18417_v16 = vld [vmem:[%s19296_s25 + $0x72c] ss:$16 sps:$4 sm:$0xff]  }
 0x797   : > { %14722 = vmatpush1.bf16.msra.mxu0 %v18334_v20  ;;  %v18412_v20 = vld [vmem:[%s19296_s25 + $0x528] ss:$16 sps:$4 sm:$0xff]  }
 0x798   : > { %14723 = vmatprep.subr.bf16.mxu0 %v18342_v5  ;;  %v18420_v5 = vld [vmem:[%s19296_s25 + $0x50c] ss:$16 sps:$4 sm:$0xff]  }
 0x799   : > { %14765 = vmatpush1.bf16.msra.mxu1 %v18337_v60  ;;  %v18415_v60 = vld [vmem:[%s19296_s25 + $0x728] ss:$16 sps:$4 sm:$0xff]  }
 0x79a   : > { %14766 = vmatprep.subr.bf16.mxu1 %v18345_v61  ;;  %v18423_v61 = vld [vmem:[%s19296_s25 + $0x70c] ss:$16 sps:$4 sm:$0xff]  }
 0x79b   : > { %14724 = vmatpush1.bf16.msra.mxu0 %v18340_v38  ;;  %v18418_v38 = vld [vmem:[%s19296_s25 + $0x508] ss:$16 sps:$4 sm:$0xff]  }
 0x79c   : > { %14725 = vmatprep.subr.bf16.mxu0 %v18348_v10  ;;  %v18426_v10 = vld [vmem:[%s19296_s25 + $0x8ec] ss:$16 sps:$4 sm:$0xff]  }
 0x79d   : > { %14767 = vmatpush1.bf16.msra.mxu1 %v18343_v43  ;;  %v18421_v43 = vld [vmem:[%s19296_s25 + $0x708] ss:$16 sps:$4 sm:$0xff]  }
 0x79e   : > { %14768 = vmatprep.subr.bf16.mxu1 %v18351_v32  ;;  %v18429_v32 = vld [vmem:[%s19296_s25 + $0xaec] ss:$16 sps:$4 sm:$0xff]  }
 0x79f   : > { %14726 = vmatpush1.bf16.msra.mxu0 %v18346_v4  ;;  %v18424_v4 = vld [vmem:[%s19296_s25 + $0x8e8] ss:$16 sps:$4 sm:$0xff]  }
 0x7a0   : > { %14727 = vmatprep.subr.bf16.mxu0 %v18354_v53  ;;  %v18432_v53 = vld [vmem:[%s19296_s25 + $0x8cc] ss:$16 sps:$4 sm:$0xff]  }
 0x7a1   : > { %14769 = vmatpush1.bf16.msra.mxu1 %v18349_v45  ;;  %v18427_v45 = vld [vmem:[%s19296_s25 + $0xae8] ss:$16 sps:$4 sm:$0xff]  }
 0x7a2   : > { %14770 = vmatprep.subr.bf16.mxu1 %v18357_v11  ;;  %v18435_v11 = vld [vmem:[%s19296_s25 + $0xacc] ss:$16 sps:$4 sm:$0xff]  }
 0x7a3   : > { %14728 = vmatpush1.bf16.msra.mxu0 %v18352_v18  ;;  %v18430_v18 = vld [vmem:[%s19296_s25 + $0x8c8] ss:$16 sps:$4 sm:$0xff]  }
 0x7a4   : > { %14729 = vmatprep.subr.bf16.mxu0 %v18360_v14  ;;  %v18438_v14 = vld [vmem:[%s19296_s25 + $0x8ac] ss:$16 sps:$4 sm:$0xff]  }
 0x7a5   : > { %14771 = vmatpush1.bf16.msra.mxu1 %v18355_v40  ;;  %v18433_v40 = vld [vmem:[%s19296_s25 + $0xac8] ss:$16 sps:$4 sm:$0xff]  }
 0x7a6   : > { %14772 = vmatprep.subr.bf16.mxu1 %v18363_v52  ;;  %v18439_v52 = vld [vmem:[%s19296_s25 + $0xaa8] ss:$16 sps:$4 sm:$0xff]  }
 0x7a7   : > { %14730 = vmatpush1.bf16.msra.mxu0 %v18358_v31  ;;  %v18447_v31 = vld [vmem:[%s19296_s25 + $0xa8c] ss:$16 sps:$4 sm:$0xff]  }
 0x7a8   : > { %14731 = vmatprep.subr.bf16.mxu0 %v18366_v24  ;;  %v18450_v24 = vld [vmem:[%s19296_s25 + $0x86c] ss:$16 sps:$4 sm:$0xff]  }
 0x7a9   : > { %14773 = vmatpush1.bf16.msra.mxu1 %v18361_v12  ;;  %v18445_v12 = vld [vmem:[%s19296_s25 + $0xa88] ss:$16 sps:$4 sm:$0xff]  }
 0x7aa   : > { %14774 = vmatprep.subr.bf16.mxu1 %v18369_v2  ;;  %v18453_v2 = vld [vmem:[%s19296_s25 + $0xa6c] ss:$16 sps:$4 sm:$0xff]  }
 0x7ab   : > { %14732 = vmatpush1.bf16.msra.mxu0 %v18364_v1  ;;  %v18448_v1 = vld [vmem:[%s19296_s25 + $0x868] ss:$16 sps:$4 sm:$0xff]  }
 0x7ac   : > { %14733 = vmatprep.subr.bf16.mxu0 %v18372_v28  ;;  %v18456_v28 = vld [vmem:[%s19296_s25 + $0x84c] ss:$16 sps:$4 sm:$0xff]  }
 0x7ad   : > { %14775 = vmatpush1.bf16.msra.mxu1 %v18367_v0  ;;  %v18451_v0 = vld [vmem:[%s19296_s25 + $0xa68] ss:$16 sps:$4 sm:$0xff]  }
 0x7ae   : > { %14776 = vmatprep.subr.bf16.mxu1 %v18375_v17  ;;  %v18459_v17 = vld [vmem:[%s19296_s25 + $0xa4c] ss:$16 sps:$4 sm:$0xff]  }
 0x7af   : > { %14734 = vmatpush1.bf16.msra.mxu0 %v18370_v58  ;;  %v18454_v58 = vld [vmem:[%s19296_s25 + $0x848] ss:$16 sps:$4 sm:$0xff]  }
 0x7b0   : > { %14735 = vmatprep.subr.bf16.mxu0 %v18378_v9  ;;  %v18462_v9 = vld [vmem:[%s19296_s25 + $0x82c] ss:$16 sps:$4 sm:$0xff]  }
 0x7b1   : > { %14777 = vmatpush1.bf16.msra.mxu1 %v18373_v62  ;;  %v18457_v62 = vld [vmem:[%s19296_s25 + $0xa48] ss:$16 sps:$4 sm:$0xff]  }
 0x7b2   : > { %14778 = vmatprep.subr.bf16.mxu1 %v18381_v63  ;;  %v18465_v63 = vld [vmem:[%s19296_s25 + $0xa2c] ss:$16 sps:$4 sm:$0xff]  }
 0x7b3   : > { %14736 = vmatpush2.bf16.msra.mxu0 %v18376_v25  ;;  %v18460_v25 = vld [vmem:[%s19296_s25 + $0x828] ss:$16 sps:$4 sm:$0xff]  }
 0x7b4   : > { %14737 = vmatprep.subr.bf16.mxu0 %v18384_v7  ;;  %v18463_v7 = vld [vmem:[%s19296_s25 + $0xa28] ss:$16 sps:$4 sm:$0xff]  }
 0x7b5   : > { %14779 = vmatpush2.bf16.msra.mxu1 %v18379_v3  ;;  %v21918_v3 = vpop.f32.mrf.mxu0 }
 0x7b6   : > { %14780 = vmatprep.subr.bf16.mxu1 %v18387_v22  ;;  %v18468_v22 = vld [vmem:[%s19296_s25 + $0x80c] ss:$16 sps:$4 sm:$0xff]  }
 0x7b7   : > { %14738 = vmatpush2.bf16.msra.mxu0 %v18382_v47  ;;  %v21922_v47 = vpop.f32.mrf.mxu1 }
 0x7b8   : > { %14739 = vmatprep.subr.bf16.mxu0 %v18390_v30  ;;  %v18466_v30 = vld [vmem:[%s19296_s25 + $0x808] ss:$16 sps:$4 sm:$0xff]  }
 0x7b9   : > { %14781 = vmatpush2.bf16.msra.mxu1 %v18385_v21  ;;  %v18471_v21 = vld [vmem:[%s19296_s25 + $0xa0c] ss:$16 sps:$4 sm:$0xff]  }
 0x7ba   : > { %14782 = vmatprep.subr.bf16.mxu1 %v18393_v8  ;;  %v21926_v8 = vpop.f32.mrf.mxu0 }
 0x7bb   : > { %14740 = vmatpush2.bf16.msra.mxu0 %v18388_v48  ;;  %v18469_v48 = vld [vmem:[%s19296_s25 + $0xa08] ss:$16 sps:$4 sm:$0xff]  }
 0x7bc   : > { %14741 = vmatprep.subr.bf16.mxu0 %v18396_v55  ;;  %v21930_v55 = vpop.f32.mrf.mxu1 }
 0x7bd   : > { %14783 = vmatpush2.bf16.msra.mxu1 %v18391_v50  ;;  %v18474_v50 = vld [vmem:[%s19296_s25 + $0x9ec] ss:$16 sps:$4 sm:$0xff]  }
 0x7be   : > { %14784 = vmatprep.subr.bf16.mxu1 %v18399_v34  ;;  %v18477_v34 = vld [vmem:[%s19296_s25 + $0xbec] ss:$16 sps:$4 sm:$0xff]  }
 0x7bf   : > { %14742 = vmatpush2.bf16.msra.mxu0 %v18394_v15  ;;  %v18472_v15 = vld [vmem:[%s19296_s25 + $0x9e8] ss:$16 sps:$4 sm:$0xff]  }
 0x7c0   : > { %14743 = vmatprep.subr.bf16.mxu0 %v18402_v54  ;;  %v18475_v54 = vld [vmem:[%s19296_s25 + $0xbe8] ss:$16 sps:$4 sm:$0xff]  }
 0x7c1   : > { %14785 = vmatpush2.bf16.msra.mxu1 %v18397_v13  ;;  %v21934_v13 = vpop.f32.mrf.mxu0 }
 0x7c2   : > { %14786 = vmatprep.subr.bf16.mxu1 %v18405_v44  ;;  %v18480_v44 = vld [vmem:[%s19296_s25 + $0x9cc] ss:$16 sps:$4 sm:$0xff]  }
 0x7c3   : > { %14744 = vmatpush2.bf16.msra.mxu0 %v18400_v41  ;;  %v21938_v41 = vpop.f32.mrf.mxu1 }
 0x7c4   : > { %14745 = vmatprep.subr.bf16.mxu0 %v18408_v42  ;;  %v18478_v42 = vld [vmem:[%s19296_s25 + $0x9c8] ss:$16 sps:$4 sm:$0xff]  }
 0x7c5   : > { %14787 = vmatpush2.bf16.msra.mxu1 %v18403_v33  ;;  %v18483_v33 = vld [vmem:[%s19296_s25 + $0xbcc] ss:$16 sps:$4 sm:$0xff]  }
 0x7c6   : > { %14788 = vmatprep.subr.bf16.mxu1 %v18411_v37  ;;  %v21942_v37 = vpop.f32.mrf.mxu0 }
 0x7c7   : > { %14746 = vmatpush2.bf16.msra.mxu0 %v18406_v49  ;;  %v18481_v49 = vld [vmem:[%s19296_s25 + $0xbc8] ss:$16 sps:$4 sm:$0xff]  }
 0x7c8   : > { %14747 = vmatprep.subr.bf16.mxu0 %v18414_v6  ;;  %v14372_v6 = vpop.f32.mrf.mxu1 }
 0x7c9   : > { %14789 = vmatpush2.bf16.msra.mxu1 %v18409_v46  ;;  %v18486_v46 = vld [vmem:[%s19296_s25 + $0x9ac] ss:$16 sps:$4 sm:$0xff]  }
 0x7ca   : > { %14790 = vmatprep.subr.bf16.mxu1 %v18417_v16  ;;  %v18489_v16 = vld [vmem:[%s19296_s25 + $0xbac] ss:$16 sps:$4 sm:$0xff]  }
 0x7cb   : > { %14748 = vmatpush2.bf16.msra.mxu0 %v18412_v20  ;;  %v14409_v20 = vpop.f32.mrf.mxu0 }
 0x7cc   : > { %14749 = vmatprep.subr.bf16.mxu0 %v18420_v5  ;;  %v18484_v5 = vld [vmem:[%s19296_s25 + $0x9a8] ss:$16 sps:$4 sm:$0xff]  }
 0x7cd   : > { %14791 = vmatpush2.bf16.msra.mxu1 %v18415_v60  ;;  %v14452_v60 = vpop.f32.mrf.mxu1 }
 0x7ce   : > { %14792 = vmatprep.subr.bf16.mxu1 %v18423_v61  ;;  %v18487_v61 = vld [vmem:[%s19296_s25 + $0xba8] ss:$16 sps:$4 sm:$0xff]  }
 0x7cf   : > { %14750 = vmatpush2.bf16.msra.mxu0 %v18418_v38  ;;  %v18492_v38 = vld [vmem:[%s19296_s25 + $0x98c] ss:$16 sps:$4 sm:$0xff]  }
 0x7d0   : > { %14805 = vmatprep.subr.bf16.mxu0 %v18426_v10  ;;  %v14411_v10 = vpop.f32.mrf.mxu0 }
 0x7d1   : > { %14793 = vmatpush2.bf16.msra.mxu1 %v18421_v43  ;;  %v18495_v43 = vld [vmem:[%s19296_s25 + $0xb8c] ss:$16 sps:$4 sm:$0xff]  }
 0x7d2   : > { %14848 = vmatprep.subr.bf16.mxu1 %v18429_v32  ;;  %14752 = vmatmul.mubr.bf16.vlgmr.msra.gmra.mxu0 %v22222_v26  ;;  %v18441_v26 = vld [vmem:[%s19296_s25 + $0xaac] ss:$16 sps:$4 sm:$0xff]   ;;  %v14454_v32 = vpop.f32.mrf.mxu1 }
 0x7d3   : > { %14806 = vmatpush1.bf16.msra.mxu0 %v18424_v4  ;;  %14837 = vmatprep.mubr.bf16.mxu0 %v21547_v27  ;;  %v18444_v27 = vld [vmem:[%s19296_s25 + $0x88c] ss:$16 sps:$4 sm:$0xff]   ;;  %v18490_v4 = vld [vmem:[%s19296_s25 + $0x988] ss:$16 sps:$4 sm:$0xff]  }
 0x7d4   : > { %14795 = vmatmul.mubr.bf16.vlgmr.msra.gmra.mxu1 %v22223_v35  ;;  %14807 = vmatprep.subr.bf16.mxu0 %v18432_v53  ;;  %v18436_v35 = vld [vmem:[%s19296_s25 + $0x8a8] ss:$16 sps:$4 sm:$0xff]   ;;  %v18498_v53 = vld [vmem:[%s19296_s25 + $0x96c] ss:$16 sps:$4 sm:$0xff]  }
 0x7d5   : > { %14849 = vmatpush1.bf16.msra.mxu1 %v18427_v45  ;;  %14880 = vmatprep.mubr.bf16.mxu1 %v21550_v39  ;;  %v18442_v39 = vld [vmem:[%s19296_s25 + $0x888] ss:$16 sps:$4 sm:$0xff]  }
 0x7d6   : > { %14850 = vmatprep.subr.bf16.mxu1 %v18435_v11  ;;  %v18493_v45 = vld [vmem:[%s19296_s25 + $0xb88] ss:$16 sps:$4 sm:$0xff]   ;;  %v18501_v11 = vld [vmem:[%s19296_s25 + $0xb6c] ss:$16 sps:$4 sm:$0xff]  }
 0x7d7   : > { %14808 = vmatpush1.bf16.msra.mxu0 %v18430_v18  ;;  %v14413_v18 = vpop.f32.mrf.mxu0 }
 0x7d8   : > { %14809 = vmatprep.subr.bf16.mxu0 %v18438_v14  ;;  %v18496_v14 = vld [vmem:[%s19296_s25 + $0x968] ss:$16 sps:$4 sm:$0xff]  }
 0x7d9   : > { %14851 = vmatpush1.bf16.msra.mxu1 %v18433_v40  ;;  %v14456_v40 = vpop.f32.mrf.mxu1 }
 0x7da   : > { %14852 = vmatprep.subr.bf16.mxu1 %v18441_v26  ;;  %v18499_v26 = vld [vmem:[%s19296_s25 + $0xb68] ss:$16 sps:$4 sm:$0xff]  }
 0x7db   : > { %14810 = vmatpush1.bf16.msra.mxu0 %v18436_v35  ;;  %v18504_v35 = vld [vmem:[%s19296_s25 + $0x94c] ss:$16 sps:$4 sm:$0xff]  }
 0x7dc   : > { %14811 = vmatprep.subr.bf16.mxu0 %v18444_v27  ;;  %v14415_v27 = vpop.f32.mrf.mxu0 }
 0x7dd   : > { %14853 = vmatpush1.bf16.msra.mxu1 %v18439_v52  ;;  %v18507_v52 = vld [vmem:[%s19296_s25 + $0xb4c] ss:$16 sps:$4 sm:$0xff]  }
 0x7de   : > { %14854 = vmatprep.subr.bf16.mxu1 %v18447_v31  ;;  %v14458_v31 = vpop.f32.mrf.mxu1 }
 0x7df   : > { %14812 = vmatpush1.bf16.msra.mxu0 %v18442_v39  ;;  %v18502_v39 = vld [vmem:[%s19296_s25 + $0x948] ss:$16 sps:$4 sm:$0xff]  }
 0x7e0   : > { %14813 = vmatprep.subr.bf16.mxu0 %v18450_v24  ;;  %v18505_v24 = vld [vmem:[%s19296_s25 + $0xb48] ss:$16 sps:$4 sm:$0xff]  }
 0x7e1   : > { %14855 = vmatpush1.bf16.msra.mxu1 %v18445_v12  ;;  %v14495_v12 = vpop.f32.mrf.mxu0 }
 0x7e2   : > { %14856 = vmatprep.subr.bf16.mxu1 %v18453_v2  ;;  %v18510_v2 = vld [vmem:[%s19296_s25 + $0x92c] ss:$16 sps:$4 sm:$0xff]  }
 0x7e3   : > { %14814 = vmatpush1.bf16.msra.mxu0 %v18448_v1  ;;  %v14367_v1 = vadd.f32 %v21922_v47, %v21918_v3  ;;  %v14371_v3 = vadd.f32 %v21938_v41, %v21934_v13  ;;  %v18519_v47 = vld [vmem:[%s19296_s25 + $0xb0c] ss:$16 sps:$4 sm:$0xff]  }
 0x7e4   : > { %14815 = vmatprep.subr.bf16.mxu0 %v18456_v28  ;;  %v18513_v28 = vld [vmem:[%s19296_s25 + $0xb2c] ss:$16 sps:$4 sm:$0xff]  }
 0x7e5   : > { %14857 = vmatpush1.bf16.msra.mxu1 %v18451_v0  ;;  %v14538_v0 = vpop.f32.mrf.mxu1  ;;  %v18525_v41 = vld [vmem:[%s19296_s25 + $0xeec] ss:$16 sps:$4 sm:$0xff]  }
 0x7e6   : > { %14858 = vmatprep.subr.bf16.mxu1 %v18459_v17  ;;  %v14369_v17 = vadd.f32 %v21930_v55, %v21926_v8  ;;  %v14414_v8 = vadd.f32 %v14413_v18, %v14371_v3  ;;  %v18517_v55 = vld [vmem:[%s19296_s25 + $0xb08] ss:$16 sps:$4 sm:$0xff]  }
 0x7e7   : > { %14816 = vmatpush1.bf16.msra.mxu0 %v18454_v58  ;;  %v14410_v58 = vadd.f32 %v14409_v20, %v14367_v1  ;;  %v18529_v18 = vld [vmem:[%s19296_s25 + $0xec8] ss:$16 sps:$4 sm:$0xff]  }
 0x7e8   : > { %14817 = vmatprep.subr.bf16.mxu0 %v18462_v9  ;;  %v14497_v9 = vpop.f32.mrf.mxu0  ;;  %v11197_v1 = vld [vmem:[#allocation2 + $0x8] sm:$0xff] }
 0x7e9   : > { %14859 = vmatpush1.bf16.msra.mxu1 %v18457_v62  ;;  %v18508_v62 = vld [vmem:[%s19296_s25 + $0x928] ss:$16 sps:$4 sm:$0xff]  }
 0x7ea   : > { %14860 = vmatprep.subr.bf16.mxu1 %v18465_v63  ;;  %v18511_v63 = vld [vmem:[%s19296_s25 + $0xb28] ss:$16 sps:$4 sm:$0xff]  }
 0x7eb   : > { %14818 = vmatpush1.bf16.msra.mxu0 %v18460_v25  ;;  %v18516_v25 = vld [vmem:[%s19296_s25 + $0x90c] ss:$16 sps:$4 sm:$0xff]  }
 0x7ec   : > { %14819 = vmatprep.subr.bf16.mxu0 %v18468_v22  ;;  %v14540_v22 = vpop.f32.mrf.mxu1 }
 0x7ed   : > { %14861 = vmatpush1.bf16.msra.mxu1 %v18463_v7  ;;  %v14412_v7 = vadd.f32 %v14411_v10, %v14369_v17 }
 0x7ee   : > { %14862 = vmatprep.subr.bf16.mxu1 %v18471_v21  ;;  %v14373_v21 = vadd.f32 %v14372_v6, %v21942_v37  ;;  %v18520_v37 = vld [vmem:[%s19296_s25 + $0xce8] ss:$16 sps:$4 sm:$0xff]  }
 0x7ef   : > { %14820 = vmatpush1.bf16.msra.mxu0 %v18466_v30  ;;  %v14453_v30 = vadd.f32 %v14452_v60, %v14410_v58 }
 0x7f0   : > { %14821 = vmatprep.subr.bf16.mxu0 %v18474_v50  ;;  %v14499_v50 = vpop.f32.mrf.mxu0  ;;  %v14416_v13 = vadd.f32 %v14415_v27, %v14373_v21  ;;  %v18546_v21 = vld [vmem:[%s19296_s25 + $0xc6c] ss:$16 sps:$4 sm:$0xff]  }
 0x7f1   : > { %14863 = vmatpush1.bf16.msra.mxu1 %v18469_v48  ;;  %v18514_v48 = vld [vmem:[%s19296_s25 + $0x908] ss:$16 sps:$4 sm:$0xff]  }
 0x7f2   : > { %14864 = vmatprep.subr.bf16.mxu1 %v18477_v34  ;;  %v18522_v34 = vld [vmem:[%s19296_s25 + $0xcec] ss:$16 sps:$4 sm:$0xff]   ;;  %v14459_v6 = vadd.f32 %v14458_v31, %v14416_v13  ;;  %v18553_v13 = vld [vmem:[%s19296_s25 + $0xe48] ss:$16 sps:$4 sm:$0xff]  }
 0x7f3   : > { %14822 = vmatpush2.bf16.msra.mxu0 %v18472_v15  ;;  %v14455_v15 = vadd.f32 %v14454_v32, %v14412_v7 }
 0x7f4   : > { %14823 = vmatprep.subr.bf16.mxu0 %v18480_v44  ;;  %v14542_v44 = vpop.f32.mrf.mxu1 }
 0x7f5   : > { %14865 = vmatpush2.bf16.msra.mxu1 %v18475_v54  ;;  %v14496_v54 = vadd.f32 %v14495_v12, %v14453_v30 }
 0x7f6   : > { %14866 = vmatprep.subr.bf16.mxu1 %v18483_v33  ;;  %v14457_v33 = vadd.f32 %v14456_v40, %v14414_v8  ;;  %v14544_v60 = vpop.f32.mrf.mxu1  ;;  %v18534_v40 = vld [vmem:[%s19296_s25 + $0xcac] ss:$16 sps:$4 sm:$0xff]  }
 0x7f7   : > { %14824 = vmatpush2.bf16.msra.mxu0 %v18478_v42  ;;  %v14498_v42 = vadd.f32 %v14497_v9, %v14455_v15  ;;  %v18543_v9 = vld [vmem:[%s19296_s25 + $0xe8c] ss:$16 sps:$4 sm:$0xff]   ;;  %v18550_v15 = vld [vmem:[%s19296_s25 + $0xc48] ss:$16 sps:$4 sm:$0xff]  }
 0x7f8   : > { %14825 = vmatprep.subr.bf16.mxu0 %v18486_v46  ;;  %v18523_v46 = vld [vmem:[%s19296_s25 + $0xee8] ss:$16 sps:$4 sm:$0xff]   ;;  %v14500_v20 = vadd.f32 %v14499_v50, %v14457_v33  ;;  %v18549_v8 = vld [vmem:[%s19296_s25 + $0xe6c] ss:$16 sps:$4 sm:$0xff]  }
 0x7f9   : > { %14867 = vmatpush2.bf16.msra.mxu1 %v18481_v49  ;;  %v14501_v49 = vpop.f32.mrf.mxu0  ;;  %v18547_v50 = vld [vmem:[%s19296_s25 + $0xe68] ss:$16 sps:$4 sm:$0xff]  }
 0x7fa   : > { %14868 = vmatprep.subr.bf16.mxu1 %v18489_v16  ;;  %v14539_v16 = vadd.f32 %v14538_v0, %v14496_v54  ;;  %v14502_v10 = vadd.f32 %v14501_v49, %v14459_v6  ;;  %v18535_v0 = vld [vmem:[%s19296_s25 + $0xea8] ss:$16 sps:$4 sm:$0xff]   ;;  %v18558_v54 = vld [vmem:[%s19296_s25 + $0xc2c] ss:$16 sps:$4 sm:$0xff]  }
 0x7fb   : > { %14826 = vmatpush2.bf16.msra.mxu0 %v18484_v5  ;;  %v18528_v5 = vld [vmem:[%s19296_s25 + $0xccc] ss:$16 sps:$4 sm:$0xff]   ;;  %v18559_v33 = vld [vmem:[%s19296_s25 + $0xe28] ss:$16 sps:$4 sm:$0xff]  }
 0x7fc   : > { %14827 = vmatprep.subr.bf16.mxu0 %v18492_v38  ;;  %v18531_v38 = vld [vmem:[%s19296_s25 + $0xecc] ss:$16 sps:$4 sm:$0xff]   ;;  %v14545_v31 = vadd.f32 %v14544_v60, %v14502_v10  ;;  %v18562_v49 = vld [vmem:[%s19296_s25 + $0xc08] ss:$16 sps:$4 sm:$0xff]  }
 0x7fd   : > { %14869 = vmatpush2.bf16.msra.mxu1 %v18487_v61  ;;  %v18570_v6 = vld [vmem:[%s19296_s25 + $0xdec] ss:$16 sps:$4 sm:$0xff]   ;;  %v18571_v60 = vld [vmem:[%s19296_s25 + $0xfe8] ss:$16 sps:$4 sm:$0xff]  }
 0x7fe   : > { %14870 = vmatprep.subr.bf16.mxu1 %v18495_v43  ;;  %v14541_v43 = vadd.f32 %v14540_v22, %v14498_v42  ;;  %v18538_v22 = vld [vmem:[%s19296_s25 + $0xc88] ss:$16 sps:$4 sm:$0xff]   ;;  %v18564_v42 = vld [vmem:[%s19296_s25 + $0xc0c] ss:$16 sps:$4 sm:$0xff]  }
 0x7ff   : > { %14828 = vmatpush2.bf16.msra.mxu0 %v18490_v4  ;;  %v18582_v10 = vld [vmem:[%s19296_s25 + $0xdac] ss:$16 sps:$4 sm:$0xff]  }
 0x800   : > { %14829 = vmatprep.subr.bf16.mxu0 %v18498_v53  ;;  %v11193_v53 = vld [vmem:[#allocation2 + $0x30] sm:$0xff] }
 0x801   : > { %14871 = vmatpush2.bf16.msra.mxu1 %v18493_v45  ;;  %v18526_v45 = vld [vmem:[%s19296_s25 + $0xcc8] ss:$16 sps:$4 sm:$0xff]  }
 0x802   : > { %14872 = vmatprep.subr.bf16.mxu1 %v18501_v11 }
 0x803   : > { %14830 = vmatpush2.bf16.msra.mxu0 %v18496_v14  ;;  %v14543_v14 = vadd.f32 %v14542_v44, %v14500_v20  ;;  %v18561_v44 = vld [vmem:[%s19296_s25 + $0xe2c] ss:$16 sps:$4 sm:$0xff]   ;;  %v18568_v20 = vld [vmem:[%s19296_s25 + $0xde8] ss:$16 sps:$4 sm:$0xff]  }
 0x804   : > { %14831 = vmatprep.subr.bf16.mxu0 %v18504_v35 }
 0x805   : > { %14873 = vmatpush2.bf16.msra.mxu1 %v18499_v26 }
 0x806   : > { %14874 = vmatprep.subr.bf16.mxu1 %v18507_v52  ;;  %v18537_v52 = vld [vmem:[%s19296_s25 + $0xeac] ss:$16 sps:$4 sm:$0xff]  }
 0x807   : > { %14832 = vmatpush2.bf16.msra.mxu0 %v18502_v39 }
 0x808   : > { %14833 = vmatprep.subr.bf16.mxu0 %v18510_v2  ;;  %v18532_v2 = vld [vmem:[%s19296_s25 + $0xca8] ss:$16 sps:$4 sm:$0xff]  }
 0x809   : > { %14875 = vmatpush2.bf16.msra.mxu1 %v18505_v24 }
 0x80a   : > { %14876 = vmatprep.subr.bf16.mxu1 %v18513_v28  ;;  %v18540_v28 = vld [vmem:[%s19296_s25 + $0xc8c] ss:$16 sps:$4 sm:$0xff]  }
 0x80b   : > { %14834 = vmatpush2.bf16.msra.mxu0 %v18508_v62 }
 0x80c   : > { %14835 = vmatprep.subr.bf16.mxu0 %v18516_v25 }
 0x80d   : > { %14877 = vmatpush2.bf16.msra.mxu1 %v18511_v63  ;;  %v11198_v63 = vld [vmem:[#allocation2 + $0x20] sm:$0xff] }
 0x80e   : > { %14878 = vmatprep.subr.bf16.mxu1 %v18519_v47  ;;  %v18541_v47 = vld [vmem:[%s19296_s25 + $0xe88] ss:$16 sps:$4 sm:$0xff]  }
 0x80f   : > { %14836 = vmatpush2.bf16.msra.mxu0 %v18514_v48  ;;  %v18544_v48 = vld [vmem:[%s19296_s25 + $0xc68] ss:$16 sps:$4 sm:$0xff]  }
 0x810   : > { %14891 = vmatprep.subr.bf16.mxu0 %v18522_v34  ;;  %v18555_v34 = vld [vmem:[%s19296_s25 + $0xe4c] ss:$16 sps:$4 sm:$0xff]  }
 0x811   : > { %14879 = vmatpush2.bf16.msra.mxu1 %v18517_v55  ;;  %v18552_v55 = vld [vmem:[%s19296_s25 + $0xc4c] ss:$16 sps:$4 sm:$0xff]  }
 0x812   : > { %14934 = vmatprep.subr.bf16.mxu1 %v18525_v41  ;;  %v14581_v61 = vpop.f32.mrf.mxu0  ;;  %14838 = vmatmul.mubr.bf16.vlgmr.msra.gmra.mxu0 %v22230_v23  ;;  %v18556_v41 = vld [vmem:[%s19296_s25 + $0xc28] ss:$16 sps:$4 sm:$0xff]  }
 0x813   : > { %v14582_v32 = vadd.f32 %v14581_v61, %v14539_v16  ;;  %14892 = vmatpush1.bf16.msra.mxu0 %v18520_v37  ;;  %14923 = vmatprep.mubr.bf16.mxu0 %v21663_v36  ;;  %v18567_v37 = vld [vmem:[%s19296_s25 + $0xe0c] ss:$16 sps:$4 sm:$0xff]  }
 0x814   : > { %v14624_v4 = vpop.f32.mrf.mxu1  ;;  %14881 = vmatmul.mubr.bf16.vlgmr.msra.gmra.mxu1 %v22231_v56  ;;  %v14583_v11 = vpop.f32.mrf.mxu0  ;;  %14893 = vmatprep.subr.bf16.mxu0 %v18528_v5  ;;  %v11194_v56 = vld [vmem:[#allocation2] sm:$0xff]  ;;  %v18573_v16 = vld [vmem:[%s19296_s25 + $0xfec] ss:$16 sps:$4 sm:$0xff]  }
 0x815   : > { %14935 = vmatpush1.bf16.msra.mxu1 %v18523_v46  ;;  %v14625_v23 = vadd.f32 %v14624_v4, %v14582_v32  ;;  %14966 = vmatprep.mubr.bf16.mxu1 %v21686_v19  ;;  %v14584_v26 = vadd.f32 %v14583_v11, %v14541_v43  ;;  %v18565_v46 = vld [vmem:[%s19296_s25 + $0xe08] ss:$16 sps:$4 sm:$0xff]   ;;  %v18576_v5 = vld [vmem:[%s19296_s25 + $0xdcc] ss:$16 sps:$4 sm:$0xff]  }
 0x816   : > { %v14626_v35 = vpop.f32.mrf.mxu1  ;;  %v14585_v27 = vpop.f32.mrf.mxu0  ;;  %14936 = vmatprep.subr.bf16.mxu1 %v18531_v38  ;;  %v18579_v61 = vld [vmem:[%s19296_s25 + $0xfcc] ss:$16 sps:$4 sm:$0xff]   ;;  %v18574_v38 = vld [vmem:[%s19296_s25 + $0xdc8] ss:$16 sps:$4 sm:$0xff]  }
 0x817   : > { %v14977_v36 = vadd.f32 %v14625_v23, %v11193_v53  ;;  %v14627_v39 = vadd.f32 %v14626_v35, %v14584_v26  ;;  %v14586_v12 = vadd.f32 %v14585_v27, %v14543_v14  ;;  %14894 = vmatpush1.bf16.msra.mxu0 %v18526_v45  ;;  %v18577_v43 = vld [vmem:[%s19296_s25 + $0xfc8] ss:$16 sps:$4 sm:$0xff]   ;;  %v18585_v32 = vld [vmem:[%s19296_s25 + $0xfac] ss:$16 sps:$4 sm:$0xff]  }
 0x818   : > { %v14628_v24 = vpop.f32.mrf.mxu1  ;;  %v14587_v19 = vpop.f32.mrf.mxu0  ;;  %14895 = vmatprep.subr.bf16.mxu0 %v18534_v40  ;;  %v18580_v4 = vld [vmem:[%s19296_s25 + $0xda8] ss:$16 sps:$4 sm:$0xff]   ;;  %v18588_v53 = vld [vmem:[%s19296_s25 + $0xd8c] ss:$16 sps:$4 sm:$0xff]  }
 0x819   : > { %14937 = vmatpush1.bf16.msra.mxu1 %v18529_v18  ;;  %14985 = vst [vmem:[#allocation2 + $0x30] sm:$0xff] %v14977_v36  ;;  %v14978_v17 = vadd.f32 %v14627_v39, %v11194_v56  ;;  %v14629_v58 = vadd.f32 %v14628_v24, %v14586_v12  ;;  %v14588_v62 = vadd.f32 %v14587_v19, %v14545_v31  ;;  %v18583_v45 = vld [vmem:[%s19296_s25 + $0xfa8] ss:$16 sps:$4 sm:$0xff]   ;;  %v18591_v11 = vld [vmem:[%s19296_s25 + $0xf8c] ss:$16 sps:$4 sm:$0xff]  }
 0x81a   : > { %14938 = vmatprep.subr.bf16.mxu1 %v18537_v52  ;;  %v14630_v25 = vpop.f32.mrf.mxu1  ;;  %v18586_v18 = vld [vmem:[%s19296_s25 + $0xd88] ss:$16 sps:$4 sm:$0xff]   ;;  %v18594_v14 = vld [vmem:[%s19296_s25 + $0xd6c] ss:$16 sps:$4 sm:$0xff]  }
 0x81b   : > { %14986 = vst [vmem:[#allocation2] sm:$0xff] %v14978_v17  ;;  %v14981_v3 = vadd.f32 %v14629_v58, %v11197_v1  ;;  %v14631_v7 = vadd.f32 %v14630_v25, %v14588_v62  ;;  %14896 = vmatpush1.bf16.msra.mxu0 %v18532_v2  ;;  %v18589_v40 = vld [vmem:[%s19296_s25 + $0xf88] ss:$16 sps:$4 sm:$0xff]   ;;  %v18597_v23 = vld [vmem:[%s19296_s25 + $0xf6c] ss:$16 sps:$4 sm:$0xff]  }
 0x81c   : > { %14897 = vmatprep.subr.bf16.mxu0 %v18540_v28  ;;  %v18592_v26 = vld [vmem:[%s19296_s25 + $0xd68] ss:$16 sps:$4 sm:$0xff]   ;;  %v18600_v52 = vld [vmem:[%s19296_s25 + $0xd4c] ss:$16 sps:$4 sm:$0xff]  }
 0x81d   : > { %14939 = vmatpush1.bf16.msra.mxu1 %v18535_v0  ;;  %14989 = vst [vmem:[#allocation2 + $0x8] sm:$0xff] %v14981_v3  ;;  %v14982_v30 = vadd.f32 %v14631_v7, %v11198_v63  ;;  %v18595_v35 = vld [vmem:[%s19296_s25 + $0xf68] ss:$16 sps:$4 sm:$0xff]   ;;  %v18603_v56 = vld [vmem:[%s19296_s25 + $0xf4c] ss:$16 sps:$4 sm:$0xff]  }
 0x81e   : > { %14940 = vmatprep.subr.bf16.mxu1 %v18543_v9  ;;  %v18598_v27 = vld [vmem:[%s19296_s25 + $0xd48] ss:$16 sps:$4 sm:$0xff]   ;;  %v18606_v36 = vld [vmem:[%s19296_s25 + $0xd2c] ss:$16 sps:$4 sm:$0xff]  }
 0x81f   : > { %14990 = vst [vmem:[#allocation2 + $0x20] sm:$0xff] %v14982_v30  ;;  %14898 = vmatpush1.bf16.msra.mxu0 %v18538_v22  ;;  %v18601_v31 = vld [vmem:[%s19296_s25 + $0xf48] ss:$16 sps:$4 sm:$0xff]   ;;  %v18609_v39 = vld [vmem:[%s19296_s25 + $0xf2c] ss:$16 sps:$4 sm:$0xff]  }
 0x820   : > { %14899 = vmatprep.subr.bf16.mxu0 %v18546_v21  ;;  %v18604_v12 = vld [vmem:[%s19296_s25 + $0xd28] ss:$16 sps:$4 sm:$0xff]   ;;  %v18612_v2 = vld [vmem:[%s19296_s25 + $0xd0c] ss:$16 sps:$4 sm:$0xff]  }
 0x821   : > { %14941 = vmatpush1.bf16.msra.mxu1 %v18541_v47  ;;  %v18607_v24 = vld [vmem:[%s19296_s25 + $0xf28] ss:$16 sps:$4 sm:$0xff]   ;;  %v18615_v1 = vld [vmem:[%s19296_s25 + $0xf0c] ss:$16 sps:$4 sm:$0xff]  }
 0x822   : > { %14942 = vmatprep.subr.bf16.mxu1 %v18549_v8  ;;  %v18610_v19 = vld [vmem:[%s19296_s25 + $0xd08] ss:$16 sps:$4 sm:$0xff]  }
 0x823   : > { %14900 = vmatpush1.bf16.msra.mxu0 %v18544_v48  ;;  %v18613_v0 = vld [vmem:[%s19296_s25 + $0xf08] ss:$16 sps:$4 sm:$0xff]  }
 0x824   : > { %14901 = vmatprep.subr.bf16.mxu0 %v18552_v55 }
 0x825   : > { %14943 = vmatpush1.bf16.msra.mxu1 %v18547_v50 }
 0x826   : > { %14944 = vmatprep.subr.bf16.mxu1 %v18555_v34 }
 0x827   : > { %14902 = vmatpush1.bf16.msra.mxu0 %v18550_v15 }
 0x828   : > { %14903 = vmatprep.subr.bf16.mxu0 %v18558_v54 }
 0x829   : > { %14945 = vmatpush1.bf16.msra.mxu1 %v18553_v13 }
 0x82a   : > { %14946 = vmatprep.subr.bf16.mxu1 %v18561_v44 }
 0x82b   : > { %14904 = vmatpush1.bf16.msra.mxu0 %v18556_v41 }
 0x82c   : > { %14905 = vmatprep.subr.bf16.mxu0 %v18564_v42 }
 0x82d   : > { %14947 = vmatpush1.bf16.msra.mxu1 %v18559_v33 }
 0x82e   : > { %14948 = vmatprep.subr.bf16.mxu1 %v18567_v37 }
 0x82f   : > { %14906 = vmatpush1.bf16.msra.mxu0 %v18562_v49 }
 0x830   : > { %14907 = vmatprep.subr.bf16.mxu0 %v18570_v6 }
 0x831   : > { %14949 = vmatpush1.bf16.msra.mxu1 %v18565_v46 }
 0x832   : > { %14950 = vmatprep.subr.bf16.mxu1 %v18573_v16 }
 0x833   : > { %14908 = vmatpush2.bf16.msra.mxu0 %v18568_v20 }
 0x834   : > { %14909 = vmatprep.subr.bf16.mxu0 %v18576_v5 }
 0x835   : > { %14951 = vmatpush2.bf16.msra.mxu1 %v18571_v60 }
 0x836   : > { %14952 = vmatprep.subr.bf16.mxu1 %v18579_v61 }
 0x837   : > { %14910 = vmatpush2.bf16.msra.mxu0 %v18574_v38 }
 0x838   : > { %14911 = vmatprep.subr.bf16.mxu0 %v18582_v10 }
 0x839   : > { %14953 = vmatpush2.bf16.msra.mxu1 %v18577_v43 }
 0x83a   : > { %14954 = vmatprep.subr.bf16.mxu1 %v18585_v32 }
 0x83b   : > { %14912 = vmatpush2.bf16.msra.mxu0 %v18580_v4 }
 0x83c   : > { %14913 = vmatprep.subr.bf16.mxu0 %v18588_v53 }
 0x83d   : > { %14955 = vmatpush2.bf16.msra.mxu1 %v18583_v45 }
 0x83e   : > { %14956 = vmatprep.subr.bf16.mxu1 %v18591_v11 }
 0x83f   : > { %14914 = vmatpush2.bf16.msra.mxu0 %v18586_v18 }
 0x840   : > { %14915 = vmatprep.subr.bf16.mxu0 %v18594_v14 }
 0x841   : > { %14957 = vmatpush2.bf16.msra.mxu1 %v18589_v40  ;;  %v11195_v40 = vld [vmem:[#allocation2 + $0x18] sm:$0xff] }
 0x842   : > { %14958 = vmatprep.subr.bf16.mxu1 %v18597_v23 }
 0x843   : > { %14916 = vmatpush2.bf16.msra.mxu0 %v18592_v26 }
 0x844   : > { %14917 = vmatprep.subr.bf16.mxu0 %v18600_v52 }
 0x845   : > { %14959 = vmatpush2.bf16.msra.mxu1 %v18595_v35 }
 0x846   : > { %14960 = vmatprep.subr.bf16.mxu1 %v18603_v56  ;;  %v11196_v56 = vld [vmem:[#allocation2 + $0x10] sm:$0xff] }
 0x847   : > { %14918 = vmatpush2.bf16.msra.mxu0 %v18598_v27 }
 0x848   : > { %14919 = vmatprep.subr.bf16.mxu0 %v18606_v36 }
 0x849   : > { %14961 = vmatpush2.bf16.msra.mxu1 %v18601_v31 }
 0x84a   : > { %14962 = vmatprep.subr.bf16.mxu1 %v18609_v39 }
 0x84b   : > { %14920 = vmatpush2.bf16.msra.mxu0 %v18604_v12 }
 0x84c   : > { %14921 = vmatprep.subr.bf16.mxu0 %v18612_v2  ;;  %v11199_v2 = vld [vmem:[#allocation2 + $0x28] sm:$0xff] }
 0x84d   : > { %14963 = vmatpush2.bf16.msra.mxu1 %v18607_v24 }
 0x84e   : > { %14964 = vmatprep.subr.bf16.mxu1 %v18615_v1 }
 0x84f   : > { %14922 = vmatpush2.bf16.msra.mxu0 %v18610_v19 }
 0x851   : > { %14965 = vmatpush2.bf16.msra.mxu1 %v18613_v0 }
 0x852   : > { %14924 = vmatmul.mubr.bf16.vlgmr.msra.gmra.mxu0 %v21399_v59  ;;  %v14667_v28 = vpop.f32.mrf.mxu0 }
 0x854   : > { %14967 = vmatmul.mubr.bf16.vlgmr.msra.gmra.mxu1 %v21753_v57  ;;  %v14710_v17 = vpop.f32.mrf.mxu1  ;;  %v14669_v58 = vpop.f32.mrf.mxu0 }
 0x855   : > { %v14711_v59 = vadd.f32 %v14710_v17, %v14667_v28  ;;  %v11200_v17 = vld [vmem:[#allocation2 + $0x38] sm:$0xff] }
 0x856   : > { %v14712_v62 = vpop.f32.mrf.mxu1  ;;  %v14671_v9 = vpop.f32.mrf.mxu0 }
 0x857   : > { %v14713_v57 = vadd.f32 %v14712_v62, %v14669_v58 }
 0x858   : > { %v14714_v63 = vpop.f32.mrf.mxu1  ;;  %v14673_v25 = vpop.f32.mrf.mxu0 }
 0x859   : > { %v14715_v54 = vadd.f32 %v14714_v63, %v14671_v9 }
 0x85a   : > { %v14716_v3 = vpop.f32.mrf.mxu1 }
 0x85b   : > { %v14717_v33 = vadd.f32 %v14716_v3, %v14673_v25 }
 0x892   : > { %v14753_v7 = vpop.f32.mrf.mxu0 }
 0x893   : > { %v14754_v15 = vadd.f32 %v14753_v7, %v14711_v59 }
 0x894   : > { %v14796_v22 = vpop.f32.mrf.mxu1  ;;  %v14755_v47 = vpop.f32.mrf.mxu0 }
 0x895   : > { %v14756_v44 = vadd.f32 %v14755_v47, %v14713_v57  ;;  %v14797_v42 = vadd.f32 %v14796_v22, %v14754_v15 }
 0x896   : > { %v14798_v21 = vpop.f32.mrf.mxu1  ;;  %v14757_v30 = vpop.f32.mrf.mxu0 }
 0x897   : > { %v14758_v37 = vadd.f32 %v14757_v30, %v14715_v54  ;;  %v14799_v46 = vadd.f32 %v14798_v21, %v14756_v44 }
 0x898   : > { %v14800_v8 = vpop.f32.mrf.mxu1  ;;  %v14759_v48 = vpop.f32.mrf.mxu0 }
 0x899   : > { %v14760_v6 = vadd.f32 %v14759_v48, %v14717_v33  ;;  %v14801_v60 = vadd.f32 %v14800_v8, %v14758_v37 }
 0x89a   : > { %v14802_v50 = vpop.f32.mrf.mxu1 }
 0x89b   : > { %v14803_v38 = vadd.f32 %v14802_v50, %v14760_v6 }
 0x8d2   : > { %v14839_v55 = vpop.f32.mrf.mxu0 }
 0x8d3   : > { %v14840_v16 = vadd.f32 %v14839_v55, %v14797_v42 }
 0x8d4   : > { %v14882_v34 = vpop.f32.mrf.mxu1  ;;  %v14841_v13 = vpop.f32.mrf.mxu0 }
 0x8d5   : > { %v14842_v5 = vadd.f32 %v14841_v13, %v14799_v46  ;;  %v14883_v43 = vadd.f32 %v14882_v34, %v14840_v16 }
 0x8d6   : > { %v14884_v41 = vpop.f32.mrf.mxu1  ;;  %v14843_v49 = vpop.f32.mrf.mxu0 }
 0x8d7   : > { %v14844_v10 = vadd.f32 %v14843_v49, %v14801_v60  ;;  %v14885_v45 = vadd.f32 %v14884_v41, %v14842_v5 }
 0x8d8   : > { %v14886_v20 = vpop.f32.mrf.mxu1  ;;  %v14845_v61 = vpop.f32.mrf.mxu0 }
 0x8d9   : > { %v14846_v53 = vadd.f32 %v14845_v61, %v14803_v38  ;;  %v14887_v23 = vadd.f32 %v14886_v20, %v14844_v10 }
 0x8da   : > { %v14888_v32 = vpop.f32.mrf.mxu1 }
 0x8db   : > { %v14889_v31 = vadd.f32 %v14888_v32, %v14846_v53 }
 0x912   : > { %v14925_v4 = vpop.f32.mrf.mxu0 }
 0x913   : > { %v14926_v11 = vadd.f32 %v14925_v4, %v14883_v43 }
 0x914   : > { %v14968_v18 = vpop.f32.mrf.mxu1  ;;  %v14927_v14 = vpop.f32.mrf.mxu0 }
 0x915   : > { %v14969_v26 = vadd.f32 %v14968_v18, %v14926_v11  ;;  %v14928_v35 = vadd.f32 %v14927_v14, %v14885_v45 }
 0x916   : > { %v14970_v52 = vpop.f32.mrf.mxu1  ;;  %v14929_v27 = vpop.f32.mrf.mxu0 }
 0x917   : > { %v14979_v36 = vadd.f32 %v14969_v26, %v11195_v40  ;;  %v14971_v39 = vadd.f32 %v14970_v52, %v14928_v35  ;;  %v14930_v12 = vadd.f32 %v14929_v27, %v14887_v23 }
 0x918   : > { %v14972_v24 = vpop.f32.mrf.mxu1  ;;  %v14931_v1 = vpop.f32.mrf.mxu0 }
 0x919   : > { %14987 = vst [vmem:[#allocation2 + $0x18] sm:$0xff] %v14979_v36  ;;  %v14980_v19 = vadd.f32 %v14971_v39, %v11196_v56  ;;  %v14973_v0 = vadd.f32 %v14972_v24, %v14930_v12  ;;  %v14932_v28 = vadd.f32 %v14931_v1, %v14889_v31 }
 0x91a   : > { %v14974_v58 = vpop.f32.mrf.mxu1 }
 0x91b   : > { %14988 = vst [vmem:[#allocation2 + $0x10] sm:$0xff] %v14980_v19  ;;  %v14983_v62 = vadd.f32 %v14973_v0, %v11199_v2  ;;  %v14975_v9 = vadd.f32 %v14974_v58, %v14932_v28  ;;  %14996 = sbr.rel (%p17598_p9) target bundleno = 2781 (0xadd), region = 96 }
 0x91d   : > { %14991 = vst [vmem:[#allocation2 + $0x28] sm:$0xff] %v14983_v62  ;;  %v14984_v63 = vadd.f32 %v14975_v9, %v11200_v17 }
 0x91f   : > { %14992 = vst [vmem:[#allocation2 + $0x38] sm:$0xff] %v14984_v63 }
 0x920   : > { %v18700_v25 = vld [vmem:[#allocation10 + $0x78] sm:$0xff]   ;;  %v18704_v47 = vld [vmem:[#allocation10 + $0x70] sm:$0xff]   ;;  %v18708_v48 = vld [vmem:[#allocation10 + $0x68] sm:$0xff]   ;;  %v19022_v31 = vmov 0.0   ;;  %vm19023_vm0 = vmmov 0  }
 0x921   : > { %v18701_v3 = vld [vmem:[#allocation10 + $0xf8] sm:$0xff]   ;;  %17647 = vmatprep.subr.bf16.mxu0 %v18700_v25  ;;  %v18705_v21 = vld [vmem:[#allocation10 + $0xf0] sm:$0xff]   ;;  %v18709_v50 = vld [vmem:[#allocation10 + $0xe8] sm:$0xff]  }
 0x922   : > { %v18702_v7 = vld [vmem:[#allocation10 + $0x38] sm:$0xff]   ;;  %17669 = vmatprep.subr.bf16.mxu1 %v18701_v3  ;;  %v18706_v30 = vld [vmem:[#allocation10 + $0x30] sm:$0xff]   ;;  %v18710_v55 = vld [vmem:[#allocation10 + $0x28] sm:$0xff]  }
 0x923   : > { %v18703_v22 = vld [vmem:[#allocation10 + $0xb8] sm:$0xff]   ;;  %17648 = vmatpush3.bf16.msra.mxu0 %v18702_v7  ;;  %v18707_v8 = vld [vmem:[#allocation10 + $0xb0] sm:$0xff]   ;;  %v18711_v59 = vld [vmem:[#allocation10 + $0xa8] sm:$0xff]  }
 0x924   : > { %17670 = vmatpush3.bf16.msra.mxu1 %v18703_v22  ;;  %17649 = vmatprep.subr.bf16.mxu0 %v18704_v47  ;;  %v18712_v34 = vld [vmem:[#allocation10 + $0x60] sm:$0xff]   ;;  %v18716_v54 = vld [vmem:[#allocation10 + $0x58] sm:$0xff]   ;;  %v18720_v42 = vld [vmem:[#allocation10 + $0x50] sm:$0xff]  }
 0x925   : > { %17671 = vmatprep.subr.bf16.mxu1 %v18705_v21  ;;  %v18713_v57 = vld [vmem:[#allocation10 + $0xe0] sm:$0xff]   ;;  %v18717_v44 = vld [vmem:[#allocation10 + $0xd8] sm:$0xff]   ;;  %v18721_v37 = vld [vmem:[#allocation10 + $0xd0] sm:$0xff]  }
 0x926   : > { %v18714_v15 = vld [vmem:[#allocation10 + $0x20] sm:$0xff]   ;;  %v18718_v41 = vld [vmem:[#allocation10 + $0x18] sm:$0xff]   ;;  %v18722_v49 = vld [vmem:[#allocation10 + $0x10] sm:$0xff]  }
 0x927   : > { %17650 = vmatpush3.bf16.msra.mxu0 %v18706_v30  ;;  %v18715_v13 = vld [vmem:[#allocation10 + $0xa0] sm:$0xff]   ;;  %v18719_v33 = vld [vmem:[#allocation10 + $0x98] sm:$0xff]   ;;  %v18723_v46 = vld [vmem:[#allocation10 + $0x90] sm:$0xff]  }
 0x928   : > { %17672 = vmatpush3.bf16.msra.mxu1 %v18707_v8  ;;  %17651 = vmatprep.subr.bf16.mxu0 %v18708_v48  ;;  %v18724_v6 = vld [vmem:[#allocation10 + $0x48] sm:$0xff]   ;;  %v18728_v5 = vld [vmem:[#allocation10 + $0x40] sm:$0xff]   ;;  %v15005_v4 = vld [vmem:[#allocation8] sm:$0xf] }
 0x929   : > { %17673 = vmatprep.subr.bf16.mxu1 %v18709_v50  ;;  %v18725_v16 = vld [vmem:[#allocation10 + $0xc8] sm:$0xff]   ;;  %v18729_v61 = vld [vmem:[#allocation10 + $0xc0] sm:$0xff]   ;;  %v15014_v45 = vrot.slane %v15005_v4, %v21251_v29  ;;  %v15004_v11 = vld [vmem:[#allocation2 + $0x38] sm:$0xff]  ;;  %v15022_v18 = vrot.slane %v15005_v4, %v21272_v51 }
 0x92a   : > { %v18726_v20 = vld [vmem:[#allocation10 + $0x8] sm:$0xff]   ;;  %v18730_v38 = vld [vmem:[#allocation10] sm:$0xff]   ;;  %v22234_v26 = vld [vmem:[#allocation26_spill] sm:$0xff] }
 0x92b   : > { %17652 = vmatpush3.bf16.msra.mxu0 %v18710_v55  ;;  %v18727_v60 = vld [vmem:[#allocation10 + $0x88] sm:$0xff]   ;;  %v18731_v43 = vld [vmem:[#allocation10 + $0x80] sm:$0xff]   ;;  %v15018_v35 = vrot.slane %v15005_v4, %v22234_v26  ;;  %v14999_v56 = vld [vmem:[#allocation2 + $0x18] sm:$0xff]  ;;  %v15034_v24 = vadd.f32 %v15022_v18, %v15004_v11 }
 0x92c   : > { %17674 = vmatpush3.bf16.msra.mxu1 %v18711_v59  ;;  %17653 = vmatprep.subr.bf16.mxu0 %v18712_v34  ;;  %v14998_v10 = vld [vmem:[#allocation2] sm:$0xff]  ;;  %v15000_v53 = vld [vmem:[#allocation2 + $0x10] sm:$0xff]  ;;  %v22233_v14 = vld [vmem:[#allocation24_spill] sm:$0xff] }
 0x92d   : > { %17675 = vmatprep.subr.bf16.mxu1 %v18713_v57  ;;  %v15002_v32 = vld [vmem:[#allocation2 + $0x20] sm:$0xff]  ;;  %v14997_v40 = vld [vmem:[#allocation2 + $0x30] sm:$0xff]  ;;  %v15010_v23 = vrot.slane %v15005_v4, %v22233_v14  ;;  %v15001_v52 = vld [vmem:[#allocation2 + $0x8] sm:$0xff]  ;;  %v15028_v36 = vadd.f32 %v15014_v45, %v14998_v10  ;;  %v15030_v12 = vadd.f32 %v15022_v18, %v15000_v53  ;;  %v15029_v1 = vadd.f32 %v15018_v35, %v14999_v56 }
 0x92e   : > { %v15003_v27 = vld [vmem:[#allocation2 + $0x28] sm:$0xff]  ;;  %v15032_v39 = vadd.f32 %v15014_v45, %v15002_v32  ;;  %v15042_v17 = vmax.f32 %v15034_v24, 0.0  ;;  %v18732_v7 = vld [vmem:[#allocation13 + $0x38] sm:$0xff]   ;;  %v18733_v21 = vld [vmem:[#allocation13 + $0x30] sm:$0xff]  }
 0x92f   : > { %17654 = vmatpush3.bf16.msra.mxu0 %v18714_v15  ;;  %v15027_v2 = vadd.f32 %v15010_v23, %v14997_v40  ;;  %v15031_v29 = vadd.f32 %v15010_v23, %v15001_v52  ;;  %v15033_v19 = vadd.f32 %v15018_v35, %v15003_v27  ;;  %v15036_v0 = vmax.f32 %v15028_v36, 0.0  ;;  %v18734_v30 = vld [vmem:[#allocation13 + $0x28] sm:$0xff]   ;;  %v18735_v8 = vld [vmem:[#allocation13 + $0x20] sm:$0xff]   ;;  %v18736_v48 = vld [vmem:[#allocation13 + $0x18] sm:$0xff]  }
 0x930   : > { %17676 = vmatpush3.bf16.msra.mxu1 %v18715_v13  ;;  %17655 = vmatprep.subr.bf16.mxu0 %v18716_v54  ;;  %v15040_v51 = vmax.f32 %v15032_v39, 0.0  ;;  %v15038_v28 = vmax.f32 %v15030_v12, 0.0  ;;  %v15037_v9 = vmax.f32 %v15029_v1, 0.0  ;;  %v18737_v50 = vld [vmem:[#allocation13 + $0x10] sm:$0xff]   ;;  %v18738_v55 = vld [vmem:[#allocation13 + $0x8] sm:$0xff]   ;;  %v18739_v59 = vld [vmem:[#allocation13] sm:$0xff]  }
 0x931   : > { %17677 = vmatprep.subr.bf16.mxu1 %v18717_v44  ;;  %v15035_v58 = vmax.f32 %v15027_v2, 0.0  ;;  %v15039_v62 = vmax.f32 %v15031_v29, 0.0  ;;  %v15041_v63 = vmax.f32 %v15033_v19, 0.0  ;;  %v17599_v15 = vld [vmem:[#allocation11] ss:$0 sm:$0xff] }
 0x932   : > { %v15044_v25 = vpack.c.bf16 %v15040_v51, %v15036_v0  ;;  %v15046_v3 = vpack.c.bf16 %v15042_v17, %v15038_v28  ;;  %v17632_v10 = vld [vmem:[#allocation14] ss:$0 sm:$0xff] }
 0x933   : > { %17656 = vmatpush3.bf16.msra.mxu0 %v18718_v41  ;;  %v15043_v22 = vpack.c.bf16 %v15039_v62, %v15035_v58  ;;  %v15045_v47 = vpack.c.bf16 %v15041_v63, %v15037_v9 }
 0x934   : > { %17678 = vmatpush3.bf16.msra.mxu1 %v18719_v33  ;;  %17657 = vmatprep.subr.bf16.mxu0 %v18720_v42 }
 0x935   : > { %17679 = vmatprep.subr.bf16.mxu1 %v18721_v37  ;;  %15342 = vmatprep.mubr.bf16.mxu0 %v15044_v25 }
 0x936   : > { %15383 = vmatprep.mubr.bf16.mxu1 %v15046_v3 }
 0x937   : > { %17658 = vmatpush3.bf16.msra.mxu0 %v18722_v49 }
 0x938   : > { %17680 = vmatpush3.bf16.msra.mxu1 %v18723_v46  ;;  %17659 = vmatprep.subr.bf16.mxu0 %v18724_v6 }
 0x939   : > { %17681 = vmatprep.subr.bf16.mxu1 %v18725_v16 }
 0x93b   : > { %17660 = vmatpush3.bf16.msra.mxu0 %v18726_v20 }
 0x93c   : > { %17682 = vmatpush3.bf16.msra.mxu1 %v18727_v60  ;;  %17661 = vmatprep.subr.bf16.mxu0 %v18728_v5 }
 0x93d   : > { %17683 = vmatprep.subr.bf16.mxu1 %v18729_v61 }
 0x93f   : > { %17662 = vmatpush3.bf16.msra.mxu0 %v18730_v38 }
 0x940   : > { %17684 = vmatpush3.bf16.msra.mxu1 %v18731_v43  ;;  %17700 = vmatprep.subr.bf16.mxu0 %v19022_v31 }
 0x942   : > { %15343 = vmatmul.mubr.bf16.vlgmr.msra.gmra.mxu0 %v15043_v22 }
 0x943   : > { %15384 = vmatmul.mubr.bf16.vlgmr.msra.gmra.mxu1 %v15045_v47  ;;  %17701 = vmatpush3.bf16.msra.mxu0 %v18732_v7 }
 0x944   : > { %17702 = vmatprep.subr.bf16.mxu0 %v19022_v31  ;;  %17716 = vmatprep.mubr.msk.bf16.mxu0 %vm19023_vm0, %v19022_v31 }
 0x947   : > { %17703 = vmatpush3.bf16.msra.mxu0 %v18733_v21 }
 0x948   : > { %17704 = vmatprep.subr.bf16.mxu0 %v19022_v31 }
 0x94b   : > { %17705 = vmatpush3.bf16.msra.mxu0 %v18734_v30 }
 0x94c   : > { %17706 = vmatprep.subr.bf16.mxu0 %v19022_v31 }
 0x94f   : > { %17707 = vmatpush3.bf16.msra.mxu0 %v18735_v8 }
 0x950   : > { %17708 = vmatprep.subr.bf16.mxu0 %v19022_v31 }
 0x953   : > { %17709 = vmatpush3.bf16.msra.mxu0 %v18736_v48 }
 0x954   : > { %17710 = vmatprep.subr.bf16.mxu0 %v19022_v31 }
 0x957   : > { %17711 = vmatpush3.bf16.msra.mxu0 %v18737_v50 }
 0x958   : > { %17712 = vmatprep.subr.bf16.mxu0 %v19022_v31 }
 0x95b   : > { %17713 = vmatpush3.bf16.msra.mxu0 %v18738_v55 }
 0x95c   : > { %17714 = vmatprep.subr.bf16.mxu0 %v19022_v31 }
 0x95f   : > { %17715 = vmatpush3.bf16.msra.mxu0 %v18739_v59 }
 0xa02   : > { %v17663_v34 = vpop.f32.mrf.mxu0 }
 0xa03   : > { %v17685_v57 = vpop.f32.mrf.mxu1 }
 0xa04   : > { %v17664_v13 = vpop.f32.mrf.mxu0 }
 0xa05   : > { %v17686_v54 = vpop.f32.mrf.mxu1  ;;  %v17665_v44 = vadd.f32 %v17664_v13, %v17663_v34 }
 0xa06   : > { %v17666_v41 = vpop.f32.mrf.mxu0  ;;  %v17687_v46 = vadd.f32 %v17686_v54, %v17685_v57 }
 0xa07   : > { %v17688_v33 = vpop.f32.mrf.mxu1  ;;  %v15345_v42 = vadd.f32 %v17665_v44, %v17599_v15 }
 0xa08   : > { %v17667_v37 = vpop.f32.mrf.mxu0 }
 0xa09   : > { %v17689_v49 = vpop.f32.mrf.mxu1  ;;  %v17668_v6 = vadd.f32 %v17667_v37, %v17666_v41  ;;  %v15386_v16 = vadd.f32 %v17687_v46, %v15345_v42 }
 0xa0a   : > { %v17690_v60 = vadd.f32 %v17689_v49, %v17688_v33 }
 0xa0b   : > { %v15348_v20 = vadd.f32 %v17668_v6, %v17599_v15  ;;  %v15392_v61 = vmax.f32 %v15386_v16, 0.0 }
 0xa0d   : > { %v15389_v5 = vadd.f32 %v17690_v60, %v15348_v20 }
 0xa0f   : > { %v15393_v38 = vmax.f32 %v15389_v5, 0.0 }
 0xa11   : > { %v15394_v43 = vpack.c.bf16 %v15393_v38, %v15392_v61 }
 0xa13   : > { %17717 = vmatmul.mubr.bf16.vlgmr.msra.gmra.mxu0 %v15394_v43 }
 0xad3   : > { %v15500_v32 = vpop.f32.mrf.mxu0 }
 0xad4   : > { %v15501_v4 = vadd.f32 %v17632_v10, %v15500_v32 }
 0xad5   : > { %v17718_v45 = vpop.f32.mrf.mxu0 }
 0xad6   : > { %v15507_v53 = vmax.f32 %v15501_v4, 0.0 }
 0xad7   : > { %v15503_v11 = vpop.f32.mrf.mxu0 }
 0xad8   : > { %15509 = vst [vmem:[%s22079_s9] sm:$0xff] %v15507_v53  ;;  %v15504_v18 = vadd.f32 %v17632_v10, %v15503_v11 }
 0xad9   : > { %v17719_v40 = vpop.f32.mrf.mxu0 }
 0xada   : > { %v15508_v14 = vmax.f32 %v15504_v18, 0.0 }
 0xadc   : > { %15510 = vst [vmem:[%s22079_s9 + $0x8] sm:$0xff] %v15508_v14 }
 0xadd PF: > { %s22235_s12 = sld [smem:[#allocation22_spill]]  ;;  %s22238_s30 = smov %s18996_s10 }
 0xade   : > { %s22236_s11 = sld [smem:[#allocation21_spill]] }
 0xadf   : > { %s22237_s23 = sld [smem:[#allocation23_spill]] }
 0xae3   : > { %p25_p3 = scmp.ge.s32.totalorder %s22235_s12, 4  }
 0xae4   : > { %s22239_s10 = smov %s22236_s11 }
 0xae5   : > { %s22240_s11 = smov %s22237_s23  ;;  %27 = sbr.rel (!%p25_p3) target bundleno = 11 (0xb), region = 144 }
 0xaea   :  { %15522 = vsyncpa [#allocation4], 1 }
 0xaeb   :  { %15524 = vsyncpa [#allocation4 + $0x1], 1 }
 0xaec   :  { %15525 = vsyncpa [#allocation6], 1 }
 0xaed   :  { %15527 = vsyncpa [#allocation6 + $0x1], 1 }
 0xaee   :  { %15528 = vsyncpa [#allocation9], 1 }
 0xaef   :  { %15529 = vsyncpa [#allocation12], 1 }
 0xaf0   :  { %15530 = vsyncpa [#allocation15], 1 }

</bundles_post_ra>
